<compile_context>
chip_gen: v6e
topology: v6e:2x2x1
jax: 0.10.0
libtpu: 0.0.40
codegen_flags: <defaults>
</compile_context>

<pallas_src>
import numpy as np
import jax
import jax.numpy as jnp
from jax.experimental import pallas as pl
from jax.experimental.pallas import tpu as pltpu

EPS = 1e-5     # BatchNorm2d default eps
SLOPE = 0.2    # LeakyReLU negative slope


def _conv_out(size, k, s, p):
    return (size + 2 * p - k) // s + 1


# ------------------------- one-time parameter packing -------------------------------
def _make_selection(n, h, w, kh, kw, sh, sw, ph, pw):
    """0/1 row-selection matrices implementing im2col (incl. zero padding).

    sel has shape (kh*kw, N*Ho*Wo, N*H*W).  sel[t, q, p] = 1 iff input row p feeds output
    pixel q at kernel tap t = di*kw + dj (all-zero row => spatial zero padding).
    """
    ho, wo = _conv_out(h, kh, sh, ph), _conv_out(w, kw, sw, pw)
    sel = np.zeros((kh * kw, n * ho * wo, n * h * w), np.float32)
    for b in range(n):
        for i in range(ho):
            for j in range(wo):
                q = (b * ho + i) * wo + j
                for di in range(kh):
                    for dj in range(kw):
                        r = sh * i + di - ph
                        c = sw * j + dj - pw
                        if 0 <= r < h and 0 <= c < w:
                            sel[di * kw + dj, q, (b * h + r) * w + c] = 1.0
    return sel, ho, wo


def _pack_taps(wt):
    """(Cout, Cin, kh, kw) -> (kh*kw*Cin, Cout) bf16, rows ordered (tap, cin)."""
    cout, cin, kh, kw = wt.shape
    return jnp.transpose(wt, (2, 3, 1, 0)).reshape(kh * kw * cin, cout).astype(jnp.bfloat16)


def _stack_sel(sel):
    """(taps, P_out, P_in) f32 -> (taps*P_out, P_in) bf16, tap-major rows."""
    t, po, pi = sel.shape
    return jnp.asarray(sel.reshape(t * po, pi), jnp.bfloat16)


def prepare_params(p, n, h, w, w4_chunks=4):
    """Pack PyTorch-layout params into kernel-ready operands (runs once, off hot path)."""
    bf16, f32 = jnp.bfloat16, jnp.float32
    ho1, wo1 = _conv_out(h, 3, 3, 1), _conv_out(w, 3, 2, 2)        # after conv1
    s2, ho2, wo2 = _make_selection(n, ho1, wo1, 3, 3, 2, 2, 1, 1)  # conv2
    s3, ho3, wo3 = _make_selection(n, ho2, wo2, 3, 3, 1, 1, 0, 0)  # conv3
    s4, ho4, wo4 = _make_selection(n, ho3, wo3, 4, 2, 1, 1, 0, 0)  # conv4
    assert (ho4, wo4) == (1, 1), "unexpected conv4 output spatial size"
    w4m = _pack_taps(p["w4"])                                      # (8*256, 512)
    assert w4m.shape[0] % w4_chunks == 0
    w4m = w4m.reshape(w4_chunks, w4m.shape[0] // w4_chunks, w4m.shape[1])
    return {
        "w1m": p["w1"].reshape(64, 9).T.astype(bf16),              # (9, 64)
        "w2m": _pack_taps(p["w2"]),                                 # (576, 128)
        "w3m": _pack_taps(p["w3"]),                                 # (1152, 256)
        "w4m": w4m,                                                 # (4, 512, 512) K-chunks
        "s2": _stack_sel(s2),                                       # (9*P2, P1)
        "s3": _stack_sel(s3),                                       # (9*P3, P2)
        "s4": _stack_sel(s4),                                       # (8*N,  P3)
        "g1": p["g1"].reshape(1, -1).astype(f32),
        "b1": p["b1"].reshape(1, -1).astype(f32),
        "g2": p["g2"].reshape(1, -1).astype(f32),
        "b2": p["b2"].reshape(1, -1).astype(f32),
        "g3": p["g3"].reshape(1, -1).astype(f32),
        "b3": p["b3"].reshape(1, -1).astype(f32),
    }


# ---------------------------- layer-1 im2col (tiny, XLA) -----------------------------
def _im2col_conv1(x):
    """x: (N, 1, H, W) -> (N*Ho*Wo, 9) patches for conv1 (k=3x3, s=(3,2), p=(1,2))."""
    n, _, h, w = x.shape
    kh, kw, sh, sw, ph, pw = 3, 3, 3, 2, 1, 2
    ho, wo = _conv_out(h, kh, sh, ph), _conv_out(w, kw, sw, pw)
    xp = jnp.pad(x[:, 0], ((0, 0), (ph, ph), (pw, pw)))
    cols = [xp[:, i:i + sh * ho:sh, j:j + sw * wo:sw]              # (N, Ho, Wo)
            for i in range(kh) for j in range(kw)]
    return jnp.stack(cols, axis=-1).reshape(n * ho * wo, kh * kw)


# --------------------------------- fused Pallas kernel --------------------------------
def _fused_kernel(p1_ref, w1_ref, s2_ref, w2_ref, s3_ref, w3_ref, s4_ref, w4_hbm,
                  g1_ref, b1_ref, g2_ref, b2_ref, g3_ref, b3_ref,
                  o_ref,
                  w4_vmem, w4_sem, p2_ref, p3_ref, p4_ref):
    f32, bf16 = jnp.float32, jnp.bfloat16
    n_chunks = w4_vmem.shape[0]

    def w4_copy(c):
        return pltpu.make_async_copy(w4_hbm.at[c], w4_vmem.at[c], w4_sem.at[c])

    # Kick off all conv4-weight chunk DMAs now so they overlap layer-1..3 compute and
    # can be consumed chunk-by-chunk in the conv4 stage (keeps v5e's slower HBM hidden).
    for c in range(n_chunks):
        w4_copy(c).start()

    def bn_lrelu(y, g, b):
        # BatchNorm2d training-mode batch stats (biased variance), single pass, f32.
        inv_p = 1.0 / y.shape[0]
        mean = jnp.sum(y, axis=0, keepdims=True) * inv_p
        var = jnp.sum(y * y, axis=0, keepdims=True) * inv_p - mean * mean
        var = jnp.maximum(var, 0.0)                        # guard rsqrt vs cancellation
        yn = (y - mean) * jax.lax.rsqrt(var + EPS) * g + b
        return jnp.where(yn >= 0, yn, SLOPE * yn)          # LeakyReLU(0.2)

    def gather_patches(act, sel_ref, patches_ref):
        # ONE stacked row-gather matmul over all taps (tap-major rows), then `taps`
        # static block copies laying the result out as the (P_out, taps*Cin) im2col
        # matrix in VMEM scratch.  One-hot bf16 selection => the gather is exact.
        cin = act.shape[1]
        p_out = patches_ref.shape[0]
        taps = patches_ref.shape[1] // cin
        g = jnp.dot(sel_ref[...], act, preferred_element_type=f32).astype(bf16)
        for t in range(taps):
            patches_ref[:, t * cin:(t + 1) * cin] = g[t * p_out:(t + 1) * p_out, :]
        return patches_ref[...]

    # layer 1: im2col GEMM (P1, 9) @ (9, 64) -> BN -> LeakyReLU
    y1 = jnp.dot(p1_ref[...], w1_ref[...], preferred_element_type=f32)
    a1 = bn_lrelu(y1, g1_ref[...], b1_ref[...]).astype(bf16)        # (P1, 64)

    # layer 2: 3x3 / s2 / p1 -> BN -> LeakyReLU    (2 matmuls, K = 576)
    y2 = jnp.dot(gather_patches(a1, s2_ref, p2_ref), w2_ref[...],
                 preferred_element_type=f32)
    a2 = bn_lrelu(y2, g2_ref[...], b2_ref[...]).astype(bf16)        # (P2, 128)

    # layer 3: 3x3 / s1 / p0 -> BN -> LeakyReLU    (2 matmuls, K = 1152)
    y3 = jnp.dot(gather_patches(a2, s3_ref, p3_ref), w3_ref[...],
                 preferred_element_type=f32)
    a3 = bn_lrelu(y3, g3_ref[...], b3_ref[...]).astype(bf16)        # (P3, 256)

    # layer 4: 4x2 / s1 / p0 -> raw conv output (no bn5 / tanh in forward()).
    # Accumulate over K-chunks as each conv4 weight chunk DMA lands.
    pat4 = gather_patches(a3, s4_ref, p4_ref)                       # (N, 2048)
    kc = w4_vmem.shape[1]                                           # K rows per chunk
    w4_copy(0).wait()
    acc = jnp.dot(pat4[:, :kc], w4_vmem[0], preferred_element_type=f32)
    for c in range(1, n_chunks):
        w4_copy(c).wait()
        acc = acc + jnp.dot(pat4[:, c * kc:(c + 1) * kc], w4_vmem[c],
                            preferred_element_type=f32)
    o_ref[...] = acc


_VMEM = pl.BlockSpec(memory_space=pltpu.MemorySpace.VMEM)
_HBM = pl.BlockSpec(memory_space=pl.ANY)


def audio_encoder_forward(x, prep):
    """x: (N, 1, H, W) NCHW -> (N, 512, 1, 1).  `prep` from prepare_params(params, N, H, W)."""
    n = x.shape[0]
    patches1 = _im2col_conv1(x).astype(jnp.bfloat16)                # (P1, 9)
    p2 = prep["s2"].shape[0] // 9
    p3 = prep["s3"].shape[0] // 9
    k2 = prep["w2m"].shape[0]                                       # 9 * 64
    k3 = prep["w3m"].shape[0]                                       # 9 * 128
    k4 = prep["w4m"].shape[0] * prep["w4m"].shape[1]                # 8 * 256
    y4 = pl.pallas_call(
        _fused_kernel,
        out_shape=jax.ShapeDtypeStruct((n, 512), jnp.float32),
        in_specs=[_VMEM] * 7 + [_HBM] + [_VMEM] * 6,
        out_specs=_VMEM,
        scratch_shapes=[
            pltpu.VMEM(prep["w4m"].shape, jnp.bfloat16),            # conv4 weight chunks
            pltpu.SemaphoreType.DMA((prep["w4m"].shape[0],)),       # per-chunk DMA sems
            pltpu.VMEM((p2, k2), jnp.bfloat16),                     # layer-2 im2col
            pltpu.VMEM((p3, k3), jnp.bfloat16),                     # layer-3 im2col
            pltpu.VMEM((n, k4), jnp.bfloat16),                      # layer-4 im2col
        ],
        compiler_params=pltpu.CompilerParams(vmem_limit_bytes=32 * 1024 * 1024),
    )(patches1, prep["w1m"], prep["s2"], prep["w2m"], prep["s3"], prep["w3m"],
      prep["s4"], prep["w4m"],
      prep["g1"], prep["b1"], prep["g2"], prep["b2"], prep["g3"], prep["b3"])
    return y4.reshape(n, 512, 1, 1)


# ---------------------------- pure-JAX f32 reference ---------------------------------
def _ref_forward(x, p):
    def conv(x, w, stride, pad):
        return jax.lax.conv_general_dilated(
            x, w, window_strides=stride, padding=pad,
            dimension_numbers=("NCHW", "OIHW", "NCHW"),
            precision=jax.lax.Precision.HIGHEST)

    def bn(y, g, b):
        mean = y.mean(axis=(0, 2, 3), keepdims=True)
        var = jnp.square(y - mean).mean(axis=(0, 2, 3), keepdims=True)
        return (y - mean) * jax.lax.rsqrt(var + EPS) * g.reshape(1, -1, 1, 1) \
               + b.reshape(1, -1, 1, 1)

    def lrelu(y):
        return jnp.where(y >= 0, y, SLOPE * y)

    net = lrelu(bn(conv(x, p["w1"], (3, 2), [(1, 1), (2, 2)]), p["g1"], p["b1"]))
    net = lrelu(bn(conv(net, p["w2"], (2, 2), [(1, 1), (1, 1)]), p["g2"], p["b2"]))
    net = lrelu(bn(conv(net, p["w3"], (1, 1), [(0, 0), (0, 0)]), p["g3"], p["b3"]))
    net = conv(net, p["w4"], (1, 1), [(0, 0), (0, 0)])
    return net


# ------------------------------------ main --------------------------------------------
def _init_params(key):
    ks = jax.random.split(key, 10)
    f32 = jnp.float32
    return {
        "w1": 0.05 * jax.random.normal(ks[0], (64, 1, 3, 3), f32),
        "w2": 0.05 * jax.random.normal(ks[1], (128, 64, 3, 3), f32),
        "w3": 0.05 * jax.random.normal(ks[2], (256, 128, 3, 3), f32),
        "w4": 0.05 * jax.random.normal(ks[3], (512, 256, 4, 2), f32),
        "g1": 1.0 + 0.1 * jax.random.normal(ks[4], (64,), f32),
        "b1": 0.1 * jax.random.normal(ks[5], (64,), f32),
        "g2": 1.0 + 0.1 * jax.random.normal(ks[6], (128,), f32),
        "b2": 0.1 * jax.random.normal(ks[7], (128,), f32),
        "g3": 1.0 + 0.1 * jax.random.normal(ks[8], (256,), f32),
        "b3": 0.1 * jax.random.normal(ks[9], (256,), f32),
    }


if __name__ == "__main__":
    key = jax.random.PRNGKey(0)
    pkey, xkey = jax.random.split(key)
    params = _init_params(pkey)

    # Input: (N=2, C=1, H=36, W=14) spectrogram -> final output (2, 512, 1, 1)
    N, H, W = 2, 36, 14
    x = jax.random.normal(xkey, (N, 1, H, W), jnp.float32)

    prep = prepare_params(params, N, H, W)          # one-time packing, off hot path
    fwd = jax.jit(audio_encoder_forward)
    out = jax.block_until_ready(fwd(x, prep))

    ref = jax.block_until_ready(_ref_forward(x, params))

    assert out.shape == (N, 512, 1, 1), f"bad shape {out.shape}"
    assert bool(jnp.all(jnp.isfinite(out))), "non-finite output"
    err = jnp.abs(out - ref)
    tol = 5e-2 + 5e-2 * jnp.abs(ref)                # bf16 MXU operands vs f32 reference
    assert bool(jnp.all(err <= tol)), (
        f"mismatch vs reference: max_abs_err={float(jnp.max(err))}, "
        f"max_excess={float(jnp.max(err - tol))}")

    print("KERNEL_OK")
</pallas_src>

<mosaic_0001>
module attributes {stable_mosaic.version = 11 : i64} {
  func.func @_fused_kernel(%arg0: memref<192x9xbf16, #tpu.memory_space<vmem>>, %arg1: memref<9x64xbf16, #tpu.memory_space<vmem>>, %arg2: memref<432x192xbf16, #tpu.memory_space<vmem>>, %arg3: memref<576x128xbf16, #tpu.memory_space<vmem>>, %arg4: memref<144x48xbf16, #tpu.memory_space<vmem>>, %arg5: memref<1152x256xbf16, #tpu.memory_space<vmem>>, %arg6: memref<16x16xbf16, #tpu.memory_space<vmem>>, %arg7: memref<4x512x512xbf16, #tpu.memory_space<any>>, %arg8: memref<1x64xf32, #tpu.memory_space<vmem>>, %arg9: memref<1x64xf32, #tpu.memory_space<vmem>>, %arg10: memref<1x128xf32, #tpu.memory_space<vmem>>, %arg11: memref<1x128xf32, #tpu.memory_space<vmem>>, %arg12: memref<1x256xf32, #tpu.memory_space<vmem>>, %arg13: memref<1x256xf32, #tpu.memory_space<vmem>>, %arg14: memref<2x512xf32, #tpu.memory_space<vmem>>, %arg15: memref<4x512x512xbf16, #tpu.memory_space<vmem>>, %arg16: memref<4x!tpu.dma_semaphore, #tpu.memory_space<semaphore_mem>>, %arg17: memref<48x576xbf16, #tpu.memory_space<vmem>>, %arg18: memref<16x1152xbf16, #tpu.memory_space<vmem>>, %arg19: memref<2x2048xbf16, #tpu.memory_space<vmem>>) attributes {dimension_semantics = [], scalar_prefetch = 0 : i64, scratch_operands = 5 : i64, tpu.core_type = #tpu.core_type<tc>} {
    %c0_i32 = arith.constant 0 : i32
    %c0_i32_0 = arith.constant 0 : i32
    %c0_i32_1 = arith.constant 0 : i32
    %c0_i32_2 = arith.constant 0 : i32
    %c0_i32_3 = arith.constant 0 : i32
    %0 = tpu.memref_slice %arg7[%c0_i32, %c0_i32_2, %c0_i32_3] : memref<4x512x512xbf16, #tpu.memory_space<any>> -> memref<1x512x512xbf16, #tpu.memory_space<any>>
    %1 = tpu.memref_squeeze %0 : memref<1x512x512xbf16, #tpu.memory_space<any>> -> memref<512x512xbf16, #tpu.memory_space<any>>
    %c0_i32_4 = arith.constant 0 : i32
    %c0_i32_5 = arith.constant 0 : i32
    %2 = tpu.memref_slice %arg15[%c0_i32_0, %c0_i32_4, %c0_i32_5] : memref<4x512x512xbf16, #tpu.memory_space<vmem>> -> memref<1x512x512xbf16, #tpu.memory_space<vmem>>
    %3 = tpu.memref_squeeze %2 : memref<1x512x512xbf16, #tpu.memory_space<vmem>> -> memref<512x512xbf16, #tpu.memory_space<vmem>>
    %4 = tpu.memref_slice %arg16[%c0_i32_1] : memref<4x!tpu.dma_semaphore, #tpu.memory_space<semaphore_mem>> -> memref<1x!tpu.dma_semaphore, #tpu.memory_space<semaphore_mem>>
    %5 = tpu.memref_squeeze %4 : memref<1x!tpu.dma_semaphore, #tpu.memory_space<semaphore_mem>> -> memref<!tpu.dma_semaphore, #tpu.memory_space<semaphore_mem>>
    tpu.enqueue_dma source(%1 : memref<512x512xbf16, #tpu.memory_space<any>>) target(%3 : memref<512x512xbf16, #tpu.memory_space<vmem>>) target_semaphore(%5 : memref<!tpu.dma_semaphore, #tpu.memory_space<semaphore_mem>>)
    %c1_i32 = arith.constant 1 : i32
    %c1_i32_6 = arith.constant 1 : i32
    %c1_i32_7 = arith.constant 1 : i32
    %c0_i32_8 = arith.constant 0 : i32
    %c0_i32_9 = arith.constant 0 : i32
    %6 = tpu.memref_slice %arg7[%c1_i32, %c0_i32_8, %c0_i32_9] : memref<4x512x512xbf16, #tpu.memory_space<any>> -> memref<1x512x512xbf16, #tpu.memory_space<any>>
    %7 = tpu.memref_squeeze %6 : memref<1x512x512xbf16, #tpu.memory_space<any>> -> memref<512x512xbf16, #tpu.memory_space<any>>
    %c0_i32_10 = arith.constant 0 : i32
    %c0_i32_11 = arith.constant 0 : i32
    %8 = tpu.memref_slice %arg15[%c1_i32_6, %c0_i32_10, %c0_i32_11] : memref<4x512x512xbf16, #tpu.memory_space<vmem>> -> memref<1x512x512xbf16, #tpu.memory_space<vmem>>
    %9 = tpu.memref_squeeze %8 : memref<1x512x512xbf16, #tpu.memory_space<vmem>> -> memref<512x512xbf16, #tpu.memory_space<vmem>>
    %10 = tpu.memref_slice %arg16[%c1_i32_7] : memref<4x!tpu.dma_semaphore, #tpu.memory_space<semaphore_mem>> -> memref<1x!tpu.dma_semaphore, #tpu.memory_space<semaphore_mem>>
    %11 = tpu.memref_squeeze %10 : memref<1x!tpu.dma_semaphore, #tpu.memory_space<semaphore_mem>> -> memref<!tpu.dma_semaphore, #tpu.memory_space<semaphore_mem>>
    tpu.enqueue_dma source(%7 : memref<512x512xbf16, #tpu.memory_space<any>>) target(%9 : memref<512x512xbf16, #tpu.memory_space<vmem>>) target_semaphore(%11 : memref<!tpu.dma_semaphore, #tpu.memory_space<semaphore_mem>>)
    %c2_i32 = arith.constant 2 : i32
    %c2_i32_12 = arith.constant 2 : i32
    %c2_i32_13 = arith.constant 2 : i32
    %c0_i32_14 = arith.constant 0 : i32
    %c0_i32_15 = arith.constant 0 : i32
    %12 = tpu.memref_slice %arg7[%c2_i32, %c0_i32_14, %c0_i32_15] : memref<4x512x512xbf16, #tpu.memory_space<any>> -> memref<1x512x512xbf16, #tpu.memory_space<any>>
    %13 = tpu.memref_squeeze %12 : memref<1x512x512xbf16, #tpu.memory_space<any>> -> memref<512x512xbf16, #tpu.memory_space<any>>
    %c0_i32_16 = arith.constant 0 : i32
    %c0_i32_17 = arith.constant 0 : i32
    %14 = tpu.memref_slice %arg15[%c2_i32_12, %c0_i32_16, %c0_i32_17] : memref<4x512x512xbf16, #tpu.memory_space<vmem>> -> memref<1x512x512xbf16, #tpu.memory_space<vmem>>
    %15 = tpu.memref_squeeze %14 : memref<1x512x512xbf16, #tpu.memory_space<vmem>> -> memref<512x512xbf16, #tpu.memory_space<vmem>>
    %16 = tpu.memref_slice %arg16[%c2_i32_13] : memref<4x!tpu.dma_semaphore, #tpu.memory_space<semaphore_mem>> -> memref<1x!tpu.dma_semaphore, #tpu.memory_space<semaphore_mem>>
    %17 = tpu.memref_squeeze %16 : memref<1x!tpu.dma_semaphore, #tpu.memory_space<semaphore_mem>> -> memref<!tpu.dma_semaphore, #tpu.memory_space<semaphore_mem>>
    tpu.enqueue_dma source(%13 : memref<512x512xbf16, #tpu.memory_space<any>>) target(%15 : memref<512x512xbf16, #tpu.memory_space<vmem>>) target_semaphore(%17 : memref<!tpu.dma_semaphore, #tpu.memory_space<semaphore_mem>>)
    %c3_i32 = arith.constant 3 : i32
    %c3_i32_18 = arith.constant 3 : i32
    %c3_i32_19 = arith.constant 3 : i32
    %c0_i32_20 = arith.constant 0 : i32
    %c0_i32_21 = arith.constant 0 : i32
    %18 = tpu.memref_slice %arg7[%c3_i32, %c0_i32_20, %c0_i32_21] : memref<4x512x512xbf16, #tpu.memory_space<any>> -> memref<1x512x512xbf16, #tpu.memory_space<any>>
    %19 = tpu.memref_squeeze %18 : memref<1x512x512xbf16, #tpu.memory_space<any>> -> memref<512x512xbf16, #tpu.memory_space<any>>
    %c0_i32_22 = arith.constant 0 : i32
    %c0_i32_23 = arith.constant 0 : i32
    %20 = tpu.memref_slice %arg15[%c3_i32_18, %c0_i32_22, %c0_i32_23] : memref<4x512x512xbf16, #tpu.memory_space<vmem>> -> memref<1x512x512xbf16, #tpu.memory_space<vmem>>
    %21 = tpu.memref_squeeze %20 : memref<1x512x512xbf16, #tpu.memory_space<vmem>> -> memref<512x512xbf16, #tpu.memory_space<vmem>>
    %22 = tpu.memref_slice %arg16[%c3_i32_19] : memref<4x!tpu.dma_semaphore, #tpu.memory_space<semaphore_mem>> -> memref<1x!tpu.dma_semaphore, #tpu.memory_space<semaphore_mem>>
    %23 = tpu.memref_squeeze %22 : memref<1x!tpu.dma_semaphore, #tpu.memory_space<semaphore_mem>> -> memref<!tpu.dma_semaphore, #tpu.memory_space<semaphore_mem>>
    tpu.enqueue_dma source(%19 : memref<512x512xbf16, #tpu.memory_space<any>>) target(%21 : memref<512x512xbf16, #tpu.memory_space<vmem>>) target_semaphore(%23 : memref<!tpu.dma_semaphore, #tpu.memory_space<semaphore_mem>>)
    %c0 = arith.constant 0 : index
    %c0_24 = arith.constant 0 : index
    %24 = vector.load %arg0[%c0, %c0_24] : memref<192x9xbf16, #tpu.memory_space<vmem>>, vector<192x9xbf16>
    %c0_25 = arith.constant 0 : index
    %c0_26 = arith.constant 0 : index
    %25 = vector.load %arg1[%c0_25, %c0_26] : memref<9x64xbf16, #tpu.memory_space<vmem>>, vector<9x64xbf16>
    %cst = arith.constant dense<0.000000e+00> : vector<192x64xf32>
    %26 = tpu.matmul %24, %25, %cst {dimension_numbers = #tpu.dot_dimension_numbers<[1], [0], [0], [1], [0, 0, 1, 1], [], []>} : vector<192x9xbf16>, vector<9x64xbf16>, vector<192x64xf32> -> vector<192x64xf32>
    %c0_27 = arith.constant 0 : index
    %c0_28 = arith.constant 0 : index
    %27 = vector.load %arg8[%c0_27, %c0_28] : memref<1x64xf32, #tpu.memory_space<vmem>>, vector<1x64xf32>
    %c0_29 = arith.constant 0 : index
    %c0_30 = arith.constant 0 : index
    %28 = vector.load %arg9[%c0_29, %c0_30] : memref<1x64xf32, #tpu.memory_space<vmem>>, vector<1x64xf32>
    %cst_31 = arith.constant dense<0.000000e+00> : vector<64xf32>
    %29 = vector.multi_reduction <add>, %26, %cst_31 [0] : vector<192x64xf32> to vector<64xf32>
    %30 = vector.shape_cast %29 : vector<64xf32> to vector<1x64xf32>
    %cst_32 = arith.constant 0.00520833349 : f32
    %31 = vector.broadcast %cst_32 : f32 to vector<1x64xf32>
    %32 = arith.mulf %30, %31 : vector<1x64xf32>
    %33 = arith.mulf %26, %26 : vector<192x64xf32>
    %cst_33 = arith.constant dense<0.000000e+00> : vector<64xf32>
    %34 = vector.multi_reduction <add>, %33, %cst_33 [0] : vector<192x64xf32> to vector<64xf32>
    %35 = vector.shape_cast %34 : vector<64xf32> to vector<1x64xf32>
    %cst_34 = arith.constant 0.00520833349 : f32
    %36 = vector.broadcast %cst_34 : f32 to vector<1x64xf32>
    %37 = arith.mulf %35, %36 : vector<1x64xf32>
    %38 = arith.mulf %32, %32 : vector<1x64xf32>
    %39 = arith.subf %37, %38 : vector<1x64xf32>
    %cst_35 = arith.constant 0.000000e+00 : f32
    %40 = vector.broadcast %cst_35 : f32 to vector<1x64xf32>
    %41 = arith.maximumf %39, %40 : vector<1x64xf32>
    %42 = vector.broadcast %32 : vector<1x64xf32> to vector<192x64xf32>
    %43 = arith.subf %26, %42 : vector<192x64xf32>
    %cst_36 = arith.constant 9.99999974E-6 : f32
    %44 = vector.broadcast %cst_36 : f32 to vector<1x64xf32>
    %45 = arith.addf %41, %44 : vector<1x64xf32>
    %46 = math.rsqrt %45 : vector<1x64xf32>
    %47 = vector.broadcast %46 : vector<1x64xf32> to vector<192x64xf32>
    %48 = arith.mulf %43, %47 : vector<192x64xf32>
    %49 = vector.broadcast %27 : vector<1x64xf32> to vector<192x64xf32>
    %50 = arith.mulf %48, %49 : vector<192x64xf32>
    %51 = vector.broadcast %28 : vector<1x64xf32> to vector<192x64xf32>
    %52 = arith.addf %50, %51 : vector<192x64xf32>
    %cst_37 = arith.constant 0.000000e+00 : f32
    %53 = vector.broadcast %cst_37 : f32 to vector<192x64xf32>
    %54 = arith.cmpf oge, %52, %53 : vector<192x64xf32>
    %cst_38 = arith.constant 2.000000e-01 : f32
    %55 = vector.broadcast %cst_38 : f32 to vector<192x64xf32>
    %56 = arith.mulf %55, %52 : vector<192x64xf32>
    %57 = arith.select %54, %52, %56 : vector<192x64xi1>, vector<192x64xf32>
    %58 = arith.truncf %57 : vector<192x64xf32> to vector<192x64xbf16>
    %c0_39 = arith.constant 0 : index
    %c0_40 = arith.constant 0 : index
    %59 = vector.load %arg2[%c0_39, %c0_40] : memref<432x192xbf16, #tpu.memory_space<vmem>>, vector<432x192xbf16>
    %cst_41 = arith.constant dense<0.000000e+00> : vector<432x64xf32>
    %60 = tpu.matmul %59, %58, %cst_41 {dimension_numbers = #tpu.dot_dimension_numbers<[1], [0], [0], [1], [0, 0, 1, 1], [], []>} : vector<432x192xbf16>, vector<192x64xbf16>, vector<432x64xf32> -> vector<432x64xf32>
    %61 = arith.truncf %60 : vector<432x64xf32> to vector<432x64xbf16>
    %62 = vector.extract_strided_slice %61 {offsets = [0, 0], sizes = [48, 64], strides = [1, 1]} : vector<432x64xbf16> to vector<48x64xbf16>
    %c0_42 = arith.constant 0 : index
    %c0_43 = arith.constant 0 : index
    %63 = vector.load %arg17[%c0_42, %c0_43] : memref<48x576xbf16, #tpu.memory_space<vmem>>, vector<48x64xbf16>
    tpu.vector_store %arg17[%c0_42, %c0_43], %62 {strides = array<i32>} : memref<48x576xbf16, #tpu.memory_space<vmem>>, vector<48x64xbf16>,
    %64 = vector.extract_strided_slice %61 {offsets = [48, 0], sizes = [48, 64], strides = [1, 1]} : vector<432x64xbf16> to vector<48x64xbf16>
    %c0_44 = arith.constant 0 : index
    %c64 = arith.constant 64 : index
    %65 = vector.load %arg17[%c0_44, %c64] : memref<48x576xbf16, #tpu.memory_space<vmem>>, vector<48x64xbf16>
    tpu.vector_store %arg17[%c0_44, %c64], %64 {strides = array<i32>} : memref<48x576xbf16, #tpu.memory_space<vmem>>, vector<48x64xbf16>,
    %66 = vector.extract_strided_slice %61 {offsets = [96, 0], sizes = [48, 64], strides = [1, 1]} : vector<432x64xbf16> to vector<48x64xbf16>
    %c0_45 = arith.constant 0 : index
    %c128 = arith.constant 128 : index
    %67 = vector.load %arg17[%c0_45, %c128] : memref<48x576xbf16, #tpu.memory_space<vmem>>, vector<48x64xbf16>
    tpu.vector_store %arg17[%c0_45, %c128], %66 {strides = array<i32>} : memref<48x576xbf16, #tpu.memory_space<vmem>>, vector<48x64xbf16>,
    %68 = vector.extract_strided_slice %61 {offsets = [144, 0], sizes = [48, 64], strides = [1, 1]} : vector<432x64xbf16> to vector<48x64xbf16>
    %c0_46 = arith.constant 0 : index
    %c192 = arith.constant 192 : index
    %69 = vector.load %arg17[%c0_46, %c192] : memref<48x576xbf16, #tpu.memory_space<vmem>>, vector<48x64xbf16>
    tpu.vector_store %arg17[%c0_46, %c192], %68 {strides = array<i32>} : memref<48x576xbf16, #tpu.memory_space<vmem>>, vector<48x64xbf16>,
    %70 = vector.extract_strided_slice %61 {offsets = [192, 0], sizes = [48, 64], strides = [1, 1]} : vector<432x64xbf16> to vector<48x64xbf16>
    %c0_47 = arith.constant 0 : index
    %c256 = arith.constant 256 : index
    %71 = vector.load %arg17[%c0_47, %c256] : memref<48x576xbf16, #tpu.memory_space<vmem>>, vector<48x64xbf16>
    tpu.vector_store %arg17[%c0_47, %c256], %70 {strides = array<i32>} : memref<48x576xbf16, #tpu.memory_space<vmem>>, vector<48x64xbf16>,
    %72 = vector.extract_strided_slice %61 {offsets = [240, 0], sizes = [48, 64], strides = [1, 1]} : vector<432x64xbf16> to vector<48x64xbf16>
    %c0_48 = arith.constant 0 : index
    %c320 = arith.constant 320 : index
    %73 = vector.load %arg17[%c0_48, %c320] : memref<48x576xbf16, #tpu.memory_space<vmem>>, vector<48x64xbf16>
    tpu.vector_store %arg17[%c0_48, %c320], %72 {strides = array<i32>} : memref<48x576xbf16, #tpu.memory_space<vmem>>, vector<48x64xbf16>,
    %74 = vector.extract_strided_slice %61 {offsets = [288, 0], sizes = [48, 64], strides = [1, 1]} : vector<432x64xbf16> to vector<48x64xbf16>
    %c0_49 = arith.constant 0 : index
    %c384 = arith.constant 384 : index
    %75 = vector.load %arg17[%c0_49, %c384] : memref<48x576xbf16, #tpu.memory_space<vmem>>, vector<48x64xbf16>
    tpu.vector_store %arg17[%c0_49, %c384], %74 {strides = array<i32>} : memref<48x576xbf16, #tpu.memory_space<vmem>>, vector<48x64xbf16>,
    %76 = vector.extract_strided_slice %61 {offsets = [336, 0], sizes = [48, 64], strides = [1, 1]} : vector<432x64xbf16> to vector<48x64xbf16>
    %c0_50 = arith.constant 0 : index
    %c448 = arith.constant 448 : index
    %77 = vector.load %arg17[%c0_50, %c448] : memref<48x576xbf16, #tpu.memory_space<vmem>>, vector<48x64xbf16>
    tpu.vector_store %arg17[%c0_50, %c448], %76 {strides = array<i32>} : memref<48x576xbf16, #tpu.memory_space<vmem>>, vector<48x64xbf16>,
    %78 = vector.extract_strided_slice %61 {offsets = [384, 0], sizes = [48, 64], strides = [1, 1]} : vector<432x64xbf16> to vector<48x64xbf16>
    %c0_51 = arith.constant 0 : index
    %c512 = arith.constant 512 : index
    %79 = vector.load %arg17[%c0_51, %c512] : memref<48x576xbf16, #tpu.memory_space<vmem>>, vector<48x64xbf16>
    tpu.vector_store %arg17[%c0_51, %c512], %78 {strides = array<i32>} : memref<48x576xbf16, #tpu.memory_space<vmem>>, vector<48x64xbf16>,
    %c0_52 = arith.constant 0 : index
    %c0_53 = arith.constant 0 : index
    %80 = vector.load %arg17[%c0_52, %c0_53] : memref<48x576xbf16, #tpu.memory_space<vmem>>, vector<48x576xbf16>
    %c0_54 = arith.constant 0 : index
    %c0_55 = arith.constant 0 : index
    %81 = vector.load %arg3[%c0_54, %c0_55] : memref<576x128xbf16, #tpu.memory_space<vmem>>, vector<576x128xbf16>
    %cst_56 = arith.constant dense<0.000000e+00> : vector<48x128xf32>
    %82 = tpu.matmul %80, %81, %cst_56 {dimension_numbers = #tpu.dot_dimension_numbers<[1], [0], [0], [1], [0, 0, 1, 1], [], []>} : vector<48x576xbf16>, vector<576x128xbf16>, vector<48x128xf32> -> vector<48x128xf32>
    %c0_57 = arith.constant 0 : index
    %c0_58 = arith.constant 0 : index
    %83 = vector.load %arg10[%c0_57, %c0_58] : memref<1x128xf32, #tpu.memory_space<vmem>>, vector<1x128xf32>
    %c0_59 = arith.constant 0 : index
    %c0_60 = arith.constant 0 : index
    %84 = vector.load %arg11[%c0_59, %c0_60] : memref<1x128xf32, #tpu.memory_space<vmem>>, vector<1x128xf32>
    %cst_61 = arith.constant dense<0.000000e+00> : vector<128xf32>
    %85 = vector.multi_reduction <add>, %82, %cst_61 [0] : vector<48x128xf32> to vector<128xf32>
    %86 = vector.shape_cast %85 : vector<128xf32> to vector<1x128xf32>
    %cst_62 = arith.constant 0.020833334 : f32
    %87 = vector.broadcast %cst_62 : f32 to vector<1x128xf32>
    %88 = arith.mulf %86, %87 : vector<1x128xf32>
    %89 = arith.mulf %82, %82 : vector<48x128xf32>
    %cst_63 = arith.constant dense<0.000000e+00> : vector<128xf32>
    %90 = vector.multi_reduction <add>, %89, %cst_63 [0] : vector<48x128xf32> to vector<128xf32>
    %91 = vector.shape_cast %90 : vector<128xf32> to vector<1x128xf32>
    %cst_64 = arith.constant 0.020833334 : f32
    %92 = vector.broadcast %cst_64 : f32 to vector<1x128xf32>
    %93 = arith.mulf %91, %92 : vector<1x128xf32>
    %94 = arith.mulf %88, %88 : vector<1x128xf32>
    %95 = arith.subf %93, %94 : vector<1x128xf32>
    %cst_65 = arith.constant 0.000000e+00 : f32
    %96 = vector.broadcast %cst_65 : f32 to vector<1x128xf32>
    %97 = arith.maximumf %95, %96 : vector<1x128xf32>
    %98 = vector.broadcast %88 : vector<1x128xf32> to vector<48x128xf32>
    %99 = arith.subf %82, %98 : vector<48x128xf32>
    %cst_66 = arith.constant 9.99999974E-6 : f32
    %100 = vector.broadcast %cst_66 : f32 to vector<1x128xf32>
    %101 = arith.addf %97, %100 : vector<1x128xf32>
    %102 = math.rsqrt %101 : vector<1x128xf32>
    %103 = vector.broadcast %102 : vector<1x128xf32> to vector<48x128xf32>
    %104 = arith.mulf %99, %103 : vector<48x128xf32>
    %105 = vector.broadcast %83 : vector<1x128xf32> to vector<48x128xf32>
    %106 = arith.mulf %104, %105 : vector<48x128xf32>
    %107 = vector.broadcast %84 : vector<1x128xf32> to vector<48x128xf32>
    %108 = arith.addf %106, %107 : vector<48x128xf32>
    %cst_67 = arith.constant 0.000000e+00 : f32
    %109 = vector.broadcast %cst_67 : f32 to vector<48x128xf32>
    %110 = arith.cmpf oge, %108, %109 : vector<48x128xf32>
    %cst_68 = arith.constant 2.000000e-01 : f32
    %111 = vector.broadcast %cst_68 : f32 to vector<48x128xf32>
    %112 = arith.mulf %111, %108 : vector<48x128xf32>
    %113 = arith.select %110, %108, %112 : vector<48x128xi1>, vector<48x128xf32>
    %114 = arith.truncf %113 : vector<48x128xf32> to vector<48x128xbf16>
    %c0_69 = arith.constant 0 : index
    %c0_70 = arith.constant 0 : index
    %115 = vector.load %arg4[%c0_69, %c0_70] : memref<144x48xbf16, #tpu.memory_space<vmem>>, vector<144x48xbf16>
    %cst_71 = arith.constant dense<0.000000e+00> : vector<144x128xf32>
    %116 = tpu.matmul %115, %114, %cst_71 {dimension_numbers = #tpu.dot_dimension_numbers<[1], [0], [0], [1], [0, 0, 1, 1], [], []>} : vector<144x48xbf16>, vector<48x128xbf16>, vector<144x128xf32> -> vector<144x128xf32>
    %117 = arith.truncf %116 : vector<144x128xf32> to vector<144x128xbf16>
    %118 = vector.extract_strided_slice %117 {offsets = [0, 0], sizes = [16, 128], strides = [1, 1]} : vector<144x128xbf16> to vector<16x128xbf16>
    %c0_72 = arith.constant 0 : index
    %c0_73 = arith.constant 0 : index
    %119 = vector.load %arg18[%c0_72, %c0_73] : memref<16x1152xbf16, #tpu.memory_space<vmem>>, vector<16x128xbf16>
    tpu.vector_store %arg18[%c0_72, %c0_73], %118 {strides = array<i32>} : memref<16x1152xbf16, #tpu.memory_space<vmem>>, vector<16x128xbf16>,
    %120 = vector.extract_strided_slice %117 {offsets = [16, 0], sizes = [16, 128], strides = [1, 1]} : vector<144x128xbf16> to vector<16x128xbf16>
    %c0_74 = arith.constant 0 : index
    %c128_75 = arith.constant 128 : index
    %121 = vector.load %arg18[%c0_74, %c128_75] : memref<16x1152xbf16, #tpu.memory_space<vmem>>, vector<16x128xbf16>
    tpu.vector_store %arg18[%c0_74, %c128_75], %120 {strides = array<i32>} : memref<16x1152xbf16, #tpu.memory_space<vmem>>, vector<16x128xbf16>,
    %122 = vector.extract_strided_slice %117 {offsets = [32, 0], sizes = [16, 128], strides = [1, 1]} : vector<144x128xbf16> to vector<16x128xbf16>
    %c0_76 = arith.constant 0 : index
    %c256_77 = arith.constant 256 : index
    %123 = vector.load %arg18[%c0_76, %c256_77] : memref<16x1152xbf16, #tpu.memory_space<vmem>>, vector<16x128xbf16>
    tpu.vector_store %arg18[%c0_76, %c256_77], %122 {strides = array<i32>} : memref<16x1152xbf16, #tpu.memory_space<vmem>>, vector<16x128xbf16>,
    %124 = vector.extract_strided_slice %117 {offsets = [48, 0], sizes = [16, 128], strides = [1, 1]} : vector<144x128xbf16> to vector<16x128xbf16>
    %c0_78 = arith.constant 0 : index
    %c384_79 = arith.constant 384 : index
    %125 = vector.load %arg18[%c0_78, %c384_79] : memref<16x1152xbf16, #tpu.memory_space<vmem>>, vector<16x128xbf16>
    tpu.vector_store %arg18[%c0_78, %c384_79], %124 {strides = array<i32>} : memref<16x1152xbf16, #tpu.memory_space<vmem>>, vector<16x128xbf16>,
    %126 = vector.extract_strided_slice %117 {offsets = [64, 0], sizes = [16, 128], strides = [1, 1]} : vector<144x128xbf16> to vector<16x128xbf16>
    %c0_80 = arith.constant 0 : index
    %c512_81 = arith.constant 512 : index
    %127 = vector.load %arg18[%c0_80, %c512_81] : memref<16x1152xbf16, #tpu.memory_space<vmem>>, vector<16x128xbf16>
    tpu.vector_store %arg18[%c0_80, %c512_81], %126 {strides = array<i32>} : memref<16x1152xbf16, #tpu.memory_space<vmem>>, vector<16x128xbf16>,
    %128 = vector.extract_strided_slice %117 {offsets = [80, 0], sizes = [16, 128], strides = [1, 1]} : vector<144x128xbf16> to vector<16x128xbf16>
    %c0_82 = arith.constant 0 : index
    %c640 = arith.constant 640 : index
    %129 = vector.load %arg18[%c0_82, %c640] : memref<16x1152xbf16, #tpu.memory_space<vmem>>, vector<16x128xbf16>
    tpu.vector_store %arg18[%c0_82, %c640], %128 {strides = array<i32>} : memref<16x1152xbf16, #tpu.memory_space<vmem>>, vector<16x128xbf16>,
    %130 = vector.extract_strided_slice %117 {offsets = [96, 0], sizes = [16, 128], strides = [1, 1]} : vector<144x128xbf16> to vector<16x128xbf16>
    %c0_83 = arith.constant 0 : index
    %c768 = arith.constant 768 : index
    %131 = vector.load %arg18[%c0_83, %c768] : memref<16x1152xbf16, #tpu.memory_space<vmem>>, vector<16x128xbf16>
    tpu.vector_store %arg18[%c0_83, %c768], %130 {strides = array<i32>} : memref<16x1152xbf16, #tpu.memory_space<vmem>>, vector<16x128xbf16>,
    %132 = vector.extract_strided_slice %117 {offsets = [112, 0], sizes = [16, 128], strides = [1, 1]} : vector<144x128xbf16> to vector<16x128xbf16>
    %c0_84 = arith.constant 0 : index
    %c896 = arith.constant 896 : index
    %133 = vector.load %arg18[%c0_84, %c896] : memref<16x1152xbf16, #tpu.memory_space<vmem>>, vector<16x128xbf16>
    tpu.vector_store %arg18[%c0_84, %c896], %132 {strides = array<i32>} : memref<16x1152xbf16, #tpu.memory_space<vmem>>, vector<16x128xbf16>,
    %134 = vector.extract_strided_slice %117 {offsets = [128, 0], sizes = [16, 128], strides = [1, 1]} : vector<144x128xbf16> to vector<16x128xbf16>
    %c0_85 = arith.constant 0 : index
    %c1024 = arith.constant 1024 : index
    %135 = vector.load %arg18[%c0_85, %c1024] : memref<16x1152xbf16, #tpu.memory_space<vmem>>, vector<16x128xbf16>
    tpu.vector_store %arg18[%c0_85, %c1024], %134 {strides = array<i32>} : memref<16x1152xbf16, #tpu.memory_space<vmem>>, vector<16x128xbf16>,
    %c0_86 = arith.constant 0 : index
    %c0_87 = arith.constant 0 : index
    %136 = vector.load %arg18[%c0_86, %c0_87] : memref<16x1152xbf16, #tpu.memory_space<vmem>>, vector<16x1152xbf16>
    %c0_88 = arith.constant 0 : index
    %c0_89 = arith.constant 0 : index
    %137 = vector.load %arg5[%c0_88, %c0_89] : memref<1152x256xbf16, #tpu.memory_space<vmem>>, vector<1152x256xbf16>
    %cst_90 = arith.constant dense<0.000000e+00> : vector<16x256xf32>
    %138 = tpu.matmul %136, %137, %cst_90 {dimension_numbers = #tpu.dot_dimension_numbers<[1], [0], [0], [1], [0, 0, 1, 1], [], []>} : vector<16x1152xbf16>, vector<1152x256xbf16>, vector<16x256xf32> -> vector<16x256xf32>
    %c0_91 = arith.constant 0 : index
    %c0_92 = arith.constant 0 : index
    %139 = vector.load %arg12[%c0_91, %c0_92] : memref<1x256xf32, #tpu.memory_space<vmem>>, vector<1x256xf32>
    %c0_93 = arith.constant 0 : index
    %c0_94 = arith.constant 0 : index
    %140 = vector.load %arg13[%c0_93, %c0_94] : memref<1x256xf32, #tpu.memory_space<vmem>>, vector<1x256xf32>
    %cst_95 = arith.constant dense<0.000000e+00> : vector<256xf32>
    %141 = vector.multi_reduction <add>, %138, %cst_95 [0] : vector<16x256xf32> to vector<256xf32>
    %142 = vector.shape_cast %141 : vector<256xf32> to vector<1x256xf32>
    %cst_96 = arith.constant 6.250000e-02 : f32
    %143 = vector.broadcast %cst_96 : f32 to vector<1x256xf32>
    %144 = arith.mulf %142, %143 : vector<1x256xf32>
    %145 = arith.mulf %138, %138 : vector<16x256xf32>
    %cst_97 = arith.constant dense<0.000000e+00> : vector<256xf32>
    %146 = vector.multi_reduction <add>, %145, %cst_97 [0] : vector<16x256xf32> to vector<256xf32>
    %147 = vector.shape_cast %146 : vector<256xf32> to vector<1x256xf32>
    %cst_98 = arith.constant 6.250000e-02 : f32
    %148 = vector.broadcast %cst_98 : f32 to vector<1x256xf32>
    %149 = arith.mulf %147, %148 : vector<1x256xf32>
    %150 = arith.mulf %144, %144 : vector<1x256xf32>
    %151 = arith.subf %149, %150 : vector<1x256xf32>
    %cst_99 = arith.constant 0.000000e+00 : f32
    %152 = vector.broadcast %cst_99 : f32 to vector<1x256xf32>
    %153 = arith.maximumf %151, %152 : vector<1x256xf32>
    %154 = vector.broadcast %144 : vector<1x256xf32> to vector<16x256xf32>
    %155 = arith.subf %138, %154 : vector<16x256xf32>
    %cst_100 = arith.constant 9.99999974E-6 : f32
    %156 = vector.broadcast %cst_100 : f32 to vector<1x256xf32>
    %157 = arith.addf %153, %156 : vector<1x256xf32>
    %158 = math.rsqrt %157 : vector<1x256xf32>
    %159 = vector.broadcast %158 : vector<1x256xf32> to vector<16x256xf32>
    %160 = arith.mulf %155, %159 : vector<16x256xf32>
    %161 = vector.broadcast %139 : vector<1x256xf32> to vector<16x256xf32>
    %162 = arith.mulf %160, %161 : vector<16x256xf32>
    %163 = vector.broadcast %140 : vector<1x256xf32> to vector<16x256xf32>
    %164 = arith.addf %162, %163 : vector<16x256xf32>
    %cst_101 = arith.constant 0.000000e+00 : f32
    %165 = vector.broadcast %cst_101 : f32 to vector<16x256xf32>
    %166 = arith.cmpf oge, %164, %165 : vector<16x256xf32>
    %cst_102 = arith.constant 2.000000e-01 : f32
    %167 = vector.broadcast %cst_102 : f32 to vector<16x256xf32>
    %168 = arith.mulf %167, %164 : vector<16x256xf32>
    %169 = arith.select %166, %164, %168 : vector<16x256xi1>, vector<16x256xf32>
    %170 = arith.truncf %169 : vector<16x256xf32> to vector<16x256xbf16>
    %c0_103 = arith.constant 0 : index
    %c0_104 = arith.constant 0 : index
    %171 = vector.load %arg6[%c0_103, %c0_104] : memref<16x16xbf16, #tpu.memory_space<vmem>>, vector<16x16xbf16>
    %cst_105 = arith.constant dense<0.000000e+00> : vector<16x256xf32>
    %172 = tpu.matmul %171, %170, %cst_105 {dimension_numbers = #tpu.dot_dimension_numbers<[1], [0], [0], [1], [0, 0, 1, 1], [], []>} : vector<16x16xbf16>, vector<16x256xbf16>, vector<16x256xf32> -> vector<16x256xf32>
    %173 = arith.truncf %172 : vector<16x256xf32> to vector<16x256xbf16>
    %174 = vector.extract_strided_slice %173 {offsets = [0, 0], sizes = [2, 256], strides = [1, 1]} : vector<16x256xbf16> to vector<2x256xbf16>
    %c0_106 = arith.constant 0 : index
    %c0_107 = arith.constant 0 : index
    %175 = vector.load %arg19[%c0_106, %c0_107] : memref<2x2048xbf16, #tpu.memory_space<vmem>>, vector<2x256xbf16>
    tpu.vector_store %arg19[%c0_106, %c0_107], %174 {strides = array<i32>} : memref<2x2048xbf16, #tpu.memory_space<vmem>>, vector<2x256xbf16>,
    %176 = vector.extract_strided_slice %173 {offsets = [2, 0], sizes = [2, 256], strides = [1, 1]} : vector<16x256xbf16> to vector<2x256xbf16>
    %c0_108 = arith.constant 0 : index
    %c256_109 = arith.constant 256 : index
    %177 = vector.load %arg19[%c0_108, %c256_109] : memref<2x2048xbf16, #tpu.memory_space<vmem>>, vector<2x256xbf16>
    tpu.vector_store %arg19[%c0_108, %c256_109], %176 {strides = array<i32>} : memref<2x2048xbf16, #tpu.memory_space<vmem>>, vector<2x256xbf16>,
    %178 = vector.extract_strided_slice %173 {offsets = [4, 0], sizes = [2, 256], strides = [1, 1]} : vector<16x256xbf16> to vector<2x256xbf16>
    %c0_110 = arith.constant 0 : index
    %c512_111 = arith.constant 512 : index
    %179 = vector.load %arg19[%c0_110, %c512_111] : memref<2x2048xbf16, #tpu.memory_space<vmem>>, vector<2x256xbf16>
    tpu.vector_store %arg19[%c0_110, %c512_111], %178 {strides = array<i32>} : memref<2x2048xbf16, #tpu.memory_space<vmem>>, vector<2x256xbf16>,
    %180 = vector.extract_strided_slice %173 {offsets = [6, 0], sizes = [2, 256], strides = [1, 1]} : vector<16x256xbf16> to vector<2x256xbf16>
    %c0_112 = arith.constant 0 : index
    %c768_113 = arith.constant 768 : index
    %181 = vector.load %arg19[%c0_112, %c768_113] : memref<2x2048xbf16, #tpu.memory_space<vmem>>, vector<2x256xbf16>
    tpu.vector_store %arg19[%c0_112, %c768_113], %180 {strides = array<i32>} : memref<2x2048xbf16, #tpu.memory_space<vmem>>, vector<2x256xbf16>,
    %182 = vector.extract_strided_slice %173 {offsets = [8, 0], sizes = [2, 256], strides = [1, 1]} : vector<16x256xbf16> to vector<2x256xbf16>
    %c0_114 = arith.constant 0 : index
    %c1024_115 = arith.constant 1024 : index
    %183 = vector.load %arg19[%c0_114, %c1024_115] : memref<2x2048xbf16, #tpu.memory_space<vmem>>, vector<2x256xbf16>
    tpu.vector_store %arg19[%c0_114, %c1024_115], %182 {strides = array<i32>} : memref<2x2048xbf16, #tpu.memory_space<vmem>>, vector<2x256xbf16>,
    %184 = vector.extract_strided_slice %173 {offsets = [10, 0], sizes = [2, 256], strides = [1, 1]} : vector<16x256xbf16> to vector<2x256xbf16>
    %c0_116 = arith.constant 0 : index
    %c1280 = arith.constant 1280 : index
    %185 = vector.load %arg19[%c0_116, %c1280] : memref<2x2048xbf16, #tpu.memory_space<vmem>>, vector<2x256xbf16>
    tpu.vector_store %arg19[%c0_116, %c1280], %184 {strides = array<i32>} : memref<2x2048xbf16, #tpu.memory_space<vmem>>, vector<2x256xbf16>,
    %186 = vector.extract_strided_slice %173 {offsets = [12, 0], sizes = [2, 256], strides = [1, 1]} : vector<16x256xbf16> to vector<2x256xbf16>
    %c0_117 = arith.constant 0 : index
    %c1536 = arith.constant 1536 : index
    %187 = vector.load %arg19[%c0_117, %c1536] : memref<2x2048xbf16, #tpu.memory_space<vmem>>, vector<2x256xbf16>
    tpu.vector_store %arg19[%c0_117, %c1536], %186 {strides = array<i32>} : memref<2x2048xbf16, #tpu.memory_space<vmem>>, vector<2x256xbf16>,
    %188 = vector.extract_strided_slice %173 {offsets = [14, 0], sizes = [2, 256], strides = [1, 1]} : vector<16x256xbf16> to vector<2x256xbf16>
    %c0_118 = arith.constant 0 : index
    %c1792 = arith.constant 1792 : index
    %189 = vector.load %arg19[%c0_118, %c1792] : memref<2x2048xbf16, #tpu.memory_space<vmem>>, vector<2x256xbf16>
    tpu.vector_store %arg19[%c0_118, %c1792], %188 {strides = array<i32>} : memref<2x2048xbf16, #tpu.memory_space<vmem>>, vector<2x256xbf16>,
    %c0_119 = arith.constant 0 : index
    %c0_120 = arith.constant 0 : index
    %190 = vector.load %arg19[%c0_119, %c0_120] : memref<2x2048xbf16, #tpu.memory_space<vmem>>, vector<2x2048xbf16>
    %c0_i32_121 = arith.constant 0 : i32
    %c0_i32_122 = arith.constant 0 : i32
    %c0_i32_123 = arith.constant 0 : i32
    %c0_i32_124 = arith.constant 0 : i32
    %c0_i32_125 = arith.constant 0 : i32
    %191 = tpu.memref_slice %arg7[%c0_i32_121, %c0_i32_124, %c0_i32_125] : memref<4x512x512xbf16, #tpu.memory_space<any>> -> memref<1x512x512xbf16, #tpu.memory_space<any>>
    %192 = tpu.memref_squeeze %191 : memref<1x512x512xbf16, #tpu.memory_space<any>> -> memref<512x512xbf16, #tpu.memory_space<any>>
    %c0_i32_126 = arith.constant 0 : i32
    %c0_i32_127 = arith.constant 0 : i32
    %193 = tpu.memref_slice %arg15[%c0_i32_122, %c0_i32_126, %c0_i32_127] : memref<4x512x512xbf16, #tpu.memory_space<vmem>> -> memref<1x512x512xbf16, #tpu.memory_space<vmem>>
    %194 = tpu.memref_squeeze %193 : memref<1x512x512xbf16, #tpu.memory_space<vmem>> -> memref<512x512xbf16, #tpu.memory_space<vmem>>
    %195 = tpu.memref_slice %arg16[%c0_i32_123] : memref<4x!tpu.dma_semaphore, #tpu.memory_space<semaphore_mem>> -> memref<1x!tpu.dma_semaphore, #tpu.memory_space<semaphore_mem>>
    %196 = tpu.memref_squeeze %195 : memref<1x!tpu.dma_semaphore, #tpu.memory_space<semaphore_mem>> -> memref<!tpu.dma_semaphore, #tpu.memory_space<semaphore_mem>>
    tpu.wait_dma2 semaphore(%196 : memref<!tpu.dma_semaphore, #tpu.memory_space<semaphore_mem>>) src(%192 : memref<512x512xbf16, #tpu.memory_space<any>>) dst(%194 : memref<512x512xbf16, #tpu.memory_space<vmem>>)
    %197 = vector.extract_strided_slice %190 {offsets = [0, 0], sizes = [2, 512], strides = [1, 1]} : vector<2x2048xbf16> to vector<2x512xbf16>
    %c0_128 = arith.constant 0 : index
    %c0_129 = arith.constant 0 : index
    %c0_130 = arith.constant 0 : index
    %198 = vector.load %arg15[%c0_128, %c0_129, %c0_130] : memref<4x512x512xbf16, #tpu.memory_space<vmem>>, vector<1x512x512xbf16>
    %199 = vector.shape_cast %198 : vector<1x512x512xbf16> to vector<512x512xbf16>
    %cst_131 = arith.constant dense<0.000000e+00> : vector<2x512xf32>
    %200 = tpu.matmul %197, %199, %cst_131 {dimension_numbers = #tpu.dot_dimension_numbers<[1], [0], [0], [1], [0, 0, 1, 1], [], []>} : vector<2x512xbf16>, vector<512x512xbf16>, vector<2x512xf32> -> vector<2x512xf32>
    %c1_i32_132 = arith.constant 1 : i32
    %c1_i32_133 = arith.constant 1 : i32
    %c1_i32_134 = arith.constant 1 : i32
    %c0_i32_135 = arith.constant 0 : i32
    %c0_i32_136 = arith.constant 0 : i32
    %201 = tpu.memref_slice %arg7[%c1_i32_132, %c0_i32_135, %c0_i32_136] : memref<4x512x512xbf16, #tpu.memory_space<any>> -> memref<1x512x512xbf16, #tpu.memory_space<any>>
    %202 = tpu.memref_squeeze %201 : memref<1x512x512xbf16, #tpu.memory_space<any>> -> memref<512x512xbf16, #tpu.memory_space<any>>
    %c0_i32_137 = arith.constant 0 : i32
    %c0_i32_138 = arith.constant 0 : i32
    %203 = tpu.memref_slice %arg15[%c1_i32_133, %c0_i32_137, %c0_i32_138] : memref<4x512x512xbf16, #tpu.memory_space<vmem>> -> memref<1x512x512xbf16, #tpu.memory_space<vmem>>
    %204 = tpu.memref_squeeze %203 : memref<1x512x512xbf16, #tpu.memory_space<vmem>> -> memref<512x512xbf16, #tpu.memory_space<vmem>>
    %205 = tpu.memref_slice %arg16[%c1_i32_134] : memref<4x!tpu.dma_semaphore, #tpu.memory_space<semaphore_mem>> -> memref<1x!tpu.dma_semaphore, #tpu.memory_space<semaphore_mem>>
    %206 = tpu.memref_squeeze %205 : memref<1x!tpu.dma_semaphore, #tpu.memory_space<semaphore_mem>> -> memref<!tpu.dma_semaphore, #tpu.memory_space<semaphore_mem>>
    tpu.wait_dma2 semaphore(%206 : memref<!tpu.dma_semaphore, #tpu.memory_space<semaphore_mem>>) src(%202 : memref<512x512xbf16, #tpu.memory_space<any>>) dst(%204 : memref<512x512xbf16, #tpu.memory_space<vmem>>)
    %207 = vector.extract_strided_slice %190 {offsets = [0, 512], sizes = [2, 512], strides = [1, 1]} : vector<2x2048xbf16> to vector<2x512xbf16>
    %c1 = arith.constant 1 : index
    %c0_139 = arith.constant 0 : index
    %c0_140 = arith.constant 0 : index
    %208 = vector.load %arg15[%c1, %c0_139, %c0_140] : memref<4x512x512xbf16, #tpu.memory_space<vmem>>, vector<1x512x512xbf16>
    %209 = vector.shape_cast %208 : vector<1x512x512xbf16> to vector<512x512xbf16>
    %cst_141 = arith.constant dense<0.000000e+00> : vector<2x512xf32>
    %210 = tpu.matmul %207, %209, %cst_141 {dimension_numbers = #tpu.dot_dimension_numbers<[1], [0], [0], [1], [0, 0, 1, 1], [], []>} : vector<2x512xbf16>, vector<512x512xbf16>, vector<2x512xf32> -> vector<2x512xf32>
    %211 = arith.addf %200, %210 : vector<2x512xf32>
    %c2_i32_142 = arith.constant 2 : i32
    %c2_i32_143 = arith.constant 2 : i32
    %c2_i32_144 = arith.constant 2 : i32
    %c0_i32_145 = arith.constant 0 : i32
    %c0_i32_146 = arith.constant 0 : i32
    %212 = tpu.memref_slice %arg7[%c2_i32_142, %c0_i32_145, %c0_i32_146] : memref<4x512x512xbf16, #tpu.memory_space<any>> -> memref<1x512x512xbf16, #tpu.memory_space<any>>
    %213 = tpu.memref_squeeze %212 : memref<1x512x512xbf16, #tpu.memory_space<any>> -> memref<512x512xbf16, #tpu.memory_space<any>>
    %c0_i32_147 = arith.constant 0 : i32
    %c0_i32_148 = arith.constant 0 : i32
    %214 = tpu.memref_slice %arg15[%c2_i32_143, %c0_i32_147, %c0_i32_148] : memref<4x512x512xbf16, #tpu.memory_space<vmem>> -> memref<1x512x512xbf16, #tpu.memory_space<vmem>>
    %215 = tpu.memref_squeeze %214 : memref<1x512x512xbf16, #tpu.memory_space<vmem>> -> memref<512x512xbf16, #tpu.memory_space<vmem>>
    %216 = tpu.memref_slice %arg16[%c2_i32_144] : memref<4x!tpu.dma_semaphore, #tpu.memory_space<semaphore_mem>> -> memref<1x!tpu.dma_semaphore, #tpu.memory_space<semaphore_mem>>
    %217 = tpu.memref_squeeze %216 : memref<1x!tpu.dma_semaphore, #tpu.memory_space<semaphore_mem>> -> memref<!tpu.dma_semaphore, #tpu.memory_space<semaphore_mem>>
    tpu.wait_dma2 semaphore(%217 : memref<!tpu.dma_semaphore, #tpu.memory_space<semaphore_mem>>) src(%213 : memref<512x512xbf16, #tpu.memory_space<any>>) dst(%215 : memref<512x512xbf16, #tpu.memory_space<vmem>>)
    %218 = vector.extract_strided_slice %190 {offsets = [0, 1024], sizes = [2, 512], strides = [1, 1]} : vector<2x2048xbf16> to vector<2x512xbf16>
    %c2 = arith.constant 2 : index
    %c0_149 = arith.constant 0 : index
    %c0_150 = arith.constant 0 : index
    %219 = vector.load %arg15[%c2, %c0_149, %c0_150] : memref<4x512x512xbf16, #tpu.memory_space<vmem>>, vector<1x512x512xbf16>
    %220 = vector.shape_cast %219 : vector<1x512x512xbf16> to vector<512x512xbf16>
    %cst_151 = arith.constant dense<0.000000e+00> : vector<2x512xf32>
    %221 = tpu.matmul %218, %220, %cst_151 {dimension_numbers = #tpu.dot_dimension_numbers<[1], [0], [0], [1], [0, 0, 1, 1], [], []>} : vector<2x512xbf16>, vector<512x512xbf16>, vector<2x512xf32> -> vector<2x512xf32>
    %222 = arith.addf %211, %221 : vector<2x512xf32>
    %c3_i32_152 = arith.constant 3 : i32
    %c3_i32_153 = arith.constant 3 : i32
    %c3_i32_154 = arith.constant 3 : i32
    %c0_i32_155 = arith.constant 0 : i32
    %c0_i32_156 = arith.constant 0 : i32
    %223 = tpu.memref_slice %arg7[%c3_i32_152, %c0_i32_155, %c0_i32_156] : memref<4x512x512xbf16, #tpu.memory_space<any>> -> memref<1x512x512xbf16, #tpu.memory_space<any>>
    %224 = tpu.memref_squeeze %223 : memref<1x512x512xbf16, #tpu.memory_space<any>> -> memref<512x512xbf16, #tpu.memory_space<any>>
    %c0_i32_157 = arith.constant 0 : i32
    %c0_i32_158 = arith.constant 0 : i32
    %225 = tpu.memref_slice %arg15[%c3_i32_153, %c0_i32_157, %c0_i32_158] : memref<4x512x512xbf16, #tpu.memory_space<vmem>> -> memref<1x512x512xbf16, #tpu.memory_space<vmem>>
    %226 = tpu.memref_squeeze %225 : memref<1x512x512xbf16, #tpu.memory_space<vmem>> -> memref<512x512xbf16, #tpu.memory_space<vmem>>
    %227 = tpu.memref_slice %arg16[%c3_i32_154] : memref<4x!tpu.dma_semaphore, #tpu.memory_space<semaphore_mem>> -> memref<1x!tpu.dma_semaphore, #tpu.memory_space<semaphore_mem>>
    %228 = tpu.memref_squeeze %227 : memref<1x!tpu.dma_semaphore, #tpu.memory_space<semaphore_mem>> -> memref<!tpu.dma_semaphore, #tpu.memory_space<semaphore_mem>>
    tpu.wait_dma2 semaphore(%228 : memref<!tpu.dma_semaphore, #tpu.memory_space<semaphore_mem>>) src(%224 : memref<512x512xbf16, #tpu.memory_space<any>>) dst(%226 : memref<512x512xbf16, #tpu.memory_space<vmem>>)
    %229 = vector.extract_strided_slice %190 {offsets = [0, 1536], sizes = [2, 512], strides = [1, 1]} : vector<2x2048xbf16> to vector<2x512xbf16>
    %c3 = arith.constant 3 : index
    %c0_159 = arith.constant 0 : index
    %c0_160 = arith.constant 0 : index
    %230 = vector.load %arg15[%c3, %c0_159, %c0_160] : memref<4x512x512xbf16, #tpu.memory_space<vmem>>, vector<1x512x512xbf16>
    %231 = vector.shape_cast %230 : vector<1x512x512xbf16> to vector<512x512xbf16>
    %cst_161 = arith.constant dense<0.000000e+00> : vector<2x512xf32>
    %232 = tpu.matmul %229, %231, %cst_161 {dimension_numbers = #tpu.dot_dimension_numbers<[1], [0], [0], [1], [0, 0, 1, 1], [], []>} : vector<2x512xbf16>, vector<512x512xbf16>, vector<2x512xf32> -> vector<2x512xf32>
    %233 = arith.addf %222, %232 : vector<2x512xf32>
    %c0_162 = arith.constant 0 : index
    %c0_163 = arith.constant 0 : index
    %234 = vector.load %arg14[%c0_162, %c0_163] : memref<2x512xf32, #tpu.memory_space<vmem>>, vector<2x512xf32>
    tpu.vector_store %arg14[%c0_162, %c0_163], %233 {strides = array<i32>} : memref<2x512xf32, #tpu.memory_space<vmem>>, vector<2x512xf32>,
    return
  }
}

</mosaic_0001>

<bundles_post_ra>
// kernel: audio_encoder_forward.1
= control target key start
LH: loop header
LB: loop body
LE: loop exit
PB: predicated region body
PF: predicated region fallthrough
CT: control target
= control target key end

     0   :  { %19 = vsyncpa [#allocation8], 0  ;;  %s12173_s0 = inlined_call_operand.vmem [shape: bf16[192,9], index: 0, kind: input, shape index: {}]   ;;  %s12174_s1 = inlined_call_operand.hbm [shape: bf16[9,64], index: 1, kind: input, shape index: {}]   ;;  %s12175_s2 = inlined_call_operand.vmem [shape: bf16[432,192], index: 2, kind: input, shape index: {}]   ;;  %s12176_s3 = inlined_call_operand.hbm [shape: bf16[576,128], index: 3, kind: input, shape index: {}]   ;;  %s12177_s4 = inlined_call_operand.vmem [shape: bf16[144,48], index: 4, kind: input, shape index: {}]   ;;  %s12178_s5 = inlined_call_operand.hbm [shape: bf16[1152,256], index: 5, kind: input, shape index: {}]   ;;  %s12179_s6 = inlined_call_operand.hbm [shape: bf16[16,16], index: 6, kind: input, shape index: {}]   ;;  %s12180_s7 = inlined_call_operand.hbm [shape: bf16[4,512,512], index: 7, kind: input, shape index: {}]   ;;  %s12181_s8 = inlined_call_operand.hbm [shape: f32[1,64], index: 8, kind: input, shape index: {}]   ;;  %s12182_s9 = inlined_call_operand.hbm [shape: f32[1,64], index: 9, kind: input, shape index: {}]   ;;  %s12183_s10 = inlined_call_operand.hbm [shape: f32[1,128], index: 10, kind: input, shape index: {}]   ;;  %s12184_s11 = inlined_call_operand.hbm [shape: f32[1,128], index: 11, kind: input, shape index: {}]   ;;  %s12185_s12 = inlined_call_operand.hbm [shape: f32[1,256], index: 12, kind: input, shape index: {}]   ;;  %s12186_s13 = inlined_call_operand.hbm [shape: f32[1,256], index: 13, kind: input, shape index: {}]   ;;  %s12187_s14 = inlined_call_operand.vmem [shape: f32[2,512], index: 14, kind: output, shape index: {}]  }
   0x1   :  { %20 = vsyncpa [#allocation10], 0 }
   0x2   :  { %21 = vsyncpa [#allocation13], 0 }
   0x3   :  { %22 = vsyncpa [#allocation16], 0 }
   0x4   :  { %23 = vsyncpa [#allocation19], 0 }
   0x5   :  { %24 = vsyncpa [#allocation22], 0  ;;  %s10523_s29 = smov [#allocation9]   ;;  %s10524_s15 = smov [#allocation12]  }
   0x6   :  { %s46_s30 = sshll.u32 %s10523_s29, 4  ;;  %s72_s16 = sshll.u32 %s10524_s15, 4  ;;  %s47_s30 = int_to_ptr.vmem [resolvable:$true] %s46_s30  ;;  %s73_s16 = int_to_ptr.vmem [resolvable:$true] %s72_s16 }
   0x7   :  { %s10222_s17 = scalar_lea.vmem %s47_s30, 4608  ;;  %p10227_p1 = scmp.lt.s32.totalorder %s47_s30, %s47_s30 }
   0x8   :  { %p10223_p0 = scmp.ne.s32.totalorder %s47_s30, %s10222_s17  ;;  %p10228_p2 = scmp.lt.s32.totalorder %s10222_s17, %s10222_s17 }
   0xa   :  { %p10229_p3 = por %p10228_p2, %p10227_p1 }
   0xc   :  { %p10230_p4 = pnand %p10229_p3, %p10223_p0 }
   0xe   :  { %10233 = shalt.err (!%p10230_p4)
}
   0xf   :  { %s10525_s18 = smov 64   ;;  %s10526_s19 = smov 4  }
  0x10   :  { %52 = dma.hbm_to_vmem [thread:$0]  %s12176_s3, 4608, %s47_s30, [#allocation10], %s10525_s18, %s10525_s18, %s10526_s19  }
  0x11   :  { %s10242_s22 = scalar_lea.vmem %s73_s16, 128  ;;  %p10247_p6 = scmp.lt.s32.totalorder %s73_s16, %s73_s16 }
  0x12   :  { %p10243_p5 = scmp.ne.s32.totalorder %s73_s16, %s10242_s22  ;;  %p10248_p7 = scmp.lt.s32.totalorder %s10242_s22, %s10242_s22 }
  0x14   :  { %p10249_p8 = por %p10248_p7, %p10247_p6 }
  0x16   :  { %p10250_p9 = pnand %p10249_p8, %p10243_p5 }
  0x18   :  { %10253 = shalt.err (!%p10250_p9)
}
  0x19   :  { %78 = dma.hbm_to_vmem [thread:$0]  %s12179_s6, 128, %s73_s16, [#allocation13], %s10525_s18, %s10525_s18, %s10526_s19  }
  0x1a   :  { %s10527_s25 = smov [#allocation15]   ;;  %s10528_s27 = smov [#allocation18]  }
  0x1b   :  { %s95_s26 = sshll.u32 %s10527_s25, 4  ;;  %s115_s28 = sshll.u32 %s10528_s27, 4  ;;  %s96_s26 = int_to_ptr.vmem [resolvable:$true] %s95_s26  ;;  %s116_s28 = int_to_ptr.vmem [resolvable:$true] %s115_s28 }
  0x1c   :  { %s10262_s3 = scalar_lea.vmem %s96_s26, 16  ;;  %s10266_s29 = scalar_lea.vmem %s96_s26, 32 }
  0x1d   :  { %p10263_p10 = scmp.ne.s32.totalorder %s96_s26, %s10262_s3  ;;  %p10267_p11 = scmp.lt.s32.totalorder %s96_s26, %s96_s26 }
  0x1e   :  { %p10268_p12 = scmp.lt.s32.totalorder %s10266_s29, %s10262_s3 }
  0x20   :  { %p10269_p13 = por %p10268_p12, %p10267_p11 }
  0x22   :  { %p10270_p0 = pnand %p10269_p13, %p10263_p10 }
  0x24   :  { %10273 = shalt.err (!%p10270_p0)
}
  0x25   :  { %98 = dma.hbm_to_vmem [thread:$0]  %s12182_s9, 16, %s96_s26, [#allocation16]  }
  0x26   :  { %s10282_s17 = scalar_lea.vmem %s116_s28, 16  ;;  %s10286_s6 = scalar_lea.vmem %s116_s28, 32 }
  0x27   :  { %p10283_p1 = scmp.ne.s32.totalorder %s116_s28, %s10282_s17  ;;  %p10287_p2 = scmp.lt.s32.totalorder %s116_s28, %s116_s28 }
  0x28   :  { %p10288_p3 = scmp.lt.s32.totalorder %s10286_s6, %s10282_s17 }
  0x2a   :  { %p10289_p4 = por %p10288_p3, %p10287_p2 }
  0x2c   :  { %p10290_p5 = pnand %p10289_p4, %p10283_p1 }
  0x2e   :  { %10293 = shalt.err (!%p10290_p5)
}
  0x2f   :  { %118 = dma.hbm_to_vmem [thread:$0]  %s12184_s11, 16, %s116_s28, [#allocation19]  }
  0x30   :  { %s10529_s21 = smov [#allocation7]   ;;  %s10530_s23 = smov [#allocation11]  }
  0x31   :  { %s32_s22 = sshll.u32 %s10529_s21, 4  ;;  %s60_s24 = sshll.u32 %s10530_s23, 4  ;;  %s33_s22 = int_to_ptr.vmem [resolvable:$true] %s32_s22  ;;  %s61_s24 = int_to_ptr.vmem [resolvable:$true] %s60_s24 }
  0x32   :  { %s10302_s25 = scalar_lea.vmem %s33_s22, 128  ;;  %p10307_p7 = scmp.lt.s32.totalorder %s33_s22, %s33_s22 }
  0x33   :  { %p10303_p6 = scmp.ne.s32.totalorder %s33_s22, %s10302_s25  ;;  %p10308_p8 = scmp.lt.s32.totalorder %s10302_s25, %s10302_s25 }
  0x35   :  { %p10309_p9 = por %p10308_p8, %p10307_p7 }
  0x37   :  { %p10310_p10 = pnand %p10309_p9, %p10303_p6 }
  0x39   :  { %10313 = shalt.err (!%p10310_p10)
}
  0x3a   :  { %38 = dma.hbm_to_vmem [thread:$0]  %s12174_s1, 128, %s33_s22, [#allocation8], %s10525_s18, %s10525_s18, %s10526_s19  }
  0x3b   :  { %s10322_s11 = scalar_lea.vmem %s61_s24, 18432  ;;  %p10327_p12 = scmp.lt.s32.totalorder %s61_s24, %s61_s24 }
  0x3c   :  { %p10323_p11 = scmp.ne.s32.totalorder %s61_s24, %s10322_s11  ;;  %p10328_p13 = scmp.lt.s32.totalorder %s10322_s11, %s10322_s11 }
  0x3e   :  { %p10329_p0 = por %p10328_p13, %p10327_p12 }
  0x40   :  { %p10330_p1 = pnand %p10329_p0, %p10323_p11 }
  0x42   :  { %10333 = shalt.err (!%p10330_p1)
}
  0x43   :  { %s10531_s27 = smov 128   ;;  %s10532_s28 = smov 8  }
  0x44   :  { %66 = dma.hbm_to_vmem [thread:$0]  %s12178_s5, 18432, %s61_s24, [#allocation10], %s10531_s27, %s10531_s27, %s10532_s28  }
  0x45   :  { %s10533_s30 = smov [#allocation14]   ;;  %s10534_s17 = smov [#allocation17]  }
  0x46   :  { %s85_s15 = sshll.u32 %s10533_s30, 4  ;;  %s105_s6 = sshll.u32 %s10534_s17, 4  ;;  %s86_s15 = int_to_ptr.vmem [resolvable:$true] %s85_s15  ;;  %s106_s6 = int_to_ptr.vmem [resolvable:$true] %s105_s6 }
  0x47   :  { %s10342_s1 = scalar_lea.vmem %s86_s15, 16  ;;  %s10346_s19 = scalar_lea.vmem %s86_s15, 32 }
  0x48   :  { %p10343_p2 = scmp.ne.s32.totalorder %s86_s15, %s10342_s1  ;;  %p10347_p3 = scmp.lt.s32.totalorder %s86_s15, %s86_s15 }
  0x49   :  { %p10348_p4 = scmp.lt.s32.totalorder %s10346_s19, %s10342_s1 }
  0x4b   :  { %p10349_p5 = por %p10348_p4, %p10347_p3 }
  0x4d   :  { %p10350_p6 = pnand %p10349_p5, %p10343_p2 }
  0x4f   :  { %10353 = shalt.err (!%p10350_p6)
}
  0x50   :  { %88 = dma.hbm_to_vmem [thread:$0]  %s12181_s8, 16, %s86_s15, [#allocation13]  }
  0x51   :  { %s10362_s21 = scalar_lea.vmem %s106_s6, 16  ;;  %s10366_s5 = scalar_lea.vmem %s106_s6, 32 }
  0x52   :  { %p10363_p7 = scmp.ne.s32.totalorder %s106_s6, %s10362_s21  ;;  %p10367_p8 = scmp.lt.s32.totalorder %s106_s6, %s106_s6 }
  0x53   :  { %p10368_p9 = scmp.lt.s32.totalorder %s10366_s5, %s10362_s21 }
  0x55   :  { %p10369_p10 = por %p10368_p9, %p10367_p8 }
  0x57   :  { %p10370_p11 = pnand %p10369_p10, %p10363_p7 }
  0x59   :  { %10373 = shalt.err (!%p10370_p11)
}
  0x5a   :  { %108 = dma.hbm_to_vmem [thread:$0]  %s12183_s10, 16, %s106_s6, [#allocation16]  }
  0x5b   :  { %s10535_s24 = smov [#allocation20]   ;;  %s10536_s9 = smov [#allocation21]  }
  0x5c   :  { %s125_s25 = sshll.u32 %s10535_s24, 4  ;;  %s135_s26 = sshll.u32 %s10536_s9, 4  ;;  %s126_s25 = int_to_ptr.vmem [resolvable:$true] %s125_s25  ;;  %s136_s26 = int_to_ptr.vmem [resolvable:$true] %s135_s26 }
  0x5d   :  { %s10382_s11 = scalar_lea.vmem %s126_s25, 32  ;;  %p10387_p13 = scmp.lt.s32.totalorder %s126_s25, %s126_s25 }
  0x5e   :  { %p10383_p12 = scmp.ne.s32.totalorder %s126_s25, %s10382_s11  ;;  %p10388_p0 = scmp.lt.s32.totalorder %s10382_s11, %s10382_s11 }
  0x60   :  { %p10389_p1 = por %p10388_p0, %p10387_p13 }
  0x62   :  { %p10390_p2 = pnand %p10389_p1, %p10383_p12 }
  0x64   :  { %10393 = shalt.err (!%p10390_p2)
}
  0x65   :  { %128 = dma.hbm_to_vmem [thread:$0]  %s12185_s12, 32, %s126_s25, [#allocation19]  }
  0x66   :  { %s10402_s28 = scalar_lea.vmem %s136_s26, 32  ;;  %p10407_p4 = scmp.lt.s32.totalorder %s136_s26, %s136_s26 }
  0x67   :  { %p10403_p3 = scmp.ne.s32.totalorder %s136_s26, %s10402_s28  ;;  %p10408_p5 = scmp.lt.s32.totalorder %s10402_s28, %s10402_s28 }
  0x69   :  { %p10409_p6 = por %p10408_p5, %p10407_p4 }
  0x6b   :  { %p10410_p7 = pnand %p10409_p6, %p10403_p3 }
  0x6d   :  { %10413 = shalt.err (!%p10410_p7)
}
  0x6e   :  { %138 = dma.hbm_to_vmem [thread:$0]  %s12186_s13, 32, %s136_s26, [#allocation22]  }
  0x6f   :  { %10503 = dma.done.wait [#allocation8], 128  }
  0x70   :  { %10504 = vsyncadd [#allocation8], 4294967168 }
  0x71   :  { %10505 = dma.done.wait [#allocation10], 23040  }
  0x72   :  { %10506 = vsyncadd [#allocation10], 4294944256 }
  0x73   :  { %10507 = dma.done.wait [#allocation13], 144  }
  0x74   :  { %10508 = vsyncadd [#allocation13], 4294967152 }
  0x75   :  { %10509 = dma.done.wait [#allocation16], 32  }
  0x76   :  { %10510 = vsyncadd [#allocation16], 4294967264 }
  0x77   :  { %10511 = dma.done.wait [#allocation19], 48  }
  0x78   :  { %10512 = vsyncadd [#allocation19], 4294967248 }
  0x79   :  { %10513 = dma.done.wait [#allocation22], 32  }
  0x7a   :  { %10514 = vsyncadd [#allocation22], 4294967264  ;;  %vm351_vm0 = vcmask 1043456   ;;  %vm352_vm1 = vcmask 1044480   ;;  %v10537_v0 = vmov 65535   ;;  %vm314_vm2 = vcmask 72704  }
  0x7b   :  { %v353_v1 = vsel %vm351_vm0, 4294967295, %v10537_v0  ;;  %v9252_v3 = vld [vmem:[#allocation7] sm:$0x1f]   ;;  %v9253_v4 = vld [vmem:[%s12173_s0] sm:$0xff]   ;;  %v9254_v6 = vld [vmem:[%s12173_s0 + $0x8] sm:$0xff]   ;;  %v10538_v17 = vmov 0  }
  0x7c   :  { %v354_v2 = vsel %vm352_vm1, %v353_v1, 0  ;;  %9142 = vmatprep.mubr.msk.bf16.mxu0 %vm314_vm2, %v9253_v4  ;;  %v9255_v7 = vld [vmem:[%s12173_s0 + $0x10] sm:$0xff]   ;;  %v9256_v8 = vld [vmem:[%s12173_s0 + $0x18] sm:$0xff]   ;;  %v9257_v9 = vld [vmem:[%s12173_s0 + $0x20] sm:$0xff]   ;;  %1197 = vmatprep.subr.bf16.mxu1 %v10538_v17  ;;  %vm489_vm3 = vcmask 523264   ;;  %s181_s11 = scalar_lea.hbm %s12180_s7, 16384 }
  0x7d   :  { %v356_v5 = vand.u32 %v9252_v3, %v354_v2  ;;  %v9258_v10 = vld [vmem:[%s12173_s0 + $0x28] sm:$0xff]   ;;  %v9259_v11 = vld [vmem:[%s12173_s0 + $0x30] sm:$0xff]   ;;  %v9260_v12 = vld [vmem:[%s12173_s0 + $0x38] sm:$0xff]   ;;  %s10541_s8 = smov [#allocation2]   ;;  %s10542_s28 = smov [#allocation2 + $0x400]  }
  0x7e   :  { %v9261_v13 = vld [vmem:[%s12173_s0 + $0x40] sm:$0xff]   ;;  %v9262_v14 = vld [vmem:[%s12173_s0 + $0x48] sm:$0xff]   ;;  %v9263_v15 = vld [vmem:[%s12173_s0 + $0x50] sm:$0xff]   ;;  %s177_s27 = sshll.u32 %s10541_s8, 4  ;;  %s191_s10 = sshll.u32 %s10542_s28, 4  ;;  %s11476_s27 = int_to_ptr.vmem [resolvable:$true] %s177_s27  ;;  %s192_s10 = int_to_ptr.vmem [resolvable:$true] %s191_s10 }
  0x7f   :  { %9140 = vmatprep.subr.bf16.mxu0 %v356_v5  ;;  %v9264_v16 = vld [vmem:[%s12173_s0 + $0x58] sm:$0xff]   ;;  %v9267_v57 = vld [vmem:[%s12175_s2 + $0x4] ss:$8 sps:$4 sm:$0xff]   ;;  %s10422_s0 = scalar_lea.vmem %s11476_s27, 16384  ;;  %s11481_s3 = scalar_lea.vmem %s11476_s27, 65536 }
  0x80   :  { %9141 = vmatpush3.bf16.msra.mxu0 %v356_v5  ;;  %8071 = vmatprep.mubr.msk.bf16.mxu1 %vm489_vm3, %v9267_v57  ;;  %p10423_p8 = scmp.ne.s32.totalorder %s11476_s27, %s10422_s0  ;;  %p10427_p9 = scmp.lt.s32.totalorder %s11476_s27, %s11476_s27 }
  0x81   :  { %p10428_p10 = scmp.lt.s32.totalorder %s11481_s3, %s10422_s0 }
  0x83   :  { %9143 = vmatmul.mubr.msk.bf16.vlgmr.msra.gmra.mxu0 %vm314_vm2, %v9254_v6  ;;  %p10429_p11 = por %p10428_p10, %p10427_p9 }
  0x84   :  { %9146 = vmatprep.mubr.msk.bf16.mxu0 %vm314_vm2, %v9255_v7 }
  0x85   :  { %p10430_p12 = pnand %p10429_p11, %p10423_p8 }
  0x8b   :  { %9147 = vmatmul.mubr.msk.bf16.gmra.mxu0 %vm314_vm2, %v9256_v8 }
  0x8c   :  { %9150 = vmatprep.mubr.msk.bf16.mxu0 %vm314_vm2, %v9257_v9 }
  0x93   :  { %9151 = vmatmul.mubr.msk.bf16.gmra.mxu0 %vm314_vm2, %v9258_v10 }
  0x94   :  { %9154 = vmatprep.mubr.msk.bf16.mxu0 %vm314_vm2, %v9259_v11 }
  0x9b   :  { %9155 = vmatmul.mubr.msk.bf16.gmra.mxu0 %vm314_vm2, %v9260_v12 }
  0x9c   :  { %9158 = vmatprep.mubr.msk.bf16.mxu0 %vm314_vm2, %v9261_v13 }
  0xa3   :  { %9159 = vmatmul.mubr.msk.bf16.gmra.mxu0 %vm314_vm2, %v9262_v14 }
  0xa4   :  { %9162 = vmatprep.mubr.msk.bf16.mxu0 %vm314_vm2, %v9263_v15 }
  0xab   :  { %9163 = vmatmul.mubr.msk.bf16.gmra.mxu0 %vm314_vm2, %v9264_v16 }
 0x143   :  { %v10710_v18 = vpop.f32.mrf.mxu0 }
 0x144   :  { %v546_v23 = vmul.f32 %v10710_v18, %v10710_v18  ;;  %v493_v29 = vsel %vm489_vm3, %v10710_v18, 0.0 }
 0x145   :  { %v10712_v19 = vpop.f32.mrf.mxu0 }
 0x146   :  { %v544_v21 = vmul.f32 %v10712_v19, %v10712_v19  ;;  %v490_v24 = vsel %vm489_vm3, %v10712_v19, 0.0  ;;  %v571_v36 = vsel %vm489_vm3, %v546_v23, 0.0 }
 0x147   :  { %v10714_v20 = vpop.f32.mrf.mxu0 }
 0x148   :  { %v568_v30 = vsel %vm489_vm3, %v544_v21, 0.0  ;;  %v547_v31 = vmul.f32 %v10714_v20, %v10714_v20  ;;  %v495_v37 = vsel %vm489_vm3, %v10714_v20, 0.0 }
 0x149   :  { %v10718_v22 = vpop.f32.mrf.mxu0 }
 0x14a   :  { %v491_v25 = vsel %vm489_vm3, %v10718_v22, 0.0  ;;  %v545_v26 = vmul.f32 %v10718_v22, %v10718_v22  ;;  %v573_v42 = vsel %vm489_vm3, %v547_v31, 0.0 }
 0x14b   :  { %v492_v27 = vadd.f32 %v491_v25, %v490_v24  ;;  %v10728_v28 = vpop.f32.mrf.mxu0 }
 0x14c   :  { %v569_v32 = vsel %vm489_vm3, %v545_v26, 0.0  ;;  %v550_v47 = vmul.f32 %v10728_v28, %v10728_v28  ;;  %v501_v54 = vsel %vm489_vm3, %v10728_v28, 0.0 }
 0x14d   :  { %v494_v33 = vadd.f32 %v493_v29, %v492_v27  ;;  %v570_v34 = vadd.f32 %v569_v32, %v568_v30  ;;  %v10736_v35 = vpop.f32.mrf.mxu0 }
 0x14e   :  { %v548_v38 = vmul.f32 %v10736_v35, %v10736_v35  ;;  %v497_v43 = vsel %vm489_vm3, %v10736_v35, 0.0  ;;  %v579_v61 = vsel %vm489_vm3, %v550_v47, 0.0 }
 0x14f   :  { %v572_v39 = vadd.f32 %v571_v36, %v570_v34  ;;  %v496_v40 = vadd.f32 %v495_v37, %v494_v33  ;;  %v10743_v41 = vpop.f32.mrf.mxu0 }
 0x150   :  { %v575_v48 = vsel %vm489_vm3, %v548_v38, 0.0  ;;  %v551_v55 = vmul.f32 %v10743_v41, %v10743_v41  ;;  %v503_v62 = vsel %vm489_vm3, %v10743_v41, 0.0 }
 0x151   :  { %v498_v44 = vadd.f32 %v497_v43, %v496_v40  ;;  %v574_v45 = vadd.f32 %v573_v42, %v572_v39  ;;  %v10748_v46 = vpop.f32.mrf.mxu0 }
 0x152   :  { %v499_v49 = vsel %vm489_vm3, %v10748_v46, 0.0  ;;  %v549_v50 = vmul.f32 %v10748_v46, %v10748_v46  ;;  %v581_v3 = vsel %vm489_vm3, %v551_v55, 0.0 }
 0x153   :  { %v576_v51 = vadd.f32 %v575_v48, %v574_v45  ;;  %v500_v52 = vadd.f32 %v499_v49, %v498_v44  ;;  %v10757_v53 = vpop.f32.mrf.mxu0 }
 0x154   :  { %v577_v56 = vsel %vm489_vm3, %v549_v50, 0.0  ;;  %v554_v8 = vmul.f32 %v10757_v53, %v10757_v53  ;;  %v509_v15 = vsel %vm489_vm3, %v10757_v53, 0.0 }
 0x155   :  { %v502_v58 = vadd.f32 %v501_v54, %v500_v52  ;;  %v578_v59 = vadd.f32 %v577_v56, %v576_v51  ;;  %v10767_v60 = vpop.f32.mrf.mxu0 }
 0x156   :  { %v552_v63 = vmul.f32 %v10767_v60, %v10767_v60  ;;  %v505_v4 = vsel %vm489_vm3, %v10767_v60, 0.0  ;;  %v587_v26 = vsel %vm489_vm3, %v554_v8, 0.0 }
 0x157   :  { %v580_v0 = vadd.f32 %v579_v61, %v578_v59  ;;  %v504_v1 = vadd.f32 %v503_v62, %v502_v58  ;;  %v10775_v2 = vpop.f32.mrf.mxu0 }
 0x158   :  { %v583_v9 = vsel %vm489_vm3, %v552_v63, 0.0  ;;  %v555_v16 = vmul.f32 %v10775_v2, %v10775_v2  ;;  %v511_v27 = vsel %vm489_vm3, %v10775_v2, 0.0 }
 0x159   :  { %v506_v5 = vadd.f32 %v505_v4, %v504_v1  ;;  %v582_v6 = vadd.f32 %v581_v3, %v580_v0  ;;  %v10780_v7 = vpop.f32.mrf.mxu0 }
 0x15a   :  { %v507_v10 = vsel %vm489_vm3, %v10780_v7, 0.0  ;;  %v553_v11 = vmul.f32 %v10780_v7, %v10780_v7  ;;  %v589_v33 = vsel %vm489_vm3, %v555_v16, 0.0 }
 0x15b   :  { %v584_v12 = vadd.f32 %v583_v9, %v582_v6  ;;  %v508_v13 = vadd.f32 %v507_v10, %v506_v5  ;;  %v10789_v14 = vpop.f32.mrf.mxu0 }
 0x15c   :  { %v585_v21 = vsel %vm489_vm3, %v553_v11, 0.0  ;;  %v558_v39 = vmul.f32 %v10789_v14, %v10789_v14  ;;  %v517_v48 = vsel %vm489_vm3, %v10789_v14, 0.0 }
 0x15d   :  { %v510_v23 = vadd.f32 %v509_v15, %v508_v13  ;;  %v586_v24 = vadd.f32 %v585_v21, %v584_v12  ;;  %v10796_v25 = vpop.f32.mrf.mxu0 }
 0x15e   :  { %v556_v29 = vmul.f32 %v10796_v25, %v10796_v25  ;;  %v513_v34 = vsel %vm489_vm3, %v10796_v25, 0.0  ;;  %v595_v55 = vsel %vm489_vm3, %v558_v39, 0.0 }
 0x15f   :  { %v588_v30 = vadd.f32 %v587_v26, %v586_v24  ;;  %v512_v31 = vadd.f32 %v511_v27, %v510_v23  ;;  %v10803_v32 = vpop.f32.mrf.mxu0 }
 0x160   :  { %v591_v40 = vsel %vm489_vm3, %v556_v29, 0.0  ;;  %v559_v49 = vmul.f32 %v10803_v32, %v10803_v32  ;;  %v519_v56 = vsel %vm489_vm3, %v10803_v32, 0.0 }
 0x161   :  { %v514_v36 = vadd.f32 %v513_v34, %v512_v31  ;;  %v590_v37 = vadd.f32 %v589_v33, %v588_v30  ;;  %v10808_v38 = vpop.f32.mrf.mxu0 }
 0x162   :  { %v515_v42 = vsel %vm489_vm3, %v10808_v38, 0.0  ;;  %v557_v43 = vmul.f32 %v10808_v38, %v10808_v38  ;;  %v597_v62 = vsel %vm489_vm3, %v559_v49, 0.0 }
 0x163   :  { %v592_v44 = vadd.f32 %v591_v40, %v590_v37  ;;  %v516_v45 = vadd.f32 %v515_v42, %v514_v36  ;;  %v10817_v47 = vpop.f32.mrf.mxu0 }
 0x164   :  { %v593_v50 = vsel %vm489_vm3, %v557_v43, 0.0  ;;  %v562_v4 = vmul.f32 %v10817_v47, %v10817_v47  ;;  %v525_v12 = vsel %vm489_vm3, %v10817_v47, 0.0 }
 0x165   :  { %v518_v51 = vadd.f32 %v517_v48, %v516_v45  ;;  %v594_v52 = vadd.f32 %v593_v50, %v592_v44  ;;  %v10824_v54 = vpop.f32.mrf.mxu0 }
 0x166   :  { %v560_v57 = vmul.f32 %v10824_v54, %v10824_v54  ;;  %v521_v63 = vsel %vm489_vm3, %v10824_v54, 0.0  ;;  %v603_v24 = vsel %vm489_vm3, %v562_v4, 0.0 }
 0x167   :  { %v596_v58 = vadd.f32 %v595_v55, %v594_v52  ;;  %v520_v59 = vadd.f32 %v519_v56, %v518_v51  ;;  %v10831_v61 = vpop.f32.mrf.mxu0 }
 0x168   :  { %v599_v5 = vsel %vm489_vm3, %v560_v57, 0.0  ;;  %v563_v13 = vmul.f32 %v10831_v61, %v10831_v61  ;;  %v527_v26 = vsel %vm489_vm3, %v10831_v61, 0.0 }
 0x169   :  { %v522_v0 = vadd.f32 %v521_v63, %v520_v59  ;;  %v598_v1 = vadd.f32 %v597_v62, %v596_v58  ;;  %v10836_v3 = vpop.f32.mrf.mxu0 }
 0x16a   :  { %v523_v6 = vsel %vm489_vm3, %v10836_v3, 0.0  ;;  %v561_v8 = vmul.f32 %v10836_v3, %v10836_v3  ;;  %v605_v33 = vsel %vm489_vm3, %v563_v13, 0.0 }
 0x16b   :  { %v600_v9 = vadd.f32 %v599_v5, %v598_v1  ;;  %v524_v10 = vadd.f32 %v523_v6, %v522_v0  ;;  %v10845_v11 = vpop.f32.mrf.mxu0 }
 0x16c   :  { %v601_v15 = vsel %vm489_vm3, %v561_v8, 0.0  ;;  %v566_v40 = vmul.f32 %v10845_v11, %v10845_v11  ;;  %v533_v49 = vsel %vm489_vm3, %v10845_v11, 0.0 }
 0x16d   :  { %v526_v16 = vadd.f32 %v525_v12, %v524_v10  ;;  %v602_v21 = vadd.f32 %v601_v15, %v600_v9  ;;  %v10852_v23 = vpop.f32.mrf.mxu0 }
 0x16e   :  { %v564_v27 = vmul.f32 %v10852_v23, %v10852_v23  ;;  %v529_v34 = vsel %vm489_vm3, %v10852_v23, 0.0  ;;  %v611_v56 = vsel %vm489_vm3, %v566_v40, 0.0 }
 0x16f   :  { %v604_v29 = vadd.f32 %v603_v24, %v602_v21  ;;  %v528_v30 = vadd.f32 %v527_v26, %v526_v16  ;;  %v10859_v31 = vpop.f32.mrf.mxu0 }
 0x170   :  { %v607_v42 = vsel %vm489_vm3, %v564_v27, 0.0  ;;  %v567_v50 = vmul.f32 %v10859_v31, %v10859_v31  ;;  %v535_v57 = vsel %vm489_vm3, %v10859_v31, 0.0 }
 0x171   :  { %v530_v36 = vadd.f32 %v529_v34, %v528_v30  ;;  %v606_v37 = vadd.f32 %v605_v33, %v604_v29  ;;  %v10864_v39 = vpop.f32.mrf.mxu0 }
 0x172   :  { %v531_v43 = vsel %vm489_vm3, %v10864_v39, 0.0  ;;  %v565_v44 = vmul.f32 %v10864_v39, %v10864_v39  ;;  %v613_v62 = vsel %vm489_vm3, %v567_v50, 0.0 }
 0x173   :  { %v608_v45 = vadd.f32 %v607_v42, %v606_v37  ;;  %v532_v48 = vadd.f32 %v531_v43, %v530_v36 }
 0x174   :  { %v609_v51 = vsel %vm489_vm3, %v565_v44, 0.0 }
 0x175   :  { %v534_v52 = vadd.f32 %v533_v49, %v532_v48  ;;  %v610_v55 = vadd.f32 %v609_v51, %v608_v45 }
 0x177   :  { %v536_v58 = vadd.f32 %v535_v57, %v534_v52  ;;  %v612_v59 = vadd.f32 %v611_v56, %v610_v55  ;;  %v10931_v52 = vld [vmem:[#allocation15] ss:$0 sm:$0xff] }
 0x179   :  { %v537_v63 = vrot.slane %v536_v58, 4  ;;  %v614_v0 = vadd.f32 %v613_v62, %v612_v59 }
 0x17b   :  { %v538_v1 = vadd.f32 %v537_v63, %v536_v58  ;;  %v615_v4 = vrot.slane %v614_v0, 4 }
 0x17d   :  { %v539_v5 = vrot.slane %v538_v1, 2  ;;  %v616_v6 = vadd.f32 %v615_v4, %v614_v0 }
 0x17f   :  { %v540_v8 = vadd.f32 %v539_v5, %v538_v1  ;;  %v617_v9 = vrot.slane %v616_v6, 2 }
 0x181   :  { %v541_v10 = vrot.slane %v540_v8, 1  ;;  %v618_v12 = vadd.f32 %v617_v9, %v616_v6 }
 0x183   :  { %v542_v13 = vadd.f32 %v541_v10, %v540_v8  ;;  %v619_v15 = vrot.slane %v618_v12, 1 }
 0x185   :  { %v10882_v16 = vmul.f32 0.0052083335, %v542_v13  ;;  %v620_v21 = vadd.f32 %v619_v15, %v618_v12 }
 0x187   :  { %v621_v24 = vmul.f32 0.0052083335, %v620_v21  ;;  %v622_v26 = vmul.f32 %v10882_v16, %v10882_v16  ;;  %v641_v33 = vsub.f32 %v10824_v54, %v10882_v16  ;;  %v642_v34 = vsub.f32 %v10836_v3, %v10882_v16 }
 0x188   :  { %v639_v36 = vsub.f32 %v10789_v14, %v10882_v16  ;;  %v640_v37 = vsub.f32 %v10803_v32, %v10882_v16  ;;  %v637_v40 = vsub.f32 %v10796_v25, %v10882_v16  ;;  %v638_v42 = vsub.f32 %v10808_v38, %v10882_v16 }
 0x189   :  { %v623_v27 = vsub.f32 %v621_v24, %v622_v26  ;;  %v635_v43 = vsub.f32 %v10757_v53, %v10882_v16  ;;  %v636_v44 = vsub.f32 %v10775_v2, %v10882_v16  ;;  %v633_v45 = vsub.f32 %v10767_v60, %v10882_v16  ;;  %v10916_v2 = vld [vmem:[#allocation14] ss:$0 sm:$0xff] }
 0x18a   :  { %v634_v14 = vsub.f32 %v10780_v7, %v10882_v16  ;;  %v631_v32 = vsub.f32 %v10728_v28, %v10882_v16  ;;  %v632_v25 = vsub.f32 %v10743_v41, %v10882_v16  ;;  %v629_v38 = vsub.f32 %v10736_v35, %v10882_v16 }
 0x18b   :  { %v624_v29 = vmax.f32 %v623_v27, 0.0  ;;  %v630_v53 = vsub.f32 %v10748_v46, %v10882_v16  ;;  %v627_v60 = vsub.f32 %v10710_v18, %v10882_v16  ;;  %v628_v7 = vsub.f32 %v10714_v20, %v10882_v16 }
 0x18c   :  { %v625_v28 = vsub.f32 %v10712_v19, %v10882_v16  ;;  %v626_v41 = vsub.f32 %v10718_v22, %v10882_v16  ;;  %v647_v51 = vsub.f32 %v10845_v11, %v10882_v16  ;;  %v648_v0 = vsub.f32 %v10859_v31, %v10882_v16 }
 0x18d   :  { %v649_v30 = vadd.f32 1e-05, %v624_v29  ;;  %v645_v19 = vsub.f32 %v10852_v23, %v10882_v16  ;;  %v643_v31 = vsub.f32 %v10817_v47, %v10882_v16 }
 0x18f   :  { %9630 = vrsqrt.f32 %v649_v30 }
 0x19c   :  { %v10914_v48 = vpop.eup %9630 }
 0x19d   :  { %v665_v35 = vmul.f32 %v10914_v48, %v639_v36  ;;  %v666_v49 = vmul.f32 %v10914_v48, %v640_v37  ;;  %v663_v50 = vmul.f32 %v10914_v48, %v637_v40  ;;  %v664_v55 = vmul.f32 %v10914_v48, %v638_v42 }
 0x19e   :  { %v661_v56 = vmul.f32 %v10914_v48, %v635_v43  ;;  %v662_v57 = vmul.f32 %v10914_v48, %v636_v44  ;;  %v659_v58 = vmul.f32 %v10914_v48, %v633_v45  ;;  %v660_v6 = vmul.f32 %v10914_v48, %v634_v14 }
 0x19f   :  { %v695_v59 = vmul.f32 %v10916_v2, %v665_v35  ;;  %v696_v62 = vmul.f32 %v10916_v2, %v666_v49  ;;  %v693_v63 = vmul.f32 %v10916_v2, %v663_v50  ;;  %v694_v1 = vmul.f32 %v10916_v2, %v664_v55 }
 0x1a0   :  { %v691_v4 = vmul.f32 %v10916_v2, %v661_v56  ;;  %v692_v5 = vmul.f32 %v10916_v2, %v662_v57  ;;  %v689_v12 = vmul.f32 %v10916_v2, %v659_v58  ;;  %v690_v24 = vmul.f32 %v10916_v2, %v660_v6 }
 0x1a1   :  { %v725_v8 = vadd.f32 %v10931_v52, %v695_v59  ;;  %v726_v9 = vadd.f32 %v10931_v52, %v696_v62  ;;  %v723_v10 = vadd.f32 %v10931_v52, %v693_v63  ;;  %v724_v13 = vadd.f32 %v10931_v52, %v694_v1 }
 0x1a2   :  { %v721_v15 = vadd.f32 %v10931_v52, %v691_v4  ;;  %v722_v21 = vadd.f32 %v10931_v52, %v692_v5  ;;  %v719_v35 = vadd.f32 %v10931_v52, %v689_v12  ;;  %v720_v49 = vadd.f32 %v10931_v52, %v690_v24 }
 0x1a3   :  { %vm749_vm4 = vcmp.ge.f32.partialorder %v725_v8, 0.0  ;;  %vm750_vm5 = vcmp.ge.f32.partialorder %v726_v9, 0.0  ;;  %v773_v26 = vmul.f32 0.2, %v725_v8  ;;  %v774_v27 = vmul.f32 0.2, %v726_v9 }
 0x1a4   :  { %vm747_vm6 = vcmp.ge.f32.partialorder %v723_v10, 0.0  ;;  %vm748_vm7 = vcmp.ge.f32.partialorder %v724_v13, 0.0  ;;  %v771_v29 = vmul.f32 0.2, %v723_v10  ;;  %v772_v30 = vmul.f32 0.2, %v724_v13 }
 0x1a5   :  { %v797_v36 = vsel %vm749_vm4, %v725_v8, %v773_v26  ;;  %v798_v37 = vsel %vm750_vm5, %v726_v9, %v774_v27  ;;  %vm745_vm8 = vcmp.ge.f32.partialorder %v721_v15, 0.0  ;;  %vm746_vm9 = vcmp.ge.f32.partialorder %v722_v21, 0.0 }
 0x1a6   :  { %v814_v40 = vpack.c.bf16 %v798_v37, %v797_v36  ;;  %v795_v42 = vsel %vm747_vm6, %v723_v10, %v771_v29  ;;  %v796_v43 = vsel %vm748_vm7, %v724_v13, %v772_v30  ;;  %v769_v44 = vmul.f32 0.2, %v721_v15 }
 0x1a7   :  { %v813_v45 = vpack.c.bf16 %v796_v43, %v795_v42  ;;  %v770_v14 = vmul.f32 0.2, %v722_v21  ;;  %v657_v55 = vmul.f32 %v10914_v48, %v631_v32  ;;  %v658_v56 = vmul.f32 %v10914_v48, %v632_v25 }
 0x1a8   :  { %1198 = vmatpush1.bf16.msra.mxu1 %v814_v40  ;;  %v793_v50 = vsel %vm745_vm8, %v721_v15, %v769_v44  ;;  %v655_v57 = vmul.f32 %v10914_v48, %v629_v38  ;;  %vm743_vm10 = vcmp.ge.f32.partialorder %v719_v35, 0.0  ;;  %vm744_vm11 = vcmp.ge.f32.partialorder %v720_v49, 0.0 }
 0x1a9   :  { %1199 = vmatprep.subr.bf16.mxu1 %v10538_v17  ;;  %v794_v58 = vsel %vm746_vm9, %v722_v21, %v770_v14  ;;  %v767_v59 = vmul.f32 0.2, %v719_v35  ;;  %v768_v63 = vmul.f32 0.2, %v720_v49  ;;  %v687_v1 = vmul.f32 %v10916_v2, %v657_v55 }
 0x1aa   :  { %v812_v62 = vpack.c.bf16 %v794_v58, %v793_v50  ;;  %v688_v4 = vmul.f32 %v10916_v2, %v658_v56  ;;  %v656_v32 = vmul.f32 %v10914_v48, %v630_v53  ;;  %v685_v25 = vmul.f32 %v10916_v2, %v655_v57 }
 0x1ab   :  { %v791_v5 = vsel %vm743_vm10, %v719_v35, %v767_v59  ;;  %v653_v38 = vmul.f32 %v10914_v48, %v627_v60  ;;  %v792_v6 = vsel %vm744_vm11, %v720_v49, %v768_v63  ;;  %v717_v8 = vadd.f32 %v10931_v52, %v687_v1 }
 0x1ac   :  { %1200 = vmatpush1.bf16.msra.mxu1 %v813_v45  ;;  %v718_v9 = vadd.f32 %v10931_v52, %v688_v4  ;;  %v654_v46 = vmul.f32 %v10914_v48, %v628_v7  ;;  %v811_v53 = vpack.c.bf16 %v792_v6, %v791_v5  ;;  %v686_v10 = vmul.f32 %v10916_v2, %v656_v32 }
 0x1ad   :  { %1201 = vmatprep.subr.bf16.mxu1 %v10538_v17  ;;  %v715_v18 = vadd.f32 %v10931_v52, %v685_v25  ;;  %v683_v60 = vmul.f32 %v10916_v2, %v653_v38  ;;  %vm741_vm12 = vcmp.ge.f32.partialorder %v717_v8, 0.0  ;;  %v765_v12 = vmul.f32 0.2, %v717_v8 }
 0x1ae   :  { %vm742_vm13 = vcmp.ge.f32.partialorder %v718_v9, 0.0  ;;  %v766_v13 = vmul.f32 0.2, %v718_v9  ;;  %v716_v15 = vadd.f32 %v10931_v52, %v686_v10  ;;  %v684_v20 = vmul.f32 %v10916_v2, %v654_v46 }
 0x1af   :  { %vm739_vm14 = vcmp.ge.f32.partialorder %v715_v18, 0.0  ;;  %v763_v21 = vmul.f32 0.2, %v715_v18  ;;  %v789_v7 = vsel %vm741_vm12, %v717_v8, %v765_v12  ;;  %v713_v26 = vadd.f32 %v10931_v52, %v683_v60 }
 0x1b0   :  { %1202 = vmatpush1.bf16.msra.mxu1 %v812_v62  ;;  %v790_v24 = vsel %vm742_vm13, %v718_v9, %v766_v13  ;;  %v651_v27 = vmul.f32 %v10914_v48, %v625_v28  ;;  %vm740_vm15 = vcmp.ge.f32.partialorder %v716_v15, 0.0  ;;  %v764_v30 = vmul.f32 0.2, %v716_v15 }
 0x1b1   :  { %1203 = vmatprep.subr.bf16.mxu1 %v10538_v17  ;;  %v810_v29 = vpack.c.bf16 %v790_v24, %v789_v7  ;;  %v787_v36 = vsel %vm739_vm14, %v715_v18, %v763_v21  ;;  %v646_v37 = vsub.f32 %v10864_v39, %v10882_v16  ;;  %v714_v40 = vadd.f32 %v10931_v52, %v684_v20 }
 0x1b2   :  { %v652_v42 = vmul.f32 %v10914_v48, %v626_v41  ;;  %v788_v28 = vsel %vm740_vm15, %v716_v15, %v764_v30  ;;  %v681_v43 = vmul.f32 %v10916_v2, %v651_v27  ;;  %v673_v44 = vmul.f32 %v10914_v48, %v647_v51 }
 0x1b3   :  { %v674_v39 = vmul.f32 %v10914_v48, %v648_v0  ;;  %v672_v22 = vmul.f32 %v10914_v48, %v646_v37  ;;  %v809_v41 = vpack.c.bf16 %v788_v28, %v787_v36  ;;  %v761_v45 = vmul.f32 0.2, %v713_v26  ;;  %v9268_v28 = vld [vmem:[%s12175_s2 + $0x14] ss:$8 sps:$4 sm:$0xff]  }
 0x1b4   :  { %1204 = vmatpush1.bf16.msra.mxu1 %v811_v53  ;;  %v762_v14 = vmul.f32 0.2, %v714_v40  ;;  %v682_v23 = vmul.f32 %v10916_v2, %v652_v42  ;;  %v711_v35 = vadd.f32 %v10931_v52, %v681_v43  ;;  %v703_v11 = vmul.f32 %v10916_v2, %v673_v44  ;;  %v9270_v43 = vld [vmem:[%s12175_s2 + $0x10] ss:$8 sps:$4 sm:$0xff]   ;;  %v9271_v44 = vld [vmem:[%s12175_s2 + $0x24] ss:$8 sps:$4 sm:$0xff]  }
 0x1b5   :  { %1205 = vmatprep.subr.bf16.mxu1 %v10538_v17  ;;  %v704_v51 = vmul.f32 %v10916_v2, %v674_v39  ;;  %vm737_vm0 = vcmp.ge.f32.partialorder %v713_v26, 0.0  ;;  %vm738_vm1 = vcmp.ge.f32.partialorder %v714_v40, 0.0  ;;  %v671_v49 = vmul.f32 %v10914_v48, %v645_v19  ;;  %v9273_v39 = vld [vmem:[%s12175_s2 + $0x20] ss:$8 sps:$4 sm:$0xff]  }
 0x1b6   :  { %v712_v0 = vadd.f32 %v10931_v52, %v682_v23  ;;  %v733_v50 = vadd.f32 %v10931_v52, %v703_v11  ;;  %v644_v56 = vsub.f32 %v10831_v61, %v10882_v16  ;;  %v669_v57 = vmul.f32 %v10914_v48, %v643_v31  ;;  %v9280_v23 = vld [vmem:[%s12175_s2 + $0x54] ss:$8 sps:$4 sm:$0xff]   ;;  %v9283_v11 = vld [vmem:[%s12175_s2 + $0x64] ss:$8 sps:$4 sm:$0xff]  }
 0x1b7   :  { %v734_v55 = vadd.f32 %v10931_v52, %v704_v51  ;;  %v702_v58 = vmul.f32 %v10916_v2, %v672_v22  ;;  %v785_v59 = vsel %vm737_vm0, %v713_v26, %v761_v45  ;;  %v786_v47 = vsel %vm738_vm1, %v714_v40, %v762_v14  ;;  %v9274_v22 = vld [vmem:[%s12175_s2 + $0x34] ss:$8 sps:$4 sm:$0xff]   ;;  %v9277_v45 = vld [vmem:[%s12175_s2 + $0x44] ss:$8 sps:$4 sm:$0xff]   ;;  %v9279_v14 = vld [vmem:[%s12175_s2 + $0x40] ss:$8 sps:$4 sm:$0xff]  }
 0x1b8   :  { %1206 = vmatpush1.bf16.msra.mxu1 %v810_v29  ;;  %vm735_vm2 = vcmp.ge.f32.partialorder %v711_v35, 0.0  ;;  %vm757_vm4 = vcmp.ge.f32.partialorder %v733_v50, 0.0  ;;  %v781_v62 = vmul.f32 0.2, %v733_v50  ;;  %v759_v1 = vmul.f32 0.2, %v711_v35 }
 0x1b9   :  { %1207 = vmatprep.subr.bf16.mxu1 %v10538_v17  ;;  %vm758_vm5 = vcmp.ge.f32.partialorder %v734_v55, 0.0  ;;  %v782_v63 = vmul.f32 0.2, %v734_v55  ;;  %v760_v4 = vmul.f32 0.2, %v712_v0  ;;  %v701_v5 = vmul.f32 %v10916_v2, %v671_v49 }
 0x1ba   :  { %v670_v32 = vmul.f32 %v10914_v48, %v644_v56  ;;  %vm736_vm6 = vcmp.ge.f32.partialorder %v712_v0, 0.0  ;;  %v805_v61 = vsel %vm757_vm4, %v733_v50, %v781_v62  ;;  %v699_v38 = vmul.f32 %v10916_v2, %v669_v57  ;;  %v9285_v51 = vld [vmem:[%s12175_s2 + $0x60] ss:$8 sps:$4 sm:$0xff]   ;;  %v9286_v31 = vld [vmem:[%s12175_s2 + $0x74] ss:$8 sps:$4 sm:$0xff]  }
 0x1bb   :  { %v806_v25 = vsel %vm758_vm5, %v734_v55, %v782_v63  ;;  %v732_v8 = vadd.f32 %v10931_v52, %v702_v58  ;;  %v808_v46 = vpack.c.bf16 %v786_v47, %v785_v59  ;;  %v667_v10 = vmul.f32 %v10914_v48, %v641_v33  ;;  %v9289_v49 = vld [vmem:[%s12175_s2 + $0x84] ss:$8 sps:$4 sm:$0xff]   ;;  %v9291_v50 = vld [vmem:[%s12175_s2 + $0x80] ss:$8 sps:$4 sm:$0xff]   ;;  %v9292_v55 = vld [vmem:[%s12175_s2 + $0x94] ss:$8 sps:$4 sm:$0xff]  }
 0x1bc   :  { %1208 = vmatpush1.bf16.msra.mxu1 %v809_v41  ;;  %v818_v6 = vpack.c.bf16 %v806_v25, %v805_v61  ;;  %v700_v9 = vmul.f32 %v10916_v2, %v670_v32  ;;  %v729_v53 = vadd.f32 %v10931_v52, %v699_v38  ;;  %v668_v18 = vmul.f32 %v10914_v48, %v642_v34  ;;  %v9276_v41 = vld [vmem:[%s12175_s2 + $0x30] ss:$8 sps:$4 sm:$0xff]   ;;  %v9295_v57 = vld [vmem:[%s12175_s2 + $0xa4] ss:$8 sps:$4 sm:$0xff]   ;;  %v9297_v58 = vld [vmem:[%s12175_s2 + $0xa0] ss:$8 sps:$4 sm:$0xff]  }
 0x1bd   :  { %1209 = vmatprep.subr.bf16.mxu1 %v10538_v17  ;;  %v783_v60 = vsel %vm735_vm2, %v711_v35, %v759_v1  ;;  %v784_v12 = vsel %vm736_vm6, %v712_v0, %v760_v4  ;;  %v731_v13 = vadd.f32 %v10931_v52, %v701_v5  ;;  %v697_v20 = vmul.f32 %v10916_v2, %v667_v10  ;;  %v9282_v35 = vld [vmem:[%s12175_s2 + $0x50] ss:$8 sps:$4 sm:$0xff]   ;;  %v9298_v59 = vld [vmem:[%s12175_s2 + $0xb4] ss:$8 sps:$4 sm:$0xff]   ;;  %v9301_v62 = vld [vmem:[%s12175_s2 + $0xc4] ss:$8 sps:$4 sm:$0xff]  }
 0x1be   :  { %v730_v15 = vadd.f32 %v10931_v52, %v700_v9  ;;  %vm753_vm7 = vcmp.ge.f32.partialorder %v729_v53, 0.0  ;;  %v777_v21 = vmul.f32 0.2, %v729_v53  ;;  %v698_v3 = vmul.f32 %v10916_v2, %v668_v18  ;;  %v9288_v0 = vld [vmem:[%s12175_s2 + $0x70] ss:$8 sps:$4 sm:$0xff]  }
 0x1bf   :  { %v807_v16 = vpack.c.bf16 %v784_v12, %v783_v60  ;;  %vm756_vm9 = vcmp.ge.f32.partialorder %v732_v8, 0.0  ;;  %v727_v34 = vadd.f32 %v10931_v52, %v697_v20  ;;  %v779_v48 = vmul.f32 0.2, %v731_v13  ;;  %v9294_v56 = vld [vmem:[%s12175_s2 + $0x90] ss:$8 sps:$4 sm:$0xff]  }
 0x1c0   :  { %1210 = vmatpush1.bf16.msra.mxu1 %v808_v46  ;;  %vm754_vm8 = vcmp.ge.f32.partialorder %v730_v15, 0.0  ;;  %v778_v54 = vmul.f32 0.2, %v730_v15  ;;  %v801_v33 = vsel %vm753_vm7, %v729_v53, %v777_v21  ;;  %v780_v7 = vmul.f32 0.2, %v732_v8 }
 0x1c1   :  { %1211 = vmatprep.subr.bf16.mxu1 %v10538_v17  ;;  %v728_v26 = vadd.f32 %v10931_v52, %v698_v3  ;;  %vm755_vm10 = vcmp.ge.f32.partialorder %v731_v13, 0.0  ;;  %vm751_vm11 = vcmp.ge.f32.partialorder %v727_v34, 0.0  ;;  %v775_v29 = vmul.f32 0.2, %v727_v34  ;;  %v9265_v52 = vld [vmem:[%s12175_s2] ss:$8 sps:$4 sm:$0xff]  }
 0x1c2   :  { %v802_v24 = vsel %vm754_vm8, %v730_v15, %v778_v54  ;;  %v803_v36 = vsel %vm755_vm10, %v731_v13, %v779_v48  ;;  %v804_v37 = vsel %vm756_vm9, %v732_v8, %v780_v7  ;;  %v9300_v47 = vld [vmem:[%s12175_s2 + $0xb0] ss:$8 sps:$4 sm:$0xff]   ;;  %v9303_v63 = vld [vmem:[%s12175_s2 + $0xc0] ss:$8 sps:$4 sm:$0xff]   ;;  %v9304_v1 = vld [vmem:[%s12175_s2 + $0xd4] ss:$8 sps:$4 sm:$0xff]  }
 0x1c3   :  { %v816_v27 = vpack.c.bf16 %v802_v24, %v801_v33  ;;  %vm752_vm12 = vcmp.ge.f32.partialorder %v728_v26, 0.0  ;;  %v776_v30 = vmul.f32 0.2, %v728_v26  ;;  %v799_v2 = vsel %vm751_vm11, %v727_v34, %v775_v29  ;;  %v9306_v4 = vld [vmem:[%s12175_s2 + $0xd0] ss:$8 sps:$4 sm:$0xff]  }
 0x1c4   :  { %1212 = vmatpush1.bf16.msra.mxu1 %v807_v16  ;;  %v817_v19 = vpack.c.bf16 %v804_v37, %v803_v36  ;;  %v9307_v5 = vld [vmem:[%s12175_s2 + $0xe4] ss:$8 sps:$4 sm:$0xff]   ;;  %v9309_v32 = vld [vmem:[%s12175_s2 + $0xe0] ss:$8 sps:$4 sm:$0xff]   ;;  %v9310_v61 = vld [vmem:[%s12175_s2 + $0xf4] ss:$8 sps:$4 sm:$0xff]  }
 0x1c5   :  { %1221 = vmatprep.subr.bf16.mxu1 %v10538_v17  ;;  %v800_v40 = vsel %vm752_vm12, %v728_v26, %v776_v30  ;;  %v9312_v25 = vld [vmem:[%s12175_s2 + $0xf0] ss:$8 sps:$4 sm:$0xff]   ;;  %v9313_v38 = vld [vmem:[%s12175_s2 + $0x104] ss:$8 sps:$4 sm:$0xff]   ;;  %v9316_v8 = vld [vmem:[%s12175_s2 + $0x114] ss:$8 sps:$4 sm:$0xff]  }
 0x1c6   :  { %v815_v42 = vpack.c.bf16 %v800_v40, %v799_v2  ;;  %v9318_v9 = vld [vmem:[%s12175_s2 + $0x110] ss:$8 sps:$4 sm:$0xff]   ;;  %v9319_v46 = vld [vmem:[%s12175_s2 + $0x124] ss:$8 sps:$4 sm:$0xff]   ;;  %v9321_v53 = vld [vmem:[%s12175_s2 + $0x120] ss:$8 sps:$4 sm:$0xff]  }
 0x1c7   :  { %v9322_v10 = vld [vmem:[%s12175_s2 + $0x134] ss:$8 sps:$4 sm:$0xff]   ;;  %v9324_v18 = vld [vmem:[%s12175_s2 + $0x130] ss:$8 sps:$4 sm:$0xff]   ;;  %v9325_v60 = vld [vmem:[%s12175_s2 + $0x144] ss:$8 sps:$4 sm:$0xff]  }
 0x1c8   :  { %1222 = vmatpush2.bf16.msra.mxu1 %v818_v6  ;;  %v9315_v6 = vld [vmem:[%s12175_s2 + $0x100] ss:$8 sps:$4 sm:$0xff]   ;;  %v9328_v13 = vld [vmem:[%s12175_s2 + $0x154] ss:$8 sps:$4 sm:$0xff]   ;;  %v9330_v15 = vld [vmem:[%s12175_s2 + $0x150] ss:$8 sps:$4 sm:$0xff]  }
 0x1c9   :  { %1223 = vmatprep.subr.bf16.mxu1 %v10538_v17  ;;  %v9327_v12 = vld [vmem:[%s12175_s2 + $0x140] ss:$8 sps:$4 sm:$0xff]   ;;  %v9331_v21 = vld [vmem:[%s12175_s2 + $0x164] ss:$8 sps:$4 sm:$0xff]   ;;  %v9334_v54 = vld [vmem:[%s12175_s2 + $0x174] ss:$8 sps:$4 sm:$0xff]  }
 0x1ca   :  { %v9333_v20 = vld [vmem:[%s12175_s2 + $0x160] ss:$8 sps:$4 sm:$0xff]   ;;  %v9336_v3 = vld [vmem:[%s12175_s2 + $0x170] ss:$8 sps:$4 sm:$0xff]   ;;  %v9337_v16 = vld [vmem:[%s12175_s2 + $0x184] ss:$8 sps:$4 sm:$0xff]  }
 0x1cb   :  { %v9339_v33 = vld [vmem:[%s12175_s2 + $0x180] ss:$8 sps:$4 sm:$0xff]   ;;  %v9340_v34 = vld [vmem:[%s12175_s2 + $0x194] ss:$8 sps:$4 sm:$0xff]   ;;  %vm1494_vm13 = vcmask 519168   ;;  %vm1534_vm14 = vcmask 1043968  }
 0x1cc   :  { %1224 = vmatpush2.bf16.msra.mxu1 %v817_v19  ;;  %v9343_v30 = vld [vmem:[%s12175_s2 + $0x1a4] ss:$8 sps:$4 sm:$0xff]   ;;  %v9345_v19 = vld [vmem:[%s12175_s2 + $0x1a0] ss:$8 sps:$4 sm:$0xff]   ;;  %vm10540_vm15 = vmmov 0   ;;  %vm2484_vm6 = vcmask 392192  }
 0x1cd   :  { %1225 = vmatprep.subr.bf16.mxu1 %v10538_v17  ;;  %vm3949_vm11 = vcmask 130048  }
 0x1d0   :  { %1226 = vmatpush2.bf16.msra.mxu1 %v816_v27  ;;  %v9342_v27 = vld [vmem:[%s12175_s2 + $0x190] ss:$8 sps:$4 sm:$0xff]  }
 0x1d1   :  { %1227 = vmatprep.subr.bf16.mxu1 %v10538_v17 }
 0x1d4   :  { %1228 = vmatpush2.bf16.msra.mxu1 %v815_v42 }
 0x1d7   :  { %1230 = vmatmul.mubr.bf16.vlgmr.msra.gmra.mxu1 %v9265_v52 }
 0x1d8   :  { %8072 = vmatprep.mubr.msk.bf16.mxu1 %vm489_vm3, %v9268_v28 }
 0x1df   :  { %1238 = vmatmul.mubr.bf16.gmra.mxu1 %v9270_v43 }
 0x1e0   :  { %8073 = vmatprep.mubr.msk.bf16.mxu1 %vm489_vm3, %v9271_v44 }
 0x1e7   :  { %1246 = vmatmul.mubr.bf16.gmra.mxu1 %v9273_v39 }
 0x1e8   :  { %8074 = vmatprep.mubr.msk.bf16.mxu1 %vm489_vm3, %v9274_v22 }
 0x1ef   :  { %1254 = vmatmul.mubr.bf16.gmra.mxu1 %v9276_v41 }
 0x1f0   :  { %8075 = vmatprep.mubr.msk.bf16.mxu1 %vm489_vm3, %v9277_v45 }
 0x1f7   :  { %1262 = vmatmul.mubr.bf16.gmra.mxu1 %v9279_v14 }
 0x1f8   :  { %8076 = vmatprep.mubr.msk.bf16.mxu1 %vm489_vm3, %v9280_v23 }
 0x1ff   :  { %1270 = vmatmul.mubr.bf16.gmra.mxu1 %v9282_v35 }
 0x200   :  { %8077 = vmatprep.mubr.msk.bf16.mxu1 %vm489_vm3, %v9283_v11 }
 0x207   :  { %1278 = vmatmul.mubr.bf16.gmra.mxu1 %v9285_v51 }
 0x208   :  { %8078 = vmatprep.mubr.msk.bf16.mxu1 %vm489_vm3, %v9286_v31 }
 0x20f   :  { %1286 = vmatmul.mubr.bf16.gmra.mxu1 %v9288_v0 }
 0x210   :  { %8079 = vmatprep.mubr.msk.bf16.mxu1 %vm489_vm3, %v9289_v49 }
 0x217   :  { %1294 = vmatmul.mubr.bf16.gmra.mxu1 %v9291_v50 }
 0x218   :  { %8080 = vmatprep.mubr.msk.bf16.mxu1 %vm489_vm3, %v9292_v55 }
 0x21f   :  { %1302 = vmatmul.mubr.bf16.gmra.mxu1 %v9294_v56 }
 0x220   :  { %8081 = vmatprep.mubr.msk.bf16.mxu1 %vm489_vm3, %v9295_v57 }
 0x227   :  { %1310 = vmatmul.mubr.bf16.gmra.mxu1 %v9297_v58 }
 0x228   :  { %8082 = vmatprep.mubr.msk.bf16.mxu1 %vm489_vm3, %v9298_v59 }
 0x22f   :  { %1318 = vmatmul.mubr.bf16.gmra.mxu1 %v9300_v47  ;;  %v9346_v47 = vld [vmem:[#allocation9 + $0x78] sm:$0xff]  }
 0x230   :  { %8083 = vmatprep.mubr.msk.bf16.mxu1 %vm489_vm3, %v9301_v62  ;;  %9053 = vmatprep.subr.bf16.mxu0 %v9346_v47 }
 0x237   :  { %1326 = vmatmul.mubr.bf16.gmra.mxu1 %v9303_v63  ;;  %v9347_v63 = vld [vmem:[#allocation9 + $0x38] sm:$0xff]  }
 0x238   :  { %8084 = vmatprep.mubr.msk.bf16.mxu1 %vm489_vm3, %v9304_v1  ;;  %9054 = vmatpush3.bf16.msra.mxu0 %v9347_v63 }
 0x23f   :  { %1334 = vmatmul.mubr.bf16.gmra.mxu1 %v9306_v4 }
 0x240   :  { %8085 = vmatprep.mubr.msk.bf16.mxu1 %vm489_vm3, %v9307_v5  ;;  %v9348_v5 = vld [vmem:[#allocation9 + $0x70] sm:$0xff]  }
 0x241   :  { %9055 = vmatprep.subr.bf16.mxu0 %v9348_v5 }
 0x247   :  { %1342 = vmatmul.mubr.bf16.gmra.mxu1 %v9309_v32 }
 0x248   :  { %8086 = vmatprep.mubr.msk.bf16.mxu1 %vm489_vm3, %v9310_v61  ;;  %v9349_v61 = vld [vmem:[#allocation9 + $0x30] sm:$0xff]  }
 0x249   :  { %9056 = vmatpush3.bf16.msra.mxu0 %v9349_v61 }
 0x24f   :  { %1350 = vmatmul.mubr.bf16.gmra.mxu1 %v9312_v25 }
 0x250   :  { %8087 = vmatprep.mubr.msk.bf16.mxu1 %vm489_vm3, %v9313_v38 }
 0x257   :  { %1358 = vmatmul.mubr.bf16.gmra.mxu1 %v9315_v6  ;;  %v9350_v6 = vld [vmem:[#allocation9 + $0x68] sm:$0xff]  }
 0x258   :  { %8088 = vmatprep.mubr.msk.bf16.mxu1 %vm489_vm3, %v9316_v8  ;;  %9057 = vmatprep.subr.bf16.mxu0 %v9350_v6 }
 0x25f   :  { %1366 = vmatmul.mubr.bf16.gmra.mxu1 %v9318_v9  ;;  %v9351_v9 = vld [vmem:[#allocation9 + $0x28] sm:$0xff]  }
 0x260   :  { %8089 = vmatprep.mubr.msk.bf16.mxu1 %vm489_vm3, %v9319_v46  ;;  %9058 = vmatpush3.bf16.msra.mxu0 %v9351_v9 }
 0x267   :  { %1374 = vmatmul.mubr.bf16.gmra.mxu1 %v9321_v53 }
 0x268   :  { %8090 = vmatprep.mubr.msk.bf16.mxu1 %vm489_vm3, %v9322_v10  ;;  %v9352_v10 = vld [vmem:[#allocation9 + $0x60] sm:$0xff]  }
 0x269   :  { %9059 = vmatprep.subr.bf16.mxu0 %v9352_v10 }
 0x26f   :  { %1382 = vmatmul.mubr.bf16.gmra.mxu1 %v9324_v18 }
 0x270   :  { %8091 = vmatprep.mubr.msk.bf16.mxu1 %vm489_vm3, %v9325_v60  ;;  %v9353_v60 = vld [vmem:[#allocation9 + $0x20] sm:$0xff]  }
 0x271   :  { %9060 = vmatpush3.bf16.msra.mxu0 %v9353_v60 }
 0x277   :  { %1390 = vmatmul.mubr.bf16.gmra.mxu1 %v9327_v12 }
 0x278   :  { %8092 = vmatprep.mubr.msk.bf16.mxu1 %vm489_vm3, %v9328_v13 }
 0x27f   :  { %1398 = vmatmul.mubr.bf16.gmra.mxu1 %v9330_v15  ;;  %v9354_v15 = vld [vmem:[#allocation9 + $0x58] sm:$0xff]  }
 0x280   :  { %8093 = vmatprep.mubr.msk.bf16.mxu1 %vm489_vm3, %v9331_v21  ;;  %9061 = vmatprep.subr.bf16.mxu0 %v9354_v15 }
 0x287   :  { %1406 = vmatmul.mubr.bf16.gmra.mxu1 %v9333_v20  ;;  %v9355_v20 = vld [vmem:[#allocation9 + $0x18] sm:$0xff]  }
 0x288   :  { %8094 = vmatprep.mubr.msk.bf16.mxu1 %vm489_vm3, %v9334_v54  ;;  %v9356_v54 = vld [vmem:[#allocation9 + $0x50] sm:$0xff]   ;;  %9062 = vmatpush3.bf16.msra.mxu0 %v9355_v20 }
 0x289   :  { %9063 = vmatprep.subr.bf16.mxu0 %v9356_v54 }
 0x28f   :  { %1414 = vmatmul.mubr.bf16.gmra.mxu1 %v9336_v3 }
 0x290   :  { %8095 = vmatprep.mubr.msk.bf16.mxu1 %vm489_vm3, %v9337_v16 }
 0x297   :  { %v1231_v48 = vpop.f32.mrf.mxu1  ;;  %1422 = vmatmul.mubr.bf16.gmra.mxu1 %v9339_v33 }
 0x298   :  { %v8921_v7 = vpack.c.bf16 %v1231_v48, %v1231_v48  ;;  %8096 = vmatprep.mubr.msk.bf16.mxu1 %vm489_vm3, %v9340_v34  ;;  %v9357_v34 = vld [vmem:[#allocation9 + $0x10] sm:$0xff]   ;;  %v9358_v48 = vld [vmem:[#allocation9 + $0x48] sm:$0xff]  }
 0x299   :  { %v1233_v24 = vpop.f32.mrf.mxu1  ;;  %9064 = vmatpush3.bf16.msra.mxu0 %v9357_v34 }
 0x29a   :  { %1495 = vst.msk [vmem:[#allocation4] sm:$0xf] %vm1494_vm13, %v8921_v7  ;;  %9065 = vmatprep.subr.bf16.mxu0 %v9358_v48 }
 0x29b   :  { %v1234_v26 = vpop.f32.mrf.mxu1 }
 0x29c   :  { %v8922_v29 = vpack.c.bf16 %v1234_v26, %v1234_v26 }
 0x29d   :  { %v1236_v2 = vpop.f32.mrf.mxu1 }
 0x29e   :  { %1496 = vst.msk [vmem:[#allocation4 + $0x14] sm:$0xf] %vm1494_vm13, %v8922_v29  ;;  %v9360_v29 = vld [vmem:[#allocation9 + $0x40] sm:$0xff]  }
 0x29f   :  { %v1239_v36 = vpop.f32.mrf.mxu1  ;;  %1430 = vmatmul.mubr.bf16.gmra.mxu1 %v9342_v27  ;;  %v9359_v27 = vld [vmem:[#allocation9 + $0x8] sm:$0xff]  }
 0x2a0   :  { %v8923_v37 = vpack.c.bf16 %v1239_v36, %v1239_v36  ;;  %8097 = vmatprep.mubr.msk.bf16.mxu1 %vm489_vm3, %v9343_v30  ;;  %9066 = vmatpush3.bf16.msra.mxu0 %v9359_v27 }
 0x2a1   :  { %v1241_v40 = vpop.f32.mrf.mxu1  ;;  %9067 = vmatprep.subr.bf16.mxu0 %v9360_v29 }
 0x2a2   :  { %1497 = vst.msk [vmem:[#allocation4 + $0x28] sm:$0xf] %vm1494_vm13, %v8923_v37  ;;  %v9361_v37 = vld [vmem:[#allocation9] sm:$0xff]  }
 0x2a3   :  { %v1242_v42 = vpop.f32.mrf.mxu1 }
 0x2a4   :  { %v8924_v52 = vpack.c.bf16 %v1242_v42, %v1242_v42  ;;  %9068 = vmatpush3.bf16.msra.mxu0 %v9361_v37 }
 0x2a5   :  { %v1244_v28 = vpop.f32.mrf.mxu1 }
 0x2a6   :  { %1498 = vst.msk [vmem:[#allocation4 + $0x3c] sm:$0xf] %vm1494_vm13, %v8924_v52 }
 0x2a7   :  { %v1247_v43 = vpop.f32.mrf.mxu1  ;;  %1438 = vmatmul.mubr.bf16.gmra.mxu1 %v9345_v19 }
 0x2a8   :  { %v8925_v44 = vpack.c.bf16 %v1247_v43, %v1247_v43 }
 0x2a9   :  { %v1249_v39 = vpop.f32.mrf.mxu1 }
 0x2aa   :  { %1499 = vst.msk [vmem:[#allocation4 + $0x50] sm:$0xf] %vm1494_vm13, %v8925_v44 }
 0x2ab   :  { %v1250_v22 = vpop.f32.mrf.mxu1 }
 0x2ac   :  { %v8926_v41 = vpack.c.bf16 %v1250_v22, %v1250_v22 }
 0x2ad   :  { %v1252_v45 = vpop.f32.mrf.mxu1 }
 0x2ae   :  { %1500 = vst.msk [vmem:[#allocation4 + $0x64] sm:$0xf] %vm1494_vm13, %v8926_v41 }
 0x2af   :  { %v1255_v14 = vpop.f32.mrf.mxu1 }
 0x2b0   :  { %v8927_v23 = vpack.c.bf16 %v1255_v14, %v1255_v14 }
 0x2b1   :  { %v1257_v35 = vpop.f32.mrf.mxu1 }
 0x2b2   :  { %1516 = vrot.lane.b32.xlu0 %v8927_v23, %s10525_s18 }
 0x2b3   :  { %v1258_v11 = vpop.f32.mrf.mxu1 }
 0x2b4   :  { %v8928_v51 = vpack.c.bf16 %v1258_v11, %v1258_v11 }
 0x2b5   :  { %v1260_v31 = vpop.f32.mrf.mxu1 }
 0x2b6   :  { %1518 = vrot.lane.b32.xlu0 %v8928_v51, %s10525_s18 }
 0x2b7   :  { %v1263_v0 = vpop.f32.mrf.mxu1 }
 0x2b8   :  { %v8929_v49 = vpack.c.bf16 %v1263_v0, %v1263_v0 }
 0x2b9   :  { %v1265_v50 = vpop.f32.mrf.mxu1 }
 0x2ba   :  { %1520 = vrot.lane.b32.xlu0 %v8929_v49, %s10525_s18 }
 0x2bb   :  { %v11246_v55 = vpop.f32.mrf.mxu1 }
 0x2bc   :  { %v8930_v28 = vpack.c.bf16 %v11246_v55, %v11246_v55 }
 0x2bd   :  { %v1268_v56 = vpop.f32.mrf.mxu1 }
 0x2bf   :  { %v11248_v57 = vpop.f32.mrf.mxu1 }
 0x2c0   :  { %v8931_v22 = vpack.c.bf16 %v11248_v57, %v11248_v57 }
 0x2c1   :  { %v1273_v58 = vpop.f32.mrf.mxu1 }
 0x2c3   :  { %v11250_v59 = vpop.f32.mrf.mxu1 }
 0x2c4   :  { %v8932_v23 = vpack.c.bf16 %v11250_v59, %v11250_v59 }
 0x2c5   :  { %v1276_v62 = vpop.f32.mrf.mxu1 }
 0x2c7   :  { %v1279_v1 = vpop.f32.mrf.mxu1 }
 0x2c8   :  { %v8933_v4 = vpack.c.bf16 %v1279_v1, %v1279_v1 }
 0x2c9   :  { %v1281_v32 = vpop.f32.mrf.mxu1 }
 0x2ca   :  { %1562 = vst.msk [vmem:[#allocation4 + $0x4] sm:$0xf] %vm1494_vm13, %v8933_v4 }
 0x2cb   :  { %v1282_v25 = vpop.f32.mrf.mxu1 }
 0x2cc   :  { %v8934_v38 = vpack.c.bf16 %v1282_v25, %v1282_v25  ;;  %v9371_v25 = vld [vmem:[#allocation9 + $0xf8] sm:$0xff]  }
 0x2cd   :  { %v1284_v8 = vpop.f32.mrf.mxu1  ;;  %9087 = vmatprep.subr.bf16.mxu0 %v9371_v25 }
 0x2ce   :  { %1563 = vst.msk [vmem:[#allocation4 + $0x18] sm:$0xf] %vm1494_vm13, %v8934_v38 }
 0x2cf   :  { %v1287_v46 = vpop.f32.mrf.mxu1 }
 0x2d0   :  { %v8935_v53 = vpack.c.bf16 %v1287_v46, %v1287_v46 }
 0x2d1   :  { %v1289_v18 = vpop.f32.mrf.mxu1 }
 0x2d2   :  { %1564 = vst.msk [vmem:[#allocation4 + $0x2c] sm:$0xf] %vm1494_vm13, %v8935_v53 }
 0x2d3   :  { %v1290_v12 = vpop.f32.mrf.mxu1 }
 0x2d4   :  { %v8936_v13 = vpack.c.bf16 %v1290_v12, %v1290_v12 }
 0x2d5   :  { %v1292_v21 = vpop.f32.mrf.mxu1 }
 0x2d6   :  { %1565 = vst.msk [vmem:[#allocation4 + $0x40] sm:$0xf] %vm1494_vm13, %v8936_v13 }
 0x2d7   :  { %v1295_v3 = vpop.f32.mrf.mxu1 }
 0x2d8   :  { %v8937_v16 = vpack.c.bf16 %v1295_v3, %v1295_v3 }
 0x2d9   :  { %v1297_v33 = vpop.f32.mrf.mxu1 }
 0x2da   :  { %1566 = vst.msk [vmem:[#allocation4 + $0x54] sm:$0xf] %vm1494_vm13, %v8937_v16 }
 0x2db   :  { %v1298_v7 = vpop.f32.mrf.mxu1 }
 0x2dc   :  { %v8938_v24 = vpack.c.bf16 %v1298_v7, %v1298_v7 }
 0x2dd   :  { %v1300_v26 = vpop.f32.mrf.mxu1 }
 0x2de   :  { %1567 = vst.msk [vmem:[#allocation4 + $0x68] sm:$0xf] %vm1494_vm13, %v8938_v24 }
 0x2df   :  { %v1303_v30 = vpop.f32.mrf.mxu1 }
 0x2e0   :  { %v8939_v2 = vpack.c.bf16 %v1303_v30, %v1303_v30 }
 0x2e1   :  { %v1305_v36 = vpop.f32.mrf.mxu1 }
 0x2e2   :  { %1583 = vrot.lane.b32.xlu1 %v8939_v2, %s10525_s18 }
 0x2e3   :  { %v1306_v40 = vpop.f32.mrf.mxu1 }
 0x2e4   :  { %v8940_v42 = vpack.c.bf16 %v1306_v40, %v1306_v40 }
 0x2e5   :  { %v1308_v19 = vpop.f32.mrf.mxu1 }
 0x2e6   :  { %1585 = vrot.lane.b32.xlu1 %v8940_v42, %s10525_s18 }
 0x2e7   :  { %v1311_v52 = vpop.f32.mrf.mxu1 }
 0x2e8   :  { %v8941_v43 = vpack.c.bf16 %v1311_v52, %v1311_v52 }
 0x2e9   :  { %v1313_v44 = vpop.f32.mrf.mxu1 }
 0x2ea   :  { %1522 = vrot.lane.b32.xlu1 %v8930_v28, %s10525_s18  ;;  %1587 = vrot.lane.b32.xlu0 %v8941_v43, %s10525_s18 }
 0x2eb   :  { %v1314_v39 = vpop.f32.mrf.mxu1 }
 0x2ec   :  { %v8942_v41 = vpack.c.bf16 %v1314_v39, %v1314_v39 }
 0x2ed   :  { %v1316_v45 = vpop.f32.mrf.mxu1 }
 0x2ee   :  { %1524 = vrot.lane.b32.xlu0 %v8931_v22, %s10525_s18  ;;  %1589 = vrot.lane.b32.xlu1 %v8942_v41, %s10525_s18 }
 0x2ef   :  { %v1319_v14 = vpop.f32.mrf.mxu1 }
 0x2f0   :  { %v8943_v35 = vpack.c.bf16 %v1319_v14, %v1319_v14 }
 0x2f1   :  { %v1321_v11 = vpop.f32.mrf.mxu1 }
 0x2f2   :  { %1526 = vrot.lane.b32.xlu1 %v8932_v23, %s10525_s18  ;;  %1591 = vrot.lane.b32.xlu0 %v8943_v35, %s10525_s18 }
 0x2f3   :  { %v1322_v51 = vpop.f32.mrf.mxu1 }
 0x2f4   :  { %v8944_v31 = vpack.c.bf16 %v1322_v51, %v1322_v51 }
 0x2f5   :  { %v1324_v0 = vpop.f32.mrf.mxu1 }
 0x2f6   :  { %1593 = vrot.lane.b32.xlu1 %v8944_v31, %s10525_s18 }
 0x2f7   :  { %v1327_v49 = vpop.f32.mrf.mxu1 }
 0x2f8   :  { %v8945_v50 = vpack.c.bf16 %v1327_v49, %v1327_v49 }
 0x2f9   :  { %v1329_v55 = vpop.f32.mrf.mxu1 }
 0x2fa   :  { %1628 = vst.msk [vmem:[#allocation4 + $0x8] sm:$0xf] %vm1494_vm13, %v8945_v50 }
 0x2fb   :  { %v1330_v56 = vpop.f32.mrf.mxu1 }
 0x2fc   :  { %v8946_v57 = vpack.c.bf16 %v1330_v56, %v1330_v56 }
 0x2fd   :  { %v1332_v58 = vpop.f32.mrf.mxu1 }
 0x2fe   :  { %1629 = vst.msk [vmem:[#allocation4 + $0x1c] sm:$0xf] %vm1494_vm13, %v8946_v57 }
 0x2ff   :  { %v1335_v59 = vpop.f32.mrf.mxu1 }
 0x300   :  { %v8947_v47 = vpack.c.bf16 %v1335_v59, %v1335_v59 }
 0x301   :  { %v1337_v62 = vpop.f32.mrf.mxu1 }
 0x302   :  { %1630 = vst.msk [vmem:[#allocation4 + $0x30] sm:$0xf] %vm1494_vm13, %v8947_v47 }
 0x303   :  { %v1338_v63 = vpop.f32.mrf.mxu1 }
 0x304   :  { %v8948_v1 = vpack.c.bf16 %v1338_v63, %v1338_v63 }
 0x305   :  { %v1340_v4 = vpop.f32.mrf.mxu1 }
 0x306   :  { %1631 = vst.msk [vmem:[#allocation4 + $0x44] sm:$0xf] %vm1494_vm13, %v8948_v1 }
 0x307   :  { %v1343_v5 = vpop.f32.mrf.mxu1 }
 0x308   :  { %v8949_v32 = vpack.c.bf16 %v1343_v5, %v1343_v5 }
 0x309   :  { %v1345_v61 = vpop.f32.mrf.mxu1 }
 0x30a   :  { %1632 = vst.msk [vmem:[#allocation4 + $0x58] sm:$0xf] %vm1494_vm13, %v8949_v32 }
 0x30b   :  { %v1346_v38 = vpop.f32.mrf.mxu1 }
 0x30c   :  { %v8950_v6 = vpack.c.bf16 %v1346_v38, %v1346_v38 }
 0x30d   :  { %v1348_v8 = vpop.f32.mrf.mxu1 }
 0x30e   :  { %1633 = vst.msk [vmem:[#allocation4 + $0x6c] sm:$0xf] %vm1494_vm13, %v8950_v6 }
 0x30f   :  { %v1351_v9 = vpop.f32.mrf.mxu1 }
 0x310   :  { %v8951_v46 = vpack.c.bf16 %v1351_v9, %v1351_v9 }
 0x311   :  { %v1353_v53 = vpop.f32.mrf.mxu1 }
 0x312   :  { %1649 = vrot.lane.b32.xlu0 %v8951_v46, %s10525_s18 }
 0x313   :  { %v1354_v10 = vpop.f32.mrf.mxu1 }
 0x314   :  { %v8952_v18 = vpack.c.bf16 %v1354_v10, %v1354_v10 }
 0x315   :  { %v1356_v60 = vpop.f32.mrf.mxu1 }
 0x316   :  { %1651 = vrot.lane.b32.xlu1 %v8952_v18, %s10525_s18  ;;  %v9372_v18 = vld [vmem:[#allocation9 + $0xb8] sm:$0xff]  }
 0x317   :  { %v1359_v12 = vpop.f32.mrf.mxu1 }
 0x318   :  { %v8953_v35 = vpack.c.bf16 %v1359_v12, %v1359_v12 }
 0x319   :  { %v1361_v13 = vpop.f32.mrf.mxu1 }
 0x31b   :  { %v1362_v15 = vpop.f32.mrf.mxu1 }
 0x31c   :  { %v8954_v0 = vpack.c.bf16 %v1362_v15, %v1362_v15 }
 0x31d   :  { %v1364_v21 = vpop.f32.mrf.mxu1 }
 0x31f   :  { %v1367_v20 = vpop.f32.mrf.mxu1 }
 0x320   :  { %v8955_v56 = vpack.c.bf16 %v1367_v20, %v1367_v20 }
 0x321   :  { %v1369_v54 = vpop.f32.mrf.mxu1 }
 0x322   :  { %v9373_v54 = vld [vmem:[#allocation9 + $0xf0] sm:$0xff]  }
 0x323   :  { %v1370_v3 = vpop.f32.mrf.mxu1 }
 0x324   :  { %v1517_v16 = vpop.permute.xlu0 %1516  ;;  %v8956_v47 = vpack.c.bf16 %v1370_v3, %v1370_v3 }
 0x325   :  { %1535 = vst.msk [vmem:[#allocation4] sm:$0xf] %vm1534_vm14, %v1517_v16  ;;  %v1372_v33 = vpop.f32.mrf.mxu1 }
 0x327   :  { %v1375_v34 = vpop.f32.mrf.mxu1 }
 0x328   :  { %v8957_v48 = vpack.c.bf16 %v1375_v34, %v1375_v34  ;;  %v1519_v7 = vpop.permute.xlu0 %1518 }
 0x329   :  { %1536 = vst.msk [vmem:[#allocation4 + $0x14] sm:$0xf] %vm1534_vm14, %v1519_v7  ;;  %v1377_v24 = vpop.f32.mrf.mxu1 }
 0x32a   :  { %1694 = vst.msk [vmem:[#allocation4 + $0xc] sm:$0xf] %vm1494_vm13, %v8957_v48  ;;  %v9374_v48 = vld [vmem:[#allocation9 + $0xb0] sm:$0xff]   ;;  %v9375_v24 = vld [vmem:[#allocation9 + $0xe8] sm:$0xff]  }
 0x32b   :  { %v1378_v26 = vpop.f32.mrf.mxu1 }
 0x32c   :  { %v8958_v27 = vpack.c.bf16 %v1378_v26, %v1378_v26  ;;  %v1521_v29 = vpop.permute.xlu0 %1520 }
 0x32d   :  { %1537 = vst.msk [vmem:[#allocation4 + $0x28] sm:$0xf] %vm1534_vm14, %v1521_v29  ;;  %v1380_v30 = vpop.f32.mrf.mxu1 }
 0x32e   :  { %1695 = vst.msk [vmem:[#allocation4 + $0x20] sm:$0xf] %vm1494_vm13, %v8958_v27  ;;  %v9376_v27 = vld [vmem:[#allocation9 + $0xa8] sm:$0xff]  }
 0x32f   :  { %v1383_v2 = vpop.f32.mrf.mxu1 }
 0x330   :  { %v8959_v36 = vpack.c.bf16 %v1383_v2, %v1383_v2  ;;  %v9362_v15 = vld [vmem:[#allocation4] ss:$20 sps:$4 sm:$0xff]  }
 0x331   :  { %v1385_v37 = vpop.f32.mrf.mxu1 }
 0x332   :  { %1696 = vst.msk [vmem:[#allocation4 + $0x34] sm:$0xf] %vm1494_vm13, %v8959_v36 }
 0x333   :  { %v1386_v40 = vpop.f32.mrf.mxu1 }
 0x334   :  { %v8960_v42 = vpack.c.bf16 %v1386_v40, %v1386_v40  ;;  %v9377_v40 = vld [vmem:[#allocation9 + $0xe0] sm:$0xff]  }
 0x335   :  { %v1388_v19 = vpop.f32.mrf.mxu1 }
 0x336   :  { %1697 = vst.msk [vmem:[#allocation4 + $0x48] sm:$0xf] %vm1494_vm13, %v8960_v42 }
 0x337   :  { %v1391_v52 = vpop.f32.mrf.mxu1 }
 0x338   :  { %v8961_v28 = vpack.c.bf16 %v1391_v52, %v1391_v52  ;;  %v9378_v52 = vld [vmem:[#allocation9 + $0xa0] sm:$0xff]  }
 0x339   :  { %v1393_v43 = vpop.f32.mrf.mxu1 }
 0x33a   :  { %1698 = vst.msk [vmem:[#allocation4 + $0x5c] sm:$0xf] %vm1494_vm13, %v8961_v28  ;;  %v9379_v43 = vld [vmem:[#allocation9 + $0xd8] sm:$0xff]  }
 0x33b   :  { %v1394_v44 = vpop.f32.mrf.mxu1 }
 0x33c   :  { %v8962_v39 = vpack.c.bf16 %v1394_v44, %v1394_v44 }
 0x33d   :  { %v1396_v22 = vpop.f32.mrf.mxu1 }
 0x33e   :  { %1699 = vst.msk [vmem:[#allocation4 + $0x70] sm:$0xf] %vm1494_vm13, %v8962_v39  ;;  %v9380_v39 = vld [vmem:[#allocation9 + $0x98] sm:$0xff]  }
 0x33f   :  { %v1399_v41 = vpop.f32.mrf.mxu1 }
 0x340   :  { %v8963_v45 = vpack.c.bf16 %v1399_v41, %v1399_v41 }
 0x341   :  { %v1401_v14 = vpop.f32.mrf.mxu1 }
 0x342   :  { %1715 = vrot.lane.b32.xlu0 %v8963_v45, %s10525_s18  ;;  %v9381_v45 = vld [vmem:[#allocation9 + $0xd0] sm:$0xff]  }
 0x343   :  { %v1402_v23 = vpop.f32.mrf.mxu1  ;;  %v9382_v14 = vld [vmem:[#allocation9 + $0x90] sm:$0xff]  }
 0x344   :  { %v8964_v11 = vpack.c.bf16 %v1402_v23, %v1402_v23  ;;  %v9383_v23 = vld [vmem:[#allocation9 + $0xc8] sm:$0xff]  }
 0x345   :  { %v1404_v51 = vpop.f32.mrf.mxu1 }
 0x346   :  { %1653 = vrot.lane.b32.xlu0 %v8953_v35, %s10525_s18  ;;  %1717 = vrot.lane.b32.xlu1 %v8964_v11, %s10525_s18  ;;  %v9384_v35 = vld [vmem:[#allocation9 + $0x88] sm:$0xff]   ;;  %v9385_v11 = vld [vmem:[#allocation9 + $0xc0] sm:$0xff]  }
 0x347   :  { %v1407_v31 = vpop.f32.mrf.mxu1  ;;  %v9386_v51 = vld [vmem:[#allocation9 + $0x80] sm:$0xff]  }
 0x348   :  { %v8965_v49 = vpack.c.bf16 %v1407_v31, %v1407_v31  ;;  %v10539_v31 = vmov 0.0  }
 0x349   :  { %v1409_v50 = vpop.f32.mrf.mxu1 }
 0x34a   :  { %1655 = vrot.lane.b32.xlu1 %v8954_v0, %s10525_s18  ;;  %1719 = vrot.lane.b32.xlu0 %v8965_v49, %s10525_s18 }
 0x34b   :  { %v1410_v55 = vpop.f32.mrf.mxu1 }
 0x34c   :  { %v8966_v57 = vpack.c.bf16 %v1410_v55, %v1410_v55 }
 0x34d   :  { %v1412_v58 = vpop.f32.mrf.mxu1 }
 0x34e   :  { %1657 = vrot.lane.b32.xlu0 %v8955_v56, %s10525_s18  ;;  %1721 = vrot.lane.b32.xlu1 %v8966_v57, %s10525_s18 }
 0x34f   :  { %v1415_v59 = vpop.f32.mrf.mxu1 }
 0x350   :  { %v8967_v62 = vpack.c.bf16 %v1415_v59, %v1415_v59  ;;  %v9393_v59 = vld [vmem:[#allocation9 + $0x118] sm:$0xff]  }
 0x351   :  { %v1417_v63 = vpop.f32.mrf.mxu1 }
 0x352   :  { %1659 = vrot.lane.b32.xlu1 %v8956_v47, %s10525_s18  ;;  %1723 = vrot.lane.b32.xlu0 %v8967_v62, %s10525_s18 }
 0x353   :  { %v1418_v1 = vpop.f32.mrf.mxu1 }
 0x354   :  { %v8968_v4 = vpack.c.bf16 %v1418_v1, %v1418_v1  ;;  %v1584_v5 = vpop.permute.xlu1 %1583 }
 0x355   :  { %1601 = vst.msk [vmem:[#allocation4 + $0x4] sm:$0xf] %vm1534_vm14, %v1584_v5  ;;  %v1420_v32 = vpop.f32.mrf.mxu1 }
 0x356   :  { %1725 = vrot.lane.b32.xlu1 %v8968_v4, %s10525_s18  ;;  %v9394_v32 = vld [vmem:[#allocation9 + $0x110] sm:$0xff]  }
 0x357   :  { %v1423_v61 = vpop.f32.mrf.mxu1 }
 0x358   :  { %v1586_v25 = vpop.permute.xlu1 %1585  ;;  %v8969_v38 = vpack.c.bf16 %v1423_v61, %v1423_v61  ;;  %v9398_v61 = vld [vmem:[#allocation9 + $0x108] sm:$0xff]  }
 0x359   :  { %1602 = vst.msk [vmem:[#allocation4 + $0x18] sm:$0xf] %vm1534_vm14, %v1586_v25  ;;  %v1425_v6 = vpop.f32.mrf.mxu1 }
 0x35a   :  { %1760 = vst.msk [vmem:[#allocation4 + $0x10] sm:$0xf] %vm1494_vm13, %v8969_v38 }
 0x35b   :  { %v1426_v8 = vpop.f32.mrf.mxu1 }
 0x35c   :  { %v1523_v9 = vpop.permute.xlu1 %1522  ;;  %v1588_v46 = vpop.permute.xlu0 %1587  ;;  %v8970_v53 = vpack.c.bf16 %v1426_v8, %v1426_v8  ;;  %v9399_v8 = vld [vmem:[#allocation9 + $0x100] sm:$0xff]  }
 0x35d   :  { %1538 = vst.msk [vmem:[#allocation4 + $0x3c] sm:$0xf] %vm1534_vm14, %v1523_v9  ;;  %1603 = vst.msk [vmem:[#allocation4 + $0x2c] sm:$0xf] %vm1534_vm14, %v1588_v46  ;;  %v1428_v10 = vpop.f32.mrf.mxu1 }
 0x35e   :  { %1761 = vst.msk [vmem:[#allocation4 + $0x24] sm:$0xf] %vm1494_vm13, %v8970_v53 }
 0x35f   :  { %v1431_v60 = vpop.f32.mrf.mxu1 }
 0x360   :  { %v1525_v12 = vpop.permute.xlu0 %1524  ;;  %v1590_v13 = vpop.permute.xlu1 %1589  ;;  %v9364_v21 = vld [vmem:[#allocation4 + $0x4] ss:$20 sps:$4 sm:$0xff]   ;;  %v8971_v20 = vpack.c.bf16 %v1431_v60, %v1431_v60 }
 0x361   :  { %1539 = vst.msk [vmem:[#allocation4 + $0x50] sm:$0xf] %vm1534_vm14, %v1525_v12  ;;  %1604 = vst.msk [vmem:[#allocation4 + $0x40] sm:$0xf] %vm1534_vm14, %v1590_v13  ;;  %v1433_v3 = vpop.f32.mrf.mxu1  ;;  %2188 = vmatprep.mubr.bf16.mxu0 %v9364_v21 }
 0x362   :  { %1762 = vst.msk [vmem:[#allocation4 + $0x38] sm:$0xf] %vm1494_vm13, %v8971_v20  ;;  %2189 = vmatmul.mubr.bf16.vlgmr.msra.gmra.mxu0 %v9362_v15 }
 0x363   :  { %v1434_v16 = vpop.f32.mrf.mxu1  ;;  %9088 = vmatpush3.bf16.msra.mxu0 %v9372_v18 }
 0x364   :  { %v1527_v33 = vpop.permute.xlu1 %1526  ;;  %v1592_v34 = vpop.permute.xlu0 %1591  ;;  %v8972_v7 = vpack.c.bf16 %v1434_v16, %v1434_v16  ;;  %9089 = vmatprep.subr.bf16.mxu0 %v9373_v54  ;;  %v9367_v36 = vld [vmem:[#allocation4 + $0x28] ss:$20 sps:$4 sm:$0xff]  }
 0x365   :  { %1540 = vst.msk [vmem:[#allocation4 + $0x64] sm:$0xf] %vm1534_vm14, %v1527_v33  ;;  %1605 = vst.msk [vmem:[#allocation4 + $0x54] sm:$0xf] %vm1534_vm14, %v1592_v34  ;;  %v1436_v26 = vpop.f32.mrf.mxu1  ;;  %v9400_v53 = vld [vmem:[#allocation4 + $0x10] ss:$20 sps:$4 sm:$0xff]  }
 0x366   :  { %1763 = vst.msk [vmem:[#allocation4 + $0x4c] sm:$0xf] %vm1494_vm13, %v8972_v7 }
 0x367   :  { %v1439_v29 = vpop.f32.mrf.mxu1  ;;  %9090 = vmatpush3.bf16.msra.mxu0 %v9374_v48 }
 0x368   :  { %v1594_v30 = vpop.permute.xlu1 %1593  ;;  %v9365_v2 = vld [vmem:[#allocation4 + $0x2c] ss:$20 sps:$4 sm:$0xff]   ;;  %v8973_v37 = vpack.c.bf16 %v1439_v29, %v1439_v29  ;;  %9091 = vmatprep.subr.bf16.mxu0 %v9375_v24 }
 0x369   :  { %1606 = vst.msk [vmem:[#allocation4 + $0x68] sm:$0xf] %vm1534_vm14, %v1594_v30  ;;  %v1441_v42 = vpop.f32.mrf.mxu1  ;;  %2196 = vmatprep.mubr.bf16.mxu0 %v9365_v2 }
 0x36a   :  { %1764 = vst.msk [vmem:[#allocation4 + $0x60] sm:$0xf] %vm1494_vm13, %v8973_v37  ;;  %2197 = vmatmul.mubr.bf16.gmra.mxu0 %v9367_v36 }
 0x36b   :  { %v1442_v19 = vpop.f32.mrf.mxu1  ;;  %9092 = vmatpush3.bf16.msra.mxu0 %v9376_v27 }
 0x36c   :  { %v8974_v28 = vpack.c.bf16 %v1442_v19, %v1442_v19  ;;  %9093 = vmatprep.subr.bf16.mxu0 %v9377_v40  ;;  %v9370_v41 = vld [vmem:[#allocation4 + $0x50] ss:$20 sps:$4 sm:$0xff]  }
 0x36d   :  { %v1444_v44 = vpop.f32.mrf.mxu1  ;;  %v9401_v10 = vld [vmem:[#allocation4 + $0x38] ss:$20 sps:$4 sm:$0xff]  }
 0x36e   :  { %1765 = vst.msk [vmem:[#allocation4 + $0x74] sm:$0xf] %vm1494_vm13, %v8974_v28  ;;  %v9410_v44 = vld [vmem:[#allocation11 + $0x170] ss:$8 sps:$4 sm:$0xff]  }
 0x36f   :  { %9094 = vmatpush3.bf16.msra.mxu0 %v9378_v52 }
 0x370   :  { %v9368_v22 = vld [vmem:[#allocation4 + $0x54] ss:$20 sps:$4 sm:$0xff]   ;;  %9095 = vmatprep.subr.bf16.mxu0 %v9379_v43 }
 0x371   :  { %2204 = vmatprep.mubr.bf16.mxu0 %v9368_v22 }
 0x372   :  { %2205 = vmatmul.mubr.bf16.gmra.mxu0 %v9370_v41  ;;  %v9415_v41 = vld [vmem:[#allocation11 + $0x164] ss:$8 sps:$4 sm:$0xff]  }
 0x373   :  { %9096 = vmatpush3.bf16.msra.mxu0 %v9380_v39  ;;  %v9412_v39 = vld [vmem:[#allocation11 + $0x174] ss:$8 sps:$4 sm:$0xff]  }
 0x374   :  { %9097 = vmatprep.subr.bf16.mxu0 %v9381_v45  ;;  %3670 = vmatprep.subr.bf16.mxu1 %v9412_v39 }
 0x375   :  { %v9402_v18 = vld [vmem:[#allocation4 + $0x60] ss:$20 sps:$4 sm:$0xff]   ;;  %3671 = vmatpush1.bf16.msra.mxu1 %v9410_v44  ;;  %v9429_v44 = vld [vmem:[#allocation11 + $0x124] ss:$8 sps:$4 sm:$0xff]  }
 0x376   :  { %3672 = vmatprep.subr.bf16.mxu1 %v9415_v41  ;;  %v9427_v41 = vld [vmem:[#allocation11 + $0x120] ss:$8 sps:$4 sm:$0xff]  }
 0x377   :  { %9098 = vmatpush3.bf16.msra.mxu0 %v9382_v14 }
 0x378   :  { %9099 = vmatprep.subr.bf16.mxu0 %v9383_v23 }
 0x37b   :  { %9100 = vmatpush3.bf16.msra.mxu0 %v9384_v35 }
 0x37c   :  { %9101 = vmatprep.subr.bf16.mxu0 %v9385_v11  ;;  %v9413_v11 = vld [vmem:[#allocation11 + $0x160] ss:$8 sps:$4 sm:$0xff]  }
 0x37d   :  { %3673 = vmatpush1.bf16.msra.mxu1 %v9413_v11 }
 0x37f   :  { %9102 = vmatpush3.bf16.msra.mxu0 %v9386_v51 }
 0x380   :  { %9166 = vmatprep.subr.bf16.mxu0 %v10539_v31 }
 0x384   :  { %v1650_v0 = vpop.permute.xlu0 %1649 }
 0x385   :  { %1667 = vst.msk [vmem:[#allocation4 + $0x8] sm:$0xf] %vm1534_vm14, %v1650_v0 }
 0x388   :  { %v1652_v49 = vpop.permute.xlu1 %1651 }
 0x389   :  { %1668 = vst.msk [vmem:[#allocation4 + $0x1c] sm:$0xf] %vm1534_vm14, %v1652_v49 }
 0x390   :  { %v9387_v63 = vld [vmem:[#allocation4 + $0x8] ss:$20 sps:$4 sm:$0xff]  }
 0x3b4   :  { %v1716_v50 = vpop.permute.xlu0 %1715 }
 0x3b5   :  { %1733 = vst.msk [vmem:[#allocation4 + $0xc] sm:$0xf] %vm1534_vm14, %v1716_v50 }
 0x3b8   :  { %v1654_v55 = vpop.permute.xlu0 %1653  ;;  %v1718_v56 = vpop.permute.xlu1 %1717 }
 0x3b9   :  { %1669 = vst.msk [vmem:[#allocation4 + $0x30] sm:$0xf] %vm1534_vm14, %v1654_v55  ;;  %1734 = vst.msk [vmem:[#allocation4 + $0x20] sm:$0xf] %vm1534_vm14, %v1718_v56 }
 0x3bc   :  { %v1656_v57 = vpop.permute.xlu1 %1655  ;;  %v1720_v58 = vpop.permute.xlu0 %1719 }
 0x3bd   :  { %1670 = vst.msk [vmem:[#allocation4 + $0x44] sm:$0xf] %vm1534_vm14, %v1656_v57  ;;  %1735 = vst.msk [vmem:[#allocation4 + $0x34] sm:$0xf] %vm1534_vm14, %v1720_v58 }
 0x3c0   :  { %v1658_v47 = vpop.permute.xlu0 %1657  ;;  %v1722_v62 = vpop.permute.xlu1 %1721  ;;  %v9389_v1 = vld [vmem:[#allocation4 + $0xc] ss:$20 sps:$4 sm:$0xff]  }
 0x3c1   :  { %1671 = vst.msk [vmem:[#allocation4 + $0x58] sm:$0xf] %vm1534_vm14, %v1658_v47  ;;  %1736 = vst.msk [vmem:[#allocation4 + $0x48] sm:$0xf] %vm1534_vm14, %v1722_v62  ;;  %2245 = vmatprep.mubr.bf16.mxu0 %v9389_v1 }
 0x3c2   :  { %2246 = vmatmul.mubr.bf16.vlgmr.msra.gmra.mxu0 %v9387_v63 }
 0x3c3   :  { %9167 = vmatpush3.bf16.msra.mxu0 %v9393_v59 }
 0x3c4   :  { %v1660_v4 = vpop.permute.xlu1 %1659  ;;  %v1724_v5 = vpop.permute.xlu0 %1723  ;;  %9168 = vmatprep.subr.bf16.mxu0 %v10539_v31  ;;  %v9392_v6 = vld [vmem:[#allocation4 + $0x30] ss:$20 sps:$4 sm:$0xff]  }
 0x3c5   :  { %1672 = vst.msk [vmem:[#allocation4 + $0x6c] sm:$0xf] %vm1534_vm14, %v1660_v4  ;;  %1737 = vst.msk [vmem:[#allocation4 + $0x5c] sm:$0xf] %vm1534_vm14, %v1724_v5 }
 0x3c7   :  { %9169 = vmatpush3.bf16.msra.mxu0 %v9394_v32 }
 0x3c8   :  { %v1726_v25 = vpop.permute.xlu1 %1725  ;;  %v9390_v38 = vld [vmem:[#allocation4 + $0x34] ss:$20 sps:$4 sm:$0xff]   ;;  %9170 = vmatprep.subr.bf16.mxu0 %v10539_v31 }
 0x3c9   :  { %1738 = vst.msk [vmem:[#allocation4 + $0x70] sm:$0xf] %vm1534_vm14, %v1726_v25  ;;  %2253 = vmatprep.mubr.bf16.mxu0 %v9390_v38 }
 0x3ca   :  { %2254 = vmatmul.mubr.bf16.gmra.mxu0 %v9392_v6 }
 0x3cb   :  { %9171 = vmatpush3.bf16.msra.mxu0 %v9398_v61 }
 0x3cc   :  { %9172 = vmatprep.subr.bf16.mxu0 %v10539_v31  ;;  %v9397_v46 = vld [vmem:[#allocation4 + $0x58] ss:$20 sps:$4 sm:$0xff]  }
 0x3cf   :  { %9173 = vmatpush3.bf16.msra.mxu0 %v9399_v8 }
 0x3d0   :  { %v9395_v9 = vld [vmem:[#allocation4 + $0x5c] ss:$20 sps:$4 sm:$0xff]   ;;  %9186 = vmatprep.subr.bf16.mxu0 %v10539_v31 }
 0x3d1   :  { %2261 = vmatprep.mubr.bf16.mxu0 %v9395_v9 }
 0x3d2   :  { %2262 = vmatmul.mubr.bf16.gmra.mxu0 %v9397_v46 }
 0x3d3   :  { %9174 = vmatprep.mubr.msk.bf16.mxu0 %vm10540_vm15, %v10539_v31 }
 0x3da   :  { %9175 = vmatmul.mubr.msk.bf16.vlgmr.msra.gmra.mxu0 %vm489_vm3, %v9400_v53 }
 0x3db   :  { %9178 = vmatprep.mubr.msk.bf16.mxu0 %vm10540_vm15, %v10539_v31 }
 0x3e2   :  { %9179 = vmatmul.mubr.msk.bf16.gmra.mxu0 %vm489_vm3, %v9401_v10 }
 0x3e3   :  { %9182 = vmatprep.mubr.msk.bf16.mxu0 %vm10540_vm15, %v10539_v31 }
 0x3ea   :  { %9183 = vmatmul.mubr.msk.bf16.gmra.mxu0 %vm489_vm3, %v9402_v18 }
 0x3eb   :  { %9192 = vmatprep.mubr.msk.bf16.mxu0 %vm10540_vm15, %v10539_v31 }
 0x422   :  { %v9069_v60 = vpop.f32.mrf.mxu0 }
 0x424   :  { %v9070_v12 = vpop.f32.mrf.mxu0 }
 0x425   :  { %v9071_v51 = vadd.f32 %v9070_v12, %v9069_v60 }
 0x426   :  { %v9072_v13 = vpop.f32.mrf.mxu0 }
 0x428   :  { %v9073_v15 = vpop.f32.mrf.mxu0 }
 0x429   :  { %v9074_v45 = vadd.f32 %v9073_v15, %v9072_v13 }
 0x42a   :  { %v9075_v21 = vpop.f32.mrf.mxu0 }
 0x42c   :  { %v9076_v20 = vpop.f32.mrf.mxu0 }
 0x42d   :  { %v9077_v0 = vadd.f32 %v9076_v20, %v9075_v21 }
 0x42e   :  { %v9078_v54 = vpop.f32.mrf.mxu0 }
 0x430   :  { %v9079_v3 = vpop.f32.mrf.mxu0 }
 0x431   :  { %v9080_v56 = vadd.f32 %v9079_v3, %v9078_v54 }
 0x432   :  { %v9081_v16 = vpop.f32.mrf.mxu0 }
 0x434   :  { %v9082_v33 = vpop.f32.mrf.mxu0 }
 0x435   :  { %v9083_v5 = vadd.f32 %v9082_v33, %v9081_v16  ;;  %v9418_v33 = vld [vmem:[#allocation11 + $0x150] ss:$8 sps:$4 sm:$0xff]  }
 0x436   :  { %v9084_v34 = vpop.f32.mrf.mxu0 }
 0x438   :  { %v9085_v48 = vpop.f32.mrf.mxu0 }
 0x439   :  { %v9086_v10 = vadd.f32 %v9085_v48, %v9084_v34  ;;  %v9423_v48 = vld [vmem:[#allocation11 + $0x144] ss:$8 sps:$4 sm:$0xff]  }
 0x482   :  { %v9103_v7 = vpop.f32.mrf.mxu0 }
 0x484   :  { %v9104_v24 = vpop.f32.mrf.mxu0 }
 0x485   :  { %v9105_v14 = vadd.f32 %v9104_v24, %v9103_v7  ;;  %v9420_v7 = vld [vmem:[#allocation11 + $0x154] ss:$8 sps:$4 sm:$0xff]  }
 0x486   :  { %v9106_v26 = vpop.f32.mrf.mxu0  ;;  %3674 = vmatprep.subr.bf16.mxu1 %v9420_v7 }
 0x487   :  { %v2248_v57 = vadd.f32 %v9105_v14, %v9071_v51  ;;  %3675 = vmatpush1.bf16.msra.mxu1 %v9418_v33  ;;  %v9430_v51 = vld [vmem:[#allocation11 + $0x110] ss:$8 sps:$4 sm:$0xff]   ;;  %v8207_v33 = vld [vmem:[#allocation18] ss:$0 sm:$0xff] }
 0x488   :  { %v9107_v27 = vpop.f32.mrf.mxu0  ;;  %3676 = vmatprep.subr.bf16.mxu1 %v9423_v48 }
 0x489   :  { %v9108_v43 = vadd.f32 %v9107_v27, %v9106_v26 }
 0x48a   :  { %v9109_v29 = vpop.f32.mrf.mxu0 }
 0x48b   :  { %v2251_v50 = vadd.f32 %v9108_v43, %v9074_v45 }
 0x48c   :  { %v9110_v30 = vpop.f32.mrf.mxu0 }
 0x48d   :  { %v9111_v23 = vadd.f32 %v9110_v30, %v9109_v29  ;;  %v9421_v30 = vld [vmem:[#allocation11 + $0x140] ss:$8 sps:$4 sm:$0xff]  }
 0x48e   :  { %v9112_v2 = vpop.f32.mrf.mxu0  ;;  %3677 = vmatpush1.bf16.msra.mxu1 %v9421_v30 }
 0x48f   :  { %v2256_v59 = vadd.f32 %v9111_v23, %v9077_v0  ;;  %v9432_v23 = vld [vmem:[#allocation11 + $0x114] ss:$8 sps:$4 sm:$0xff]  }
 0x490   :  { %v9113_v36 = vpop.f32.mrf.mxu0 }
 0x491   :  { %v9114_v49 = vadd.f32 %v9113_v36, %v9112_v2 }
 0x492   :  { %v9115_v37 = vpop.f32.mrf.mxu0 }
 0x493   :  { %v2259_v4 = vadd.f32 %v9114_v49, %v9080_v56 }
 0x494   :  { %v9116_v40 = vpop.f32.mrf.mxu0 }
 0x495   :  { %v9117_v47 = vadd.f32 %v9116_v40, %v9115_v37  ;;  %v9426_v40 = vld [vmem:[#allocation11 + $0x134] ss:$8 sps:$4 sm:$0xff]  }
 0x496   :  { %v9118_v42 = vpop.f32.mrf.mxu0  ;;  %3678 = vmatprep.subr.bf16.mxu1 %v9426_v40 }
 0x497   :  { %v2264_v6 = vadd.f32 %v9117_v47, %v9083_v5  ;;  %v9436_v5 = vld [vmem:[#allocation11 + $0x1f0] ss:$8 sps:$4 sm:$0xff]  }
 0x498   :  { %v9119_v19 = vpop.f32.mrf.mxu0 }
 0x499   :  { %v9120_v8 = vadd.f32 %v9119_v19, %v9118_v42 }
 0x49a   :  { %v2304_v52 = vpop.f32.mrf.mxu0 }
 0x49b   :  { %v11345_v63 = vadd.f32 %v2304_v52, %v2248_v57  ;;  %v2267_v16 = vadd.f32 %v9120_v8, %v9086_v10  ;;  %v9424_v52 = vld [vmem:[#allocation11 + $0x130] ss:$8 sps:$4 sm:$0xff]   ;;  %v9433_v57 = vld [vmem:[#allocation11 + $0x100] ss:$8 sps:$4 sm:$0xff]   ;;  %v9465_v8 = vld [vmem:[#allocation11 + $0x1d4] ss:$8 sps:$4 sm:$0xff]  }
 0x49c   :  { %v9176_v28 = vpop.f32.mrf.mxu0  ;;  %3679 = vmatpush1.bf16.msra.mxu1 %v9424_v52 }
 0x49d   :  { %v2341_v9 = vmul.f32 %v11345_v63, %v11345_v63  ;;  %3680 = vmatprep.subr.bf16.mxu1 %v9429_v44 }
 0x49e   :  { %v2307_v22 = vpop.f32.mrf.mxu0 }
 0x49f   :  { %v11343_v58 = vadd.f32 %v2307_v22, %v2251_v50  ;;  %v9435_v50 = vld [vmem:[#allocation11 + $0x104] ss:$8 sps:$4 sm:$0xff]  }
 0x4a0   :  { %v9177_v35 = vpop.f32.mrf.mxu0  ;;  %3681 = vmatpush1.bf16.msra.mxu1 %v9427_v41 }
 0x4a1   :  { %v2342_v61 = vmul.f32 %v11343_v58, %v11343_v58  ;;  %v2329_v46 = vadd.f32 %v11343_v58, %v11345_v63  ;;  %3682 = vmatprep.subr.bf16.mxu1 %v9432_v23  ;;  %v9441_v23 = vld [vmem:[#allocation11 + $0x74] ss:$8 sps:$4 sm:$0xff]  }
 0x4a2   :  { %v2312_v55 = vpop.f32.mrf.mxu0 }
 0x4a3   :  { %v11347_v1 = vadd.f32 %v2312_v55, %v2256_v59  ;;  %v2347_v60 = vadd.f32 %v2342_v61, %v2341_v9  ;;  %v9453_v61 = vld [vmem:[#allocation11 + $0x1e4] ss:$8 sps:$4 sm:$0xff]   ;;  %v9463_v9 = vld [vmem:[#allocation11 + $0x1d0] ss:$8 sps:$4 sm:$0xff]  }
 0x4a4   :  { %v9180_v62 = vpop.f32.mrf.mxu0  ;;  %3683 = vmatpush1.bf16.msra.mxu1 %v9430_v51  ;;  %v9439_v51 = vld [vmem:[#allocation11 + $0x70] ss:$8 sps:$4 sm:$0xff]  }
 0x4a5   :  { %v2343_v53 = vmul.f32 %v11347_v1, %v11347_v1  ;;  %v2330_v12 = vadd.f32 %v2329_v46, %v11347_v1  ;;  %3684 = vmatprep.subr.bf16.mxu1 %v9435_v50  ;;  %v9438_v62 = vld [vmem:[#allocation11 + $0x1f4] ss:$8 sps:$4 sm:$0xff]  }
 0x4a6   :  { %v2315_v32 = vpop.f32.mrf.mxu0  ;;  %v9447_v50 = vld [vmem:[#allocation11 + $0x54] ss:$8 sps:$4 sm:$0xff]  }
 0x4a7   :  { %v11351_v25 = vadd.f32 %v2315_v32, %v2259_v4  ;;  %v2348_v20 = vadd.f32 %v2347_v60, %v2343_v53 }
 0x4a8   :  { %v9181_v38 = vpop.f32.mrf.mxu0  ;;  %3685 = vmatpush1.bf16.msra.mxu1 %v9433_v57  ;;  %v9450_v57 = vld [vmem:[#allocation11 + $0x44] ss:$8 sps:$4 sm:$0xff]  }
 0x4a9   :  { %v2344_v13 = vmul.f32 %v11351_v25, %v11351_v25  ;;  %v2331_v54 = vadd.f32 %v2330_v12, %v11351_v25  ;;  %3686 = vmatprep.subr.bf16.mxu1 %v9438_v62  ;;  %v8206_v12 = vld [vmem:[#allocation17] ss:$0 sm:$0xff]  ;;  %v9405_v62 = vld [vmem:[%s12177_s4 + $0x10] sm:$0xff]  }
 0x4aa   :  { %v2320_v18 = vpop.f32.mrf.mxu0 }
 0x4ab   :  { %v11362_v15 = vadd.f32 %v2320_v18, %v2264_v6  ;;  %v2349_v24 = vadd.f32 %v2348_v20, %v2344_v13  ;;  %v9451_v6 = vld [vmem:[#allocation11 + $0x1e0] ss:$8 sps:$4 sm:$0xff]  }
 0x4ac   :  { %v9184_v21 = vpop.f32.mrf.mxu0  ;;  %3687 = vmatpush2.bf16.msra.mxu1 %v9436_v5  ;;  %v9459_v5 = vld [vmem:[#allocation11 + $0x24] ss:$8 sps:$4 sm:$0xff]  }
 0x4ad   :  { %v2345_v3 = vmul.f32 %v11362_v15, %v11362_v15  ;;  %v2332_v26 = vadd.f32 %v2331_v54, %v11362_v15  ;;  %3688 = vmatprep.subr.bf16.mxu1 %v9453_v61  ;;  %v9462_v61 = vld [vmem:[#allocation11 + $0x14] ss:$8 sps:$4 sm:$0xff]  }
 0x4ae   :  { %v2323_v34 = vpop.f32.mrf.mxu0 }
 0x4af   :  { %v11368_v27 = vadd.f32 %v2323_v34, %v2267_v16  ;;  %v2350_v2 = vadd.f32 %v2349_v24, %v2345_v3 }
 0x4b0   :  { %v9185_v29 = vpop.f32.mrf.mxu0  ;;  %3689 = vmatpush2.bf16.msra.mxu1 %v9451_v6  ;;  %v9460_v6 = vld [vmem:[#allocation11 + $0x10] ss:$8 sps:$4 sm:$0xff]  }
 0x4b1   :  { %v2333_v36 = vadd.f32 %v2332_v26, %v11368_v27  ;;  %v2346_v37 = vmul.f32 %v11368_v27, %v11368_v27  ;;  %3690 = vmatprep.subr.bf16.mxu1 %v9465_v8  ;;  %v9468_v8 = vld [vmem:[#allocation11 + $0x4] ss:$8 sps:$4 sm:$0xff]  }
 0x4b3   :  { %v2334_v42 = vrot.slane %v2333_v36, 4  ;;  %v2351_v19 = vadd.f32 %v2350_v2, %v2346_v37 }
 0x4b4   :  { %3691 = vmatpush2.bf16.msra.mxu1 %v9463_v9  ;;  %v9466_v9 = vld [vmem:[#allocation11] ss:$8 sps:$4 sm:$0xff]  }
 0x4b5   :  { %v2335_v28 = vadd.f32 %v2334_v42, %v2333_v36  ;;  %v2352_v43 = vrot.slane %v2351_v19, 4 }
 0x4b7   :  { %v2336_v39 = vrot.slane %v2335_v28, 2  ;;  %v2353_v22 = vadd.f32 %v2352_v43, %v2351_v19 }
 0x4b9   :  { %v2337_v45 = vadd.f32 %v2336_v39, %v2335_v28  ;;  %v2354_v14 = vrot.slane %v2353_v22, 2 }
 0x4bb   :  { %v2338_v35 = vrot.slane %v2337_v45, 1  ;;  %v2355_v11 = vadd.f32 %v2354_v14, %v2353_v22 }
 0x4bd   :  { %v2339_v0 = vadd.f32 %v2338_v35, %v2337_v45  ;;  %v2356_v49 = vrot.slane %v2355_v11, 1 }
 0x4bf   :  { %v2340_v55 = vmul.f32 0.020833334, %v2339_v0  ;;  %v2357_v56 = vadd.f32 %v2356_v49, %v2355_v11  ;;  %v9403_v11 = vld [vmem:[%s12177_s4] sm:$0xff]  }
 0x4c0   :  { %v9444_v0 = vld [vmem:[#allocation11 + $0x64] ss:$8 sps:$4 sm:$0xff]   ;;  %v9442_v49 = vld [vmem:[#allocation11 + $0x60] ss:$8 sps:$4 sm:$0xff]  }
 0x4c1   :  { %v2358_v59 = vmul.f32 0.020833334, %v2357_v56  ;;  %v2359_v47 = vmul.f32 %v2340_v55, %v2340_v55  ;;  %v2367_v46 = vsub.f32 %v11368_v27, %v2340_v55  ;;  %v2366_v53 = vsub.f32 %v11362_v15, %v2340_v55  ;;  %v9445_v56 = vld [vmem:[#allocation11 + $0x50] ss:$8 sps:$4 sm:$0xff]  }
 0x4c2   :  { %v2364_v10 = vsub.f32 %v11347_v1, %v2340_v55  ;;  %v2365_v18 = vsub.f32 %v11351_v25, %v2340_v55  ;;  %v2362_v13 = vsub.f32 %v11345_v63, %v2340_v55  ;;  %v2363_v21 = vsub.f32 %v11343_v58, %v2340_v55  ;;  %v9404_v55 = vld [vmem:[%s12177_s4 + $0x8] sm:$0xff]  }
 0x4c3   :  { %v2360_v4 = vsub.f32 %v2358_v59, %v2359_v47  ;;  %v9448_v59 = vld [vmem:[#allocation11 + $0x40] ss:$8 sps:$4 sm:$0xff]   ;;  %v9456_v47 = vld [vmem:[#allocation11 + $0x34] ss:$8 sps:$4 sm:$0xff]  }
 0x4c5   :  { %v2361_v32 = vmax.f32 %v2360_v4, 0.0  ;;  %v9454_v4 = vld [vmem:[#allocation11 + $0x30] ss:$8 sps:$4 sm:$0xff]  }
 0x4c7   :  { %v2368_v38 = vadd.f32 1e-05, %v2361_v32  ;;  %v9457_v32 = vld [vmem:[#allocation11 + $0x20] ss:$8 sps:$4 sm:$0xff]  }
 0x4c9   :  { %9632 = vrsqrt.f32 %v2368_v38  ;;  %v9406_v38 = vld [vmem:[%s12177_s4 + $0x18] sm:$0xff]  }
 0x4d6   :  { %v9633_v60 = vpop.eup %9632 }
 0x4d7   :  { %v2375_v20 = vmul.f32 %v9633_v60, %v2367_v46  ;;  %v2374_v54 = vmul.f32 %v9633_v60, %v2366_v53  ;;  %v2372_v3 = vmul.f32 %v9633_v60, %v2364_v10  ;;  %v2373_v16 = vmul.f32 %v9633_v60, %v2365_v18  ;;  %v9407_v46 = vld [vmem:[%s12177_s4 + $0x20] sm:$0xff]   ;;  %v9408_v53 = vld [vmem:[%s12177_s4 + $0x28] sm:$0xff]   ;;  %v9409_v10 = vld [vmem:[%s12177_s4 + $0x30] sm:$0xff]  }
 0x4d8   :  { %v2370_v7 = vmul.f32 %v9633_v60, %v2362_v13  ;;  %v2371_v34 = vmul.f32 %v9633_v60, %v2363_v21  ;;  %v9416_v18 = vld [vmem:[%s12177_s4 + $0x38] sm:$0xff]   ;;  %v9417_v60 = vld [vmem:[%s12177_s4 + $0x40] sm:$0xff]   ;;  %v9471_v13 = vld [vmem:[#allocation11 + $0xf4] ss:$8 sps:$4 sm:$0xff]  }
 0x4d9   :  { %v2387_v48 = vmul.f32 %v8206_v12, %v2375_v20  ;;  %v2386_v24 = vmul.f32 %v8206_v12, %v2374_v54  ;;  %v2384_v15 = vmul.f32 %v8206_v12, %v2372_v3  ;;  %v2385_v26 = vmul.f32 %v8206_v12, %v2373_v16  ;;  %v9472_v21 = vld [vmem:[#allocation11 + $0xe0] ss:$8 sps:$4 sm:$0xff]   ;;  %v9474_v20 = vld [vmem:[#allocation11 + $0xe4] ss:$8 sps:$4 sm:$0xff]   ;;  %v9475_v54 = vld [vmem:[#allocation11 + $0xd0] ss:$8 sps:$4 sm:$0xff]  }
 0x4da   :  { %v2382_v1 = vmul.f32 %v8206_v12, %v2370_v7  ;;  %v2383_v27 = vmul.f32 %v8206_v12, %v2371_v34  ;;  %v9469_v12 = vld [vmem:[#allocation11 + $0xf0] ss:$8 sps:$4 sm:$0xff]   ;;  %v9477_v3 = vld [vmem:[#allocation11 + $0xd4] ss:$8 sps:$4 sm:$0xff]   ;;  %v9478_v16 = vld [vmem:[#allocation11 + $0x1c0] ss:$8 sps:$4 sm:$0xff]  }
 0x4db   :  { %v2399_v25 = vadd.f32 %v8207_v33, %v2387_v48  ;;  %v2398_v29 = vadd.f32 %v8207_v33, %v2386_v24  ;;  %v2396_v30 = vadd.f32 %v8207_v33, %v2384_v15  ;;  %v2397_v2 = vadd.f32 %v8207_v33, %v2385_v26  ;;  %v9483_v7 = vld [vmem:[#allocation11 + $0xc4] ss:$8 sps:$4 sm:$0xff]   ;;  %v9486_v34 = vld [vmem:[#allocation11 + $0xb4] ss:$8 sps:$4 sm:$0xff]   ;;  %v9484_v48 = vld [vmem:[#allocation11 + $0xb0] ss:$8 sps:$4 sm:$0xff]  }
 0x4dc   :  { %v2394_v63 = vadd.f32 %v8207_v33, %v2382_v1  ;;  %v2395_v36 = vadd.f32 %v8207_v33, %v2383_v27  ;;  %v9480_v33 = vld [vmem:[#allocation11 + $0x1c4] ss:$8 sps:$4 sm:$0xff]   ;;  %v9487_v24 = vld [vmem:[#allocation11 + $0xa0] ss:$8 sps:$4 sm:$0xff]   ;;  %v9490_v26 = vld [vmem:[#allocation11 + $0x1b0] ss:$8 sps:$4 sm:$0xff]  }
 0x4dd   :  { %vm2404_vm3 = vcmp.ge.f32.partialorder %v2398_v29, 0.0  ;;  %vm2405_vm0 = vcmp.ge.f32.partialorder %v2399_v25, 0.0  ;;  %v2410_v58 = vmul.f32 0.2, %v2398_v29  ;;  %v2411_v37 = vmul.f32 0.2, %v2399_v25  ;;  %3692 = vmatprep.subr.bf16.mxu1 %v9480_v33 }
 0x4de   :  { %vm2402_vm1 = vcmp.ge.f32.partialorder %v2396_v30, 0.0  ;;  %vm2403_vm2 = vcmp.ge.f32.partialorder %v2397_v2, 0.0  ;;  %v2408_v40 = vmul.f32 0.2, %v2396_v30  ;;  %v2409_v42 = vmul.f32 0.2, %v2397_v2  ;;  %3693 = vmatpush2.bf16.msra.mxu1 %v9478_v16 }
 0x4df   :  { %v2416_v19 = vsel %vm2404_vm3, %v2398_v29, %v2410_v58  ;;  %v2417_v52 = vsel %vm2405_vm0, %v2399_v25, %v2411_v37  ;;  %v2406_v39 = vmul.f32 0.2, %v2394_v63  ;;  %v2407_v22 = vmul.f32 0.2, %v2395_v36  ;;  %v9489_v15 = vld [vmem:[#allocation11 + $0xa4] ss:$8 sps:$4 sm:$0xff]  }
 0x4e0   :  { %v2420_v28 = vpack.c.bf16 %v2417_v52, %v2416_v19  ;;  %v2414_v43 = vsel %vm2402_vm1, %v2396_v30, %v2408_v40  ;;  %v2415_v44 = vsel %vm2403_vm2, %v2397_v2, %v2409_v42  ;;  %vm2400_vm4 = vcmp.ge.f32.partialorder %v2394_v63, 0.0  ;;  %v9492_v1 = vld [vmem:[#allocation11 + $0x1b4] ss:$8 sps:$4 sm:$0xff]   ;;  %v9493_v27 = vld [vmem:[#allocation11 + $0x90] ss:$8 sps:$4 sm:$0xff]  }
 0x4e1   :  { %vm2401_vm5 = vcmp.ge.f32.partialorder %v2395_v36, 0.0  ;;  %v2419_v41 = vpack.c.bf16 %v2415_v44, %v2414_v43  ;;  %v2412_v45 = vsel %vm2400_vm4, %v2394_v63, %v2406_v39  ;;  %3694 = vmatprep.subr.bf16.mxu1 %v9492_v1  ;;  %v9495_v25 = vld [vmem:[#allocation11 + $0x94] ss:$8 sps:$4 sm:$0xff]   ;;  %v9498_v29 = vld [vmem:[#allocation11 + $0x84] ss:$8 sps:$4 sm:$0xff]  }
 0x4e2   :  { %9187 = vmatpush3.bf16.msra.mxu0 %v2420_v28  ;;  %v2413_v14 = vsel %vm2401_vm5, %v2395_v36, %v2407_v22  ;;  %3695 = vmatpush2.bf16.msra.mxu1 %v9490_v26  ;;  %v9496_v30 = vld [vmem:[#allocation11 + $0x80] ss:$8 sps:$4 sm:$0xff]   ;;  %v9501_v2 = vld [vmem:[#allocation11 + $0x274] ss:$8 sps:$4 sm:$0xff]   ;;  %v9504_v36 = vld [vmem:[#allocation11 + $0x1a4] ss:$8 sps:$4 sm:$0xff]  }
 0x4e3   :  { %9188 = vmatprep.subr.bf16.mxu0 %v10539_v31  ;;  %v2418_v35 = vpack.c.bf16 %v2413_v14, %v2412_v45  ;;  %v9502_v63 = vld [vmem:[#allocation11 + $0x1a0] ss:$8 sps:$4 sm:$0xff]   ;;  %3696 = vmatprep.subr.bf16.mxu1 %v9504_v36  ;;  %v9508_v58 = vld [vmem:[#allocation11 + $0x190] ss:$8 sps:$4 sm:$0xff]   ;;  %v9510_v37 = vld [vmem:[#allocation11 + $0x194] ss:$8 sps:$4 sm:$0xff]  }
 0x4e4   :  { %v9516_v40 = vld [vmem:[#allocation11 + $0x184] ss:$8 sps:$4 sm:$0xff]   ;;  %v9514_v42 = vld [vmem:[#allocation11 + $0x180] ss:$8 sps:$4 sm:$0xff]   ;;  %v9525_v19 = vld [vmem:[#allocation11 + $0x374] ss:$8 sps:$4 sm:$0xff]  }
 0x4e5   :  { %v9526_v1 = vld [vmem:[#allocation11 + $0x220] ss:$8 sps:$4 sm:$0xff]   ;;  %v9532_v36 = vld [vmem:[#allocation11 + $0x210] ss:$8 sps:$4 sm:$0xff]  }
 0x4e6   :  { %9189 = vmatpush3.bf16.msra.mxu0 %v2419_v41  ;;  %3697 = vmatpush2.bf16.msra.mxu1 %v9502_v63 }
 0x4e7   :  { %9190 = vmatprep.subr.bf16.mxu0 %v10539_v31  ;;  %3698 = vmatprep.subr.bf16.mxu1 %v9510_v37  ;;  %v9540_v37 = vld [vmem:[#allocation11 + $0x204] ss:$8 sps:$4 sm:$0xff]  }
 0x4ea   :  { %9191 = vmatpush3.bf16.msra.mxu0 %v2418_v35  ;;  %3699 = vmatpush2.bf16.msra.mxu1 %v9508_v58  ;;  %v9535_v58 = vld [vmem:[#allocation11 + $0x350] ss:$8 sps:$4 sm:$0xff]  }
 0x4eb   :  { %3627 = vmatprep.subr.bf16.mxu0 %v9441_v23  ;;  %3700 = vmatprep.subr.bf16.mxu1 %v9516_v40  ;;  %v9543_v40 = vld [vmem:[#allocation11 + $0x344] ss:$8 sps:$4 sm:$0xff]  }
 0x4ed   :  { %9193 = vmatmul.mubr.msk.bf16.vlgmr.msra.gmra.mxu0 %vm2484_vm6, %v9403_v11 }
 0x4ee   :  { %9196 = vmatprep.mubr.msk.bf16.mxu0 %vm10540_vm15, %v10539_v31  ;;  %3628 = vmatpush1.bf16.msra.mxu0 %v9439_v51 }
 0x4ef   :  { %3629 = vmatprep.subr.bf16.mxu0 %v9444_v0  ;;  %3701 = vmatpush2.bf16.msra.mxu1 %v9514_v42 }
 0x4f0   :  { %3756 = vmatprep.subr.bf16.mxu1 %v9525_v19 }
 0x4f2   :  { %3630 = vmatpush1.bf16.msra.mxu0 %v9442_v49 }
 0x4f3   :  { %3631 = vmatprep.subr.bf16.mxu0 %v9447_v50 }
 0x4f5   :  { %9197 = vmatmul.mubr.msk.bf16.gmra.mxu0 %vm2484_vm6, %v9404_v55 }
 0x4f6   :  { %9200 = vmatprep.mubr.msk.bf16.mxu0 %vm10540_vm15, %v10539_v31  ;;  %3632 = vmatpush1.bf16.msra.mxu0 %v9445_v56 }
 0x4f7   :  { %3633 = vmatprep.subr.bf16.mxu0 %v9450_v57 }
 0x4fa   :  { %3634 = vmatpush1.bf16.msra.mxu0 %v9448_v59 }
 0x4fb   :  { %3635 = vmatprep.subr.bf16.mxu0 %v9456_v47 }
 0x4fd   :  { %9201 = vmatmul.mubr.msk.bf16.gmra.mxu0 %vm2484_vm6, %v9405_v62 }
 0x4fe   :  { %9204 = vmatprep.mubr.msk.bf16.mxu0 %vm10540_vm15, %v10539_v31  ;;  %3636 = vmatpush1.bf16.msra.mxu0 %v9454_v4 }
 0x4ff   :  { %3637 = vmatprep.subr.bf16.mxu0 %v9459_v5  ;;  %v9499_v5 = vld [vmem:[#allocation11 + $0x270] ss:$8 sps:$4 sm:$0xff]  }
 0x502   :  { %3638 = vmatpush1.bf16.msra.mxu0 %v9457_v32 }
 0x503   :  { %3639 = vmatprep.subr.bf16.mxu0 %v9462_v61  ;;  %v9507_v61 = vld [vmem:[#allocation11 + $0x264] ss:$8 sps:$4 sm:$0xff]  }
 0x505   :  { %9205 = vmatmul.mubr.msk.bf16.gmra.mxu0 %vm2484_vm6, %v9406_v38 }
 0x506   :  { %9208 = vmatprep.mubr.msk.bf16.mxu0 %vm10540_vm15, %v10539_v31  ;;  %3640 = vmatpush1.bf16.msra.mxu0 %v9460_v6  ;;  %v9505_v6 = vld [vmem:[#allocation11 + $0x260] ss:$8 sps:$4 sm:$0xff]  }
 0x507   :  { %3641 = vmatprep.subr.bf16.mxu0 %v9468_v8 }
 0x50a   :  { %3642 = vmatpush1.bf16.msra.mxu0 %v9466_v9  ;;  %v9513_v9 = vld [vmem:[#allocation11 + $0x254] ss:$8 sps:$4 sm:$0xff]  }
 0x50b   :  { %3643 = vmatprep.subr.bf16.mxu0 %v9471_v13 }
 0x50d   :  { %9209 = vmatmul.mubr.msk.bf16.gmra.mxu0 %vm2484_vm6, %v9407_v46 }
 0x50e   :  { %9212 = vmatprep.mubr.msk.bf16.mxu0 %vm10540_vm15, %v10539_v31  ;;  %3644 = vmatpush2.bf16.msra.mxu0 %v9469_v12 }
 0x50f   :  { %3645 = vmatprep.subr.bf16.mxu0 %v9474_v20 }
 0x512   :  { %3646 = vmatpush2.bf16.msra.mxu0 %v9472_v21  ;;  %v9517_v21 = vld [vmem:[#allocation11 + $0x240] ss:$8 sps:$4 sm:$0xff]  }
 0x513   :  { %3647 = vmatprep.subr.bf16.mxu0 %v9477_v3 }
 0x515   :  { %9213 = vmatmul.mubr.msk.bf16.gmra.mxu0 %vm2484_vm6, %v9408_v53 }
 0x516   :  { %9216 = vmatprep.mubr.msk.bf16.mxu0 %vm10540_vm15, %v10539_v31  ;;  %3648 = vmatpush2.bf16.msra.mxu0 %v9475_v54  ;;  %v9522_v54 = vld [vmem:[#allocation11 + $0x234] ss:$8 sps:$4 sm:$0xff]  }
 0x517   :  { %3649 = vmatprep.subr.bf16.mxu0 %v9483_v7 }
 0x51d   :  { %9217 = vmatmul.mubr.msk.bf16.gmra.mxu0 %vm2484_vm6, %v9409_v10  ;;  %v9511_v10 = vld [vmem:[#allocation11 + $0x250] ss:$8 sps:$4 sm:$0xff]  }
 0x51e   :  { %9220 = vmatprep.mubr.msk.bf16.mxu0 %vm10540_vm15, %v10539_v31 }
 0x525   :  { %9221 = vmatmul.mubr.msk.bf16.gmra.mxu0 %vm2484_vm6, %v9416_v18 }
 0x526   :  { %9224 = vmatprep.mubr.msk.bf16.mxu0 %vm10540_vm15, %v10539_v31  ;;  %v9481_v31 = vld [vmem:[#allocation11 + $0xc0] ss:$8 sps:$4 sm:$0xff]  }
 0x527   :  { %3650 = vmatpush2.bf16.msra.mxu0 %v9481_v31  ;;  %v9520_v31 = vld [vmem:[#allocation11 + $0x230] ss:$8 sps:$4 sm:$0xff]  }
 0x528   :  { %3651 = vmatprep.subr.bf16.mxu0 %v9486_v34  ;;  %v9523_v34 = vld [vmem:[#allocation11 + $0x370] ss:$8 sps:$4 sm:$0xff]  }
 0x52b   :  { %3652 = vmatpush2.bf16.msra.mxu0 %v9484_v48 }
 0x52c   :  { %3653 = vmatprep.subr.bf16.mxu0 %v9489_v15  ;;  %v9531_v15 = vld [vmem:[#allocation11 + $0x364] ss:$8 sps:$4 sm:$0xff]  }
 0x52d   :  { %9225 = vmatmul.mubr.msk.bf16.gmra.mxu0 %vm2484_vm6, %v9417_v60  ;;  %v9519_v60 = vld [vmem:[#allocation11 + $0x244] ss:$8 sps:$4 sm:$0xff]  }
 0x52f   :  { %3654 = vmatpush2.bf16.msra.mxu0 %v9487_v24  ;;  %v9528_v24 = vld [vmem:[#allocation11 + $0x224] ss:$8 sps:$4 sm:$0xff]  }
 0x530   :  { %3655 = vmatprep.subr.bf16.mxu0 %v9495_v25 }
 0x533   :  { %3656 = vmatpush2.bf16.msra.mxu0 %v9493_v27  ;;  %v9529_v27 = vld [vmem:[#allocation11 + $0x360] ss:$8 sps:$4 sm:$0xff]  }
 0x534   :  { %3657 = vmatprep.subr.bf16.mxu0 %v9498_v29  ;;  %v9534_v29 = vld [vmem:[#allocation11 + $0x214] ss:$8 sps:$4 sm:$0xff]  }
 0x537   :  { %3658 = vmatpush2.bf16.msra.mxu0 %v9496_v30  ;;  %v9537_v30 = vld [vmem:[#allocation11 + $0x354] ss:$8 sps:$4 sm:$0xff]  }
 0x538   :  { %3713 = vmatprep.subr.bf16.mxu0 %v9501_v2 }
 0x5ad   :  { %v2546_v52 = vpop.f32.mrf.mxu0 }
 0x5af   :  { %v9194_v28 = vpop.f32.mrf.mxu0 }
 0x5b0   :  { %v9538_v28 = vld [vmem:[#allocation11 + $0x200] ss:$8 sps:$4 sm:$0xff]  }
 0x5b1   :  { %v2549_v43 = vpop.f32.mrf.mxu0 }
 0x5b2   :  { %v8976_v44 = vpack.c.bf16 %v2549_v43, %v2549_v43  ;;  %v9541_v43 = vld [vmem:[#allocation11 + $0x340] ss:$8 sps:$4 sm:$0xff]  }
 0x5b3   :  { %v9195_v39 = vpop.f32.mrf.mxu0 }
 0x5b4   :  { %2634 = vst [vmem:[#allocation5 + $0x24] sm:$0xf] %v8976_v44  ;;  %v9546_v44 = vld [vmem:[#allocation11 + $0x2f4] ss:$8 sps:$4 sm:$0xff]  }
 0x5b5   :  { %v2554_v22 = vpop.f32.mrf.mxu0  ;;  %v9549_v39 = vld [vmem:[#allocation11 + $0x334] ss:$8 sps:$4 sm:$0xff]  }
 0x5b6   :  { %v8996_v41 = vpack.c.bf16 %v2554_v22, %v2546_v52 }
 0x5b7   :  { %v9198_v45 = vpop.f32.mrf.mxu0 }
 0x5b9   :  { %v2557_v14 = vpop.f32.mrf.mxu0 }
 0x5bb   :  { %v9199_v23 = vpop.f32.mrf.mxu0 }
 0x5bd   :  { %v2562_v35 = vpop.f32.mrf.mxu0 }
 0x5bf   :  { %v9202_v11 = vpop.f32.mrf.mxu0 }
 0x5c0   :  { %v9552_v11 = vld [vmem:[#allocation11 + $0x2e4] ss:$8 sps:$4 sm:$0xff]  }
 0x5c1   :  { %v2565_v51 = vpop.f32.mrf.mxu0 }
 0x5c2   :  { %v9001_v0 = vpack.c.bf16 %v2565_v51, %v2557_v14  ;;  %v9544_v14 = vld [vmem:[#allocation11 + $0x2f0] ss:$8 sps:$4 sm:$0xff]   ;;  %v9555_v51 = vld [vmem:[#allocation11 + $0x324] ss:$8 sps:$4 sm:$0xff]  }
 0x5c3   :  { %v9203_v49 = vpop.f32.mrf.mxu0 }
 0x5c4   :  { %9033 = vst [vmem:[#allocation5 + $0x28] sm:$0xff] %v9001_v0  }
 0x5c5   :  { %v2570_v50 = vpop.f32.mrf.mxu0 }
 0x5c6   :  { %v9006_v55 = vpack.c.bf16 %v2570_v50, %v2562_v35  ;;  %v9547_v35 = vld [vmem:[#allocation11 + $0x330] ss:$8 sps:$4 sm:$0xff]  }
 0x5c7   :  { %v9206_v56 = vpop.f32.mrf.mxu0 }
 0x5c8   :  { %v9553_v56 = vld [vmem:[#allocation11 + $0x320] ss:$8 sps:$4 sm:$0xff]  }
 0x5c9   :  { %v2573_v57 = vpop.f32.mrf.mxu0 }
 0x5cb   :  { %v9207_v59 = vpop.f32.mrf.mxu0  ;;  %v2712_v47 = vld [vmem:[#allocation5 + $0x24] sm:$0xff] }
 0x5cc   :  { %v8244_v62 = vcombine.low %v8996_v41, %v2712_v47  ;;  %v8245_v4 = vcombine.high %v8996_v41, %v2712_v47  ;;  %v9561_v59 = vld [vmem:[#allocation11 + $0x314] ss:$8 sps:$4 sm:$0xff]  }
 0x5cd   :  { %v2578_v32 = vpop.f32.mrf.mxu0 }
 0x5ce   :  { %3659 = vmatprep.mubr.bf16.mxu0 %v8245_v4 }
 0x5cf   :  { %v9210_v38 = vpop.f32.mrf.mxu0  ;;  %3660 = vmatmul.mubr.bf16.vlgmr.msra.gmra.mxu0 %v8244_v62 }
 0x5d0   :  { %3714 = vmatpush1.bf16.msra.mxu0 %v9499_v5  ;;  %v9556_v5 = vld [vmem:[#allocation11 + $0x2d0] ss:$8 sps:$4 sm:$0xff]   ;;  %v9567_v38 = vld [vmem:[#allocation11 + $0x304] ss:$8 sps:$4 sm:$0xff]  }
 0x5d1   :  { %v2581_v8 = vpop.f32.mrf.mxu0  ;;  %3715 = vmatprep.subr.bf16.mxu0 %v9507_v61  ;;  %v9564_v61 = vld [vmem:[#allocation11 + $0x2c4] ss:$8 sps:$4 sm:$0xff]  }
 0x5d2   :  { %v9011_v46 = vpack.c.bf16 %v2581_v8, %v2573_v57  ;;  %v9558_v57 = vld [vmem:[#allocation11 + $0x2d4] ss:$8 sps:$4 sm:$0xff]   ;;  %v9565_v8 = vld [vmem:[#allocation11 + $0x300] ss:$8 sps:$4 sm:$0xff]  }
 0x5d3   :  { %v9211_v53 = vpop.f32.mrf.mxu0 }
 0x5d4   :  { %9035 = vst [vmem:[#allocation5 + $0x30] sm:$0xff] %v9011_v46   ;;  %3716 = vmatpush1.bf16.msra.mxu0 %v9505_v6  ;;  %v9562_v6 = vld [vmem:[#allocation11 + $0x2c0] ss:$8 sps:$4 sm:$0xff]   ;;  %v9573_v46 = vld [vmem:[#allocation11 + $0x3f4] ss:$8 sps:$4 sm:$0xff]  }
 0x5d5   :  { %v2586_v18 = vpop.f32.mrf.mxu0  ;;  %3717 = vmatprep.subr.bf16.mxu0 %v9513_v9  ;;  %v9570_v9 = vld [vmem:[#allocation11 + $0x2b4] ss:$8 sps:$4 sm:$0xff]  }
 0x5d6   :  { %v11433_v12 = vpack.c.bf16 %v2586_v18, %v2578_v32  ;;  %v9559_v32 = vld [vmem:[#allocation11 + $0x310] ss:$8 sps:$4 sm:$0xff]  }
 0x5d7   :  { %v9214_v13 = vpop.f32.mrf.mxu0  ;;  %v9571_v18 = vld [vmem:[#allocation11 + $0x3f0] ss:$8 sps:$4 sm:$0xff]  }
 0x5d8   :  { %3718 = vmatpush1.bf16.msra.mxu0 %v9511_v10  ;;  %v9568_v10 = vld [vmem:[#allocation11 + $0x2b0] ss:$8 sps:$4 sm:$0xff]   ;;  %v9576_v13 = vld [vmem:[#allocation11 + $0x2a4] ss:$8 sps:$4 sm:$0xff]  }
 0x5d9   :  { %v2589_v20 = vpop.f32.mrf.mxu0  ;;  %3719 = vmatprep.subr.bf16.mxu0 %v9519_v60 }
 0x5db   :  { %v9215_v3 = vpop.f32.mrf.mxu0  ;;  %v2713_v16 = vld [vmem:[#allocation5 + $0x2c] sm:$0xff] }
 0x5dc   :  { %3720 = vmatpush1.bf16.msra.mxu0 %v9517_v21  ;;  %v8246_v33 = vcombine.low %v9006_v55, %v2713_v16  ;;  %v8247_v7 = vcombine.high %v9006_v55, %v2713_v16  ;;  %v9550_v55 = vld [vmem:[#allocation11 + $0x2e0] ss:$8 sps:$4 sm:$0xff]   ;;  %v9579_v21 = vld [vmem:[#allocation11 + $0x3e4] ss:$8 sps:$4 sm:$0xff]   ;;  %v9582_v3 = vld [vmem:[#allocation11 + $0x294] ss:$8 sps:$4 sm:$0xff]  }
 0x5dd   :  { %v2594_v48 = vpop.f32.mrf.mxu0  ;;  %3721 = vmatprep.subr.bf16.mxu0 %v9522_v54  ;;  %v9577_v54 = vld [vmem:[#allocation11 + $0x3e0] ss:$8 sps:$4 sm:$0xff]   ;;  %v9585_v16 = vld [vmem:[#allocation11 + $0x3d4] ss:$8 sps:$4 sm:$0xff]  }
 0x5de   :  { %3702 = vmatprep.mubr.bf16.mxu1 %v8247_v7  ;;  %v9583_v7 = vld [vmem:[#allocation11 + $0x3d0] ss:$8 sps:$4 sm:$0xff]  }
 0x5df   :  { %v9218_v26 = vpop.f32.mrf.mxu0  ;;  %3703 = vmatmul.mubr.bf16.vlgmr.msra.gmra.mxu1 %v8246_v33  ;;  %v9580_v33 = vld [vmem:[#allocation11 + $0x290] ss:$8 sps:$4 sm:$0xff]  }
 0x5e0   :  { %3722 = vmatpush1.bf16.msra.mxu0 %v9520_v31  ;;  %3757 = vmatpush1.bf16.msra.mxu1 %v9523_v34  ;;  %v9588_v31 = vld [vmem:[#allocation11 + $0x284] ss:$8 sps:$4 sm:$0xff]   ;;  %v9597_v26 = vld [vmem:[#allocation11 + $0x474] ss:$8 sps:$4 sm:$0xff]  }
 0x5e1   :  { %v2597_v25 = vpop.f32.mrf.mxu0  ;;  %3723 = vmatprep.subr.bf16.mxu0 %v9528_v24  ;;  %3758 = vmatprep.subr.bf16.mxu1 %v9531_v15  ;;  %v9591_v34 = vld [vmem:[#allocation11 + $0x3c4] ss:$8 sps:$4 sm:$0xff]   ;;  %v9589_v24 = vld [vmem:[#allocation11 + $0x3c0] ss:$8 sps:$4 sm:$0xff]   ;;  %v9594_v15 = vld [vmem:[#allocation11 + $0x3b4] ss:$8 sps:$4 sm:$0xff]  }
 0x5e2   :  { %v9021_v2 = vpack.c.bf16 %v2597_v25, %v2589_v20  ;;  %v9574_v20 = vld [vmem:[#allocation11 + $0x2a0] ss:$8 sps:$4 sm:$0xff]  }
 0x5e3   :  { %v9219_v63 = vpop.f32.mrf.mxu0 }
 0x5e4   :  { %9037 = vst [vmem:[#allocation5 + $0x38] sm:$0xff] %v9021_v2   ;;  %3724 = vmatpush1.bf16.msra.mxu0 %v9526_v1  ;;  %3759 = vmatpush1.bf16.msra.mxu1 %v9529_v27  ;;  %v9592_v1 = vld [vmem:[#allocation11 + $0x3b0] ss:$8 sps:$4 sm:$0xff]   ;;  %v9598_v2 = vld [vmem:[#allocation11 + $0x3a0] ss:$8 sps:$4 sm:$0xff]  }
 0x5e5   :  { %3725 = vmatprep.subr.bf16.mxu0 %v9534_v29  ;;  %3760 = vmatprep.subr.bf16.mxu1 %v9537_v30  ;;  %v2602_v42 = vpop.f32.mrf.mxu0  ;;  %v9595_v27 = vld [vmem:[#allocation11 + $0x470] ss:$8 sps:$4 sm:$0xff]   ;;  %v9600_v29 = vld [vmem:[#allocation11 + $0x3a4] ss:$8 sps:$4 sm:$0xff]   ;;  %v9601_v63 = vld [vmem:[#allocation11 + $0x460] ss:$8 sps:$4 sm:$0xff]  }
 0x5e6   :  { %v11435_v19 = vpack.c.bf16 %v2602_v42, %v2594_v48  ;;  %v9586_v48 = vld [vmem:[#allocation11 + $0x280] ss:$8 sps:$4 sm:$0xff]   ;;  %v9603_v30 = vld [vmem:[#allocation11 + $0x464] ss:$8 sps:$4 sm:$0xff]  }
 0x5e7   :  { %v9222_v52 = vpop.f32.mrf.mxu0  ;;  %v9615_v42 = vld [vmem:[#allocation11 + $0x444] ss:$8 sps:$4 sm:$0xff]  }
 0x5e8   :  { %3726 = vmatpush1.bf16.msra.mxu0 %v9532_v36  ;;  %3761 = vmatpush1.bf16.msra.mxu1 %v9535_v58  ;;  %v9606_v36 = vld [vmem:[#allocation11 + $0x394] ss:$8 sps:$4 sm:$0xff]   ;;  %v9610_v52 = vld [vmem:[#allocation11 + $0x380] ss:$8 sps:$4 sm:$0xff]  }
 0x5e9   :  { %3727 = vmatprep.subr.bf16.mxu0 %v9540_v37  ;;  %3762 = vmatprep.subr.bf16.mxu1 %v9543_v40  ;;  %v2605_v22 = vpop.f32.mrf.mxu0  ;;  %v9609_v58 = vld [vmem:[#allocation11 + $0x454] ss:$8 sps:$4 sm:$0xff]   ;;  %v9604_v37 = vld [vmem:[#allocation11 + $0x390] ss:$8 sps:$4 sm:$0xff]  }
 0x5ea   :  { %v9607_v40 = vld [vmem:[#allocation11 + $0x450] ss:$8 sps:$4 sm:$0xff]  }
 0x5eb   :  { %v11437_v41 = vld [vmem:[#allocation5 + $0x34] sm:$0xff]  ;;  %v9223_v45 = vpop.f32.mrf.mxu0 }
 0x5ec   :  { %3728 = vmatpush1.bf16.msra.mxu0 %v9538_v28  ;;  %3763 = vmatpush1.bf16.msra.mxu1 %v9541_v43  ;;  %v8249_v23 = vcombine.high %v11433_v12, %v11437_v41  ;;  %v8248_v25 = vcombine.low %v11433_v12, %v11437_v41  ;;  %v9612_v12 = vld [vmem:[#allocation11 + $0x384] ss:$8 sps:$4 sm:$0xff]   ;;  %v9613_v28 = vld [vmem:[#allocation11 + $0x440] ss:$8 sps:$4 sm:$0xff]   ;;  %v9618_v43 = vld [vmem:[#allocation11 + $0x434] ss:$8 sps:$4 sm:$0xff]  }
 0x5ed   :  { %3729 = vmatprep.subr.bf16.mxu0 %v9546_v44  ;;  %3764 = vmatprep.subr.bf16.mxu1 %v9549_v39  ;;  %v2610_v0 = vpop.f32.mrf.mxu0  ;;  %v9616_v44 = vld [vmem:[#allocation11 + $0x430] ss:$8 sps:$4 sm:$0xff]   ;;  %v9619_v41 = vld [vmem:[#allocation11 + $0x420] ss:$8 sps:$4 sm:$0xff]   ;;  %v9624_v45 = vld [vmem:[#allocation11 + $0x414] ss:$8 sps:$4 sm:$0xff]  }
 0x5ee   :  { %3745 = vmatprep.mubr.bf16.mxu0 %v8249_v23  ;;  %v8991_v49 = vpack.c.bf16 %v2610_v0, %v2610_v0  ;;  %v9627_v23 = vld [vmem:[#allocation11 + $0x404] ss:$8 sps:$4 sm:$0xff]  }
 0x5ef   :  { %v9226_v50 = vpop.f32.mrf.mxu0 }
 0x5f0   :  { %3730 = vmatpush2.bf16.msra.mxu0 %v9544_v14  ;;  %3765 = vmatpush1.bf16.msra.mxu1 %v9547_v35  ;;  %2705 = vst [vmem:[#allocation5 + $0x20] sm:$0xf] %v8991_v49  ;;  %v9622_v14 = vld [vmem:[#allocation11 + $0x410] ss:$8 sps:$4 sm:$0xff]   ;;  %v9625_v35 = vld [vmem:[#allocation11 + $0x400] ss:$8 sps:$4 sm:$0xff]  }
 0x5f1   :  { %3731 = vmatprep.subr.bf16.mxu0 %v9552_v11  ;;  %3766 = vmatprep.subr.bf16.mxu1 %v9555_v51  ;;  %v2613_v47 = vpop.f32.mrf.mxu0 }
 0x5f2   :  { %v9031_v62 = vpack.c.bf16 %v2613_v47, %v2605_v22  ;;  %v9621_v22 = vld [vmem:[#allocation11 + $0x424] ss:$8 sps:$4 sm:$0xff]  }
 0x5f3   :  { %v9227_v4 = vpop.f32.mrf.mxu0 }
 0x5f4   :  { %3732 = vmatpush2.bf16.msra.mxu0 %v9550_v55  ;;  %3767 = vmatpush1.bf16.msra.mxu1 %v9553_v56  ;;  %9039 = vst [vmem:[#allocation5 + $0x40] sm:$0xff] %v9031_v62  }
 0x5f5   :  { %3733 = vmatprep.subr.bf16.mxu0 %v9558_v57  ;;  %3768 = vmatprep.subr.bf16.mxu1 %v9561_v59 }
 0x5f8   :  { %3734 = vmatpush2.bf16.msra.mxu0 %v9556_v5  ;;  %3769 = vmatpush1.bf16.msra.mxu1 %v9559_v32 }
 0x5f9   :  { %3735 = vmatprep.subr.bf16.mxu0 %v9564_v61  ;;  %3770 = vmatprep.subr.bf16.mxu1 %v9567_v38 }
 0x5fb   :  { %v11441_v53 = vld [vmem:[#allocation5 + $0x3c] sm:$0xff] }
 0x5fc   :  { %3736 = vmatpush2.bf16.msra.mxu0 %v9562_v6  ;;  %3771 = vmatpush1.bf16.msra.mxu1 %v9565_v8  ;;  %v8251_v60 = vcombine.high %v11435_v19, %v11441_v53  ;;  %v8250_v39 = vcombine.low %v11435_v19, %v11441_v53  ;;  %v9628_v11 = vld [vmem:[#allocation5 + $0x20] ss:$36 sps:$4 sm:$0xff]  }
 0x5fd   :  { %3737 = vmatprep.subr.bf16.mxu0 %v9570_v9  ;;  %3772 = vmatprep.subr.bf16.mxu1 %v9573_v46 }
 0x5fe   :  { %3788 = vmatprep.mubr.bf16.mxu1 %v8251_v60 }
 0x600   :  { %3738 = vmatpush2.bf16.msra.mxu0 %v9568_v10  ;;  %3773 = vmatpush2.bf16.msra.mxu1 %v9571_v18 }
 0x601   :  { %3739 = vmatprep.subr.bf16.mxu0 %v9576_v13  ;;  %3774 = vmatprep.subr.bf16.mxu1 %v9579_v21 }
 0x604   :  { %3740 = vmatpush2.bf16.msra.mxu0 %v9574_v20  ;;  %3775 = vmatpush2.bf16.msra.mxu1 %v9577_v54 }
 0x605   :  { %3741 = vmatprep.subr.bf16.mxu0 %v9582_v3  ;;  %3776 = vmatprep.subr.bf16.mxu1 %v9585_v16 }
 0x608   :  { %3742 = vmatpush2.bf16.msra.mxu0 %v9580_v33  ;;  %3777 = vmatpush2.bf16.msra.mxu1 %v9583_v7 }
 0x609   :  { %3743 = vmatprep.subr.bf16.mxu0 %v9588_v31  ;;  %3778 = vmatprep.subr.bf16.mxu1 %v9591_v34 }
 0x60c   :  { %3744 = vmatpush2.bf16.msra.mxu0 %v9586_v48  ;;  %3779 = vmatpush2.bf16.msra.mxu1 %v9589_v24 }
 0x60d   :  { %3780 = vmatprep.subr.bf16.mxu1 %v9594_v15  ;;  %3799 = vmatprep.subr.bf16.mxu0 %v9597_v26 }
 0x60f   :  { %3746 = vmatmul.mubr.bf16.vlgmr.msra.gmra.mxu0 %v8248_v25 }
 0x610   :  { %3781 = vmatpush2.bf16.msra.mxu1 %v9592_v1  ;;  %3800 = vmatpush1.bf16.msra.mxu0 %v9595_v27 }
 0x611   :  { %3782 = vmatprep.subr.bf16.mxu1 %v9600_v29  ;;  %3801 = vmatprep.subr.bf16.mxu0 %v9603_v30 }
 0x612   :  { %3831 = vmatprep.mubr.bf16.mxu0 %v10538_v17 }
 0x614   :  { %3783 = vmatpush2.bf16.msra.mxu1 %v9598_v2  ;;  %3802 = vmatpush1.bf16.msra.mxu0 %v9601_v63 }
 0x615   :  { %3784 = vmatprep.subr.bf16.mxu1 %v9606_v36  ;;  %3803 = vmatprep.subr.bf16.mxu0 %v9609_v58 }
 0x618   :  { %3785 = vmatpush2.bf16.msra.mxu1 %v9604_v37  ;;  %3804 = vmatpush1.bf16.msra.mxu0 %v9607_v40 }
 0x619   :  { %3786 = vmatprep.subr.bf16.mxu1 %v9612_v12  ;;  %3805 = vmatprep.subr.bf16.mxu0 %v9615_v42 }
 0x61c   :  { %3787 = vmatpush2.bf16.msra.mxu1 %v9610_v52  ;;  %3806 = vmatpush1.bf16.msra.mxu0 %v9613_v28 }
 0x61d   :  { %3807 = vmatprep.subr.bf16.mxu0 %v9618_v43 }
 0x61f   :  { %3789 = vmatmul.mubr.bf16.vlgmr.msra.gmra.mxu1 %v8250_v39 }
 0x620   :  { %3808 = vmatpush1.bf16.msra.mxu0 %v9616_v44 }
 0x621   :  { %3809 = vmatprep.subr.bf16.mxu0 %v9621_v22 }
 0x624   :  { %3810 = vmatpush1.bf16.msra.mxu0 %v9619_v41 }
 0x625   :  { %3811 = vmatprep.subr.bf16.mxu0 %v9624_v45 }
 0x628   :  { %3812 = vmatpush1.bf16.msra.mxu0 %v9622_v14 }
 0x629   :  { %3813 = vmatprep.subr.bf16.mxu0 %v9627_v23 }
 0x62c   :  { %3814 = vmatpush1.bf16.msra.mxu0 %v9625_v35 }
 0x62f   :  { %3832 = vmatmul.mubr.bf16.vlgmr.msra.gmra.mxu0 %v9628_v11 }
 0x630   :  { %3985 = vmatprep.mubr.bf16.mxu0 %v10538_v17 }
 0x68f   :  { %v3661_v19 = vpop.f32.mrf.mxu0 }
 0x691   :  { %v3663_v51 = vpop.f32.mrf.mxu0 }
 0x693   :  { %v3665_v49 = vpop.f32.mrf.mxu0 }
 0x695   :  { %v3667_v55 = vpop.f32.mrf.mxu0 }
 0x69f   :  { %v3704_v0 = vpop.f32.mrf.mxu1 }
 0x6a0   :  { %v3705_v32 = vadd.f32 %v3704_v0, %v3661_v19 }
 0x6a1   :  { %v3706_v50 = vpop.f32.mrf.mxu1 }
 0x6a2   :  { %v3707_v61 = vadd.f32 %v3706_v50, %v3663_v51 }
 0x6a3   :  { %v3708_v56 = vpop.f32.mrf.mxu1 }
 0x6a4   :  { %v3709_v8 = vadd.f32 %v3708_v56, %v3665_v49 }
 0x6a5   :  { %v3710_v59 = vpop.f32.mrf.mxu1 }
 0x6a6   :  { %v3711_v53 = vadd.f32 %v3710_v59, %v3667_v55 }
 0x6cf   :  { %v3747_v57 = vpop.f32.mrf.mxu0 }
 0x6d0   :  { %v3748_v9 = vadd.f32 %v3747_v57, %v3705_v32 }
 0x6d1   :  { %v3749_v47 = vpop.f32.mrf.mxu0 }
 0x6d2   :  { %v3750_v17 = vadd.f32 %v3749_v47, %v3707_v61 }
 0x6d3   :  { %v3751_v4 = vpop.f32.mrf.mxu0 }
 0x6d4   :  { %v3752_v10 = vadd.f32 %v3751_v4, %v3709_v8 }
 0x6d5   :  { %v3753_v38 = vpop.f32.mrf.mxu0 }
 0x6d6   :  { %v3754_v20 = vadd.f32 %v3753_v38, %v3711_v53  ;;  %v3899_v38 = vlaneseq }
 0x6d8   :  { %v11466_v8 = vshrl.u32 %v3899_v38, 7 }
 0x6da   :  { %12274 = vst [vmem:[#allocation43_spill] sm:$0xff] %v11466_v8  ;;  %v3905_v53 = vsub.s32 1, %v11466_v8 }
 0x6df   :  { %v3790_v62 = vpop.f32.mrf.mxu1 }
 0x6e0   :  { %v3791_v18 = vadd.f32 %v3790_v62, %v3748_v9  ;;  %v3901_v9 = vsub.s32 0, %v11466_v8 }
 0x6e1   :  { %v3792_v5 = vpop.f32.mrf.mxu1 }
 0x6e2   :  { %v3793_v60 = vadd.f32 %v3792_v5, %v3750_v17  ;;  %v3842_v17 = vld [vmem:[#allocation20] sm:$0x3] }
 0x6e3   :  { %v3794_v6 = vpop.f32.mrf.mxu1 }
 0x6e4   :  { %v3795_v54 = vadd.f32 %v3794_v6, %v3752_v10 }
 0x6e5   :  { %v3796_v13 = vpop.f32.mrf.mxu1 }
 0x6e6   :  { %v3797_v7 = vadd.f32 %v3796_v13, %v3754_v20 }
 0x6ef   :  { %v3833_v46 = vpop.f32.mrf.mxu0 }
 0x6f0   :  { %v11451_v3 = vadd.f32 %v3833_v46, %v3791_v18  ;;  %v3843_v46 = vld [vmem:[#allocation21] sm:$0x3] }
 0x6f1   :  { %v3835_v21 = vpop.f32.mrf.mxu0 }
 0x6f2   :  { %v11453_v16 = vadd.f32 %v3835_v21, %v3793_v60  ;;  %v3860_v48 = vmul.f32 %v11451_v3, %v11451_v3  ;;  %v3902_v60 = vrot.slane %v3842_v17, %v3901_v9 }
 0x6f3   :  { %v3837_v33 = vpop.f32.mrf.mxu0 }
 0x6f4   :  { %v3838_v31 = vadd.f32 %v3837_v33, %v3795_v54  ;;  %v3861_v1 = vmul.f32 %v11453_v16, %v11453_v16  ;;  %v3917_v54 = vrot.slane %v3843_v46, %v3901_v9 }
 0x6f5   :  { %v3839_v34 = vpop.f32.mrf.mxu0 }
 0x6f6   :  { %v3844_v24 = vadd.f32 %v3838_v31, %v11451_v3  ;;  %v3862_v15 = vmul.f32 %v3838_v31, %v3838_v31  ;;  %v11458_v26 = vadd.f32 %v3839_v34, %v3797_v7  ;;  %v3906_v34 = vrot.slane %v3842_v17, %v3905_v53 }
 0x6f8   :  { %v3845_v27 = vrot.slane %v3844_v24, 4  ;;  %v3864_v25 = vadd.f32 %v3862_v15, %v3860_v48  ;;  %v3851_v29 = vadd.f32 %v11458_v26, %v11453_v16  ;;  %v3863_v30 = vmul.f32 %v11458_v26, %v11458_v26 }
 0x6fa   :  { %v3846_v2 = vadd.f32 %v3845_v27, %v3844_v24  ;;  %v3865_v63 = vrot.slane %v3864_v25, 4  ;;  %v3852_v36 = vrot.slane %v3851_v29, 4  ;;  %v3871_v58 = vadd.f32 %v3863_v30, %v3861_v1 }
 0x6fc   :  { %v3847_v37 = vrot.slane %v3846_v2, 2  ;;  %v3866_v40 = vadd.f32 %v3865_v63, %v3864_v25  ;;  %v3853_v12 = vadd.f32 %v3852_v36, %v3851_v29  ;;  %v3872_v42 = vrot.slane %v3871_v58, 4 }
 0x6fd   :  { %v3921_v25 = vrot.slane %v3843_v46, %v3905_v53 }
 0x6fe   :  { %v3848_v52 = vadd.f32 %v3847_v37, %v3846_v2  ;;  %v3867_v28 = vrot.slane %v3866_v40, 2  ;;  %v3854_v43 = vrot.slane %v3853_v12, 2  ;;  %v3873_v44 = vadd.f32 %v3872_v42, %v3871_v58 }
 0x700   :  { %v3849_v39 = vrot.slane %v3848_v52, 1  ;;  %v3868_v22 = vadd.f32 %v3867_v28, %v3866_v40  ;;  %v3855_v41 = vadd.f32 %v3854_v43, %v3853_v12  ;;  %v3874_v45 = vrot.slane %v3873_v44, 2  ;;  %v9629_v43 = vld [vmem:[#allocation12] sm:$0xff]  }
 0x702   :  { %v3850_v14 = vadd.f32 %v3849_v39, %v3848_v52  ;;  %v3869_v23 = vrot.slane %v3868_v22, 1  ;;  %v3856_v35 = vrot.slane %v3855_v41, 1  ;;  %v3875_v11 = vadd.f32 %v3874_v45, %v3873_v44 }
 0x704   :  { %v3858_v19 = vmul.f32 0.0625, %v3850_v14  ;;  %v3870_v51 = vadd.f32 %v3869_v23, %v3868_v22  ;;  %v3857_v0 = vadd.f32 %v3856_v35, %v3855_v41  ;;  %v3876_v49 = vrot.slane %v3875_v11, 1 }
 0x706   :  { %v3878_v50 = vmul.f32 0.0625, %v3870_v51  ;;  %v3880_v55 = vmul.f32 %v3858_v19, %v3858_v19  ;;  %v3859_v56 = vmul.f32 0.0625, %v3857_v0  ;;  %v3877_v57 = vadd.f32 %v3876_v49, %v3875_v11 }
 0x707   :  { %v3886_v10 = vsub.f32 %v11451_v3, %v3858_v19  ;;  %v3888_v18 = vsub.f32 %v3838_v31, %v3858_v19 }
 0x708   :  { %v3882_v59 = vsub.f32 %v3878_v50, %v3880_v55  ;;  %v3879_v47 = vmul.f32 0.0625, %v3877_v57  ;;  %v3881_v62 = vmul.f32 %v3859_v56, %v3859_v56  ;;  %v3887_v33 = vsub.f32 %v11453_v16, %v3859_v56 }
 0x709   :  { %v3889_v7 = vsub.f32 %v11458_v26, %v3859_v56 }
 0x70a   :  { %v3884_v4 = vmax.f32 %v3882_v59, 0.0  ;;  %v3883_v5 = vsub.f32 %v3879_v47, %v3881_v62 }
 0x70c   :  { %v3890_v32 = vadd.f32 1e-05, %v3884_v4  ;;  %v3885_v61 = vmax.f32 %v3883_v5, 0.0 }
 0x70e   :  { %9634 = vrsqrt.f32 %v3890_v32  ;;  %v3891_v6 = vadd.f32 1e-05, %v3885_v61 }
 0x710   :  { %9636 = vrsqrt.f32 %v3891_v6 }
 0x71b   :  { %v9635_v13 = vpop.eup %9634 }
 0x71c   :  { %v3894_v21 = vmul.f32 %v9635_v13, %v3886_v10  ;;  %v3896_v20 = vmul.f32 %v9635_v13, %v3888_v18 }
 0x71d   :  { %v9637_v48 = vpop.eup %9636 }
 0x71e   :  { %v3909_v24 = vmul.f32 %v3902_v60, %v3894_v21  ;;  %v3911_v15 = vmul.f32 %v3902_v60, %v3896_v20  ;;  %v3897_v1 = vmul.f32 %v9637_v48, %v3889_v7  ;;  %v3895_v27 = vmul.f32 %v9637_v48, %v3887_v33 }
 0x720   :  { %v3926_v29 = vadd.f32 %v3917_v54, %v3911_v15  ;;  %v3924_v30 = vadd.f32 %v3917_v54, %v3909_v24  ;;  %v3912_v3 = vmul.f32 %v3906_v34, %v3897_v1  ;;  %v3910_v31 = vmul.f32 %v3906_v34, %v3895_v27 }
 0x722   :  { %v3932_v2 = vmul.f32 0.2, %v3924_v30  ;;  %v3934_v63 = vmul.f32 0.2, %v3926_v29  ;;  %v3925_v36 = vadd.f32 %v3921_v25, %v3910_v31  ;;  %v3927_v58 = vadd.f32 %v3921_v25, %v3912_v3 }
 0x723   :  { %vm3928_vm7 = vcmp.ge.f32.partialorder %v3924_v30, 0.0  ;;  %vm3930_vm8 = vcmp.ge.f32.partialorder %v3926_v29, 0.0 }
 0x724   :  { %vm3929_vm9 = vcmp.ge.f32.partialorder %v3925_v36, 0.0  ;;  %vm3931_vm10 = vcmp.ge.f32.partialorder %v3927_v58, 0.0  ;;  %v3933_v16 = vmul.f32 0.2, %v3925_v36  ;;  %v3935_v26 = vmul.f32 0.2, %v3927_v58 }
 0x725   :  { %v3936_v37 = vsel %vm3928_vm7, %v3924_v30, %v3932_v2  ;;  %v3938_v40 = vsel %vm3930_vm8, %v3926_v29, %v3934_v63 }
 0x726   :  { %v3937_v12 = vsel %vm3929_vm9, %v3925_v36, %v3933_v16  ;;  %v3939_v42 = vsel %vm3931_vm10, %v3927_v58, %v3935_v26  ;;  %v3940_v28 = vpack.c.bf16 %v3938_v40, %v3936_v37 }
 0x727   :  { %v3941_v52 = vpack.c.bf16 %v3939_v42, %v3937_v12 }
 0x729   :  { %3967 = vmatprep.subr.bf16.mxu0 %v3941_v52 }
 0x72a   :  { %3968 = vmatpush1.bf16.msra.mxu0 %v3940_v28 }
 0x72d   :  { %8398 = vmatmul.mubr.msk.bf16.vlgmr.msra.gmra.mxu0 %vm3949_vm11, %v9629_v43 }
 0x72e   :  { %10433 = shalt.err (!%p10430_p12)  }
 0x72f   :  { %180 = dma.hbm_to_vmem [thread:$0]  %s12180_s7, 16384, %s11476_s27, [#allocation3] }
 0x730   :  { %s195_s29 = scalar_lea.hbm %s12180_s7, 32768  ;;  %s10444_s30 = scalar_lea.vmem %s192_s10, 16384 }
 0x731   :  { %p10445_p13 = scmp.ne.s32.totalorder %s192_s10, %s10444_s30  ;;  %p10449_p0 = scmp.lt.s32.totalorder %s192_s10, %s11476_s27 }
 0x732   :  { %p10450_p1 = scmp.lt.s32.totalorder %s11481_s3, %s10444_s30 }
 0x734   :  { %p10451_p2 = por %p10450_p1, %p10449_p0 }
 0x736   :  { %p10452_p3 = pnand %p10451_p2, %p10445_p13 }
 0x738   :  { %10455 = shalt.err (!%p10452_p3)  }
 0x739   :  { %194 = dma.hbm_to_vmem [thread:$0]  %s181_s11, 16384, %s192_s10, [#allocation3 + $0x1] }
 0x73a   :  { %s209_s6 = scalar_lea.hbm %s12180_s7, 49152  ;;  %s10543_s1 = smov [#allocation2 + $0x800]  }
 0x73b   :  { %s205_s19 = sshll.u32 %s10543_s1, 4  ;;  %s10544_s16 = smov [#allocation2 + $0xc00]   ;;  %s206_s19 = int_to_ptr.vmem [resolvable:$true] %s205_s19 }
 0x73c   :  { %s219_s20 = sshll.u32 %s10544_s16, 4  ;;  %s10467_s21 = scalar_lea.vmem %s206_s19, 16384  ;;  %s220_s20 = int_to_ptr.vmem [resolvable:$true] %s219_s20 }
 0x73d   :  { %p10468_p4 = scmp.ne.s32.totalorder %s206_s19, %s10467_s21  ;;  %p10472_p5 = scmp.lt.s32.totalorder %s206_s19, %s11476_s27 }
 0x73e   :  { %p10473_p6 = scmp.lt.s32.totalorder %s11481_s3, %s10467_s21 }
 0x740   :  { %p10474_p7 = por %p10473_p6, %p10472_p5 }
 0x742   :  { %p10475_p8 = pnand %p10474_p7, %p10468_p4 }
 0x744   :  { %10478 = shalt.err (!%p10475_p8)  }
 0x745   :  { %208 = dma.hbm_to_vmem [thread:$0]  %s195_s29, 16384, %s206_s19, [#allocation3 + $0x2] }
 0x746   :  { %s10490_s5 = scalar_lea.vmem %s220_s20, 16384  ;;  %p10495_p10 = scmp.lt.s32.totalorder %s220_s20, %s11476_s27 }
 0x747   :  { %p10491_p9 = scmp.ne.s32.totalorder %s220_s20, %s10490_s5  ;;  %p10496_p11 = scmp.lt.s32.totalorder %s11481_s3, %s10490_s5 }
 0x749   :  { %p10497_p12 = por %p10496_p11, %p10495_p10 }
 0x74b   :  { %p10498_p13 = pnand %p10497_p12, %p10491_p9 }
 0x74d   :  { %10501 = shalt.err (!%p10498_p13)  }
 0x74e   :  { %222 = dma.hbm_to_vmem [thread:$0]  %s209_s6, 16384, %s220_s20, [#allocation3 + $0x3]  ;;  %v10545_v44 = vmov 1966171168  }
 0x74f   :  { %v4002_v39 = vunpack.c.l.s4 %v10545_v44 }
 0x751   :  { %v4003_v22 = vunpack.c.0.s8 %v4002_v39 }
 0x753   :  { %v11503_v45 = vsub.s32 %v4003_v22, %v11466_v8 }
 0x7ed   :  { %v3987_v41 = vpop.f32.mrf.mxu0 }
 0x7ef   :  { %v3989_v14 = vpop.f32.mrf.mxu0 }
 0x7f0   :  { %v8399_v23 = vpack.c.bf16 %v3989_v14, %v3987_v41 }
 0x7f1   :  { %v3991_v35 = vpop.f32.mrf.mxu0 }
 0x7f2   :  { %v4007_v11 = vrot.slane %v8399_v23, %v11503_v45 }
 0x7f3   :  { %v3993_v19 = vpop.f32.mrf.mxu0 }
 0x7f4   :  { %v4014_v51 = vrot.slane %v4007_v11, %v11503_v45  ;;  %8400 = vst.sshfl [vmem:[#allocation6] sm:$0x5 pattern:$0x73625140] %v4007_v11  ;;  %v4017_v0 = vcombine.high %v4007_v11, %v4007_v11  ;;  %v8402_v49 = vpack.c.bf16 %v3993_v19, %v3991_v35 }
 0x7f6   :  { %v4024_v50 = vrot.slane %v4017_v0, %v11503_v45  ;;  %8401 = vst.sshfl [vmem:[#allocation6 + $0x2] sm:$0x5 pattern:$0x73625140] %v4017_v0  ;;  %v4027_v55 = vcombine.high %v4014_v51, %v4014_v51  ;;  %v4040_v56 = vrot.slane %v8402_v49, %v11503_v45 }
 0x7f8   :  { %4029 = vst [vmem:[#allocation6 + $0x4] sm:$0x3] %v4027_v55  ;;  %v4030_v57 = vcombine.high %v4024_v50, %v4024_v50  ;;  %v4047_v59 = vrot.slane %v4040_v56, %v11503_v45  ;;  %8403 = vst.sshfl [vmem:[#allocation6 + $0x8] sm:$0x5 pattern:$0x73625140] %v4040_v56  ;;  %v4050_v47 = vcombine.high %v4040_v56, %v4040_v56 }
 0x7fa   :  { %4032 = vst [vmem:[#allocation6 + $0x6] sm:$0x3] %v4030_v57  ;;  %v4057_v62 = vrot.slane %v4050_v47, %v11503_v45  ;;  %8404 = vst.sshfl [vmem:[#allocation6 + $0xa] sm:$0x5 pattern:$0x73625140] %v4050_v47  ;;  %v4060_v4 = vcombine.high %v4047_v59, %v4047_v59 }
 0x7fc   :  { %4062 = vst [vmem:[#allocation6 + $0xc] sm:$0x3] %v4060_v4  ;;  %v4063_v5 = vcombine.high %v4057_v62, %v4057_v62 }
 0x7fe   :  { %4065 = vst [vmem:[#allocation6 + $0xe] sm:$0x3] %v4063_v5 }
 0x801   :  { %v11511_v32 = vld [vmem:[#allocation6] sm:$0xff] }
 0x805   :  { %v11513_v61 = vld [vmem:[#allocation6 + $0x8] sm:$0xff] }
 0x806   :  { %12275 = vst [vmem:[#allocation44_spill] sm:$0xff] %v11513_v61 }
 0x807   :  { %10515 = dma.done.wait [#allocation3], 16384 }
 0x808   :  { %10516 = vsyncadd [#allocation3], 4294950912  ;;  %v11515_v38 = vld [vmem:[#allocation2] sm:$0xff]  ;;  %v11517_v6 = vld [vmem:[#allocation2 + $0x8] sm:$0xff] }
 0x809   :  { %12276 = vst [vmem:[#allocation45_spill] sm:$0xff] %v11517_v6  ;;  %v11519_v9 = vld [vmem:[#allocation2 + $0x10] sm:$0xff]  ;;  %v11521_v17 = vld [vmem:[#allocation2 + $0x18] sm:$0xff]  ;;  %v11523_v46 = vld [vmem:[#allocation2 + $0x20] sm:$0xff] }
 0x80a   :  { %12277 = vst [vmem:[#allocation46_spill] sm:$0xff] %v11521_v17  ;;  %v11525_v53 = vld [vmem:[#allocation2 + $0x28] sm:$0xff]  ;;  %v11527_v10 = vld [vmem:[#allocation2 + $0x30] sm:$0xff]  ;;  %v11529_v18 = vld [vmem:[#allocation2 + $0x38] sm:$0xff] }
 0x80b   :  { %12278 = vst [vmem:[#allocation47_spill] sm:$0xff] %v11525_v53  ;;  %12279 = vst [vmem:[#allocation48_spill] sm:$0xff] %v11529_v18  ;;  %v11531_v60 = vld [vmem:[#allocation2 + $0x40] sm:$0xff]  ;;  %v11533_v13 = vld [vmem:[#allocation2 + $0x48] sm:$0xff] }
 0x80c   :  { %12280 = vst [vmem:[#allocation49_spill] sm:$0xff] %v11533_v13  ;;  %v11535_v21 = vld [vmem:[#allocation2 + $0x50] sm:$0xff]  ;;  %v11537_v20 = vld [vmem:[#allocation2 + $0x58] sm:$0xff]  ;;  %v11539_v54 = vld [vmem:[#allocation2 + $0x60] sm:$0xff] }
 0x80d   :  { %12281 = vst [vmem:[#allocation50_spill] sm:$0xff] %v11537_v20  ;;  %v11541_v33 = vld [vmem:[#allocation2 + $0x68] sm:$0xff]  ;;  %v11543_v7 = vld [vmem:[#allocation2 + $0x70] sm:$0xff]  ;;  %v11545_v34 = vld [vmem:[#allocation2 + $0x78] sm:$0xff] }
 0x80e   :  { %12282 = vst [vmem:[#allocation51_spill] sm:$0xff] %v11541_v33  ;;  %12283 = vst [vmem:[#allocation52_spill] sm:$0xff] %v11545_v34  ;;  %v11547_v48 = vld [vmem:[#allocation2 + $0x80] sm:$0xff]  ;;  %v11549_v24 = vld [vmem:[#allocation2 + $0x88] sm:$0xff] }
 0x80f   :  { %12284 = vst [vmem:[#allocation53_spill] sm:$0xff] %v11549_v24  ;;  %v11551_v15 = vld [vmem:[#allocation2 + $0x90] sm:$0xff]  ;;  %v11553_v1 = vld [vmem:[#allocation2 + $0x98] sm:$0xff]  ;;  %v11555_v27 = vld [vmem:[#allocation2 + $0xa0] sm:$0xff] }
 0x810   :  { %12285 = vst [vmem:[#allocation54_spill] sm:$0xff] %v11553_v1  ;;  %v11557_v25 = vld [vmem:[#allocation2 + $0xa8] sm:$0xff]  ;;  %v11559_v29 = vld [vmem:[#allocation2 + $0xb0] sm:$0xff]  ;;  %v11561_v30 = vld [vmem:[#allocation2 + $0xb8] sm:$0xff] }
 0x811   :  { %12286 = vst [vmem:[#allocation55_spill] sm:$0xff] %v11557_v25  ;;  %12287 = vst [vmem:[#allocation56_spill] sm:$0xff] %v11561_v30  ;;  %v11563_v3 = vld [vmem:[#allocation2 + $0xc0] sm:$0xff]  ;;  %v11565_v31 = vld [vmem:[#allocation2 + $0xc8] sm:$0xff] }
 0x812   :  { %12288 = vst [vmem:[#allocation57_spill] sm:$0xff] %v11565_v31  ;;  %v11567_v2 = vld [vmem:[#allocation2 + $0xd0] sm:$0xff]  ;;  %v11569_v63 = vld [vmem:[#allocation2 + $0xd8] sm:$0xff]  ;;  %v11571_v36 = vld [vmem:[#allocation2 + $0xe0] sm:$0xff] }
 0x813   :  { %12289 = vst [vmem:[#allocation58_spill] sm:$0xff] %v11569_v63  ;;  %v11573_v58 = vld [vmem:[#allocation2 + $0xe8] sm:$0xff]  ;;  %v11575_v16 = vld [vmem:[#allocation2 + $0xf0] sm:$0xff]  ;;  %v11577_v26 = vld [vmem:[#allocation2 + $0xf8] sm:$0xff] }
 0x814   :  { %12290 = vst [vmem:[#allocation59_spill] sm:$0xff] %v11573_v58  ;;  %12291 = vst [vmem:[#allocation60_spill] sm:$0xff] %v11577_v26  ;;  %v11579_v37 = vld [vmem:[#allocation2 + $0x100] sm:$0xff]  ;;  %v11581_v40 = vld [vmem:[#allocation2 + $0x108] sm:$0xff] }
 0x815   :  { %12292 = vst [vmem:[#allocation61_spill] sm:$0xff] %v11579_v37  ;;  %12293 = vst [vmem:[#allocation62_spill] sm:$0xff] %v11581_v40  ;;  %v11583_v12 = vld [vmem:[#allocation2 + $0x110] sm:$0xff]  ;;  %v11585_v42 = vld [vmem:[#allocation2 + $0x118] sm:$0xff] }
 0x816   :  { %12294 = vst [vmem:[#allocation63_spill] sm:$0xff] %v11583_v12  ;;  %12295 = vst [vmem:[#allocation64_spill] sm:$0xff] %v11585_v42  ;;  %v11587_v52 = vld [vmem:[#allocation2 + $0x120] sm:$0xff]  ;;  %v11589_v28 = vld [vmem:[#allocation2 + $0x128] sm:$0xff] }
 0x817   :  { %12296 = vst [vmem:[#allocation65_spill] sm:$0xff] %v11587_v52  ;;  %12297 = vst [vmem:[#allocation66_spill] sm:$0xff] %v11589_v28  ;;  %v11591_v43 = vld [vmem:[#allocation2 + $0x130] sm:$0xff]  ;;  %v11593_v44 = vld [vmem:[#allocation2 + $0x138] sm:$0xff] }
 0x818   :  { %12298 = vst [vmem:[#allocation67_spill] sm:$0xff] %v11591_v43  ;;  %12299 = vst [vmem:[#allocation68_spill] sm:$0xff] %v11593_v44  ;;  %v11595_v39 = vld [vmem:[#allocation2 + $0x140] sm:$0xff]  ;;  %v11597_v22 = vld [vmem:[#allocation2 + $0x148] sm:$0xff] }
 0x819   :  { %12300 = vst [vmem:[#allocation69_spill] sm:$0xff] %v11595_v39  ;;  %12301 = vst [vmem:[#allocation70_spill] sm:$0xff] %v11597_v22  ;;  %v11599_v41 = vld [vmem:[#allocation2 + $0x150] sm:$0xff]  ;;  %v11601_v14 = vld [vmem:[#allocation2 + $0x158] sm:$0xff] }
 0x81a   :  { %12302 = vst [vmem:[#allocation71_spill] sm:$0xff] %v11599_v41  ;;  %12303 = vst [vmem:[#allocation72_spill] sm:$0xff] %v11601_v14  ;;  %v11603_v23 = vld [vmem:[#allocation2 + $0x160] sm:$0xff]  ;;  %v11605_v35 = vld [vmem:[#allocation2 + $0x168] sm:$0xff] }
 0x81b   :  { %12304 = vst [vmem:[#allocation73_spill] sm:$0xff] %v11603_v23  ;;  %12305 = vst [vmem:[#allocation74_spill] sm:$0xff] %v11605_v35  ;;  %v11607_v11 = vld [vmem:[#allocation2 + $0x170] sm:$0xff]  ;;  %v11609_v19 = vld [vmem:[#allocation2 + $0x178] sm:$0xff] }
 0x81c   :  { %12306 = vst [vmem:[#allocation75_spill] sm:$0xff] %v11607_v11  ;;  %12307 = vst [vmem:[#allocation76_spill] sm:$0xff] %v11609_v19  ;;  %v11611_v51 = vld [vmem:[#allocation2 + $0x180] sm:$0xff]  ;;  %v11613_v0 = vld [vmem:[#allocation2 + $0x188] sm:$0xff] }
 0x81d   :  { %12308 = vst [vmem:[#allocation77_spill] sm:$0xff] %v11611_v51  ;;  %12309 = vst [vmem:[#allocation78_spill] sm:$0xff] %v11613_v0  ;;  %v11615_v49 = vld [vmem:[#allocation2 + $0x190] sm:$0xff]  ;;  %v11617_v50 = vld [vmem:[#allocation2 + $0x198] sm:$0xff] }
 0x81e   :  { %12310 = vst [vmem:[#allocation79_spill] sm:$0xff] %v11615_v49  ;;  %12311 = vst [vmem:[#allocation80_spill] sm:$0xff] %v11617_v50  ;;  %v11619_v55 = vld [vmem:[#allocation2 + $0x1a0] sm:$0xff]  ;;  %v11621_v56 = vld [vmem:[#allocation2 + $0x1a8] sm:$0xff] }
 0x81f   :  { %12312 = vst [vmem:[#allocation81_spill] sm:$0xff] %v11621_v56  ;;  %v11623_v57 = vld [vmem:[#allocation2 + $0x1b0] sm:$0xff]  ;;  %v11625_v59 = vld [vmem:[#allocation2 + $0x1b8] sm:$0xff]  ;;  %v11627_v47 = vld [vmem:[#allocation2 + $0x1c0] sm:$0xff] }
 0x820   :  { %12313 = vst [vmem:[#allocation82_spill] sm:$0xff] %v11625_v59  ;;  %v11629_v62 = vld [vmem:[#allocation2 + $0x1c8] sm:$0xff]  ;;  %v11631_v4 = vld [vmem:[#allocation2 + $0x1d0] sm:$0xff]  ;;  %v11633_v5 = vld [vmem:[#allocation2 + $0x1d8] sm:$0xff] }
 0x821   :  { %12314 = vst [vmem:[#allocation83_spill] sm:$0xff] %v11629_v62  ;;  %12315 = vst [vmem:[#allocation84_spill] sm:$0xff] %v11633_v5  ;;  %v11635_v8 = vld [vmem:[#allocation2 + $0x1e0] sm:$0xff]  ;;  %v11637_v61 = vld [vmem:[#allocation2 + $0x1e8] sm:$0xff] }
 0x822   :  { %12316 = vst [vmem:[#allocation85_spill] sm:$0xff] %v11637_v61  ;;  %v11639_v40 = vld [vmem:[#allocation2 + $0x1f0] sm:$0xff]  ;;  %v11641_v42 = vld [vmem:[#allocation2 + $0x1f8] sm:$0xff]  ;;  %v11643_v28 = vld [vmem:[#allocation2 + $0x200] sm:$0xff] }
 0x823   :  { %12317 = vst [vmem:[#allocation86_spill] sm:$0xff] %v11641_v42  ;;  %v11645_v44 = vld [vmem:[#allocation2 + $0x208] sm:$0xff]  ;;  %v11647_v22 = vld [vmem:[#allocation2 + $0x210] sm:$0xff]  ;;  %v11649_v14 = vld [vmem:[#allocation2 + $0x218] sm:$0xff] }
 0x824   :  { %12318 = vst [vmem:[#allocation87_spill] sm:$0xff] %v11645_v44  ;;  %12319 = vst [vmem:[#allocation88_spill] sm:$0xff] %v11649_v14  ;;  %v11651_v35 = vld [vmem:[#allocation2 + $0x220] sm:$0xff]  ;;  %v11653_v19 = vld [vmem:[#allocation2 + $0x228] sm:$0xff] }
 0x825   :  { %12320 = vst [vmem:[#allocation89_spill] sm:$0xff] %v11653_v19  ;;  %v11655_v0 = vld [vmem:[#allocation2 + $0x230] sm:$0xff]  ;;  %v11657_v50 = vld [vmem:[#allocation2 + $0x238] sm:$0xff]  ;;  %v11659_v56 = vld [vmem:[#allocation2 + $0x240] sm:$0xff] }
 0x826   :  { %12321 = vst [vmem:[#allocation90_spill] sm:$0xff] %v11657_v50  ;;  %v11661_v59 = vld [vmem:[#allocation2 + $0x248] sm:$0xff]  ;;  %v11663_v62 = vld [vmem:[#allocation2 + $0x250] sm:$0xff]  ;;  %v11665_v5 = vld [vmem:[#allocation2 + $0x258] sm:$0xff] }
 0x827   :  { %12322 = vst [vmem:[#allocation91_spill] sm:$0xff] %v11661_v59  ;;  %12323 = vst [vmem:[#allocation92_spill] sm:$0xff] %v11665_v5  ;;  %v11667_v61 = vld [vmem:[#allocation2 + $0x260] sm:$0xff]  ;;  %v11669_v42 = vld [vmem:[#allocation2 + $0x268] sm:$0xff] }
 0x828   :  { %12324 = vst [vmem:[#allocation93_spill] sm:$0xff] %v11669_v42  ;;  %v11671_v44 = vld [vmem:[#allocation2 + $0x270] sm:$0xff]  ;;  %v11673_v14 = vld [vmem:[#allocation2 + $0x278] sm:$0xff]  ;;  %v11675_v6 = vld [vmem:[#allocation2 + $0x280] sm:$0xff] }
 0x829   :  { %12325 = vst [vmem:[#allocation94_spill] sm:$0xff] %v11673_v14  ;;  %v11677_v17 = vld [vmem:[#allocation2 + $0x288] sm:$0xff]  ;;  %v11679_v19 = vld [vmem:[#allocation2 + $0x290] sm:$0xff]  ;;  %v11681_v50 = vld [vmem:[#allocation2 + $0x298] sm:$0xff] }
 0x82a   :  { %12326 = vst [vmem:[#allocation95_spill] sm:$0xff] %v11677_v17  ;;  %12327 = vst [vmem:[#allocation96_spill] sm:$0xff] %v11681_v50  ;;  %v11683_v53 = vld [vmem:[#allocation2 + $0x2a0] sm:$0xff]  ;;  %v11685_v18 = vld [vmem:[#allocation2 + $0x2a8] sm:$0xff] }
 0x82b   :  { %12328 = vst [vmem:[#allocation97_spill] sm:$0xff] %v11685_v18  ;;  %v11687_v59 = vld [vmem:[#allocation2 + $0x2b0] sm:$0xff]  ;;  %v11689_v5 = vld [vmem:[#allocation2 + $0x2b8] sm:$0xff]  ;;  %v11691_v13 = vld [vmem:[#allocation2 + $0x2c0] sm:$0xff] }
 0x82c   :  { %12329 = vst [vmem:[#allocation98_spill] sm:$0xff] %v11689_v5  ;;  %v11693_v20 = vld [vmem:[#allocation2 + $0x2c8] sm:$0xff]  ;;  %v11695_v42 = vld [vmem:[#allocation2 + $0x2d0] sm:$0xff]  ;;  %v11697_v14 = vld [vmem:[#allocation2 + $0x2d8] sm:$0xff] }
 0x82d   :  { %12330 = vst [vmem:[#allocation99_spill] sm:$0xff] %v11693_v20  ;;  %12331 = vst [vmem:[#allocation100_spill] sm:$0xff] %v11697_v14  ;;  %v11699_v33 = vld [vmem:[#allocation2 + $0x2e0] sm:$0xff]  ;;  %v11701_v34 = vld [vmem:[#allocation2 + $0x2e8] sm:$0xff] }
 0x82e   :  { %12332 = vst [vmem:[#allocation101_spill] sm:$0xff] %v11701_v34  ;;  %v11703_v17 = vld [vmem:[#allocation2 + $0x2f0] sm:$0xff]  ;;  %v11705_v50 = vld [vmem:[#allocation2 + $0x2f8] sm:$0xff]  ;;  %v11707_v24 = vld [vmem:[#allocation2 + $0x300] sm:$0xff] }
 0x82f   :  { %12333 = vst [vmem:[#allocation102_spill] sm:$0xff] %v11705_v50  ;;  %12334 = vst [vmem:[#allocation103_spill] sm:$0xff] %v11707_v24  ;;  %v11709_v1 = vld [vmem:[#allocation2 + $0x308] sm:$0xff]  ;;  %v11711_v18 = vld [vmem:[#allocation2 + $0x310] sm:$0xff] }
 0x830   :  { %12335 = vst [vmem:[#allocation104_spill] sm:$0xff] %v11709_v1  ;;  %12336 = vst [vmem:[#allocation105_spill] sm:$0xff] %v11711_v18  ;;  %v11713_v5 = vld [vmem:[#allocation2 + $0x318] sm:$0xff]  ;;  %v11715_v25 = vld [vmem:[#allocation2 + $0x320] sm:$0xff] }
 0x831   :  { %12337 = vst [vmem:[#allocation106_spill] sm:$0xff] %v11713_v5  ;;  %12338 = vst [vmem:[#allocation107_spill] sm:$0xff] %v11715_v25  ;;  %v11717_v30 = vld [vmem:[#allocation2 + $0x328] sm:$0xff]  ;;  %v11719_v20 = vld [vmem:[#allocation2 + $0x330] sm:$0xff] }
 0x832   :  { %12339 = vst [vmem:[#allocation108_spill] sm:$0xff] %v11717_v30  ;;  %12340 = vst [vmem:[#allocation109_spill] sm:$0xff] %v11719_v20  ;;  %v11721_v14 = vld [vmem:[#allocation2 + $0x338] sm:$0xff]  ;;  %v11723_v31 = vld [vmem:[#allocation2 + $0x340] sm:$0xff] }
 0x833   :  { %12341 = vst [vmem:[#allocation110_spill] sm:$0xff] %v11721_v14  ;;  %12342 = vst [vmem:[#allocation111_spill] sm:$0xff] %v11723_v31  ;;  %v11725_v63 = vld [vmem:[#allocation2 + $0x348] sm:$0xff]  ;;  %v11727_v34 = vld [vmem:[#allocation2 + $0x350] sm:$0xff] }
 0x834   :  { %12343 = vst [vmem:[#allocation112_spill] sm:$0xff] %v11725_v63  ;;  %12344 = vst [vmem:[#allocation113_spill] sm:$0xff] %v11727_v34  ;;  %v11729_v50 = vld [vmem:[#allocation2 + $0x358] sm:$0xff]  ;;  %v11731_v1 = vld [vmem:[#allocation2 + $0x360] sm:$0xff] }
 0x835   :  { %12345 = vst [vmem:[#allocation114_spill] sm:$0xff] %v11729_v50  ;;  %12346 = vst [vmem:[#allocation115_spill] sm:$0xff] %v11731_v1  ;;  %v11733_v58 = vld [vmem:[#allocation2 + $0x368] sm:$0xff]  ;;  %v11735_v5 = vld [vmem:[#allocation2 + $0x370] sm:$0xff] }
 0x836   :  { %12347 = vst [vmem:[#allocation116_spill] sm:$0xff] %v11733_v58  ;;  %12348 = vst [vmem:[#allocation117_spill] sm:$0xff] %v11735_v5  ;;  %v11737_v26 = vld [vmem:[#allocation2 + $0x378] sm:$0xff]  ;;  %v11739_v30 = vld [vmem:[#allocation2 + $0x380] sm:$0xff] }
 0x837   :  { %12349 = vst [vmem:[#allocation118_spill] sm:$0xff] %v11737_v26  ;;  %12350 = vst [vmem:[#allocation119_spill] sm:$0xff] %v11739_v30  ;;  %v11741_v24 = vld [vmem:[#allocation2 + $0x388] sm:$0xff]  ;;  %v11743_v14 = vld [vmem:[#allocation2 + $0x390] sm:$0xff] }
 0x838   :  { %12351 = vst [vmem:[#allocation120_spill] sm:$0xff] %v11741_v24  ;;  %12352 = vst [vmem:[#allocation121_spill] sm:$0xff] %v11743_v14  ;;  %v11745_v18 = vld [vmem:[#allocation2 + $0x398] sm:$0xff]  ;;  %v11747_v63 = vld [vmem:[#allocation2 + $0x3a0] sm:$0xff] }
 0x839   :  { %12353 = vst [vmem:[#allocation122_spill] sm:$0xff] %v11745_v18  ;;  %v11749_v37 = vld [vmem:[#allocation2 + $0x3a8] sm:$0xff]  ;;  %v11751_v50 = vld [vmem:[#allocation2 + $0x3b0] sm:$0xff]  ;;  %v11753_v12 = vld [vmem:[#allocation2 + $0x3b8] sm:$0xff] }
 0x83a   :  { %12354 = vst [vmem:[#allocation123_spill] sm:$0xff] %v11749_v37  ;;  %12355 = vst [vmem:[#allocation124_spill] sm:$0xff] %v11753_v12  ;;  %v11755_v58 = vld [vmem:[#allocation2 + $0x3c0] sm:$0xff]  ;;  %v11757_v25 = vld [vmem:[#allocation2 + $0x3c8] sm:$0xff] }
 0x83b   :  { %12356 = vst [vmem:[#allocation125_spill] sm:$0xff] %v11757_v25  ;;  %v11759_v26 = vld [vmem:[#allocation2 + $0x3d0] sm:$0xff]  ;;  %v11761_v20 = vld [vmem:[#allocation2 + $0x3d8] sm:$0xff]  ;;  %v11763_v24 = vld [vmem:[#allocation2 + $0x3e0] sm:$0xff] }
 0x83c   :  { %12357 = vst [vmem:[#allocation126_spill] sm:$0xff] %v11761_v20  ;;  %v11765_v52 = vld [vmem:[#allocation2 + $0x3e8] sm:$0xff]  ;;  %v11767_v18 = vld [vmem:[#allocation2 + $0x3f0] sm:$0xff]  ;;  %v11769_v43 = vld [vmem:[#allocation2 + $0x3f8] sm:$0xff] }
 0x83d   :  { %12358 = vst [vmem:[#allocation127_spill] sm:$0xff] %v11765_v52  ;;  %12359 = vst [vmem:[#allocation128_spill] sm:$0xff] %v11769_v43 }
 0x83e   :  { %10517 = dma.done.wait [#allocation3 + $0x1], 16384 }
 0x83f   :  { %10518 = vsyncadd [#allocation3 + $0x1], 4294950912  ;;  %v4331_v37 = vcombine.high %v11511_v32, %v11511_v32  ;;  %v9638_v31 = vld [vmem:[#allocation2 + $0x4e4] ss:$16 sps:$4 sm:$0xff]   ;;  %v9642_v34 = vld [vmem:[#allocation2 + $0x4e0] ss:$16 sps:$4 sm:$0xff]  }
 0x840   :  { %v9640_v52 = vld [vmem:[#allocation2 + $0x6e4] ss:$16 sps:$4 sm:$0xff]   ;;  %5014 = vmatprep.subr.bf16.mxu0 %v9638_v31  ;;  %v9643_v39 = vld [vmem:[#allocation2 + $0x6e0] ss:$16 sps:$4 sm:$0xff]  }
 0x841   :  { %v11774_v12 = vrot.slane %v4331_v37, %v11503_v45  ;;  %5055 = vmatprep.subr.bf16.mxu1 %v9640_v52  ;;  %v9644_v37 = vld [vmem:[#allocation2 + $0x4c4] ss:$16 sps:$4 sm:$0xff]   ;;  %5015 = vmatpush1.bf16.msra.mxu0 %v9642_v34  ;;  %v9649_v1 = vld [vmem:[#allocation2 + $0x6c0] ss:$16 sps:$4 sm:$0xff]  }
 0x842   :  { %5056 = vmatpush1.bf16.msra.mxu1 %v9643_v39  ;;  %v9646_v41 = vld [vmem:[#allocation2 + $0x6c4] ss:$16 sps:$4 sm:$0xff]   ;;  %5016 = vmatprep.subr.bf16.mxu0 %v9644_v37  ;;  %v9654_v11 = vld [vmem:[#allocation2 + $0x4a0] ss:$16 sps:$4 sm:$0xff]  }
 0x843   :  { %v4346_v25 = vcombine.high %v11774_v12, %v11774_v12  ;;  %5057 = vmatprep.subr.bf16.mxu1 %v9646_v41  ;;  %v9650_v5 = vld [vmem:[#allocation2 + $0x4a4] ss:$16 sps:$4 sm:$0xff]   ;;  %v9655_v30 = vld [vmem:[#allocation2 + $0x6a0] ss:$16 sps:$4 sm:$0xff]  }
 0x844   :  { %v9652_v23 = vld [vmem:[#allocation2 + $0x6a4] ss:$16 sps:$4 sm:$0xff]   ;;  %v9660_v14 = vld [vmem:[#allocation2 + $0x480] ss:$16 sps:$4 sm:$0xff]  }
 0x845   :  { %v11779_v20 = vrot.slane %v4346_v25, %v11503_v45  ;;  %v9648_v25 = vld [vmem:[#allocation2 + $0x4c0] ss:$16 sps:$4 sm:$0xff]   ;;  %v9656_v31 = vld [vmem:[#allocation2 + $0x484] ss:$16 sps:$4 sm:$0xff]  }
 0x846   :  { %5017 = vmatpush1.bf16.msra.mxu0 %v9648_v25  ;;  %5058 = vmatpush1.bf16.msra.mxu1 %v9649_v1  ;;  %v9658_v52 = vld [vmem:[#allocation2 + $0x684] ss:$16 sps:$4 sm:$0xff]   ;;  %v9661_v34 = vld [vmem:[#allocation2 + $0x680] ss:$16 sps:$4 sm:$0xff]  }
 0x847   :  { %5046 = vmatprep.mubr.bf16.mxu0 %v11779_v20  ;;  %v11784_v43 = vcombine.high %v11779_v20, %v11779_v20  ;;  %5018 = vmatprep.subr.bf16.mxu0 %v9650_v5  ;;  %v9662_v39 = vld [vmem:[#allocation2 + $0x464] ss:$16 sps:$4 sm:$0xff]   ;;  %v9666_v51 = vld [vmem:[#allocation2 + $0x460] ss:$16 sps:$4 sm:$0xff]  }
 0x848   :  { %5059 = vmatprep.subr.bf16.mxu1 %v9652_v23  ;;  %v9664_v37 = vld [vmem:[#allocation2 + $0x664] ss:$16 sps:$4 sm:$0xff]   ;;  %v9667_v41 = vld [vmem:[#allocation2 + $0x660] ss:$16 sps:$4 sm:$0xff]  }
 0x849   :  { %5087 = vmatprep.mubr.bf16.mxu1 %v11784_v43  ;;  %v9668_v49 = vld [vmem:[#allocation2 + $0x444] ss:$16 sps:$4 sm:$0xff]   ;;  %v9672_v25 = vld [vmem:[#allocation2 + $0x440] ss:$16 sps:$4 sm:$0xff]  }
 0x84a   :  { %5019 = vmatpush1.bf16.msra.mxu0 %v9654_v11  ;;  %5060 = vmatpush1.bf16.msra.mxu1 %v9655_v30  ;;  %v9670_v1 = vld [vmem:[#allocation2 + $0x644] ss:$16 sps:$4 sm:$0xff]   ;;  %v9673_v23 = vld [vmem:[#allocation2 + $0x640] ss:$16 sps:$4 sm:$0xff]  }
 0x84b   :  { %5020 = vmatprep.subr.bf16.mxu0 %v9656_v31  ;;  %5061 = vmatprep.subr.bf16.mxu1 %v9658_v52  ;;  %v9674_v5 = vld [vmem:[#allocation2 + $0x424] ss:$16 sps:$4 sm:$0xff]   ;;  %v9678_v11 = vld [vmem:[#allocation2 + $0x420] ss:$16 sps:$4 sm:$0xff]  }
 0x84c   :  { %v9676_v30 = vld [vmem:[#allocation2 + $0x624] ss:$16 sps:$4 sm:$0xff]   ;;  %v9679_v31 = vld [vmem:[#allocation2 + $0x620] ss:$16 sps:$4 sm:$0xff]  }
 0x84d   :  { %v9680_v52 = vld [vmem:[#allocation2 + $0x404] ss:$16 sps:$4 sm:$0xff]  }
 0x84e   :  { %5021 = vmatpush1.bf16.msra.mxu0 %v9660_v14  ;;  %5062 = vmatpush1.bf16.msra.mxu1 %v9661_v34  ;;  %v9682_v14 = vld [vmem:[#allocation2 + $0x604] ss:$16 sps:$4 sm:$0xff]   ;;  %v9684_v34 = vld [vmem:[#allocation2 + $0x400] ss:$16 sps:$4 sm:$0xff]  }
 0x84f   :  { %5022 = vmatprep.subr.bf16.mxu0 %v9662_v39  ;;  %5063 = vmatprep.subr.bf16.mxu1 %v9664_v37  ;;  %v9685_v39 = vld [vmem:[#allocation2 + $0x600] ss:$16 sps:$4 sm:$0xff]   ;;  %v9686_v37 = vld [vmem:[#allocation2 + $0x5e4] ss:$16 sps:$4 sm:$0xff]  }
 0x852   :  { %5023 = vmatpush1.bf16.msra.mxu0 %v9666_v51  ;;  %5064 = vmatpush1.bf16.msra.mxu1 %v9667_v41  ;;  %v9688_v51 = vld [vmem:[#allocation2 + $0x7e4] ss:$16 sps:$4 sm:$0xff]   ;;  %v9690_v41 = vld [vmem:[#allocation2 + $0x5e0] ss:$16 sps:$4 sm:$0xff]  }
 0x853   :  { %5024 = vmatprep.subr.bf16.mxu0 %v9668_v49  ;;  %5065 = vmatprep.subr.bf16.mxu1 %v9670_v1  ;;  %v9691_v49 = vld [vmem:[#allocation2 + $0x7e0] ss:$16 sps:$4 sm:$0xff]   ;;  %v9692_v1 = vld [vmem:[#allocation2 + $0x5c4] ss:$16 sps:$4 sm:$0xff]  }
 0x856   :  { %5025 = vmatpush1.bf16.msra.mxu0 %v9672_v25  ;;  %5066 = vmatpush1.bf16.msra.mxu1 %v9673_v23  ;;  %v9694_v25 = vld [vmem:[#allocation2 + $0x7c4] ss:$16 sps:$4 sm:$0xff]   ;;  %v9696_v23 = vld [vmem:[#allocation2 + $0x5c0] ss:$16 sps:$4 sm:$0xff]  }
 0x857   :  { %5026 = vmatprep.subr.bf16.mxu0 %v9674_v5  ;;  %5067 = vmatprep.subr.bf16.mxu1 %v9676_v30  ;;  %v9697_v5 = vld [vmem:[#allocation2 + $0x7c0] ss:$16 sps:$4 sm:$0xff]   ;;  %v9698_v30 = vld [vmem:[#allocation2 + $0x5a4] ss:$16 sps:$4 sm:$0xff]  }
 0x85a   :  { %5027 = vmatpush1.bf16.msra.mxu0 %v9678_v11  ;;  %5068 = vmatpush1.bf16.msra.mxu1 %v9679_v31  ;;  %v9700_v11 = vld [vmem:[#allocation2 + $0x7a4] ss:$16 sps:$4 sm:$0xff]   ;;  %v9702_v31 = vld [vmem:[#allocation2 + $0x5a0] ss:$16 sps:$4 sm:$0xff]  }
 0x85b   :  { %5028 = vmatprep.subr.bf16.mxu0 %v9680_v52  ;;  %5069 = vmatprep.subr.bf16.mxu1 %v9682_v14  ;;  %v9703_v52 = vld [vmem:[#allocation2 + $0x7a0] ss:$16 sps:$4 sm:$0xff]   ;;  %v9704_v14 = vld [vmem:[#allocation2 + $0x584] ss:$16 sps:$4 sm:$0xff]  }
 0x85e   :  { %5029 = vmatpush1.bf16.msra.mxu0 %v9684_v34  ;;  %5070 = vmatpush1.bf16.msra.mxu1 %v9685_v39  ;;  %v9706_v34 = vld [vmem:[#allocation2 + $0x784] ss:$16 sps:$4 sm:$0xff]   ;;  %v9708_v39 = vld [vmem:[#allocation2 + $0x580] ss:$16 sps:$4 sm:$0xff]  }
 0x85f   :  { %5030 = vmatprep.subr.bf16.mxu0 %v9686_v37  ;;  %5071 = vmatprep.subr.bf16.mxu1 %v9688_v51  ;;  %v9709_v37 = vld [vmem:[#allocation2 + $0x780] ss:$16 sps:$4 sm:$0xff]   ;;  %v9710_v51 = vld [vmem:[#allocation2 + $0x564] ss:$16 sps:$4 sm:$0xff]  }
 0x862   :  { %5031 = vmatpush2.bf16.msra.mxu0 %v9690_v41  ;;  %5072 = vmatpush2.bf16.msra.mxu1 %v9691_v49  ;;  %v9712_v41 = vld [vmem:[#allocation2 + $0x764] ss:$16 sps:$4 sm:$0xff]   ;;  %v9714_v49 = vld [vmem:[#allocation2 + $0x560] ss:$16 sps:$4 sm:$0xff]  }
 0x863   :  { %5032 = vmatprep.subr.bf16.mxu0 %v9692_v1  ;;  %5073 = vmatprep.subr.bf16.mxu1 %v9694_v25  ;;  %v9715_v1 = vld [vmem:[#allocation2 + $0x760] ss:$16 sps:$4 sm:$0xff]   ;;  %v9716_v25 = vld [vmem:[#allocation2 + $0x544] ss:$16 sps:$4 sm:$0xff]  }
 0x866   :  { %5033 = vmatpush2.bf16.msra.mxu0 %v9696_v23  ;;  %5074 = vmatpush2.bf16.msra.mxu1 %v9697_v5  ;;  %v9718_v23 = vld [vmem:[#allocation2 + $0x744] ss:$16 sps:$4 sm:$0xff]   ;;  %v9720_v5 = vld [vmem:[#allocation2 + $0x540] ss:$16 sps:$4 sm:$0xff]  }
 0x867   :  { %5034 = vmatprep.subr.bf16.mxu0 %v9698_v30  ;;  %5075 = vmatprep.subr.bf16.mxu1 %v9700_v11  ;;  %v9721_v30 = vld [vmem:[#allocation2 + $0x740] ss:$16 sps:$4 sm:$0xff]   ;;  %v9722_v11 = vld [vmem:[#allocation2 + $0x524] ss:$16 sps:$4 sm:$0xff]  }
 0x86a   :  { %5035 = vmatpush2.bf16.msra.mxu0 %v9702_v31  ;;  %5076 = vmatpush2.bf16.msra.mxu1 %v9703_v52  ;;  %v9724_v31 = vld [vmem:[#allocation2 + $0x724] ss:$16 sps:$4 sm:$0xff]   ;;  %v9726_v52 = vld [vmem:[#allocation2 + $0x520] ss:$16 sps:$4 sm:$0xff]  }
 0x86b   :  { %5036 = vmatprep.subr.bf16.mxu0 %v9704_v14  ;;  %5077 = vmatprep.subr.bf16.mxu1 %v9706_v34  ;;  %v9727_v14 = vld [vmem:[#allocation2 + $0x720] ss:$16 sps:$4 sm:$0xff]   ;;  %v9728_v34 = vld [vmem:[#allocation2 + $0x504] ss:$16 sps:$4 sm:$0xff]  }
 0x86e   :  { %5037 = vmatpush2.bf16.msra.mxu0 %v9708_v39  ;;  %5078 = vmatpush2.bf16.msra.mxu1 %v9709_v37  ;;  %v9730_v39 = vld [vmem:[#allocation2 + $0x704] ss:$16 sps:$4 sm:$0xff]   ;;  %v9732_v37 = vld [vmem:[#allocation2 + $0x500] ss:$16 sps:$4 sm:$0xff]  }
 0x86f   :  { %5038 = vmatprep.subr.bf16.mxu0 %v9710_v51  ;;  %5079 = vmatprep.subr.bf16.mxu1 %v9712_v41  ;;  %v9733_v51 = vld [vmem:[#allocation2 + $0x700] ss:$16 sps:$4 sm:$0xff]   ;;  %v11789_v41 = vrot.slane %v11774_v12, %v11503_v45  ;;  %v9740_v12 = vld [vmem:[#allocation2 + $0x4c8] ss:$16 sps:$4 sm:$0xff]  }
 0x872   :  { %5039 = vmatpush2.bf16.msra.mxu0 %v9714_v49  ;;  %5080 = vmatpush2.bf16.msra.mxu1 %v9715_v1  ;;  %v9736_v49 = vld [vmem:[#allocation2 + $0x4ec] ss:$16 sps:$4 sm:$0xff]  }
 0x873   :  { %5040 = vmatprep.subr.bf16.mxu0 %v9716_v25  ;;  %5081 = vmatprep.subr.bf16.mxu1 %v9718_v23  ;;  %v9739_v1 = vld [vmem:[#allocation2 + $0x6ec] ss:$16 sps:$4 sm:$0xff]   ;;  %v11793_v25 = vcombine.high %v11789_v41, %v11789_v41  ;;  %v9734_v23 = vld [vmem:[#allocation2 + $0x4e8] ss:$16 sps:$4 sm:$0xff]  }
 0x876   :  { %5041 = vmatpush2.bf16.msra.mxu0 %v9720_v5  ;;  %5082 = vmatpush2.bf16.msra.mxu1 %v9721_v30  ;;  %v9737_v5 = vld [vmem:[#allocation2 + $0x6e8] ss:$16 sps:$4 sm:$0xff]   ;;  %v9742_v30 = vld [vmem:[#allocation2 + $0x4cc] ss:$16 sps:$4 sm:$0xff]  }
 0x877   :  { %5042 = vmatprep.subr.bf16.mxu0 %v9722_v11  ;;  %5083 = vmatprep.subr.bf16.mxu1 %v9724_v31  ;;  %v9745_v11 = vld [vmem:[#allocation2 + $0x6cc] ss:$16 sps:$4 sm:$0xff]   ;;  %v9743_v31 = vld [vmem:[#allocation2 + $0x6c8] ss:$16 sps:$4 sm:$0xff]  }
 0x87a   :  { %5043 = vmatpush2.bf16.msra.mxu0 %v9726_v52  ;;  %5084 = vmatpush2.bf16.msra.mxu1 %v9727_v14  ;;  %v9748_v52 = vld [vmem:[#allocation2 + $0x4ac] ss:$16 sps:$4 sm:$0xff]  }
 0x87b   :  { %5044 = vmatprep.subr.bf16.mxu0 %v9728_v34  ;;  %5085 = vmatprep.subr.bf16.mxu1 %v9730_v39  ;;  %v9751_v14 = vld [vmem:[#allocation2 + $0x6ac] ss:$16 sps:$4 sm:$0xff]   ;;  %v9746_v34 = vld [vmem:[#allocation2 + $0x4a8] ss:$16 sps:$4 sm:$0xff]  }
 0x87c   :  { %v9749_v39 = vld [vmem:[#allocation2 + $0x6a8] ss:$16 sps:$4 sm:$0xff]  }
 0x87e   :  { %5045 = vmatpush2.bf16.msra.mxu0 %v9732_v37  ;;  %5086 = vmatpush2.bf16.msra.mxu1 %v9733_v51  ;;  %v9754_v37 = vld [vmem:[#allocation2 + $0x48c] ss:$16 sps:$4 sm:$0xff]  }
 0x87f   :  { %5096 = vmatprep.subr.bf16.mxu0 %v9736_v49  ;;  %5137 = vmatprep.subr.bf16.mxu1 %v9739_v1  ;;  %v9757_v51 = vld [vmem:[#allocation2 + $0x68c] ss:$16 sps:$4 sm:$0xff]   ;;  %v9752_v49 = vld [vmem:[#allocation2 + $0x488] ss:$16 sps:$4 sm:$0xff]  }
 0x880   :  { %v9755_v1 = vld [vmem:[#allocation2 + $0x688] ss:$16 sps:$4 sm:$0xff]  }
 0x881   :  { %5047 = vmatmul.mubr.bf16.vlgmr.msra.gmra.mxu0 %v11789_v41  ;;  %5088 = vmatmul.mubr.bf16.vlgmr.msra.gmra.mxu1 %v11793_v25 }
 0x882   :  { %5097 = vmatpush1.bf16.msra.mxu0 %v9734_v23  ;;  %5138 = vmatpush1.bf16.msra.mxu1 %v9737_v5  ;;  %v9760_v23 = vld [vmem:[#allocation2 + $0x46c] ss:$16 sps:$4 sm:$0xff]  }
 0x883   :  { %5098 = vmatprep.subr.bf16.mxu0 %v9742_v30  ;;  %5139 = vmatprep.subr.bf16.mxu1 %v9745_v11  ;;  %v9763_v5 = vld [vmem:[#allocation2 + $0x66c] ss:$16 sps:$4 sm:$0xff]   ;;  %v9758_v30 = vld [vmem:[#allocation2 + $0x468] ss:$16 sps:$4 sm:$0xff]  }
 0x884   :  { %5128 = vmatprep.mubr.bf16.mxu0 %v11779_v20  ;;  %5169 = vmatprep.mubr.bf16.mxu1 %v11784_v43  ;;  %v9761_v20 = vld [vmem:[#allocation2 + $0x668] ss:$16 sps:$4 sm:$0xff]   ;;  %v9766_v43 = vld [vmem:[#allocation2 + $0x44c] ss:$16 sps:$4 sm:$0xff]  }
 0x885   :  { %v9769_v11 = vld [vmem:[#allocation2 + $0x64c] ss:$16 sps:$4 sm:$0xff]  }
 0x886   :  { %5099 = vmatpush1.bf16.msra.mxu0 %v9740_v12  ;;  %5140 = vmatpush1.bf16.msra.mxu1 %v9743_v31  ;;  %v9764_v12 = vld [vmem:[#allocation2 + $0x448] ss:$16 sps:$4 sm:$0xff]  }
 0x887   :  { %5100 = vmatprep.subr.bf16.mxu0 %v9748_v52  ;;  %5141 = vmatprep.subr.bf16.mxu1 %v9751_v14  ;;  %v9767_v31 = vld [vmem:[#allocation2 + $0x648] ss:$16 sps:$4 sm:$0xff]   ;;  %v9772_v52 = vld [vmem:[#allocation2 + $0x42c] ss:$16 sps:$4 sm:$0xff]  }
 0x888   :  { %v9775_v14 = vld [vmem:[#allocation2 + $0x62c] ss:$16 sps:$4 sm:$0xff]  }
 0x88a   :  { %5101 = vmatpush1.bf16.msra.mxu0 %v9746_v34  ;;  %5142 = vmatpush1.bf16.msra.mxu1 %v9749_v39  ;;  %v9770_v34 = vld [vmem:[#allocation2 + $0x428] ss:$16 sps:$4 sm:$0xff]  }
 0x88b   :  { %5102 = vmatprep.subr.bf16.mxu0 %v9754_v37  ;;  %5143 = vmatprep.subr.bf16.mxu1 %v9757_v51  ;;  %v9773_v39 = vld [vmem:[#allocation2 + $0x628] ss:$16 sps:$4 sm:$0xff]   ;;  %v9778_v37 = vld [vmem:[#allocation2 + $0x40c] ss:$16 sps:$4 sm:$0xff]  }
 0x88c   :  { %v9781_v51 = vld [vmem:[#allocation2 + $0x60c] ss:$16 sps:$4 sm:$0xff]  }
 0x88e   :  { %5103 = vmatpush1.bf16.msra.mxu0 %v9752_v49  ;;  %5144 = vmatpush1.bf16.msra.mxu1 %v9755_v1  ;;  %v9776_v49 = vld [vmem:[#allocation2 + $0x408] ss:$16 sps:$4 sm:$0xff]  }
 0x88f   :  { %5104 = vmatprep.subr.bf16.mxu0 %v9760_v23  ;;  %5145 = vmatprep.subr.bf16.mxu1 %v9763_v5  ;;  %v9779_v1 = vld [vmem:[#allocation2 + $0x608] ss:$16 sps:$4 sm:$0xff]   ;;  %v9784_v23 = vld [vmem:[#allocation2 + $0x5ec] ss:$16 sps:$4 sm:$0xff]  }
 0x890   :  { %v9787_v5 = vld [vmem:[#allocation2 + $0x7ec] ss:$16 sps:$4 sm:$0xff]  }
 0x892   :  { %5105 = vmatpush1.bf16.msra.mxu0 %v9758_v30  ;;  %5146 = vmatpush1.bf16.msra.mxu1 %v9761_v20  ;;  %v9782_v30 = vld [vmem:[#allocation2 + $0x5e8] ss:$16 sps:$4 sm:$0xff]  }
 0x893   :  { %5106 = vmatprep.subr.bf16.mxu0 %v9766_v43  ;;  %5147 = vmatprep.subr.bf16.mxu1 %v9769_v11  ;;  %v9785_v20 = vld [vmem:[#allocation2 + $0x7e8] ss:$16 sps:$4 sm:$0xff]   ;;  %v9790_v43 = vld [vmem:[#allocation2 + $0x5cc] ss:$16 sps:$4 sm:$0xff]  }
 0x894   :  { %v9793_v11 = vld [vmem:[#allocation2 + $0x7cc] ss:$16 sps:$4 sm:$0xff]  }
 0x896   :  { %5107 = vmatpush1.bf16.msra.mxu0 %v9764_v12  ;;  %5148 = vmatpush1.bf16.msra.mxu1 %v9767_v31  ;;  %v9788_v12 = vld [vmem:[#allocation2 + $0x5c8] ss:$16 sps:$4 sm:$0xff]  }
 0x897   :  { %5108 = vmatprep.subr.bf16.mxu0 %v9772_v52  ;;  %5149 = vmatprep.subr.bf16.mxu1 %v9775_v14  ;;  %v9791_v31 = vld [vmem:[#allocation2 + $0x7c8] ss:$16 sps:$4 sm:$0xff]   ;;  %v9796_v52 = vld [vmem:[#allocation2 + $0x5ac] ss:$16 sps:$4 sm:$0xff]  }
 0x898   :  { %v9799_v14 = vld [vmem:[#allocation2 + $0x7ac] ss:$16 sps:$4 sm:$0xff]  }
 0x89a   :  { %5109 = vmatpush1.bf16.msra.mxu0 %v9770_v34  ;;  %5150 = vmatpush1.bf16.msra.mxu1 %v9773_v39  ;;  %v9794_v34 = vld [vmem:[#allocation2 + $0x5a8] ss:$16 sps:$4 sm:$0xff]  }
 0x89b   :  { %5110 = vmatprep.subr.bf16.mxu0 %v9778_v37  ;;  %5151 = vmatprep.subr.bf16.mxu1 %v9781_v51  ;;  %v9797_v39 = vld [vmem:[#allocation2 + $0x7a8] ss:$16 sps:$4 sm:$0xff]   ;;  %v9802_v37 = vld [vmem:[#allocation2 + $0x58c] ss:$16 sps:$4 sm:$0xff]  }
 0x89c   :  { %v9805_v51 = vld [vmem:[#allocation2 + $0x78c] ss:$16 sps:$4 sm:$0xff]  }
 0x89e   :  { %5111 = vmatpush1.bf16.msra.mxu0 %v9776_v49  ;;  %5152 = vmatpush1.bf16.msra.mxu1 %v9779_v1  ;;  %v9800_v49 = vld [vmem:[#allocation2 + $0x588] ss:$16 sps:$4 sm:$0xff]  }
 0x89f   :  { %5112 = vmatprep.subr.bf16.mxu0 %v9784_v23  ;;  %5153 = vmatprep.subr.bf16.mxu1 %v9787_v5  ;;  %v9803_v1 = vld [vmem:[#allocation2 + $0x788] ss:$16 sps:$4 sm:$0xff]   ;;  %v9808_v23 = vld [vmem:[#allocation2 + $0x56c] ss:$16 sps:$4 sm:$0xff]  }
 0x8a0   :  { %v9811_v5 = vld [vmem:[#allocation2 + $0x76c] ss:$16 sps:$4 sm:$0xff]  }
 0x8a2   :  { %5113 = vmatpush2.bf16.msra.mxu0 %v9782_v30  ;;  %5154 = vmatpush2.bf16.msra.mxu1 %v9785_v20  ;;  %v9806_v30 = vld [vmem:[#allocation2 + $0x568] ss:$16 sps:$4 sm:$0xff]  }
 0x8a3   :  { %5114 = vmatprep.subr.bf16.mxu0 %v9790_v43  ;;  %5155 = vmatprep.subr.bf16.mxu1 %v9793_v11  ;;  %v9809_v20 = vld [vmem:[#allocation2 + $0x768] ss:$16 sps:$4 sm:$0xff]   ;;  %v9814_v43 = vld [vmem:[#allocation2 + $0x54c] ss:$16 sps:$4 sm:$0xff]  }
 0x8a4   :  { %v9817_v11 = vld [vmem:[#allocation2 + $0x74c] ss:$16 sps:$4 sm:$0xff]  }
 0x8a6   :  { %5115 = vmatpush2.bf16.msra.mxu0 %v9788_v12  ;;  %5156 = vmatpush2.bf16.msra.mxu1 %v9791_v31  ;;  %v9812_v12 = vld [vmem:[#allocation2 + $0x548] ss:$16 sps:$4 sm:$0xff]  }
 0x8a7   :  { %5116 = vmatprep.subr.bf16.mxu0 %v9796_v52  ;;  %5157 = vmatprep.subr.bf16.mxu1 %v9799_v14  ;;  %v9815_v31 = vld [vmem:[#allocation2 + $0x748] ss:$16 sps:$4 sm:$0xff]   ;;  %v9820_v52 = vld [vmem:[#allocation2 + $0x52c] ss:$16 sps:$4 sm:$0xff]  }
 0x8a8   :  { %v9823_v14 = vld [vmem:[#allocation2 + $0x72c] ss:$16 sps:$4 sm:$0xff]  }
 0x8aa   :  { %5117 = vmatpush2.bf16.msra.mxu0 %v9794_v34  ;;  %5158 = vmatpush2.bf16.msra.mxu1 %v9797_v39  ;;  %v11801_v34 = vrot.slane %v11511_v32, %v11503_v45  ;;  %v9818_v39 = vld [vmem:[#allocation2 + $0x528] ss:$16 sps:$4 sm:$0xff]   ;;  %v8562_v32 = vcombine.high %v11571_v36, %v11575_v16 }
 0x8ab   :  { %5118 = vmatprep.subr.bf16.mxu0 %v9802_v37  ;;  %5159 = vmatprep.subr.bf16.mxu1 %v9805_v51  ;;  %v9821_v37 = vld [vmem:[#allocation2 + $0x728] ss:$16 sps:$4 sm:$0xff]   ;;  %v9826_v51 = vld [vmem:[#allocation2 + $0x50c] ss:$16 sps:$4 sm:$0xff]  }
 0x8ae   :  { %5119 = vmatpush2.bf16.msra.mxu0 %v9800_v49  ;;  %5160 = vmatpush2.bf16.msra.mxu1 %v9803_v1  ;;  %v9829_v49 = vld [vmem:[#allocation2 + $0x70c] ss:$16 sps:$4 sm:$0xff]   ;;  %v5178_v1 = vcombine.high %v11801_v34, %v11801_v34 }
 0x8af   :  { %5120 = vmatprep.subr.bf16.mxu0 %v9808_v23  ;;  %5161 = vmatprep.subr.bf16.mxu1 %v9811_v5  ;;  %v9824_v23 = vld [vmem:[#allocation2 + $0x508] ss:$16 sps:$4 sm:$0xff]  }
 0x8b0   :  { %v9827_v5 = vld [vmem:[#allocation2 + $0x708] ss:$16 sps:$4 sm:$0xff]  }
 0x8b2   :  { %5121 = vmatpush2.bf16.msra.mxu0 %v9806_v30  ;;  %5162 = vmatpush2.bf16.msra.mxu1 %v9809_v20  ;;  %v8626_v30 = vcombine.high %v11699_v33, %v11703_v17  ;;  %v11810_v20 = vrot.slane %v5178_v1, %v11503_v45 }
 0x8b3   :  { %5122 = vmatprep.subr.bf16.mxu0 %v9814_v43  ;;  %5163 = vmatprep.subr.bf16.mxu1 %v9817_v11  ;;  %v8561_v43 = vcombine.low %v11571_v36, %v11575_v16  ;;  %v8625_v11 = vcombine.low %v11699_v33, %v11703_v17  ;;  %v8557_v17 = vcombine.low %v11563_v3, %v11567_v2 }
 0x8b4   :  { %v8621_v33 = vcombine.low %v11691_v13, %v11695_v42  ;;  %v8554_v36 = vcombine.high %v11555_v27, %v11559_v29  ;;  %v8618_v16 = vcombine.high %v11683_v53, %v11687_v59 }
 0x8b6   :  { %5123 = vmatpush2.bf16.msra.mxu0 %v9812_v12  ;;  %5164 = vmatpush2.bf16.msra.mxu1 %v9815_v31  ;;  %v8558_v12 = vcombine.high %v11563_v3, %v11567_v2  ;;  %v8622_v31 = vcombine.high %v11691_v13, %v11695_v42  ;;  %v8553_v3 = vcombine.low %v11555_v27, %v11559_v29 }
 0x8b7   :  { %5124 = vmatprep.subr.bf16.mxu0 %v9820_v52  ;;  %5165 = vmatprep.subr.bf16.mxu1 %v9823_v14  ;;  %v11822_v52 = vcombine.high %v11810_v20, %v11810_v20  ;;  %v8617_v13 = vcombine.low %v11683_v53, %v11687_v59  ;;  %v8550_v2 = vcombine.high %v11547_v48, %v11551_v15  ;;  %v12363_v14 = vld [vmem:[#allocation119_spill] sm:$0xff] }
 0x8b8   :  { %v8614_v42 = vcombine.high %v11675_v6, %v11679_v19  ;;  %v8546_v53 = vcombine.high %v11539_v54, %v11543_v7  ;;  %v8610_v27 = vcombine.high %v11667_v61, %v11671_v44  ;;  %v8545_v29 = vcombine.low %v11539_v54, %v11543_v7 }
 0x8b9   :  { %v8609_v59 = vcombine.low %v11667_v61, %v11671_v44  ;;  %v8538_v61 = vcombine.high %v11523_v46, %v11527_v10  ;;  %v8602_v54 = vcombine.high %v11651_v35, %v11655_v0  ;;  %v8537_v7 = vcombine.low %v11523_v46, %v11527_v10 }
 0x8ba   :  { %5125 = vmatpush2.bf16.msra.mxu0 %v9818_v39  ;;  %5166 = vmatpush2.bf16.msra.mxu1 %v9821_v37  ;;  %v8601_v44 = vcombine.low %v11651_v35, %v11655_v0  ;;  %v8594_v46 = vcombine.high %v11635_v8, %v11639_v40  ;;  %v8658_v10 = vcombine.high %v11763_v24, %v11767_v18 }
 0x8bb   :  { %5126 = vmatprep.subr.bf16.mxu0 %v9826_v51  ;;  %5167 = vmatprep.subr.bf16.mxu1 %v9829_v49  ;;  %v8593_v35 = vcombine.low %v11635_v8, %v11639_v40  ;;  %v8657_v0 = vcombine.low %v11763_v24, %v11767_v18  ;;  %v8586_v8 = vcombine.high %v11619_v55, %v11623_v57  ;;  %v12367_v49 = vld [vmem:[#allocation115_spill] sm:$0xff] }
 0x8bc   :  { %v8650_v18 = vcombine.high %v11747_v63, %v11751_v50  ;;  %v8585_v24 = vcombine.low %v11619_v55, %v11623_v57  ;;  %v8649_v40 = vcombine.low %v11747_v63, %v11751_v50  ;;  %v12364_v55 = vld [vmem:[#allocation75_spill] sm:$0xff]  ;;  %v12365_v63 = vld [vmem:[#allocation73_spill] sm:$0xff] }
 0x8bd   :  { %v8578_v50 = vcombine.high %v12365_v63, %v12364_v55  ;;  %v12366_v57 = vld [vmem:[#allocation117_spill] sm:$0xff] }
 0x8be   :  { %5127 = vmatpush2.bf16.msra.mxu0 %v9824_v23  ;;  %5168 = vmatpush2.bf16.msra.mxu1 %v9827_v5  ;;  %v8642_v1 = vcombine.high %v12367_v49, %v12366_v57  ;;  %v8577_v23 = vcombine.low %v12365_v63, %v12364_v55  ;;  %v8641_v5 = vcombine.low %v12367_v49, %v12366_v57  ;;  %v12394_v55 = vld [vmem:[#allocation96_spill] sm:$0xff]  ;;  %v12395_v63 = vld [vmem:[#allocation95_spill] sm:$0xff] }
 0x8bf   :  { %5832 = vmatprep.subr.bf16.mxu0 %v8562_v32  ;;  %5873 = vmatprep.subr.bf16.mxu1 %v8626_v30  ;;  %v12368_v32 = vld [vmem:[#allocation71_spill] sm:$0xff]  ;;  %v12369_v30 = vld [vmem:[#allocation69_spill] sm:$0xff]  ;;  %v12396_v57 = vld [vmem:[#allocation52_spill] sm:$0xff] }
 0x8c0   :  { %v12397_v49 = vld [vmem:[#allocation51_spill] sm:$0xff] }
 0x8c1   :  { %5129 = vmatmul.mubr.bf16.vlgmr.msra.gmra.mxu0 %v11789_v41  ;;  %5170 = vmatmul.mubr.bf16.vlgmr.msra.gmra.mxu1 %v11793_v25  ;;  %v8549_v41 = vcombine.low %v11547_v48, %v11551_v15  ;;  %v8613_v25 = vcombine.low %v11675_v6, %v11679_v19  ;;  %v8542_v6 = vcombine.high %v11531_v60, %v11535_v21 }
 0x8c2   :  { %5833 = vmatpush1.bf16.msra.mxu0 %v8561_v43  ;;  %5874 = vmatpush1.bf16.msra.mxu1 %v8625_v11  ;;  %v8606_v48 = vcombine.high %v11659_v56, %v11663_v62  ;;  %v8541_v15 = vcombine.low %v11531_v60, %v11535_v21  ;;  %v8605_v19 = vcombine.low %v11659_v56, %v11663_v62  ;;  %v12370_v11 = vld [vmem:[#allocation113_spill] sm:$0xff] }
 0x8c3   :  { %5834 = vmatprep.subr.bf16.mxu0 %v8558_v12  ;;  %5875 = vmatprep.subr.bf16.mxu1 %v8622_v31  ;;  %v8534_v60 = vcombine.high %v11515_v38, %v11519_v9  ;;  %v8598_v21 = vcombine.high %v11643_v28, %v11647_v22  ;;  %v8533_v56 = vcombine.low %v11515_v38, %v11519_v9  ;;  %v12371_v12 = vld [vmem:[#allocation111_spill] sm:$0xff] }
 0x8c4   :  { %5864 = vmatprep.mubr.bf16.mxu0 %v11810_v20  ;;  %5905 = vmatprep.mubr.bf16.mxu1 %v11822_v52  ;;  %v8597_v62 = vcombine.low %v11643_v28, %v11647_v22  ;;  %v8590_v38 = vcombine.high %v11627_v47, %v11631_v4  ;;  %v8654_v9 = vcombine.high %v11755_v58, %v11759_v26 }
 0x8c5   :  { %v8589_v28 = vcombine.low %v11627_v47, %v11631_v4  ;;  %v8653_v22 = vcombine.low %v11755_v58, %v11759_v26  ;;  %v12360_v47 = vld [vmem:[#allocation79_spill] sm:$0xff]  ;;  %v12361_v58 = vld [vmem:[#allocation77_spill] sm:$0xff]  ;;  %v8574_v43 = vcombine.high %v12369_v30, %v12368_v32  ;;  %v8638_v31 = vcombine.high %v12371_v12, %v12370_v11 }
 0x8c6   :  { %5835 = vmatpush1.bf16.msra.mxu0 %v8557_v17  ;;  %5876 = vmatpush1.bf16.msra.mxu1 %v8621_v33  ;;  %v8582_v26 = vcombine.high %v12361_v58, %v12360_v47  ;;  %v12362_v4 = vld [vmem:[#allocation121_spill] sm:$0xff]  ;;  %v8581_v37 = vcombine.low %v12361_v58, %v12360_v47  ;;  %v8573_v17 = vcombine.low %v12369_v30, %v12368_v32  ;;  %v12390_v47 = vld [vmem:[#allocation98_spill] sm:$0xff] }
 0x8c7   :  { %5836 = vmatprep.subr.bf16.mxu0 %v8554_v36  ;;  %5877 = vmatprep.subr.bf16.mxu1 %v8618_v16  ;;  %v8646_v39 = vcombine.high %v12363_v14, %v12362_v4  ;;  %v8645_v51 = vcombine.low %v12363_v14, %v12362_v4  ;;  %v8637_v33 = vcombine.low %v12371_v12, %v12370_v11  ;;  %v12372_v36 = vld [vmem:[#allocation67_spill] sm:$0xff]  ;;  %v12373_v16 = vld [vmem:[#allocation65_spill] sm:$0xff]  ;;  %v12400_v11 = vld [vmem:[#allocation50_spill] sm:$0xff] }
 0x8c8   :  { %v12391_v58 = vld [vmem:[#allocation97_spill] sm:$0xff]  ;;  %v8547_v30 = vcombine.low %v12397_v49, %v12396_v57 }
 0x8c9   :  { %v8619_v14 = vcombine.low %v12391_v58, %v12390_v47  ;;  %v12401_v12 = vld [vmem:[#allocation49_spill] sm:$0xff] }
 0x8ca   :  { %5837 = vmatpush1.bf16.msra.mxu0 %v8553_v3  ;;  %5878 = vmatpush1.bf16.msra.mxu1 %v8617_v13  ;;  %v8570_v3 = vcombine.high %v12373_v16, %v12372_v36  ;;  %v12374_v13 = vld [vmem:[#allocation109_spill] sm:$0xff] }
 0x8cb   :  { %5838 = vmatprep.subr.bf16.mxu0 %v8550_v2  ;;  %5879 = vmatprep.subr.bf16.mxu1 %v8614_v42  ;;  %v12375_v2 = vld [vmem:[#allocation107_spill] sm:$0xff] }
 0x8cc   :  { %v8634_v42 = vcombine.high %v12375_v2, %v12374_v13 }
 0x8ce   :  { %5839 = vmatpush1.bf16.msra.mxu0 %v8549_v41  ;;  %5880 = vmatpush1.bf16.msra.mxu1 %v8613_v25  ;;  %v8569_v41 = vcombine.low %v12373_v16, %v12372_v36  ;;  %v8633_v25 = vcombine.low %v12375_v2, %v12374_v13  ;;  %v8543_v16 = vcombine.low %v12401_v12, %v12400_v11  ;;  %v12404_v13 = vld [vmem:[#allocation48_spill] sm:$0xff]  ;;  %v12405_v2 = vld [vmem:[#allocation47_spill] sm:$0xff] }
 0x8cf   :  { %5840 = vmatprep.subr.bf16.mxu0 %v8546_v53  ;;  %5881 = vmatprep.subr.bf16.mxu1 %v8610_v27  ;;  %v12376_v53 = vld [vmem:[#allocation63_spill] sm:$0xff]  ;;  %v12377_v27 = vld [vmem:[#allocation61_spill] sm:$0xff] }
 0x8d2   :  { %5841 = vmatpush1.bf16.msra.mxu0 %v8545_v29  ;;  %5882 = vmatpush1.bf16.msra.mxu1 %v8609_v59  ;;  %v8566_v29 = vcombine.high %v12377_v27, %v12376_v53  ;;  %v12378_v59 = vld [vmem:[#allocation105_spill] sm:$0xff] }
 0x8d3   :  { %5842 = vmatprep.subr.bf16.mxu0 %v8542_v6  ;;  %5883 = vmatprep.subr.bf16.mxu1 %v8606_v48  ;;  %v12379_v6 = vld [vmem:[#allocation103_spill] sm:$0xff] }
 0x8d4   :  { %v8630_v48 = vcombine.high %v12379_v6, %v12378_v59 }
 0x8d6   :  { %5843 = vmatpush1.bf16.msra.mxu0 %v8541_v15  ;;  %5884 = vmatpush1.bf16.msra.mxu1 %v8605_v19  ;;  %v11942_v15 = vrot.slane %v11801_v34, %v11503_v45  ;;  %v8565_v19 = vcombine.low %v12377_v27, %v12376_v53  ;;  %v8539_v27 = vcombine.low %v12405_v2, %v12404_v13 }
 0x8d7   :  { %5844 = vmatprep.subr.bf16.mxu0 %v8538_v61  ;;  %5885 = vmatprep.subr.bf16.mxu1 %v8602_v54  ;;  %v8629_v61 = vcombine.low %v12379_v6, %v12378_v59  ;;  %v12380_v54 = vld [vmem:[#allocation60_spill] sm:$0xff]  ;;  %v12408_v59 = vld [vmem:[#allocation46_spill] sm:$0xff]  ;;  %v12409_v6 = vld [vmem:[#allocation45_spill] sm:$0xff] }
 0x8d8   :  { %v11954_v34 = vcombine.high %v11942_v15, %v11942_v15 }
 0x8da   :  { %5845 = vmatpush1.bf16.msra.mxu0 %v8537_v7  ;;  %5886 = vmatpush1.bf16.msra.mxu1 %v8601_v44  ;;  %v12381_v7 = vld [vmem:[#allocation59_spill] sm:$0xff] }
 0x8db   :  { %5846 = vmatprep.subr.bf16.mxu0 %v8534_v60  ;;  %5887 = vmatprep.subr.bf16.mxu1 %v8598_v21  ;;  %v8564_v44 = vcombine.high %v12381_v7, %v12380_v54  ;;  %v12382_v60 = vld [vmem:[#allocation102_spill] sm:$0xff]  ;;  %v12383_v21 = vld [vmem:[#allocation101_spill] sm:$0xff] }
 0x8de   :  { %5847 = vmatpush1.bf16.msra.mxu0 %v8533_v56  ;;  %5888 = vmatpush1.bf16.msra.mxu1 %v8597_v62  ;;  %v8628_v56 = vcombine.high %v12383_v21, %v12382_v60  ;;  %v8563_v62 = vcombine.low %v12381_v7, %v12380_v54  ;;  %v8535_v7 = vcombine.low %v12409_v6, %v12408_v59 }
 0x8df   :  { %5848 = vmatprep.subr.bf16.mxu0 %v8594_v46  ;;  %5889 = vmatprep.subr.bf16.mxu1 %v8658_v10  ;;  %v8627_v46 = vcombine.low %v12383_v21, %v12382_v60  ;;  %v12384_v10 = vld [vmem:[#allocation58_spill] sm:$0xff]  ;;  %v12413_v21 = vld [vmem:[#allocation85_spill] sm:$0xff] }
 0x8e0   :  { %v12412_v60 = vld [vmem:[#allocation86_spill] sm:$0xff] }
 0x8e2   :  { %5849 = vmatpush2.bf16.msra.mxu0 %v8593_v35  ;;  %5890 = vmatpush2.bf16.msra.mxu1 %v8657_v0  ;;  %v12385_v35 = vld [vmem:[#allocation57_spill] sm:$0xff] }
 0x8e3   :  { %5850 = vmatprep.subr.bf16.mxu0 %v8590_v38  ;;  %5891 = vmatprep.subr.bf16.mxu1 %v8654_v9  ;;  %v8560_v0 = vcombine.high %v12385_v35, %v12384_v10  ;;  %v12386_v38 = vld [vmem:[#allocation100_spill] sm:$0xff]  ;;  %v12387_v9 = vld [vmem:[#allocation99_spill] sm:$0xff] }
 0x8e6   :  { %5851 = vmatpush2.bf16.msra.mxu0 %v8589_v28  ;;  %5892 = vmatpush2.bf16.msra.mxu1 %v8653_v22  ;;  %v8624_v28 = vcombine.high %v12387_v9, %v12386_v38  ;;  %v8559_v22 = vcombine.low %v12385_v35, %v12384_v10  ;;  %v8595_v35 = vcombine.low %v12413_v21, %v12412_v60 }
 0x8e7   :  { %5852 = vmatprep.subr.bf16.mxu0 %v8586_v8  ;;  %5893 = vmatprep.subr.bf16.mxu1 %v8650_v18  ;;  %v8623_v8 = vcombine.low %v12387_v9, %v12386_v38  ;;  %v12388_v18 = vld [vmem:[#allocation56_spill] sm:$0xff]  ;;  %v12417_v9 = vld [vmem:[#allocation83_spill] sm:$0xff] }
 0x8e8   :  { %v12416_v38 = vld [vmem:[#allocation84_spill] sm:$0xff] }
 0x8ea   :  { %5853 = vmatpush2.bf16.msra.mxu0 %v8585_v24  ;;  %5894 = vmatpush2.bf16.msra.mxu1 %v8649_v40  ;;  %v12389_v24 = vld [vmem:[#allocation55_spill] sm:$0xff] }
 0x8eb   :  { %5854 = vmatprep.subr.bf16.mxu0 %v8582_v26  ;;  %5895 = vmatprep.subr.bf16.mxu1 %v8646_v39  ;;  %v8556_v40 = vcombine.high %v12389_v24, %v12388_v18  ;;  %v8620_v26 = vcombine.high %v12391_v58, %v12390_v47  ;;  %v8555_v4 = vcombine.low %v12389_v24, %v12388_v18  ;;  %v12392_v39 = vld [vmem:[#allocation54_spill] sm:$0xff]  ;;  %v12421_v58 = vld [vmem:[#allocation81_spill] sm:$0xff] }
 0x8ec   :  { %v8591_v24 = vcombine.low %v12417_v9, %v12416_v38  ;;  %v12420_v47 = vld [vmem:[#allocation82_spill] sm:$0xff] }
 0x8ee   :  { %5855 = vmatpush2.bf16.msra.mxu0 %v8581_v37  ;;  %5896 = vmatpush2.bf16.msra.mxu1 %v8645_v51  ;;  %v12393_v37 = vld [vmem:[#allocation53_spill] sm:$0xff] }
 0x8ef   :  { %5856 = vmatprep.subr.bf16.mxu0 %v8578_v50  ;;  %5897 = vmatprep.subr.bf16.mxu1 %v8642_v1  ;;  %v8552_v51 = vcombine.high %v12393_v37, %v12392_v39  ;;  %v8616_v50 = vcombine.high %v12395_v63, %v12394_v55  ;;  %v8548_v1 = vcombine.high %v12397_v49, %v12396_v57 }
 0x8f2   :  { %5857 = vmatpush2.bf16.msra.mxu0 %v8577_v23  ;;  %5898 = vmatpush2.bf16.msra.mxu1 %v8641_v5  ;;  %v12398_v23 = vld [vmem:[#allocation94_spill] sm:$0xff]  ;;  %v12399_v5 = vld [vmem:[#allocation93_spill] sm:$0xff] }
 0x8f3   :  { %5858 = vmatprep.subr.bf16.mxu0 %v8574_v43  ;;  %5899 = vmatprep.subr.bf16.mxu1 %v8638_v31  ;;  %v8612_v32 = vcombine.high %v12399_v5, %v12398_v23  ;;  %v8611_v43 = vcombine.low %v12399_v5, %v12398_v23  ;;  %v8544_v31 = vcombine.high %v12401_v12, %v12400_v11  ;;  %v12428_v23 = vld [vmem:[#allocation76_spill] sm:$0xff]  ;;  %v12429_v5 = vld [vmem:[#allocation74_spill] sm:$0xff] }
 0x8f4   :  { %v8579_v12 = vcombine.low %v12429_v5, %v12428_v23 }
 0x8f6   :  { %5859 = vmatpush2.bf16.msra.mxu0 %v8573_v17  ;;  %5900 = vmatpush2.bf16.msra.mxu1 %v8637_v33  ;;  %v12402_v17 = vld [vmem:[#allocation92_spill] sm:$0xff]  ;;  %v12403_v33 = vld [vmem:[#allocation91_spill] sm:$0xff] }
 0x8f7   :  { %5860 = vmatprep.subr.bf16.mxu0 %v8570_v3  ;;  %5901 = vmatprep.subr.bf16.mxu1 %v8634_v42  ;;  %v8608_v36 = vcombine.high %v12403_v33, %v12402_v17  ;;  %v8607_v3 = vcombine.low %v12403_v33, %v12402_v17  ;;  %v8540_v42 = vcombine.high %v12405_v2, %v12404_v13  ;;  %v12432_v17 = vld [vmem:[#allocation72_spill] sm:$0xff]  ;;  %v12433_v33 = vld [vmem:[#allocation70_spill] sm:$0xff] }
 0x8f8   :  { %v8575_v2 = vcombine.low %v12433_v33, %v12432_v17 }
 0x8fa   :  { %5861 = vmatpush2.bf16.msra.mxu0 %v8569_v41  ;;  %5902 = vmatpush2.bf16.msra.mxu1 %v8633_v25  ;;  %v12406_v41 = vld [vmem:[#allocation90_spill] sm:$0xff]  ;;  %v12407_v25 = vld [vmem:[#allocation89_spill] sm:$0xff] }
 0x8fb   :  { %5862 = vmatprep.subr.bf16.mxu0 %v8566_v29  ;;  %5903 = vmatprep.subr.bf16.mxu1 %v8630_v48  ;;  %v8604_v53 = vcombine.high %v12407_v25, %v12406_v41  ;;  %v8603_v29 = vcombine.low %v12407_v25, %v12406_v41  ;;  %v8536_v48 = vcombine.high %v12409_v6, %v12408_v59  ;;  %v12436_v41 = vld [vmem:[#allocation68_spill] sm:$0xff]  ;;  %v12437_v25 = vld [vmem:[#allocation66_spill] sm:$0xff] }
 0x8fc   :  { %v8571_v6 = vcombine.low %v12437_v25, %v12436_v41 }
 0x8fe   :  { %5863 = vmatpush2.bf16.msra.mxu0 %v8565_v19  ;;  %5904 = vmatpush2.bf16.msra.mxu1 %v8629_v61  ;;  %v12410_v19 = vld [vmem:[#allocation88_spill] sm:$0xff]  ;;  %v12411_v61 = vld [vmem:[#allocation87_spill] sm:$0xff] }
 0x8ff   :  { %5914 = vmatprep.subr.bf16.mxu0 %v8564_v44  ;;  %5955 = vmatprep.subr.bf16.mxu1 %v8628_v56  ;;  %v8600_v54 = vcombine.high %v12411_v61, %v12410_v19  ;;  %v8599_v44 = vcombine.low %v12411_v61, %v12410_v19  ;;  %v8596_v56 = vcombine.high %v12413_v21, %v12412_v60  ;;  %v12440_v19 = vld [vmem:[#allocation64_spill] sm:$0xff]  ;;  %v12441_v61 = vld [vmem:[#allocation62_spill] sm:$0xff] }
 0x900   :  { %v8567_v21 = vcombine.low %v12441_v61, %v12440_v19 }
 0x901   :  { %5865 = vmatmul.mubr.bf16.vlgmr.msra.gmra.mxu0 %v11942_v15  ;;  %5906 = vmatmul.mubr.bf16.vlgmr.msra.gmra.mxu1 %v11954_v34 }
 0x902   :  { %5915 = vmatpush1.bf16.msra.mxu0 %v8563_v62  ;;  %5956 = vmatpush1.bf16.msra.mxu1 %v8627_v46  ;;  %v12414_v62 = vld [vmem:[#allocation128_spill] sm:$0xff]  ;;  %v12415_v46 = vld [vmem:[#allocation127_spill] sm:$0xff] }
 0x903   :  { %5916 = vmatprep.subr.bf16.mxu0 %v8560_v0  ;;  %5957 = vmatprep.subr.bf16.mxu1 %v8624_v28  ;;  %v8660_v10 = vcombine.high %v12415_v46, %v12414_v62  ;;  %v8659_v0 = vcombine.low %v12415_v46, %v12414_v62  ;;  %v8592_v28 = vcombine.high %v12417_v9, %v12416_v38 }
 0x904   :  { %5946 = vmatprep.mubr.bf16.mxu0 %v11810_v20  ;;  %5987 = vmatprep.mubr.bf16.mxu1 %v11822_v52  ;;  %v8551_v20 = vcombine.low %v12393_v37, %v12392_v39  ;;  %v8615_v52 = vcombine.low %v12395_v63, %v12394_v55  ;;  %v8587_v37 = vcombine.low %v12421_v58, %v12420_v47  ;;  %v12424_v55 = vld [vmem:[#allocation80_spill] sm:$0xff]  ;;  %v12425_v63 = vld [vmem:[#allocation78_spill] sm:$0xff] }
 0x905   :  { %v8583_v49 = vcombine.low %v12425_v63, %v12424_v55 }
 0x906   :  { %5917 = vmatpush1.bf16.msra.mxu0 %v8559_v22  ;;  %5958 = vmatpush1.bf16.msra.mxu1 %v8623_v8  ;;  %v12418_v22 = vld [vmem:[#allocation126_spill] sm:$0xff]  ;;  %v12419_v8 = vld [vmem:[#allocation125_spill] sm:$0xff] }
 0x907   :  { %5918 = vmatprep.subr.bf16.mxu0 %v8556_v40  ;;  %5959 = vmatprep.subr.bf16.mxu1 %v8620_v26  ;;  %v8656_v18 = vcombine.high %v12419_v8, %v12418_v22  ;;  %v8655_v40 = vcombine.low %v12419_v8, %v12418_v22  ;;  %v8588_v26 = vcombine.high %v12421_v58, %v12420_v47 }
 0x90a   :  { %5919 = vmatpush1.bf16.msra.mxu0 %v8555_v4  ;;  %5960 = vmatpush1.bf16.msra.mxu1 %v8619_v14  ;;  %v12422_v4 = vld [vmem:[#allocation124_spill] sm:$0xff]  ;;  %v12423_v14 = vld [vmem:[#allocation123_spill] sm:$0xff] }
 0x90b   :  { %5920 = vmatprep.subr.bf16.mxu0 %v8552_v51  ;;  %5961 = vmatprep.subr.bf16.mxu1 %v8616_v50  ;;  %v8652_v39 = vcombine.high %v12423_v14, %v12422_v4  ;;  %v8651_v51 = vcombine.low %v12423_v14, %v12422_v4  ;;  %v8584_v50 = vcombine.high %v12425_v63, %v12424_v55 }
 0x90e   :  { %5921 = vmatpush1.bf16.msra.mxu0 %v8551_v20  ;;  %5962 = vmatpush1.bf16.msra.mxu1 %v8615_v52  ;;  %v12426_v20 = vld [vmem:[#allocation122_spill] sm:$0xff]  ;;  %v12427_v52 = vld [vmem:[#allocation120_spill] sm:$0xff] }
 0x90f   :  { %5922 = vmatprep.subr.bf16.mxu0 %v8548_v1  ;;  %5963 = vmatprep.subr.bf16.mxu1 %v8612_v32  ;;  %v8648_v57 = vcombine.high %v12427_v52, %v12426_v20  ;;  %v8647_v1 = vcombine.low %v12427_v52, %v12426_v20  ;;  %v8580_v32 = vcombine.high %v12429_v5, %v12428_v23 }
 0x912   :  { %5923 = vmatpush1.bf16.msra.mxu0 %v8547_v30  ;;  %5964 = vmatpush1.bf16.msra.mxu1 %v8611_v43  ;;  %v12430_v30 = vld [vmem:[#allocation118_spill] sm:$0xff]  ;;  %v12431_v43 = vld [vmem:[#allocation116_spill] sm:$0xff] }
 0x913   :  { %5924 = vmatprep.subr.bf16.mxu0 %v8544_v31  ;;  %5965 = vmatprep.subr.bf16.mxu1 %v8608_v36  ;;  %v8644_v11 = vcombine.high %v12431_v43, %v12430_v30  ;;  %v8643_v31 = vcombine.low %v12431_v43, %v12430_v30  ;;  %v8576_v36 = vcombine.high %v12433_v33, %v12432_v17 }
 0x916   :  { %5925 = vmatpush1.bf16.msra.mxu0 %v8543_v16  ;;  %5966 = vmatpush1.bf16.msra.mxu1 %v8607_v3  ;;  %v12434_v16 = vld [vmem:[#allocation114_spill] sm:$0xff]  ;;  %v12435_v3 = vld [vmem:[#allocation112_spill] sm:$0xff] }
 0x917   :  { %5926 = vmatprep.subr.bf16.mxu0 %v8540_v42  ;;  %5967 = vmatprep.subr.bf16.mxu1 %v8604_v53  ;;  %v8640_v13 = vcombine.high %v12435_v3, %v12434_v16  ;;  %v8639_v42 = vcombine.low %v12435_v3, %v12434_v16  ;;  %v8572_v53 = vcombine.high %v12437_v25, %v12436_v41 }
 0x91a   :  { %5927 = vmatpush1.bf16.msra.mxu0 %v8539_v27  ;;  %5968 = vmatpush1.bf16.msra.mxu1 %v8603_v29  ;;  %v12438_v27 = vld [vmem:[#allocation110_spill] sm:$0xff]  ;;  %v12439_v29 = vld [vmem:[#allocation108_spill] sm:$0xff] }
 0x91b   :  { %5928 = vmatprep.subr.bf16.mxu0 %v8536_v48  ;;  %5969 = vmatprep.subr.bf16.mxu1 %v8600_v54  ;;  %v8636_v59 = vcombine.high %v12439_v29, %v12438_v27  ;;  %v8635_v48 = vcombine.low %v12439_v29, %v12438_v27  ;;  %v8568_v54 = vcombine.high %v12441_v61, %v12440_v19 }
 0x91e   :  { %5929 = vmatpush1.bf16.msra.mxu0 %v8535_v7  ;;  %5970 = vmatpush1.bf16.msra.mxu1 %v8599_v44  ;;  %v12442_v7 = vld [vmem:[#allocation106_spill] sm:$0xff]  ;;  %v12443_v44 = vld [vmem:[#allocation104_spill] sm:$0xff] }
 0x91f   :  { %5930 = vmatprep.subr.bf16.mxu0 %v8596_v56  ;;  %5971 = vmatprep.subr.bf16.mxu1 %v8660_v10  ;;  %v8632_v60 = vcombine.high %v12443_v44, %v12442_v7  ;;  %v8631_v56 = vcombine.low %v12443_v44, %v12442_v7 }
 0x922   :  { %5931 = vmatpush2.bf16.msra.mxu0 %v8595_v35  ;;  %5972 = vmatpush2.bf16.msra.mxu1 %v8659_v0 }
 0x923   :  { %5932 = vmatprep.subr.bf16.mxu0 %v8592_v28  ;;  %5973 = vmatprep.subr.bf16.mxu1 %v8656_v18 }
 0x926   :  { %5933 = vmatpush2.bf16.msra.mxu0 %v8591_v24  ;;  %5974 = vmatpush2.bf16.msra.mxu1 %v8655_v40 }
 0x927   :  { %5934 = vmatprep.subr.bf16.mxu0 %v8588_v26  ;;  %5975 = vmatprep.subr.bf16.mxu1 %v8652_v39 }
 0x92a   :  { %5935 = vmatpush2.bf16.msra.mxu0 %v8587_v37  ;;  %5976 = vmatpush2.bf16.msra.mxu1 %v8651_v51 }
 0x92b   :  { %5936 = vmatprep.subr.bf16.mxu0 %v8584_v50  ;;  %5977 = vmatprep.subr.bf16.mxu1 %v8648_v57 }
 0x92e   :  { %5937 = vmatpush2.bf16.msra.mxu0 %v8583_v49  ;;  %5978 = vmatpush2.bf16.msra.mxu1 %v8647_v1 }
 0x92f   :  { %5938 = vmatprep.subr.bf16.mxu0 %v8580_v32  ;;  %5979 = vmatprep.subr.bf16.mxu1 %v8644_v11 }
 0x932   :  { %5939 = vmatpush2.bf16.msra.mxu0 %v8579_v12  ;;  %5980 = vmatpush2.bf16.msra.mxu1 %v8643_v31 }
 0x933   :  { %5940 = vmatprep.subr.bf16.mxu0 %v8576_v36  ;;  %5981 = vmatprep.subr.bf16.mxu1 %v8640_v13 }
 0x936   :  { %5941 = vmatpush2.bf16.msra.mxu0 %v8575_v2  ;;  %5982 = vmatpush2.bf16.msra.mxu1 %v8639_v42 }
 0x937   :  { %5942 = vmatprep.subr.bf16.mxu0 %v8572_v53  ;;  %5983 = vmatprep.subr.bf16.mxu1 %v8636_v59 }
 0x93a   :  { %5943 = vmatpush2.bf16.msra.mxu0 %v8571_v6  ;;  %5984 = vmatpush2.bf16.msra.mxu1 %v8635_v48 }
 0x93b   :  { %5944 = vmatprep.subr.bf16.mxu0 %v8568_v54  ;;  %5985 = vmatprep.subr.bf16.mxu1 %v8632_v60 }
 0x93e   :  { %5945 = vmatpush2.bf16.msra.mxu0 %v8567_v21  ;;  %5986 = vmatpush2.bf16.msra.mxu1 %v8631_v56 }
 0x941   :  { %v5048_v62 = vpop.f32.mrf.mxu0  ;;  %v5089_v46 = vpop.f32.mrf.mxu1  ;;  %5947 = vmatmul.mubr.bf16.vlgmr.msra.gmra.mxu0 %v11942_v15  ;;  %5988 = vmatmul.mubr.bf16.vlgmr.msra.gmra.mxu1 %v11954_v34 }
 0x942   :  { %v5090_v10 = vadd.f32 %v5089_v46, %v5048_v62 }
 0x943   :  { %v5050_v35 = vpop.f32.mrf.mxu0  ;;  %v5091_v0 = vpop.f32.mrf.mxu1 }
 0x944   :  { %v5092_v38 = vadd.f32 %v5091_v0, %v5050_v35 }
 0x945   :  { %v5052_v9 = vpop.f32.mrf.mxu0  ;;  %v5093_v28 = vpop.f32.mrf.mxu1 }
 0x947   :  { %v5053_v22 = vpop.f32.mrf.mxu0  ;;  %v5094_v8 = vpop.f32.mrf.mxu1 }
 0x981   :  { %v5130_v18 = vpop.f32.mrf.mxu0  ;;  %v5171_v24 = vpop.f32.mrf.mxu1 }
 0x982   :  { %v5172_v40 = vadd.f32 %v5171_v24, %v5130_v18 }
 0x983   :  { %v5132_v47 = vpop.f32.mrf.mxu0  ;;  %v5173_v58 = vpop.f32.mrf.mxu1 }
 0x984   :  { %v5174_v26 = vadd.f32 %v5173_v58, %v5132_v47 }
 0x985   :  { %v5134_v4 = vpop.f32.mrf.mxu0  ;;  %v5175_v14 = vpop.f32.mrf.mxu1 }
 0x987   :  { %v5135_v39 = vpop.f32.mrf.mxu0  ;;  %v5176_v15 = vpop.f32.mrf.mxu1 }
 0x9c1   :  { %v5866_v37 = vpop.f32.mrf.mxu0  ;;  %v5907_v34 = vpop.f32.mrf.mxu1 }
 0x9c2   :  { %v5867_v51 = vadd.f32 %v5866_v37, %v5090_v10 }
 0x9c3   :  { %v5868_v55 = vpop.f32.mrf.mxu0  ;;  %v5909_v63 = vpop.f32.mrf.mxu1 }
 0x9c4   :  { %v12086_v50 = vadd.f32 %v5907_v34, %v5867_v51  ;;  %v5869_v20 = vadd.f32 %v5868_v55, %v5092_v38 }
 0x9c5   :  { %v5870_v52 = vpop.f32.mrf.mxu0  ;;  %v5911_v57 = vpop.f32.mrf.mxu1 }
 0x9c6   :  { %v12088_v49 = vadd.f32 %v5909_v63, %v5869_v20 }
 0x9c7   :  { %v5871_v1 = vpop.f32.mrf.mxu0  ;;  %v5912_v23 = vpop.f32.mrf.mxu1 }
 0xa01   :  { %v5948_v5 = vpop.f32.mrf.mxu0  ;;  %v5989_v32 = vpop.f32.mrf.mxu1 }
 0xa02   :  { %v5949_v30 = vadd.f32 %v5948_v5, %v5172_v40 }
 0xa03   :  { %v5950_v43 = vpop.f32.mrf.mxu0  ;;  %v5991_v11 = vpop.f32.mrf.mxu1 }
 0xa04   :  { %v12090_v12 = vadd.f32 %v5989_v32, %v5949_v30  ;;  %v5951_v31 = vadd.f32 %v5950_v43, %v5174_v26 }
 0xa05   :  { %v5952_v17 = vpop.f32.mrf.mxu0  ;;  %v5993_v33 = vpop.f32.mrf.mxu1 }
 0xa06   :  { %v12092_v36 = vadd.f32 %v5991_v11, %v5951_v31 }
 0xa07   :  { %v5953_v16 = vpop.f32.mrf.mxu0  ;;  %v5994_v3 = vpop.f32.mrf.mxu1 }
 0xa08   :  { %10519 = dma.done.wait [#allocation3 + $0x2], 16384 }
 0xa09   :  { %10520 = vsyncadd [#allocation3 + $0x2], 4294950912  ;;  %v12444_v13 = vld [vmem:[#allocation44_spill] sm:$0xff]  ;;  %v9834_v29 = vld [vmem:[#allocation2 + $0x8e0] ss:$16 sps:$4 sm:$0xff]  }
 0xa0a   :  { %v12096_v2 = vrot.slane %v12444_v13, %v11503_v45  ;;  %v9830_v53 = vld [vmem:[#allocation2 + $0x8e4] ss:$16 sps:$4 sm:$0xff]   ;;  %v9835_v59 = vld [vmem:[#allocation2 + $0xae0] ss:$16 sps:$4 sm:$0xff]  }
 0xa0b   :  { %v9832_v27 = vld [vmem:[#allocation2 + $0xae4] ss:$16 sps:$4 sm:$0xff]   ;;  %6795 = vmatprep.subr.bf16.mxu0 %v9830_v53  ;;  %v9840_v19 = vld [vmem:[#allocation2 + $0x8c0] ss:$16 sps:$4 sm:$0xff]  }
 0xa0c   :  { %v6134_v42 = vcombine.high %v12096_v2, %v12096_v2  ;;  %6836 = vmatprep.subr.bf16.mxu1 %v9832_v27  ;;  %v9836_v6 = vld [vmem:[#allocation2 + $0x8c4] ss:$16 sps:$4 sm:$0xff]   ;;  %6796 = vmatpush1.bf16.msra.mxu0 %v9834_v29  ;;  %v9841_v61 = vld [vmem:[#allocation2 + $0xac0] ss:$16 sps:$4 sm:$0xff]  }
 0xa0d   :  { %6837 = vmatpush1.bf16.msra.mxu1 %v9835_v59  ;;  %v9838_v48 = vld [vmem:[#allocation2 + $0xac4] ss:$16 sps:$4 sm:$0xff]   ;;  %6797 = vmatprep.subr.bf16.mxu0 %v9836_v6  ;;  %v9846_v44 = vld [vmem:[#allocation2 + $0x8a0] ss:$16 sps:$4 sm:$0xff]  }
 0xa0e   :  { %v12101_v41 = vrot.slane %v6134_v42, %v11503_v45  ;;  %6838 = vmatprep.subr.bf16.mxu1 %v9838_v48  ;;  %v9842_v54 = vld [vmem:[#allocation2 + $0x8a4] ss:$16 sps:$4 sm:$0xff]   ;;  %v9847_v60 = vld [vmem:[#allocation2 + $0xaa0] ss:$16 sps:$4 sm:$0xff]  }
 0xa0f   :  { %v9844_v7 = vld [vmem:[#allocation2 + $0xaa4] ss:$16 sps:$4 sm:$0xff]   ;;  %v9852_v62 = vld [vmem:[#allocation2 + $0x880] ss:$16 sps:$4 sm:$0xff]  }
 0xa10   :  { %6827 = vmatprep.mubr.bf16.mxu0 %v12101_v41  ;;  %v12106_v25 = vcombine.high %v12101_v41, %v12101_v41  ;;  %6798 = vmatpush1.bf16.msra.mxu0 %v9840_v19  ;;  %v9848_v21 = vld [vmem:[#allocation2 + $0x884] ss:$16 sps:$4 sm:$0xff]   ;;  %v9853_v46 = vld [vmem:[#allocation2 + $0xa80] ss:$16 sps:$4 sm:$0xff]  }
 0xa11   :  { %6839 = vmatpush1.bf16.msra.mxu1 %v9841_v61  ;;  %6799 = vmatprep.subr.bf16.mxu0 %v9842_v54  ;;  %v9850_v56 = vld [vmem:[#allocation2 + $0xa84] ss:$16 sps:$4 sm:$0xff]   ;;  %v9858_v0 = vld [vmem:[#allocation2 + $0x860] ss:$16 sps:$4 sm:$0xff]  }
 0xa12   :  { %6868 = vmatprep.mubr.bf16.mxu1 %v12106_v25  ;;  %6840 = vmatprep.subr.bf16.mxu1 %v9844_v7  ;;  %v9854_v10 = vld [vmem:[#allocation2 + $0x864] ss:$16 sps:$4 sm:$0xff]   ;;  %v9859_v38 = vld [vmem:[#allocation2 + $0xa60] ss:$16 sps:$4 sm:$0xff]   ;;  %v12111_v7 = vrot.slane %v12096_v2, %v11503_v45  ;;  %v9932_v2 = vld [vmem:[#allocation2 + $0x8c8] ss:$16 sps:$4 sm:$0xff]  }
 0xa13   :  { %v9856_v35 = vld [vmem:[#allocation2 + $0xa64] ss:$16 sps:$4 sm:$0xff]   ;;  %v9864_v22 = vld [vmem:[#allocation2 + $0x840] ss:$16 sps:$4 sm:$0xff]  }
 0xa14   :  { %6800 = vmatpush1.bf16.msra.mxu0 %v9846_v44  ;;  %v9860_v9 = vld [vmem:[#allocation2 + $0x844] ss:$16 sps:$4 sm:$0xff]   ;;  %v9865_v8 = vld [vmem:[#allocation2 + $0xa40] ss:$16 sps:$4 sm:$0xff]   ;;  %v9928_v44 = vld [vmem:[#allocation2 + $0x8ec] ss:$16 sps:$4 sm:$0xff]  }
 0xa15   :  { %6841 = vmatpush1.bf16.msra.mxu1 %v9847_v60  ;;  %6801 = vmatprep.subr.bf16.mxu0 %v9848_v21  ;;  %v9862_v28 = vld [vmem:[#allocation2 + $0xa44] ss:$16 sps:$4 sm:$0xff]   ;;  %v9870_v40 = vld [vmem:[#allocation2 + $0x820] ss:$16 sps:$4 sm:$0xff]   ;;  %v9931_v60 = vld [vmem:[#allocation2 + $0xaec] ss:$16 sps:$4 sm:$0xff]   ;;  %v12115_v21 = vcombine.high %v12111_v7, %v12111_v7 }
 0xa16   :  { %6842 = vmatprep.subr.bf16.mxu1 %v9850_v56  ;;  %v9866_v18 = vld [vmem:[#allocation2 + $0x824] ss:$16 sps:$4 sm:$0xff]   ;;  %v9871_v47 = vld [vmem:[#allocation2 + $0xa20] ss:$16 sps:$4 sm:$0xff]   ;;  %v9926_v56 = vld [vmem:[#allocation2 + $0x8e8] ss:$16 sps:$4 sm:$0xff]  }
 0xa17   :  { %v9868_v24 = vld [vmem:[#allocation2 + $0xa24] ss:$16 sps:$4 sm:$0xff]   ;;  %v9876_v4 = vld [vmem:[#allocation2 + $0x800] ss:$16 sps:$4 sm:$0xff]  }
 0xa18   :  { %6802 = vmatpush1.bf16.msra.mxu0 %v9852_v62  ;;  %v9872_v58 = vld [vmem:[#allocation2 + $0x804] ss:$16 sps:$4 sm:$0xff]   ;;  %v9877_v14 = vld [vmem:[#allocation2 + $0xa00] ss:$16 sps:$4 sm:$0xff]   ;;  %v9929_v62 = vld [vmem:[#allocation2 + $0xae8] ss:$16 sps:$4 sm:$0xff]  }
 0xa19   :  { %6843 = vmatpush1.bf16.msra.mxu1 %v9853_v46  ;;  %6803 = vmatprep.subr.bf16.mxu0 %v9854_v10  ;;  %v9874_v26 = vld [vmem:[#allocation2 + $0xa04] ss:$16 sps:$4 sm:$0xff]   ;;  %v9882_v37 = vld [vmem:[#allocation2 + $0x9e0] ss:$16 sps:$4 sm:$0xff]   ;;  %v9934_v46 = vld [vmem:[#allocation2 + $0x8cc] ss:$16 sps:$4 sm:$0xff]  }
 0xa1a   :  { %6844 = vmatprep.subr.bf16.mxu1 %v9856_v35  ;;  %v9878_v39 = vld [vmem:[#allocation2 + $0x9e4] ss:$16 sps:$4 sm:$0xff]   ;;  %v9883_v34 = vld [vmem:[#allocation2 + $0xbe0] ss:$16 sps:$4 sm:$0xff]   ;;  %v9937_v10 = vld [vmem:[#allocation2 + $0xacc] ss:$16 sps:$4 sm:$0xff]  }
 0xa1b   :  { %v9880_v15 = vld [vmem:[#allocation2 + $0xbe4] ss:$16 sps:$4 sm:$0xff]   ;;  %v9888_v63 = vld [vmem:[#allocation2 + $0x9c0] ss:$16 sps:$4 sm:$0xff]   ;;  %v9935_v35 = vld [vmem:[#allocation2 + $0xac8] ss:$16 sps:$4 sm:$0xff]  }
 0xa1c   :  { %6804 = vmatpush1.bf16.msra.mxu0 %v9858_v0  ;;  %v9884_v51 = vld [vmem:[#allocation2 + $0x9c4] ss:$16 sps:$4 sm:$0xff]   ;;  %v9889_v20 = vld [vmem:[#allocation2 + $0xbc0] ss:$16 sps:$4 sm:$0xff]   ;;  %v9940_v0 = vld [vmem:[#allocation2 + $0x8ac] ss:$16 sps:$4 sm:$0xff]  }
 0xa1d   :  { %6845 = vmatpush1.bf16.msra.mxu1 %v9859_v38  ;;  %6805 = vmatprep.subr.bf16.mxu0 %v9860_v9  ;;  %v9886_v55 = vld [vmem:[#allocation2 + $0xbc4] ss:$16 sps:$4 sm:$0xff]   ;;  %v9894_v1 = vld [vmem:[#allocation2 + $0x9a0] ss:$16 sps:$4 sm:$0xff]   ;;  %v9943_v38 = vld [vmem:[#allocation2 + $0xaac] ss:$16 sps:$4 sm:$0xff]  }
 0xa1e   :  { %6846 = vmatprep.subr.bf16.mxu1 %v9862_v28  ;;  %v9890_v52 = vld [vmem:[#allocation2 + $0x9a4] ss:$16 sps:$4 sm:$0xff]   ;;  %v9895_v23 = vld [vmem:[#allocation2 + $0xba0] ss:$16 sps:$4 sm:$0xff]   ;;  %v9938_v9 = vld [vmem:[#allocation2 + $0x8a8] ss:$16 sps:$4 sm:$0xff]  }
 0xa1f   :  { %v9892_v57 = vld [vmem:[#allocation2 + $0xba4] ss:$16 sps:$4 sm:$0xff]   ;;  %v9900_v30 = vld [vmem:[#allocation2 + $0x980] ss:$16 sps:$4 sm:$0xff]   ;;  %v9941_v28 = vld [vmem:[#allocation2 + $0xaa8] ss:$16 sps:$4 sm:$0xff]  }
 0xa20   :  { %6806 = vmatpush1.bf16.msra.mxu0 %v9864_v22  ;;  %v9896_v5 = vld [vmem:[#allocation2 + $0x984] ss:$16 sps:$4 sm:$0xff]   ;;  %v9901_v43 = vld [vmem:[#allocation2 + $0xb80] ss:$16 sps:$4 sm:$0xff]   ;;  %v9946_v22 = vld [vmem:[#allocation2 + $0x88c] ss:$16 sps:$4 sm:$0xff]  }
 0xa21   :  { %6847 = vmatpush1.bf16.msra.mxu1 %v9865_v8  ;;  %6807 = vmatprep.subr.bf16.mxu0 %v9866_v18  ;;  %v9898_v32 = vld [vmem:[#allocation2 + $0xb84] ss:$16 sps:$4 sm:$0xff]   ;;  %v9906_v17 = vld [vmem:[#allocation2 + $0x960] ss:$16 sps:$4 sm:$0xff]   ;;  %v9949_v8 = vld [vmem:[#allocation2 + $0xa8c] ss:$16 sps:$4 sm:$0xff]  }
 0xa22   :  { %6848 = vmatprep.subr.bf16.mxu1 %v9868_v24  ;;  %v9902_v11 = vld [vmem:[#allocation2 + $0x964] ss:$16 sps:$4 sm:$0xff]   ;;  %v9907_v33 = vld [vmem:[#allocation2 + $0xb60] ss:$16 sps:$4 sm:$0xff]   ;;  %v9944_v18 = vld [vmem:[#allocation2 + $0x888] ss:$16 sps:$4 sm:$0xff]  }
 0xa23   :  { %v9904_v31 = vld [vmem:[#allocation2 + $0xb64] ss:$16 sps:$4 sm:$0xff]   ;;  %v9912_v42 = vld [vmem:[#allocation2 + $0x940] ss:$16 sps:$4 sm:$0xff]   ;;  %v9947_v24 = vld [vmem:[#allocation2 + $0xa88] ss:$16 sps:$4 sm:$0xff]  }
 0xa24   :  { %6808 = vmatpush1.bf16.msra.mxu0 %v9870_v40  ;;  %v9908_v16 = vld [vmem:[#allocation2 + $0x944] ss:$16 sps:$4 sm:$0xff]   ;;  %v9913_v53 = vld [vmem:[#allocation2 + $0xb40] ss:$16 sps:$4 sm:$0xff]   ;;  %v9952_v40 = vld [vmem:[#allocation2 + $0x86c] ss:$16 sps:$4 sm:$0xff]  }
 0xa25   :  { %6849 = vmatpush1.bf16.msra.mxu1 %v9871_v47  ;;  %6809 = vmatprep.subr.bf16.mxu0 %v9872_v58  ;;  %v9910_v3 = vld [vmem:[#allocation2 + $0xb44] ss:$16 sps:$4 sm:$0xff]   ;;  %v9918_v59 = vld [vmem:[#allocation2 + $0x920] ss:$16 sps:$4 sm:$0xff]   ;;  %v9955_v47 = vld [vmem:[#allocation2 + $0xa6c] ss:$16 sps:$4 sm:$0xff]  }
 0xa26   :  { %6850 = vmatprep.subr.bf16.mxu1 %v9874_v26  ;;  %v9914_v27 = vld [vmem:[#allocation2 + $0x924] ss:$16 sps:$4 sm:$0xff]   ;;  %v9919_v6 = vld [vmem:[#allocation2 + $0xb20] ss:$16 sps:$4 sm:$0xff]   ;;  %v9950_v58 = vld [vmem:[#allocation2 + $0x868] ss:$16 sps:$4 sm:$0xff]  }
 0xa27   :  { %v9916_v29 = vld [vmem:[#allocation2 + $0xb24] ss:$16 sps:$4 sm:$0xff]   ;;  %v9924_v61 = vld [vmem:[#allocation2 + $0x900] ss:$16 sps:$4 sm:$0xff]   ;;  %v9961_v26 = vld [vmem:[#allocation2 + $0xa4c] ss:$16 sps:$4 sm:$0xff]  }
 0xa28   :  { %6810 = vmatpush1.bf16.msra.mxu0 %v9876_v4  ;;  %v9920_v48 = vld [vmem:[#allocation2 + $0x904] ss:$16 sps:$4 sm:$0xff]   ;;  %v9925_v54 = vld [vmem:[#allocation2 + $0xb00] ss:$16 sps:$4 sm:$0xff]   ;;  %v9956_v4 = vld [vmem:[#allocation2 + $0x848] ss:$16 sps:$4 sm:$0xff]  }
 0xa29   :  { %6851 = vmatpush1.bf16.msra.mxu1 %v9877_v14  ;;  %6811 = vmatprep.subr.bf16.mxu0 %v9878_v39  ;;  %v9922_v19 = vld [vmem:[#allocation2 + $0xb04] ss:$16 sps:$4 sm:$0xff]   ;;  %v9959_v14 = vld [vmem:[#allocation2 + $0xa48] ss:$16 sps:$4 sm:$0xff]   ;;  %v9964_v39 = vld [vmem:[#allocation2 + $0x82c] ss:$16 sps:$4 sm:$0xff]  }
 0xa2a   :  { %6852 = vmatprep.subr.bf16.mxu1 %v9880_v15  ;;  %v9967_v15 = vld [vmem:[#allocation2 + $0xa2c] ss:$16 sps:$4 sm:$0xff]  }
 0xa2c   :  { %6812 = vmatpush2.bf16.msra.mxu0 %v9882_v37  ;;  %v9962_v37 = vld [vmem:[#allocation2 + $0x828] ss:$16 sps:$4 sm:$0xff]  }
 0xa2d   :  { %6853 = vmatpush2.bf16.msra.mxu1 %v9883_v34  ;;  %6813 = vmatprep.subr.bf16.mxu0 %v9884_v51  ;;  %v9965_v34 = vld [vmem:[#allocation2 + $0xa28] ss:$16 sps:$4 sm:$0xff]   ;;  %v9970_v51 = vld [vmem:[#allocation2 + $0x80c] ss:$16 sps:$4 sm:$0xff]  }
 0xa2e   :  { %6854 = vmatprep.subr.bf16.mxu1 %v9886_v55  ;;  %v9973_v55 = vld [vmem:[#allocation2 + $0xa0c] ss:$16 sps:$4 sm:$0xff]  }
 0xa30   :  { %6814 = vmatpush2.bf16.msra.mxu0 %v9888_v63  ;;  %v9968_v63 = vld [vmem:[#allocation2 + $0x808] ss:$16 sps:$4 sm:$0xff]  }
 0xa31   :  { %6855 = vmatpush2.bf16.msra.mxu1 %v9889_v20  ;;  %6815 = vmatprep.subr.bf16.mxu0 %v9890_v52  ;;  %v9971_v20 = vld [vmem:[#allocation2 + $0xa08] ss:$16 sps:$4 sm:$0xff]   ;;  %v9976_v52 = vld [vmem:[#allocation2 + $0x9ec] ss:$16 sps:$4 sm:$0xff]  }
 0xa32   :  { %6856 = vmatprep.subr.bf16.mxu1 %v9892_v57  ;;  %v9979_v57 = vld [vmem:[#allocation2 + $0xbec] ss:$16 sps:$4 sm:$0xff]  }
 0xa34   :  { %6816 = vmatpush2.bf16.msra.mxu0 %v9894_v1  ;;  %v9974_v1 = vld [vmem:[#allocation2 + $0x9e8] ss:$16 sps:$4 sm:$0xff]  }
 0xa35   :  { %6857 = vmatpush2.bf16.msra.mxu1 %v9895_v23  ;;  %6817 = vmatprep.subr.bf16.mxu0 %v9896_v5  ;;  %v9977_v23 = vld [vmem:[#allocation2 + $0xbe8] ss:$16 sps:$4 sm:$0xff]   ;;  %v9982_v5 = vld [vmem:[#allocation2 + $0x9cc] ss:$16 sps:$4 sm:$0xff]  }
 0xa36   :  { %6858 = vmatprep.subr.bf16.mxu1 %v9898_v32  ;;  %v9985_v32 = vld [vmem:[#allocation2 + $0xbcc] ss:$16 sps:$4 sm:$0xff]  }
 0xa38   :  { %6818 = vmatpush2.bf16.msra.mxu0 %v9900_v30  ;;  %v9980_v30 = vld [vmem:[#allocation2 + $0x9c8] ss:$16 sps:$4 sm:$0xff]  }
 0xa39   :  { %6859 = vmatpush2.bf16.msra.mxu1 %v9901_v43  ;;  %6819 = vmatprep.subr.bf16.mxu0 %v9902_v11  ;;  %v9983_v43 = vld [vmem:[#allocation2 + $0xbc8] ss:$16 sps:$4 sm:$0xff]   ;;  %v9988_v11 = vld [vmem:[#allocation2 + $0x9ac] ss:$16 sps:$4 sm:$0xff]  }
 0xa3a   :  { %6860 = vmatprep.subr.bf16.mxu1 %v9904_v31  ;;  %v9991_v31 = vld [vmem:[#allocation2 + $0xbac] ss:$16 sps:$4 sm:$0xff]  }
 0xa3c   :  { %6820 = vmatpush2.bf16.msra.mxu0 %v9906_v17  ;;  %v9986_v17 = vld [vmem:[#allocation2 + $0x9a8] ss:$16 sps:$4 sm:$0xff]  }
 0xa3d   :  { %6861 = vmatpush2.bf16.msra.mxu1 %v9907_v33  ;;  %6821 = vmatprep.subr.bf16.mxu0 %v9908_v16  ;;  %v9989_v33 = vld [vmem:[#allocation2 + $0xba8] ss:$16 sps:$4 sm:$0xff]   ;;  %v9994_v16 = vld [vmem:[#allocation2 + $0x98c] ss:$16 sps:$4 sm:$0xff]  }
 0xa3e   :  { %6862 = vmatprep.subr.bf16.mxu1 %v9910_v3  ;;  %v9997_v3 = vld [vmem:[#allocation2 + $0xb8c] ss:$16 sps:$4 sm:$0xff]  }
 0xa40   :  { %6822 = vmatpush2.bf16.msra.mxu0 %v9912_v42  ;;  %v9992_v42 = vld [vmem:[#allocation2 + $0x988] ss:$16 sps:$4 sm:$0xff]  }
 0xa41   :  { %6863 = vmatpush2.bf16.msra.mxu1 %v9913_v53  ;;  %6823 = vmatprep.subr.bf16.mxu0 %v9914_v27  ;;  %v9995_v53 = vld [vmem:[#allocation2 + $0xb88] ss:$16 sps:$4 sm:$0xff]   ;;  %v10000_v27 = vld [vmem:[#allocation2 + $0x96c] ss:$16 sps:$4 sm:$0xff]  }
 0xa42   :  { %6864 = vmatprep.subr.bf16.mxu1 %v9916_v29  ;;  %v10003_v29 = vld [vmem:[#allocation2 + $0xb6c] ss:$16 sps:$4 sm:$0xff]  }
 0xa44   :  { %6824 = vmatpush2.bf16.msra.mxu0 %v9918_v59  ;;  %v9998_v59 = vld [vmem:[#allocation2 + $0x968] ss:$16 sps:$4 sm:$0xff]  }
 0xa45   :  { %6865 = vmatpush2.bf16.msra.mxu1 %v9919_v6  ;;  %6825 = vmatprep.subr.bf16.mxu0 %v9920_v48  ;;  %v10001_v6 = vld [vmem:[#allocation2 + $0xb68] ss:$16 sps:$4 sm:$0xff]   ;;  %v10006_v48 = vld [vmem:[#allocation2 + $0x94c] ss:$16 sps:$4 sm:$0xff]  }
 0xa46   :  { %6866 = vmatprep.subr.bf16.mxu1 %v9922_v19  ;;  %v10009_v19 = vld [vmem:[#allocation2 + $0xb4c] ss:$16 sps:$4 sm:$0xff]  }
 0xa48   :  { %6826 = vmatpush2.bf16.msra.mxu0 %v9924_v61  ;;  %v10004_v61 = vld [vmem:[#allocation2 + $0x948] ss:$16 sps:$4 sm:$0xff]  }
 0xa49   :  { %6867 = vmatpush2.bf16.msra.mxu1 %v9925_v54  ;;  %6877 = vmatprep.subr.bf16.mxu0 %v9928_v44  ;;  %v10007_v54 = vld [vmem:[#allocation2 + $0xb48] ss:$16 sps:$4 sm:$0xff]   ;;  %v10012_v44 = vld [vmem:[#allocation2 + $0x92c] ss:$16 sps:$4 sm:$0xff]  }
 0xa4a   :  { %6918 = vmatprep.subr.bf16.mxu1 %v9931_v60  ;;  %v10015_v60 = vld [vmem:[#allocation2 + $0xb2c] ss:$16 sps:$4 sm:$0xff]  }
 0xa4b   :  { %6828 = vmatmul.mubr.bf16.vlgmr.msra.gmra.mxu0 %v12111_v7 }
 0xa4c   :  { %6869 = vmatmul.mubr.bf16.vlgmr.msra.gmra.mxu1 %v12115_v21  ;;  %6878 = vmatpush1.bf16.msra.mxu0 %v9926_v56  ;;  %v10010_v56 = vld [vmem:[#allocation2 + $0x928] ss:$16 sps:$4 sm:$0xff]  }
 0xa4d   :  { %6919 = vmatpush1.bf16.msra.mxu1 %v9929_v62  ;;  %6879 = vmatprep.subr.bf16.mxu0 %v9934_v46  ;;  %v10013_v62 = vld [vmem:[#allocation2 + $0xb28] ss:$16 sps:$4 sm:$0xff]   ;;  %v10018_v46 = vld [vmem:[#allocation2 + $0x90c] ss:$16 sps:$4 sm:$0xff]  }
 0xa4e   :  { %6920 = vmatprep.subr.bf16.mxu1 %v9937_v10  ;;  %6909 = vmatprep.mubr.bf16.mxu0 %v12101_v41  ;;  %v9953_v41 = vld [vmem:[#allocation2 + $0xa68] ss:$16 sps:$4 sm:$0xff]   ;;  %v10021_v10 = vld [vmem:[#allocation2 + $0xb0c] ss:$16 sps:$4 sm:$0xff]  }
 0xa4f   :  { %6950 = vmatprep.mubr.bf16.mxu1 %v12106_v25  ;;  %v9958_v25 = vld [vmem:[#allocation2 + $0x84c] ss:$16 sps:$4 sm:$0xff]  }
 0xa50   :  { %6880 = vmatpush1.bf16.msra.mxu0 %v9932_v2  ;;  %v10016_v2 = vld [vmem:[#allocation2 + $0x908] ss:$16 sps:$4 sm:$0xff]  }
 0xa51   :  { %6921 = vmatpush1.bf16.msra.mxu1 %v9935_v35  ;;  %6881 = vmatprep.subr.bf16.mxu0 %v9940_v0  ;;  %v10019_v35 = vld [vmem:[#allocation2 + $0xb08] ss:$16 sps:$4 sm:$0xff]  }
 0xa52   :  { %6922 = vmatprep.subr.bf16.mxu1 %v9943_v38 }
 0xa54   :  { %6882 = vmatpush1.bf16.msra.mxu0 %v9938_v9 }
 0xa55   :  { %6923 = vmatpush1.bf16.msra.mxu1 %v9941_v28  ;;  %6883 = vmatprep.subr.bf16.mxu0 %v9946_v22 }
 0xa56   :  { %6924 = vmatprep.subr.bf16.mxu1 %v9949_v8 }
 0xa58   :  { %6884 = vmatpush1.bf16.msra.mxu0 %v9944_v18 }
 0xa59   :  { %6925 = vmatpush1.bf16.msra.mxu1 %v9947_v24  ;;  %6885 = vmatprep.subr.bf16.mxu0 %v9952_v40 }
 0xa5a   :  { %6926 = vmatprep.subr.bf16.mxu1 %v9955_v47 }
 0xa5c   :  { %6886 = vmatpush1.bf16.msra.mxu0 %v9950_v58 }
 0xa5d   :  { %6927 = vmatpush1.bf16.msra.mxu1 %v9953_v41  ;;  %6887 = vmatprep.subr.bf16.mxu0 %v9958_v25 }
 0xa5e   :  { %6928 = vmatprep.subr.bf16.mxu1 %v9961_v26 }
 0xa60   :  { %6888 = vmatpush1.bf16.msra.mxu0 %v9956_v4 }
 0xa61   :  { %6929 = vmatpush1.bf16.msra.mxu1 %v9959_v14  ;;  %6889 = vmatprep.subr.bf16.mxu0 %v9964_v39 }
 0xa62   :  { %6930 = vmatprep.subr.bf16.mxu1 %v9967_v15 }
 0xa64   :  { %6890 = vmatpush1.bf16.msra.mxu0 %v9962_v37 }
 0xa65   :  { %6931 = vmatpush1.bf16.msra.mxu1 %v9965_v34  ;;  %6891 = vmatprep.subr.bf16.mxu0 %v9970_v51 }
 0xa66   :  { %6932 = vmatprep.subr.bf16.mxu1 %v9973_v55 }
 0xa68   :  { %6892 = vmatpush1.bf16.msra.mxu0 %v9968_v63 }
 0xa69   :  { %6933 = vmatpush1.bf16.msra.mxu1 %v9971_v20  ;;  %6893 = vmatprep.subr.bf16.mxu0 %v9976_v52 }
 0xa6a   :  { %6934 = vmatprep.subr.bf16.mxu1 %v9979_v57 }
 0xa6c   :  { %6894 = vmatpush2.bf16.msra.mxu0 %v9974_v1 }
 0xa6d   :  { %6935 = vmatpush2.bf16.msra.mxu1 %v9977_v23  ;;  %6895 = vmatprep.subr.bf16.mxu0 %v9982_v5 }
 0xa6e   :  { %6936 = vmatprep.subr.bf16.mxu1 %v9985_v32 }
 0xa70   :  { %6896 = vmatpush2.bf16.msra.mxu0 %v9980_v30 }
 0xa71   :  { %6937 = vmatpush2.bf16.msra.mxu1 %v9983_v43  ;;  %6897 = vmatprep.subr.bf16.mxu0 %v9988_v11 }
 0xa72   :  { %6938 = vmatprep.subr.bf16.mxu1 %v9991_v31 }
 0xa74   :  { %6898 = vmatpush2.bf16.msra.mxu0 %v9986_v17 }
 0xa75   :  { %6939 = vmatpush2.bf16.msra.mxu1 %v9989_v33  ;;  %6899 = vmatprep.subr.bf16.mxu0 %v9994_v16 }
 0xa76   :  { %6940 = vmatprep.subr.bf16.mxu1 %v9997_v3 }
 0xa78   :  { %6900 = vmatpush2.bf16.msra.mxu0 %v9992_v42 }
 0xa79   :  { %6941 = vmatpush2.bf16.msra.mxu1 %v9995_v53  ;;  %6901 = vmatprep.subr.bf16.mxu0 %v10000_v27 }
 0xa7a   :  { %6942 = vmatprep.subr.bf16.mxu1 %v10003_v29 }
 0xa7c   :  { %6902 = vmatpush2.bf16.msra.mxu0 %v9998_v59 }
 0xa7d   :  { %6943 = vmatpush2.bf16.msra.mxu1 %v10001_v6  ;;  %6903 = vmatprep.subr.bf16.mxu0 %v10006_v48 }
 0xa7e   :  { %6944 = vmatprep.subr.bf16.mxu1 %v10009_v19 }
 0xa80   :  { %6904 = vmatpush2.bf16.msra.mxu0 %v10004_v61 }
 0xa81   :  { %6945 = vmatpush2.bf16.msra.mxu1 %v10007_v54  ;;  %6905 = vmatprep.subr.bf16.mxu0 %v10012_v44 }
 0xa82   :  { %6946 = vmatprep.subr.bf16.mxu1 %v10015_v60 }
 0xa84   :  { %6906 = vmatpush2.bf16.msra.mxu0 %v10010_v56 }
 0xa85   :  { %6947 = vmatpush2.bf16.msra.mxu1 %v10013_v62  ;;  %6907 = vmatprep.subr.bf16.mxu0 %v10018_v46 }
 0xa86   :  { %6948 = vmatprep.subr.bf16.mxu1 %v10021_v10 }
 0xa88   :  { %6908 = vmatpush2.bf16.msra.mxu0 %v10016_v2 }
 0xa89   :  { %6949 = vmatpush2.bf16.msra.mxu1 %v10019_v35 }
 0xa8b   :  { %6910 = vmatmul.mubr.bf16.vlgmr.msra.gmra.mxu0 %v12111_v7 }
 0xa8c   :  { %6951 = vmatmul.mubr.bf16.vlgmr.msra.gmra.mxu1 %v12115_v21 }
 0xb0b   :  { %v6829_v0 = vpop.f32.mrf.mxu0 }
 0xb0c   :  { %v6870_v38 = vpop.f32.mrf.mxu1 }
 0xb0d   :  { %v6871_v9 = vadd.f32 %v6870_v38, %v6829_v0  ;;  %v6831_v28 = vpop.f32.mrf.mxu0 }
 0xb0e   :  { %v6872_v22 = vpop.f32.mrf.mxu1 }
 0xb0f   :  { %v12124_v8 = vadd.f32 %v6871_v9, %v12086_v50  ;;  %v6873_v18 = vadd.f32 %v6872_v22, %v6831_v28  ;;  %v6833_v24 = vpop.f32.mrf.mxu0 }
 0xb10   :  { %v6874_v40 = vpop.f32.mrf.mxu1 }
 0xb11   :  { %v12127_v47 = vadd.f32 %v6873_v18, %v12088_v49  ;;  %v6834_v58 = vpop.f32.mrf.mxu0 }
 0xb12   :  { %v6875_v41 = vpop.f32.mrf.mxu1 }
 0xb4b   :  { %v6911_v25 = vpop.f32.mrf.mxu0 }
 0xb4c   :  { %v6952_v7 = vpop.f32.mrf.mxu1 }
 0xb4d   :  { %v6953_v26 = vadd.f32 %v6952_v7, %v6911_v25  ;;  %v6913_v21 = vpop.f32.mrf.mxu0 }
 0xb4e   :  { %v6954_v4 = vpop.f32.mrf.mxu1 }
 0xb4f   :  { %v12130_v14 = vadd.f32 %v6953_v26, %v12090_v12  ;;  %v6955_v39 = vadd.f32 %v6954_v4, %v6913_v21  ;;  %v6915_v15 = vpop.f32.mrf.mxu0 }
 0xb50   :  { %v6956_v50 = vpop.f32.mrf.mxu1 }
 0xb51   :  { %v12133_v37 = vadd.f32 %v6955_v39, %v12092_v36  ;;  %v6916_v34 = vpop.f32.mrf.mxu0 }
 0xb52   :  { %v6957_v51 = vpop.f32.mrf.mxu1 }
 0xb53   :  { %10521 = dma.done.wait [#allocation3 + $0x3], 16384 }
 0xb54   :  { %10522 = vsyncadd [#allocation3 + $0x3], 4294950912  ;;  %v7093_v49 = vcombine.high %v12444_v13, %v12444_v13  ;;  %v10022_v20 = vld [vmem:[#allocation2 + $0xce4] ss:$16 sps:$4 sm:$0xff]   ;;  %v10026_v57 = vld [vmem:[#allocation2 + $0xce0] ss:$16 sps:$4 sm:$0xff]  }
 0xb55   :  { %v10024_v52 = vld [vmem:[#allocation2 + $0xee4] ss:$16 sps:$4 sm:$0xff]   ;;  %7762 = vmatprep.subr.bf16.mxu0 %v10022_v20  ;;  %v10027_v13 = vld [vmem:[#allocation2 + $0xee0] ss:$16 sps:$4 sm:$0xff]  }
 0xb56   :  { %v12138_v55 = vrot.slane %v7093_v49, %v11503_v45  ;;  %7803 = vmatprep.subr.bf16.mxu1 %v10024_v52  ;;  %v10028_v1 = vld [vmem:[#allocation2 + $0xcc4] ss:$16 sps:$4 sm:$0xff]   ;;  %7763 = vmatpush1.bf16.msra.mxu0 %v10026_v57  ;;  %v10032_v5 = vld [vmem:[#allocation2 + $0xcc0] ss:$16 sps:$4 sm:$0xff]  }
 0xb57   :  { %7804 = vmatpush1.bf16.msra.mxu1 %v10027_v13  ;;  %v10030_v23 = vld [vmem:[#allocation2 + $0xec4] ss:$16 sps:$4 sm:$0xff]   ;;  %7764 = vmatprep.subr.bf16.mxu0 %v10028_v1  ;;  %v10033_v32 = vld [vmem:[#allocation2 + $0xec0] ss:$16 sps:$4 sm:$0xff]  }
 0xb58   :  { %v7101_v12 = vcombine.high %v12138_v55, %v12138_v55  ;;  %7805 = vmatprep.subr.bf16.mxu1 %v10030_v23  ;;  %v10034_v30 = vld [vmem:[#allocation2 + $0xca4] ss:$16 sps:$4 sm:$0xff]   ;;  %v10038_v11 = vld [vmem:[#allocation2 + $0xca0] ss:$16 sps:$4 sm:$0xff]  }
 0xb59   :  { %v10036_v43 = vld [vmem:[#allocation2 + $0xea4] ss:$16 sps:$4 sm:$0xff]   ;;  %v10039_v31 = vld [vmem:[#allocation2 + $0xea0] ss:$16 sps:$4 sm:$0xff]  }
 0xb5a   :  { %v12143_v63 = vrot.slane %v7101_v12, %v11503_v45  ;;  %7765 = vmatpush1.bf16.msra.mxu0 %v10032_v5  ;;  %v10040_v17 = vld [vmem:[#allocation2 + $0xc84] ss:$16 sps:$4 sm:$0xff]   ;;  %v10044_v16 = vld [vmem:[#allocation2 + $0xc80] ss:$16 sps:$4 sm:$0xff]  }
 0xb5b   :  { %7806 = vmatpush1.bf16.msra.mxu1 %v10033_v32  ;;  %7766 = vmatprep.subr.bf16.mxu0 %v10034_v30  ;;  %v10042_v33 = vld [vmem:[#allocation2 + $0xe84] ss:$16 sps:$4 sm:$0xff]   ;;  %v10045_v3 = vld [vmem:[#allocation2 + $0xe80] ss:$16 sps:$4 sm:$0xff]   ;;  %v12153_v30 = vrot.slane %v12138_v55, %v11503_v45  ;;  %v10124_v45 = vld [vmem:[#allocation2 + $0xcc8] ss:$16 sps:$4 sm:$0xff]  }
 0xb5c   :  { %7794 = vmatprep.mubr.bf16.mxu0 %v12143_v63  ;;  %v12148_v36 = vcombine.high %v12143_v63, %v12143_v63  ;;  %7807 = vmatprep.subr.bf16.mxu1 %v10036_v43  ;;  %v10046_v42 = vld [vmem:[#allocation2 + $0xc64] ss:$16 sps:$4 sm:$0xff]   ;;  %v10050_v27 = vld [vmem:[#allocation2 + $0xc60] ss:$16 sps:$4 sm:$0xff]   ;;  %v10120_v43 = vld [vmem:[#allocation2 + $0xcec] ss:$16 sps:$4 sm:$0xff]  }
 0xb5d   :  { %v10048_v53 = vld [vmem:[#allocation2 + $0xe64] ss:$16 sps:$4 sm:$0xff]   ;;  %v10051_v29 = vld [vmem:[#allocation2 + $0xe60] ss:$16 sps:$4 sm:$0xff]   ;;  %v10127_v55 = vld [vmem:[#allocation2 + $0xec8] ss:$16 sps:$4 sm:$0xff]  }
 0xb5e   :  { %7835 = vmatprep.mubr.bf16.mxu1 %v12148_v36  ;;  %7767 = vmatpush1.bf16.msra.mxu0 %v10038_v11  ;;  %v10052_v59 = vld [vmem:[#allocation2 + $0xc44] ss:$16 sps:$4 sm:$0xff]   ;;  %v10056_v48 = vld [vmem:[#allocation2 + $0xc40] ss:$16 sps:$4 sm:$0xff]   ;;  %v10123_v11 = vld [vmem:[#allocation2 + $0xeec] ss:$16 sps:$4 sm:$0xff]  }
 0xb5f   :  { %7808 = vmatpush1.bf16.msra.mxu1 %v10039_v31  ;;  %7768 = vmatprep.subr.bf16.mxu0 %v10040_v17  ;;  %v10054_v6 = vld [vmem:[#allocation2 + $0xe44] ss:$16 sps:$4 sm:$0xff]   ;;  %v10057_v19 = vld [vmem:[#allocation2 + $0xe40] ss:$16 sps:$4 sm:$0xff]   ;;  %v12157_v31 = vcombine.high %v12153_v30, %v12153_v30  ;;  %v10118_v17 = vld [vmem:[#allocation2 + $0xce8] ss:$16 sps:$4 sm:$0xff]  }
 0xb60   :  { %7809 = vmatprep.subr.bf16.mxu1 %v10042_v33  ;;  %v10058_v61 = vld [vmem:[#allocation2 + $0xc24] ss:$16 sps:$4 sm:$0xff]   ;;  %v10062_v44 = vld [vmem:[#allocation2 + $0xc20] ss:$16 sps:$4 sm:$0xff]   ;;  %v10121_v33 = vld [vmem:[#allocation2 + $0xee8] ss:$16 sps:$4 sm:$0xff]  }
 0xb61   :  { %v10060_v54 = vld [vmem:[#allocation2 + $0xe24] ss:$16 sps:$4 sm:$0xff]   ;;  %v10063_v60 = vld [vmem:[#allocation2 + $0xe20] ss:$16 sps:$4 sm:$0xff]  }
 0xb62   :  { %7769 = vmatpush1.bf16.msra.mxu0 %v10044_v16  ;;  %v10064_v56 = vld [vmem:[#allocation2 + $0xc04] ss:$16 sps:$4 sm:$0xff]   ;;  %v10068_v46 = vld [vmem:[#allocation2 + $0xc00] ss:$16 sps:$4 sm:$0xff]   ;;  %v10126_v16 = vld [vmem:[#allocation2 + $0xccc] ss:$16 sps:$4 sm:$0xff]  }
 0xb63   :  { %7810 = vmatpush1.bf16.msra.mxu1 %v10045_v3  ;;  %7770 = vmatprep.subr.bf16.mxu0 %v10046_v42  ;;  %v10066_v62 = vld [vmem:[#allocation2 + $0xe04] ss:$16 sps:$4 sm:$0xff]   ;;  %v10069_v10 = vld [vmem:[#allocation2 + $0xe00] ss:$16 sps:$4 sm:$0xff]   ;;  %v10129_v3 = vld [vmem:[#allocation2 + $0xecc] ss:$16 sps:$4 sm:$0xff]  }
 0xb64   :  { %7811 = vmatprep.subr.bf16.mxu1 %v10048_v53  ;;  %v10070_v2 = vld [vmem:[#allocation2 + $0xde4] ss:$16 sps:$4 sm:$0xff]   ;;  %v10074_v0 = vld [vmem:[#allocation2 + $0xde0] ss:$16 sps:$4 sm:$0xff]   ;;  %v10132_v42 = vld [vmem:[#allocation2 + $0xcac] ss:$16 sps:$4 sm:$0xff]  }
 0xb65   :  { %v10072_v35 = vld [vmem:[#allocation2 + $0xfe4] ss:$16 sps:$4 sm:$0xff]   ;;  %v10075_v38 = vld [vmem:[#allocation2 + $0xfe0] ss:$16 sps:$4 sm:$0xff]   ;;  %v10135_v53 = vld [vmem:[#allocation2 + $0xeac] ss:$16 sps:$4 sm:$0xff]  }
 0xb66   :  { %7771 = vmatpush1.bf16.msra.mxu0 %v10050_v27  ;;  %v10076_v9 = vld [vmem:[#allocation2 + $0xdc4] ss:$16 sps:$4 sm:$0xff]   ;;  %v10080_v22 = vld [vmem:[#allocation2 + $0xdc0] ss:$16 sps:$4 sm:$0xff]   ;;  %v10130_v27 = vld [vmem:[#allocation2 + $0xca8] ss:$16 sps:$4 sm:$0xff]  }
 0xb67   :  { %7812 = vmatpush1.bf16.msra.mxu1 %v10051_v29  ;;  %7772 = vmatprep.subr.bf16.mxu0 %v10052_v59  ;;  %v10078_v28 = vld [vmem:[#allocation2 + $0xfc4] ss:$16 sps:$4 sm:$0xff]   ;;  %v10081_v18 = vld [vmem:[#allocation2 + $0xfc0] ss:$16 sps:$4 sm:$0xff]   ;;  %v10133_v29 = vld [vmem:[#allocation2 + $0xea8] ss:$16 sps:$4 sm:$0xff]  }
 0xb68   :  { %7813 = vmatprep.subr.bf16.mxu1 %v10054_v6  ;;  %v10082_v24 = vld [vmem:[#allocation2 + $0xda4] ss:$16 sps:$4 sm:$0xff]   ;;  %v10086_v58 = vld [vmem:[#allocation2 + $0xda0] ss:$16 sps:$4 sm:$0xff]   ;;  %v10138_v59 = vld [vmem:[#allocation2 + $0xc8c] ss:$16 sps:$4 sm:$0xff]  }
 0xb69   :  { %v10084_v40 = vld [vmem:[#allocation2 + $0xfa4] ss:$16 sps:$4 sm:$0xff]   ;;  %v10087_v41 = vld [vmem:[#allocation2 + $0xfa0] ss:$16 sps:$4 sm:$0xff]   ;;  %v10141_v6 = vld [vmem:[#allocation2 + $0xe8c] ss:$16 sps:$4 sm:$0xff]  }
 0xb6a   :  { %7773 = vmatpush1.bf16.msra.mxu0 %v10056_v48  ;;  %v10088_v25 = vld [vmem:[#allocation2 + $0xd84] ss:$16 sps:$4 sm:$0xff]   ;;  %v10092_v26 = vld [vmem:[#allocation2 + $0xd80] ss:$16 sps:$4 sm:$0xff]   ;;  %v10136_v48 = vld [vmem:[#allocation2 + $0xc88] ss:$16 sps:$4 sm:$0xff]  }
 0xb6b   :  { %7814 = vmatpush1.bf16.msra.mxu1 %v10057_v19  ;;  %7774 = vmatprep.subr.bf16.mxu0 %v10058_v61  ;;  %v10090_v7 = vld [vmem:[#allocation2 + $0xf84] ss:$16 sps:$4 sm:$0xff]   ;;  %v10093_v21 = vld [vmem:[#allocation2 + $0xf80] ss:$16 sps:$4 sm:$0xff]   ;;  %v10139_v19 = vld [vmem:[#allocation2 + $0xe88] ss:$16 sps:$4 sm:$0xff]  }
 0xb6c   :  { %7815 = vmatprep.subr.bf16.mxu1 %v10060_v54  ;;  %v10094_v4 = vld [vmem:[#allocation2 + $0xd64] ss:$16 sps:$4 sm:$0xff]   ;;  %v10098_v15 = vld [vmem:[#allocation2 + $0xd60] ss:$16 sps:$4 sm:$0xff]   ;;  %v10144_v61 = vld [vmem:[#allocation2 + $0xc6c] ss:$16 sps:$4 sm:$0xff]  }
 0xb6d   :  { %v10096_v39 = vld [vmem:[#allocation2 + $0xf64] ss:$16 sps:$4 sm:$0xff]   ;;  %v10099_v50 = vld [vmem:[#allocation2 + $0xf60] ss:$16 sps:$4 sm:$0xff]   ;;  %v10147_v54 = vld [vmem:[#allocation2 + $0xe6c] ss:$16 sps:$4 sm:$0xff]  }
 0xb6e   :  { %7775 = vmatpush1.bf16.msra.mxu0 %v10062_v44  ;;  %v10100_v34 = vld [vmem:[#allocation2 + $0xd44] ss:$16 sps:$4 sm:$0xff]   ;;  %v10104_v49 = vld [vmem:[#allocation2 + $0xd40] ss:$16 sps:$4 sm:$0xff]   ;;  %v10142_v44 = vld [vmem:[#allocation2 + $0xc68] ss:$16 sps:$4 sm:$0xff]  }
 0xb6f   :  { %7816 = vmatpush1.bf16.msra.mxu1 %v10063_v60  ;;  %7776 = vmatprep.subr.bf16.mxu0 %v10064_v56  ;;  %v10102_v51 = vld [vmem:[#allocation2 + $0xf44] ss:$16 sps:$4 sm:$0xff]   ;;  %v10105_v12 = vld [vmem:[#allocation2 + $0xf40] ss:$16 sps:$4 sm:$0xff]   ;;  %v10153_v60 = vld [vmem:[#allocation2 + $0xe4c] ss:$16 sps:$4 sm:$0xff]  }
 0xb70   :  { %7817 = vmatprep.subr.bf16.mxu1 %v10066_v62  ;;  %v10106_v20 = vld [vmem:[#allocation2 + $0xd24] ss:$16 sps:$4 sm:$0xff]   ;;  %v10110_v57 = vld [vmem:[#allocation2 + $0xd20] ss:$16 sps:$4 sm:$0xff]   ;;  %v10148_v56 = vld [vmem:[#allocation2 + $0xc48] ss:$16 sps:$4 sm:$0xff]  }
 0xb71   :  { %v10108_v52 = vld [vmem:[#allocation2 + $0xf24] ss:$16 sps:$4 sm:$0xff]   ;;  %v10111_v13 = vld [vmem:[#allocation2 + $0xf20] ss:$16 sps:$4 sm:$0xff]   ;;  %v10151_v62 = vld [vmem:[#allocation2 + $0xe48] ss:$16 sps:$4 sm:$0xff]  }
 0xb72   :  { %7777 = vmatpush1.bf16.msra.mxu0 %v10068_v46  ;;  %v10112_v1 = vld [vmem:[#allocation2 + $0xd04] ss:$16 sps:$4 sm:$0xff]   ;;  %v10116_v5 = vld [vmem:[#allocation2 + $0xd00] ss:$16 sps:$4 sm:$0xff]   ;;  %v10156_v46 = vld [vmem:[#allocation2 + $0xc2c] ss:$16 sps:$4 sm:$0xff]  }
 0xb73   :  { %7818 = vmatpush1.bf16.msra.mxu1 %v10069_v10  ;;  %7778 = vmatprep.subr.bf16.mxu0 %v10070_v2  ;;  %v10114_v23 = vld [vmem:[#allocation2 + $0xf04] ss:$16 sps:$4 sm:$0xff]   ;;  %v10117_v32 = vld [vmem:[#allocation2 + $0xf00] ss:$16 sps:$4 sm:$0xff]   ;;  %v10159_v10 = vld [vmem:[#allocation2 + $0xe2c] ss:$16 sps:$4 sm:$0xff]  }
 0xb74   :  { %7819 = vmatprep.subr.bf16.mxu1 %v10072_v35  ;;  %v10154_v2 = vld [vmem:[#allocation2 + $0xc28] ss:$16 sps:$4 sm:$0xff]  }
 0xb75   :  { %v10157_v35 = vld [vmem:[#allocation2 + $0xe28] ss:$16 sps:$4 sm:$0xff]  }
 0xb76   :  { %7779 = vmatpush2.bf16.msra.mxu0 %v10074_v0  ;;  %v10162_v0 = vld [vmem:[#allocation2 + $0xc0c] ss:$16 sps:$4 sm:$0xff]  }
 0xb77   :  { %7820 = vmatpush2.bf16.msra.mxu1 %v10075_v38  ;;  %7780 = vmatprep.subr.bf16.mxu0 %v10076_v9  ;;  %v10165_v38 = vld [vmem:[#allocation2 + $0xe0c] ss:$16 sps:$4 sm:$0xff]   ;;  %v10160_v9 = vld [vmem:[#allocation2 + $0xc08] ss:$16 sps:$4 sm:$0xff]  }
 0xb78   :  { %7821 = vmatprep.subr.bf16.mxu1 %v10078_v28  ;;  %v10163_v28 = vld [vmem:[#allocation2 + $0xe08] ss:$16 sps:$4 sm:$0xff]  }
 0xb7a   :  { %7781 = vmatpush2.bf16.msra.mxu0 %v10080_v22  ;;  %v10168_v22 = vld [vmem:[#allocation2 + $0xdec] ss:$16 sps:$4 sm:$0xff]  }
 0xb7b   :  { %7822 = vmatpush2.bf16.msra.mxu1 %v10081_v18  ;;  %7782 = vmatprep.subr.bf16.mxu0 %v10082_v24  ;;  %v10171_v18 = vld [vmem:[#allocation2 + $0xfec] ss:$16 sps:$4 sm:$0xff]   ;;  %v10166_v24 = vld [vmem:[#allocation2 + $0xde8] ss:$16 sps:$4 sm:$0xff]  }
 0xb7c   :  { %7823 = vmatprep.subr.bf16.mxu1 %v10084_v40  ;;  %v10169_v40 = vld [vmem:[#allocation2 + $0xfe8] ss:$16 sps:$4 sm:$0xff]  }
 0xb7e   :  { %7783 = vmatpush2.bf16.msra.mxu0 %v10086_v58  ;;  %v10174_v58 = vld [vmem:[#allocation2 + $0xdcc] ss:$16 sps:$4 sm:$0xff]  }
 0xb7f   :  { %7824 = vmatpush2.bf16.msra.mxu1 %v10087_v41  ;;  %7784 = vmatprep.subr.bf16.mxu0 %v10088_v25  ;;  %v10177_v41 = vld [vmem:[#allocation2 + $0xfcc] ss:$16 sps:$4 sm:$0xff]   ;;  %v10172_v25 = vld [vmem:[#allocation2 + $0xdc8] ss:$16 sps:$4 sm:$0xff]  }
 0xb80   :  { %7825 = vmatprep.subr.bf16.mxu1 %v10090_v7  ;;  %v10175_v7 = vld [vmem:[#allocation2 + $0xfc8] ss:$16 sps:$4 sm:$0xff]  }
 0xb82   :  { %7785 = vmatpush2.bf16.msra.mxu0 %v10092_v26  ;;  %v10180_v26 = vld [vmem:[#allocation2 + $0xdac] ss:$16 sps:$4 sm:$0xff]  }
 0xb83   :  { %7826 = vmatpush2.bf16.msra.mxu1 %v10093_v21  ;;  %7786 = vmatprep.subr.bf16.mxu0 %v10094_v4  ;;  %v10183_v21 = vld [vmem:[#allocation2 + $0xfac] ss:$16 sps:$4 sm:$0xff]   ;;  %v10178_v4 = vld [vmem:[#allocation2 + $0xda8] ss:$16 sps:$4 sm:$0xff]  }
 0xb84   :  { %7827 = vmatprep.subr.bf16.mxu1 %v10096_v39  ;;  %v10181_v39 = vld [vmem:[#allocation2 + $0xfa8] ss:$16 sps:$4 sm:$0xff]  }
 0xb86   :  { %7787 = vmatpush2.bf16.msra.mxu0 %v10098_v15  ;;  %v10186_v15 = vld [vmem:[#allocation2 + $0xd8c] ss:$16 sps:$4 sm:$0xff]  }
 0xb87   :  { %7828 = vmatpush2.bf16.msra.mxu1 %v10099_v50  ;;  %7788 = vmatprep.subr.bf16.mxu0 %v10100_v34  ;;  %v10189_v50 = vld [vmem:[#allocation2 + $0xf8c] ss:$16 sps:$4 sm:$0xff]   ;;  %v10184_v34 = vld [vmem:[#allocation2 + $0xd88] ss:$16 sps:$4 sm:$0xff]  }
 0xb88   :  { %7829 = vmatprep.subr.bf16.mxu1 %v10102_v51  ;;  %v10187_v51 = vld [vmem:[#allocation2 + $0xf88] ss:$16 sps:$4 sm:$0xff]  }
 0xb8a   :  { %7789 = vmatpush2.bf16.msra.mxu0 %v10104_v49  ;;  %v10192_v49 = vld [vmem:[#allocation2 + $0xd6c] ss:$16 sps:$4 sm:$0xff]  }
 0xb8b   :  { %7830 = vmatpush2.bf16.msra.mxu1 %v10105_v12  ;;  %7790 = vmatprep.subr.bf16.mxu0 %v10106_v20  ;;  %v10195_v12 = vld [vmem:[#allocation2 + $0xf6c] ss:$16 sps:$4 sm:$0xff]   ;;  %v10190_v20 = vld [vmem:[#allocation2 + $0xd68] ss:$16 sps:$4 sm:$0xff]  }
 0xb8c   :  { %7831 = vmatprep.subr.bf16.mxu1 %v10108_v52  ;;  %v10193_v52 = vld [vmem:[#allocation2 + $0xf68] ss:$16 sps:$4 sm:$0xff]  }
 0xb8e   :  { %7791 = vmatpush2.bf16.msra.mxu0 %v10110_v57  ;;  %v10198_v57 = vld [vmem:[#allocation2 + $0xd4c] ss:$16 sps:$4 sm:$0xff]  }
 0xb8f   :  { %7832 = vmatpush2.bf16.msra.mxu1 %v10111_v13  ;;  %7792 = vmatprep.subr.bf16.mxu0 %v10112_v1  ;;  %v10201_v13 = vld [vmem:[#allocation2 + $0xf4c] ss:$16 sps:$4 sm:$0xff]   ;;  %v10196_v1 = vld [vmem:[#allocation2 + $0xd48] ss:$16 sps:$4 sm:$0xff]  }
 0xb90   :  { %7833 = vmatprep.subr.bf16.mxu1 %v10114_v23  ;;  %v10199_v23 = vld [vmem:[#allocation2 + $0xf48] ss:$16 sps:$4 sm:$0xff]  }
 0xb92   :  { %7793 = vmatpush2.bf16.msra.mxu0 %v10116_v5  ;;  %v10204_v5 = vld [vmem:[#allocation2 + $0xd2c] ss:$16 sps:$4 sm:$0xff]  }
 0xb93   :  { %7834 = vmatpush2.bf16.msra.mxu1 %v10117_v32  ;;  %7844 = vmatprep.subr.bf16.mxu0 %v10120_v43  ;;  %v10207_v32 = vld [vmem:[#allocation2 + $0xf2c] ss:$16 sps:$4 sm:$0xff]   ;;  %v10202_v43 = vld [vmem:[#allocation2 + $0xd28] ss:$16 sps:$4 sm:$0xff]  }
 0xb94   :  { %7885 = vmatprep.subr.bf16.mxu1 %v10123_v11  ;;  %v10205_v11 = vld [vmem:[#allocation2 + $0xf28] ss:$16 sps:$4 sm:$0xff]  }
 0xb95   :  { %7795 = vmatmul.mubr.bf16.vlgmr.msra.gmra.mxu0 %v12153_v30 }
 0xb96   :  { %7836 = vmatmul.mubr.bf16.vlgmr.msra.gmra.mxu1 %v12157_v31  ;;  %7845 = vmatpush1.bf16.msra.mxu0 %v10118_v17  ;;  %v10210_v17 = vld [vmem:[#allocation2 + $0xd0c] ss:$16 sps:$4 sm:$0xff]  }
 0xb97   :  { %7886 = vmatpush1.bf16.msra.mxu1 %v10121_v33  ;;  %7846 = vmatprep.subr.bf16.mxu0 %v10126_v16  ;;  %v10213_v33 = vld [vmem:[#allocation2 + $0xf0c] ss:$16 sps:$4 sm:$0xff]   ;;  %v10208_v16 = vld [vmem:[#allocation2 + $0xd08] ss:$16 sps:$4 sm:$0xff]  }
 0xb98   :  { %7887 = vmatprep.subr.bf16.mxu1 %v10129_v3  ;;  %7876 = vmatprep.mubr.bf16.mxu0 %v12143_v63  ;;  %v10145_v63 = vld [vmem:[#allocation2 + $0xe68] ss:$16 sps:$4 sm:$0xff]  }
 0xb99   :  { %7917 = vmatprep.mubr.bf16.mxu1 %v12148_v36  ;;  %v10150_v36 = vld [vmem:[#allocation2 + $0xc4c] ss:$16 sps:$4 sm:$0xff]   ;;  %v10211_v3 = vld [vmem:[#allocation2 + $0xf08] ss:$16 sps:$4 sm:$0xff]  }
 0xb9a   :  { %7847 = vmatpush1.bf16.msra.mxu0 %v10124_v45 }
 0xb9b   :  { %7888 = vmatpush1.bf16.msra.mxu1 %v10127_v55  ;;  %7848 = vmatprep.subr.bf16.mxu0 %v10132_v42 }
 0xb9c   :  { %7889 = vmatprep.subr.bf16.mxu1 %v10135_v53 }
 0xb9e   :  { %7849 = vmatpush1.bf16.msra.mxu0 %v10130_v27 }
 0xb9f   :  { %7890 = vmatpush1.bf16.msra.mxu1 %v10133_v29  ;;  %7850 = vmatprep.subr.bf16.mxu0 %v10138_v59 }
 0xba0   :  { %7891 = vmatprep.subr.bf16.mxu1 %v10141_v6 }
 0xba2   :  { %7851 = vmatpush1.bf16.msra.mxu0 %v10136_v48 }
 0xba3   :  { %7892 = vmatpush1.bf16.msra.mxu1 %v10139_v19  ;;  %7852 = vmatprep.subr.bf16.mxu0 %v10144_v61 }
 0xba4   :  { %7893 = vmatprep.subr.bf16.mxu1 %v10147_v54 }
 0xba6   :  { %7853 = vmatpush1.bf16.msra.mxu0 %v10142_v44 }
 0xba7   :  { %7894 = vmatpush1.bf16.msra.mxu1 %v10145_v63  ;;  %7854 = vmatprep.subr.bf16.mxu0 %v10150_v36  ;;  %v10546_v63 = vmov 1983009808  }
 0xba8   :  { %7895 = vmatprep.subr.bf16.mxu1 %v10153_v60  ;;  %v7937_v36 = vunpack.c.l.s4 %v10546_v63 }
 0xbaa   :  { %7855 = vmatpush1.bf16.msra.mxu0 %v10148_v56 }
 0xbab   :  { %7896 = vmatpush1.bf16.msra.mxu1 %v10151_v62  ;;  %7856 = vmatprep.subr.bf16.mxu0 %v10156_v46 }
 0xbac   :  { %7897 = vmatprep.subr.bf16.mxu1 %v10159_v10 }
 0xbae   :  { %7857 = vmatpush1.bf16.msra.mxu0 %v10154_v2 }
 0xbaf   :  { %7898 = vmatpush1.bf16.msra.mxu1 %v10157_v35  ;;  %7858 = vmatprep.subr.bf16.mxu0 %v10162_v0 }
 0xbb0   :  { %7899 = vmatprep.subr.bf16.mxu1 %v10165_v38 }
 0xbb2   :  { %7859 = vmatpush1.bf16.msra.mxu0 %v10160_v9 }
 0xbb3   :  { %7900 = vmatpush1.bf16.msra.mxu1 %v10163_v28  ;;  %7860 = vmatprep.subr.bf16.mxu0 %v10168_v22 }
 0xbb4   :  { %7901 = vmatprep.subr.bf16.mxu1 %v10171_v18 }
 0xbb6   :  { %7861 = vmatpush2.bf16.msra.mxu0 %v10166_v24 }
 0xbb7   :  { %7902 = vmatpush2.bf16.msra.mxu1 %v10169_v40  ;;  %7862 = vmatprep.subr.bf16.mxu0 %v10174_v58 }
 0xbb8   :  { %7903 = vmatprep.subr.bf16.mxu1 %v10177_v41 }
 0xbba   :  { %7863 = vmatpush2.bf16.msra.mxu0 %v10172_v25 }
 0xbbb   :  { %7904 = vmatpush2.bf16.msra.mxu1 %v10175_v7  ;;  %7864 = vmatprep.subr.bf16.mxu0 %v10180_v26 }
 0xbbc   :  { %7905 = vmatprep.subr.bf16.mxu1 %v10183_v21 }
 0xbbe   :  { %7865 = vmatpush2.bf16.msra.mxu0 %v10178_v4 }
 0xbbf   :  { %7906 = vmatpush2.bf16.msra.mxu1 %v10181_v39  ;;  %7866 = vmatprep.subr.bf16.mxu0 %v10186_v15 }
 0xbc0   :  { %7907 = vmatprep.subr.bf16.mxu1 %v10189_v50 }
 0xbc2   :  { %7867 = vmatpush2.bf16.msra.mxu0 %v10184_v34 }
 0xbc3   :  { %7908 = vmatpush2.bf16.msra.mxu1 %v10187_v51  ;;  %7868 = vmatprep.subr.bf16.mxu0 %v10192_v49 }
 0xbc4   :  { %7909 = vmatprep.subr.bf16.mxu1 %v10195_v12 }
 0xbc6   :  { %7869 = vmatpush2.bf16.msra.mxu0 %v10190_v20 }
 0xbc7   :  { %7910 = vmatpush2.bf16.msra.mxu1 %v10193_v52  ;;  %7870 = vmatprep.subr.bf16.mxu0 %v10198_v57 }
 0xbc8   :  { %7911 = vmatprep.subr.bf16.mxu1 %v10201_v13 }
 0xbca   :  { %7871 = vmatpush2.bf16.msra.mxu0 %v10196_v1 }
 0xbcb   :  { %7912 = vmatpush2.bf16.msra.mxu1 %v10199_v23  ;;  %7872 = vmatprep.subr.bf16.mxu0 %v10204_v5 }
 0xbcc   :  { %7913 = vmatprep.subr.bf16.mxu1 %v10207_v32 }
 0xbce   :  { %7873 = vmatpush2.bf16.msra.mxu0 %v10202_v43 }
 0xbcf   :  { %7914 = vmatpush2.bf16.msra.mxu1 %v10205_v11  ;;  %7874 = vmatprep.subr.bf16.mxu0 %v10210_v17 }
 0xbd0   :  { %7915 = vmatprep.subr.bf16.mxu1 %v10213_v33 }
 0xbd2   :  { %7875 = vmatpush2.bf16.msra.mxu0 %v10208_v16 }
 0xbd3   :  { %7916 = vmatpush2.bf16.msra.mxu1 %v10211_v3 }
 0xbd5   :  { %7877 = vmatmul.mubr.bf16.vlgmr.msra.gmra.mxu0 %v12153_v30 }
 0xbd6   :  { %7918 = vmatmul.mubr.bf16.vlgmr.msra.gmra.mxu1 %v12157_v31  ;;  %v7938_v31 = vunpack.c.0.s8 %v7937_v36 }
 0xc55   :  { %v7796_v45 = vpop.f32.mrf.mxu0 }
 0xc56   :  { %v7837_v55 = vpop.f32.mrf.mxu1 }
 0xc57   :  { %v7838_v42 = vadd.f32 %v7837_v55, %v7796_v45  ;;  %v7798_v53 = vpop.f32.mrf.mxu0 }
 0xc58   :  { %v7839_v27 = vpop.f32.mrf.mxu1 }
 0xc59   :  { %v7926_v29 = vadd.f32 %v7838_v42, %v12124_v8  ;;  %v7840_v59 = vadd.f32 %v7839_v27, %v7798_v53  ;;  %v7800_v6 = vpop.f32.mrf.mxu0  ;;  %v12445_v8 = vld [vmem:[#allocation43_spill] sm:$0xff] }
 0xc5a   :  { %v7841_v48 = vpop.f32.mrf.mxu1  ;;  %v7941_v0 = vsub.s32 %v7938_v31, %v12445_v8 }
 0xc5b   :  { %v7927_v19 = vadd.f32 %v7840_v59, %v12127_v47  ;;  %v7801_v61 = vpop.f32.mrf.mxu0 }
 0xc5c   :  { %v7842_v54 = vpop.f32.mrf.mxu1 }
 0xc5d   :  { %v7934_v44 = vcombine.low %v7926_v29, %v7927_v19 }
 0xc5f   :  { %v7942_v18 = vrot.slane %v7934_v44, %v7941_v0 }
 0xc95   :  { %v7878_v30 = vpop.f32.mrf.mxu0 }
 0xc96   :  { %v7919_v60 = vpop.f32.mrf.mxu1 }
 0xc97   :  { %v7920_v56 = vadd.f32 %v7919_v60, %v7878_v30  ;;  %v7880_v62 = vpop.f32.mrf.mxu0 }
 0xc98   :  { %v7921_v46 = vpop.f32.mrf.mxu1 }
 0xc99   :  { %v7922_v10 = vadd.f32 %v7921_v46, %v7880_v62  ;;  %v7882_v2 = vpop.f32.mrf.mxu0  ;;  %v7928_v38 = vadd.f32 %v7920_v56, %v12130_v14 }
 0xc9a   :  { %v7923_v35 = vpop.f32.mrf.mxu1 }
 0xc9b   :  { %v7929_v47 = vadd.f32 %v7922_v10, %v12133_v37  ;;  %v7883_v9 = vpop.f32.mrf.mxu0 }
 0xc9c   :  { %v7924_v28 = vpop.f32.mrf.mxu1 }
 0xc9d   :  { %v7935_v22 = vcombine.low %v7928_v38, %v7929_v47 }
 0xc9f   :  { %v7949_v24 = vrot.slane %v7935_v22, %v7941_v0 }
 0xca1   :  { %v7950_v40 = vcombine.low %v7942_v18, %v7949_v24 }
 0xca3   :  { %7952 = vst [vmem:[%s12187_s14] sm:$0xff] %v7950_v40 }
 0xca4   :  { %7957 = vsyncpa [#allocation8], 1 }
 0xca5   :  { %7958 = vsyncpa [#allocation10], 1 }
 0xca6   :  { %7959 = vsyncpa [#allocation13], 1 }
 0xca7   :  { %7960 = vsyncpa [#allocation16], 1 }
 0xca8   :  { %7961 = vsyncpa [#allocation19], 1 }
 0xca9   :  { %7962 = vsyncpa [#allocation22], 1 }
 0xcaa   :  { %7963 = vsyncmov [#allocation3] }
 0xcad   :  { %s7964_s23 = vpop.sfrf %7963 }
 0xcae   :  { %p8917_p0 = scmp.ne.s32.totalorder %s7964_s23, 0 }
 0xcb0   :  { %7968 = shalt.err (%p8917_p0)  }
 0xcb1   :  { %7970 = vsyncmov [#allocation3 + $0x1] }
 0xcb4   :  { %s7971_s24 = vpop.sfrf %7970 }
 0xcb5   :  { %p8918_p1 = scmp.ne.s32.totalorder %s7971_s24, 0 }
 0xcb7   :  { %7975 = shalt.err (%p8918_p1)  }
 0xcb8   :  { %7977 = vsyncmov [#allocation3 + $0x2] }
 0xcbb   :  { %s7978_s25 = vpop.sfrf %7977 }
 0xcbc   :  { %p8919_p2 = scmp.ne.s32.totalorder %s7978_s25, 0 }
 0xcbe   :  { %7982 = shalt.err (%p8919_p2)  }
 0xcbf   :  { %7984 = vsyncmov [#allocation3 + $0x3] }
 0xcc2   :  { %s7985_s14 = vpop.sfrf %7984 }
 0xcc3   :  { %p8920_p3 = scmp.ne.s32.totalorder %s7985_s14, 0 }
 0xcc5   :  { %7989 = shalt.err (%p8920_p3)  }

</bundles_post_ra>
